<compile_context>
chip_gen: v7x
topology: tpu7x:2x2x1
jax: 0.10.0
libtpu: 0.0.40
codegen_flags: <defaults>
</compile_context>

<pallas_src>
import math
from functools import partial

import jax
import jax.numpy as jnp
from jax.experimental import pallas as pl
from jax.experimental.pallas import tpu as pltpu

_LANE = 128
_MAX_TN = 2048                      # upper bound on the spatial (lane) tile
_TILE_BUDGET = 12 * 1024 * 1024     # VMEM budget for the double-buffered tiles
_VMEM_LIMIT = 48 * 1024 * 1024      # fits v7x's 64 MiB physical VMEM with headroom


def _round_up(x, m):
    return ((x + m - 1) // m) * m


def _pick_lane_tile(Kc, Cout, N):
    """Largest lane tile whose double-buffered VMEM footprint fits the budget."""
    # per-lane bytes: bf16 activation column + (conservatively f32) output column,
    # both double-buffered by the BlockSpec pipeline.
    per_lane = (Kc * 2 + Cout * 4) * 2
    tn = _TILE_BUDGET // max(per_lane, 1)
    tn = (tn // _LANE) * _LANE
    tn = max(_LANE, min(_MAX_TN, tn))
    return min(tn, _round_up(N, _LANE))


# ----------------------------------------------------------------------------
# Pallas kernel: fused (Cout x Kc) @ (Kc x TN) GEMM + bias + activation
# ----------------------------------------------------------------------------
def _gemm_bias_act_kernel(act):
    """Transposed GEMM: the spatial tile TN is the lane / MXU-N dimension."""

    def kernel(w_ref, x_ref, b_ref, o_ref):
        # bf16 operands, f32 accumulation on the MXU.
        acc = jnp.dot(w_ref[...], x_ref[...], preferred_element_type=jnp.float32)
        acc = acc + b_ref[...]                      # (Cout, 1) broadcasts over lanes
        if act == "relu":
            acc = jnp.maximum(acc, 0.0)
        elif act == "sigmoid":
            acc = jax.nn.sigmoid(acc)
        elif act != "none":
            raise ValueError(f"unknown activation {act!r}")
        o_ref[...] = acc.astype(o_ref.dtype)

    return kernel


def conv3d_same(x, w, b, *, act="none", out_dtype=jnp.bfloat16):
    """3-D convolution, padding='same', stride 1, fused bias + activation.

    x: (Cin, B, D, H, W)    channels-first feature map (bf16 or f32)
    w: (Cout, K, K, K, Cin) == torch Conv3d weight (Cout,Cin,K,K,K).permute(0,2,3,4,1)
    b: (Cout,)
    returns (Cout, B, D, H, W) in `out_dtype`
    """
    Cin, B, D, H, W = x.shape
    Cout, K = w.shape[0], w.shape[1]
    p = K // 2

    xb = x.astype(jnp.bfloat16)

    # --- transposed im2col (glue, pure JAX): colT has shape (Kc, N) with the
    # spatial axis N minor, tap-major / Cin-minor along Kc ---
    if p > 0:
        xp = jnp.pad(xb, ((0, 0), (0, 0), (p, p), (p, p), (p, p)))
        taps = [
            xp[:, :, kd:kd + D, kh:kh + H, kw:kw + W]
            for kd in range(K) for kh in range(K) for kw in range(K)
        ]
        colT = jnp.concatenate(taps, axis=0)
    else:
        colT = xb
    Kc = K * K * K * Cin
    N = B * D * H * W
    colT = colT.reshape(Kc, N)

    wm = w.reshape(Cout, Kc).astype(jnp.bfloat16)   # same tap ordering as colT
    bm = b.reshape(Cout, 1).astype(jnp.float32)

    tn = _pick_lane_tile(Kc, Cout, N)               # adaptive lane tile
    Np = _round_up(N, tn)
    if Np != N:
        colT = jnp.pad(colT, ((0, 0), (0, Np - N)))

    out = pl.pallas_call(
        _gemm_bias_act_kernel(act),
        out_shape=jax.ShapeDtypeStruct((Cout, Np), out_dtype),
        grid=(Np // tn,),
        in_specs=[
            pl.BlockSpec((Cout, Kc), lambda i: (0, 0)),  # weights (VMEM-resident)
            pl.BlockSpec((Kc, tn), lambda i: (0, i)),    # activation lane-tile
            pl.BlockSpec((Cout, 1), lambda i: (0, 0)),   # bias (VMEM-resident)
        ],
        out_specs=pl.BlockSpec((Cout, tn), lambda i: (0, i)),
        compiler_params=pltpu.CompilerParams(
            dimension_semantics=("parallel",),
            vmem_limit_bytes=_VMEM_LIMIT),
    )(wm, colT, bm)

    return out[:, :N].reshape(Cout, B, D, H, W)


# ----------------------------------------------------------------------------
# Glue ops (resampling) — pure JAX data movement on (C, B, D, H, W)
# ----------------------------------------------------------------------------
def _down2(x):  # 2x average pool over D, H, W
    C, B, D, H, W = x.shape
    assert D % 2 == 0 and H % 2 == 0 and W % 2 == 0, "spatial dims must be even"
    return x.reshape(C, B, D // 2, 2, H // 2, 2, W // 2, 2).mean(axis=(3, 5, 7))


def _up2(x):  # nearest-neighbour 2x upsample over D, H, W
    x = jnp.repeat(x, 2, axis=2)
    x = jnp.repeat(x, 2, axis=3)
    x = jnp.repeat(x, 2, axis=4)
    return x


# ----------------------------------------------------------------------------
# Deterministic parameter construction
# ----------------------------------------------------------------------------
def _conv_params(key, K, cin, cout):
    kw, kb = jax.random.split(key)
    std = 1.0 / math.sqrt(K * K * K * cin)
    w = std * jax.random.normal(kw, (cout, K, K, K, cin), jnp.float32)
    b = 0.01 * jax.random.normal(kb, (cout,), jnp.float32)
    return {"w": w, "b": b}


def init_params(key, *, in_channels=1, n_kernels_init=4, n_kernels_max=16,
                n_kernels_last=1, hidden_conv_dims=(8, 8, 4, 4)):
    k = n_kernels_init
    keys = iter(jax.random.split(key, 32))
    p = {}

    # -------- synthetic frozen 2-level 3-D U-Net --------
    # TODO(synk): real UNet class definition not provided; minimal 2-level
    # stand-in with matching channel arithmetic is used.
    cb = min(4 * k, n_kernels_max)
    p["enc0"] = _conv_params(next(keys), 3, in_channels, k)          # full res skip
    p["enc1"] = _conv_params(next(keys), 3, k, 2 * k)                # half res skip
    p["bottleneck"] = _conv_params(next(keys), 3, 2 * k, cb)         # quarter res
    p["dec0_up"] = _conv_params(next(keys), 1, cb, 2 * k)
    p["dec0_conv"] = _conv_params(next(keys), 3, 4 * k, 2 * k)
    p["dec1_up"] = _conv_params(next(keys), 1, 2 * k, k)
    p["dec1_conv"] = _conv_params(next(keys), 3, 2 * k, k)
    p["last_conv"] = _conv_params(next(keys), 1, k, n_kernels_last)

    # -------- ConfidNet head: Conv3d stack --------
    # (torch default hidden dims are [128,128,64,64]; small dims used for demo)
    input_dim = min(2 * k, n_kernels_max)  # _calc_n_kernels(n_kernels_init, 1, n_kernels_max)
    dims = [input_dim] + list(hidden_conv_dims) + [n_kernels_last]
    p["confid"] = []
    for cin, cout in zip(dims, dims[1:]):
        ksz = 3 if cout != n_kernels_last else 1
        p["confid"].append(_conv_params(next(keys), ksz, cin, cout))
    return p


# ----------------------------------------------------------------------------
# Forward pass (UNetConfidNet.forward)
# ----------------------------------------------------------------------------
def unet_confidnet_forward(params, x_ncdhw, logits=False):
    # PyTorch NCDHW (B, C, D, H, W) -> channels-first (C, B, D, H, W).
    x = jnp.transpose(x_ncdhw, (1, 0, 2, 3, 4)).astype(jnp.bfloat16)

    # TODO(synk): configuration()['activation'] default unknown; ReLU used.
    # ---- frozen U-Net encoder ----
    skip0 = conv3d_same(x, params["enc0"]["w"], params["enc0"]["b"], act="relu")
    skip1 = conv3d_same(_down2(skip0), params["enc1"]["w"], params["enc1"]["b"], act="relu")
    encoded = conv3d_same(_down2(skip1), params["bottleneck"]["w"],
                          params["bottleneck"]["b"], act="relu")
    skips = [skip0, skip1]

    def up(t, pu):
        return conv3d_same(_up2(t), pu["w"], pu["b"], act="none")

    # ---- U-Net decoder (UNetConfidNetEncoder._decoder_forward) ----
    # decoder level 0 (pairs with reversed(skips)[0] = skip1)
    d0 = conv3d_same(
        jnp.concatenate([up(encoded, params["dec0_up"]), skips[1]], axis=0),
        params["dec0_conv"]["w"], params["dec0_conv"]["b"], act="relu")
    confidnet_in = d0  # i == len(skips) - 2
    # decoder level 1 (pairs with skip0)
    d1 = conv3d_same(
        jnp.concatenate([up(d0, params["dec1_up"]), skips[0]], axis=0),
        params["dec1_conv"]["w"], params["dec1_conv"]["b"], act="relu")
    seg = conv3d_same(d1, params["last_conv"]["w"], params["last_conv"]["b"],
                      act="none" if logits else "sigmoid", out_dtype=jnp.float32)

    # ConfidNet encoder output: unet.decoder.levels[-1].up(confidnet_in) ++ skips[0]
    # (the same `dec1_up` projection is reused on purpose, matching the PyTorch
    #  module reuse of `self.unet.decoder.levels[-1].up`.)
    confid_in = jnp.concatenate(
        [up(confidnet_in, params["dec1_up"]), skips[0]], axis=0)

    # ---- ConfidNet head (Conv3d + activation stack, Sigmoid on the last) ----
    # TODO(synk): this 5-layer head could be fused into a single pallas_call
    # keeping inter-layer activations in VMEM; kept as per-layer fused convs.
    h = confid_in
    n_layers = len(params["confid"])
    for i, layer in enumerate(params["confid"]):
        last = i == n_layers - 1
        h = conv3d_same(h, layer["w"], layer["b"],
                        act="sigmoid" if last else "relu",
                        out_dtype=jnp.float32 if last else jnp.bfloat16)
    confidence = h

    to_ncdhw = lambda t: jnp.transpose(t, (1, 0, 2, 3, 4)).astype(jnp.float32)
    return to_ncdhw(confidence), to_ncdhw(seg)


# ----------------------------------------------------------------------------
if __name__ == "__main__":
    key = jax.random.PRNGKey(0)
    kp, kx = jax.random.split(key)
    params = init_params(kp)

    # NCDHW, matching torch Conv3d convention: batch=2, 1 channel, 16^3 volume
    x = jax.random.normal(kx, (2, 1, 16, 16, 16), jnp.float32)

    fwd = jax.jit(partial(unet_confidnet_forward, params, logits=False))
    confidence, seg = fwd(x)
    jax.block_until_ready((confidence, seg))

    assert confidence.shape == (2, 1, 16, 16, 16), confidence.shape
    assert seg.shape == (2, 1, 16, 16, 16), seg.shape
    assert bool(jnp.all(jnp.isfinite(confidence))) and bool(jnp.all(jnp.isfinite(seg)))
    assert bool(jnp.all((confidence >= 0) & (confidence <= 1)))
    assert bool(jnp.all((seg >= 0) & (seg <= 1)))
    print("KERNEL_OK")
</pallas_src>

<mosaic_0001>
module attributes {stable_mosaic.version = 11 : i64} {
  func.func @kernel(%arg0: i32, %arg1: memref<4x27xbf16, #tpu.memory_space<vmem>>, %arg2: memref<27x2048xbf16, #tpu.memory_space<vmem>>, %arg3: memref<4x1xf32, #tpu.memory_space<vmem>>, %arg4: memref<4x2048xbf16, #tpu.memory_space<vmem>>) attributes {dimension_semantics = [#tpu.dimension_semantics<parallel>], iteration_bounds = array<i64: 4>, scalar_prefetch = 0 : i64, scratch_operands = 0 : i64, tpu.core_type = #tpu.core_type<tc>, window_params = [{pipeline_mode = #tpu.pipeline_mode<synchronous>, transform_indices = @transform_0, window_bounds = array<i64: 4, 27>}, {transform_indices = @transform_1, window_bounds = array<i64: 27, 2048>}, {pipeline_mode = #tpu.pipeline_mode<synchronous>, transform_indices = @transform_2, window_bounds = array<i64: 4, 1>}, {transform_indices = @transform_3, window_bounds = array<i64: 4, 2048>}]} {
    %c0 = arith.constant 0 : index
    %c0_0 = arith.constant 0 : index
    %0 = vector.load %arg1[%c0, %c0_0] : memref<4x27xbf16, #tpu.memory_space<vmem>>, vector<4x27xbf16>
    %c0_1 = arith.constant 0 : index
    %c0_2 = arith.constant 0 : index
    %1 = vector.load %arg2[%c0_1, %c0_2] : memref<27x2048xbf16, #tpu.memory_space<vmem>>, vector<27x2048xbf16>
    %cst = arith.constant dense<0.000000e+00> : vector<4x2048xf32>
    %2 = tpu.matmul %0, %1, %cst {dimension_numbers = #tpu.dot_dimension_numbers<[1], [0], [0], [1], [0, 0, 1, 1], [], []>} : vector<4x27xbf16>, vector<27x2048xbf16>, vector<4x2048xf32> -> vector<4x2048xf32>
    %c0_3 = arith.constant 0 : index
    %c0_4 = arith.constant 0 : index
    %3 = vector.load %arg3[%c0_3, %c0_4] : memref<4x1xf32, #tpu.memory_space<vmem>>, vector<4x1xf32>
    %4 = vector.broadcast %3 : vector<4x1xf32> to vector<4x2048xf32>
    %5 = arith.addf %2, %4 : vector<4x2048xf32>
    %cst_5 = arith.constant 0.000000e+00 : f32
    %6 = vector.broadcast %cst_5 : f32 to vector<4x2048xf32>
    %7 = arith.maximumf %5, %6 : vector<4x2048xf32>
    %8 = arith.truncf %7 : vector<4x2048xf32> to vector<4x2048xbf16>
    %c0_6 = arith.constant 0 : index
    %c0_7 = arith.constant 0 : index
    %9 = vector.load %arg4[%c0_6, %c0_7] : memref<4x2048xbf16, #tpu.memory_space<vmem>>, vector<4x2048xbf16>
    tpu.vector_store %arg4[%c0_6, %c0_7], %8 {strides = array<i32>} : memref<4x2048xbf16, #tpu.memory_space<vmem>>, vector<4x2048xbf16>,
    return
  }
  func.func @transform_0(%arg0: i32) -> (i32, i32) {
    %c0_i32 = arith.constant 0 : i32
    %c0_i32_0 = arith.constant 0 : i32
    %c0_i32_1 = arith.constant 0 : i32
    return %c0_i32, %c0_i32_0 : i32, i32
  }
  func.func @transform_1(%arg0: i32) -> (i32, i32) {
    %c0_i32 = arith.constant 0 : i32
    %c0_i32_0 = arith.constant 0 : i32
    return %c0_i32, %arg0 : i32, i32
  }
  func.func @transform_2(%arg0: i32) -> (i32, i32) {
    %c0_i32 = arith.constant 0 : i32
    %c0_i32_0 = arith.constant 0 : i32
    %c0_i32_1 = arith.constant 0 : i32
    return %c0_i32, %c0_i32_0 : i32, i32
  }
  func.func @transform_3(%arg0: i32) -> (i32, i32) {
    %c0_i32 = arith.constant 0 : i32
    %c0_i32_0 = arith.constant 0 : i32
    return %c0_i32, %arg0 : i32, i32
  }
}

module attributes {stable_mosaic.version = 11 : i64} {
  func.func @kernel(%arg0: i32, %arg1: memref<8x108xbf16, #tpu.memory_space<vmem>>, %arg2: memref<108x1024xbf16, #tpu.memory_space<vmem>>, %arg3: memref<8x1xf32, #tpu.memory_space<vmem>>, %arg4: memref<8x1024xbf16, #tpu.memory_space<vmem>>) attributes {dimension_semantics = [#tpu.dimension_semantics<parallel>], iteration_bounds = array<i64: 1>, scalar_prefetch = 0 : i64, scratch_operands = 0 : i64, tpu.core_type = #tpu.core_type<tc>, window_params = [{pipeline_mode = #tpu.pipeline_mode<synchronous>, transform_indices = @transform_0, window_bounds = array<i64: 8, 108>}, {transform_indices = @transform_1, window_bounds = array<i64: 108, 1024>}, {pipeline_mode = #tpu.pipeline_mode<synchronous>, transform_indices = @transform_2, window_bounds = array<i64: 8, 1>}, {transform_indices = @transform_3, window_bounds = array<i64: 8, 1024>}]} {
    %c0 = arith.constant 0 : index
    %c0_0 = arith.constant 0 : index
    %0 = vector.load %arg1[%c0, %c0_0] : memref<8x108xbf16, #tpu.memory_space<vmem>>, vector<8x108xbf16>
    %c0_1 = arith.constant 0 : index
    %c0_2 = arith.constant 0 : index
    %1 = vector.load %arg2[%c0_1, %c0_2] : memref<108x1024xbf16, #tpu.memory_space<vmem>>, vector<108x1024xbf16>
    %cst = arith.constant dense<0.000000e+00> : vector<8x1024xf32>
    %2 = tpu.matmul %0, %1, %cst {dimension_numbers = #tpu.dot_dimension_numbers<[1], [0], [0], [1], [0, 0, 1, 1], [], []>} : vector<8x108xbf16>, vector<108x1024xbf16>, vector<8x1024xf32> -> vector<8x1024xf32>
    %c0_3 = arith.constant 0 : index
    %c0_4 = arith.constant 0 : index
    %3 = vector.load %arg3[%c0_3, %c0_4] : memref<8x1xf32, #tpu.memory_space<vmem>>, vector<8x1xf32>
    %4 = vector.broadcast %3 : vector<8x1xf32> to vector<8x1024xf32>
    %5 = arith.addf %2, %4 : vector<8x1024xf32>
    %cst_5 = arith.constant 0.000000e+00 : f32
    %6 = vector.broadcast %cst_5 : f32 to vector<8x1024xf32>
    %7 = arith.maximumf %5, %6 : vector<8x1024xf32>
    %8 = arith.truncf %7 : vector<8x1024xf32> to vector<8x1024xbf16>
    %c0_6 = arith.constant 0 : index
    %c0_7 = arith.constant 0 : index
    %9 = vector.load %arg4[%c0_6, %c0_7] : memref<8x1024xbf16, #tpu.memory_space<vmem>>, vector<8x1024xbf16>
    tpu.vector_store %arg4[%c0_6, %c0_7], %8 {strides = array<i32>} : memref<8x1024xbf16, #tpu.memory_space<vmem>>, vector<8x1024xbf16>,
    return
  }
  func.func @transform_0(%arg0: i32) -> (i32, i32) {
    %c0_i32 = arith.constant 0 : i32
    %c0_i32_0 = arith.constant 0 : i32
    %c0_i32_1 = arith.constant 0 : i32
    return %c0_i32, %c0_i32_0 : i32, i32
  }
  func.func @transform_1(%arg0: i32) -> (i32, i32) {
    %c0_i32 = arith.constant 0 : i32
    %c0_i32_0 = arith.constant 0 : i32
    return %c0_i32, %arg0 : i32, i32
  }
  func.func @transform_2(%arg0: i32) -> (i32, i32) {
    %c0_i32 = arith.constant 0 : i32
    %c0_i32_0 = arith.constant 0 : i32
    %c0_i32_1 = arith.constant 0 : i32
    return %c0_i32, %c0_i32_0 : i32, i32
  }
  func.func @transform_3(%arg0: i32) -> (i32, i32) {
    %c0_i32 = arith.constant 0 : i32
    %c0_i32_0 = arith.constant 0 : i32
    return %c0_i32, %arg0 : i32, i32
  }
}

module attributes {stable_mosaic.version = 11 : i64} {
  func.func @kernel(%arg0: i32, %arg1: memref<16x216xbf16, #tpu.memory_space<vmem>>, %arg2: memref<216x128xbf16, #tpu.memory_space<vmem>>, %arg3: memref<16x1xf32, #tpu.memory_space<vmem>>, %arg4: memref<16x128xbf16, #tpu.memory_space<vmem>>) attributes {dimension_semantics = [#tpu.dimension_semantics<parallel>], iteration_bounds = array<i64: 1>, scalar_prefetch = 0 : i64, scratch_operands = 0 : i64, tpu.core_type = #tpu.core_type<tc>, window_params = [{pipeline_mode = #tpu.pipeline_mode<synchronous>, transform_indices = @transform_0, window_bounds = array<i64: 16, 216>}, {transform_indices = @transform_1, window_bounds = array<i64: 216, 128>}, {pipeline_mode = #tpu.pipeline_mode<synchronous>, transform_indices = @transform_2, window_bounds = array<i64: 16, 1>}, {transform_indices = @transform_3, window_bounds = array<i64: 16, 128>}]} {
    %c0 = arith.constant 0 : index
    %c0_0 = arith.constant 0 : index
    %0 = vector.load %arg1[%c0, %c0_0] : memref<16x216xbf16, #tpu.memory_space<vmem>>, vector<16x216xbf16>
    %c0_1 = arith.constant 0 : index
    %c0_2 = arith.constant 0 : index
    %1 = vector.load %arg2[%c0_1, %c0_2] : memref<216x128xbf16, #tpu.memory_space<vmem>>, vector<216x128xbf16>
    %cst = arith.constant dense<0.000000e+00> : vector<16x128xf32>
    %2 = tpu.matmul %0, %1, %cst {dimension_numbers = #tpu.dot_dimension_numbers<[1], [0], [0], [1], [0, 0, 1, 1], [], []>} : vector<16x216xbf16>, vector<216x128xbf16>, vector<16x128xf32> -> vector<16x128xf32>
    %c0_3 = arith.constant 0 : index
    %c0_4 = arith.constant 0 : index
    %3 = vector.load %arg3[%c0_3, %c0_4] : memref<16x1xf32, #tpu.memory_space<vmem>>, vector<16x1xf32>
    %4 = vector.broadcast %3 : vector<16x1xf32> to vector<16x128xf32>
    %5 = arith.addf %2, %4 : vector<16x128xf32>
    %cst_5 = arith.constant 0.000000e+00 : f32
    %6 = vector.broadcast %cst_5 : f32 to vector<16x128xf32>
    %7 = arith.maximumf %5, %6 : vector<16x128xf32>
    %8 = arith.truncf %7 : vector<16x128xf32> to vector<16x128xbf16>
    %c0_6 = arith.constant 0 : index
    %c0_7 = arith.constant 0 : index
    %9 = vector.load %arg4[%c0_6, %c0_7] : memref<16x128xbf16, #tpu.memory_space<vmem>>, vector<16x128xbf16>
    tpu.vector_store %arg4[%c0_6, %c0_7], %8 {strides = array<i32>} : memref<16x128xbf16, #tpu.memory_space<vmem>>, vector<16x128xbf16>,
    return
  }
  func.func @transform_0(%arg0: i32) -> (i32, i32) {
    %c0_i32 = arith.constant 0 : i32
    %c0_i32_0 = arith.constant 0 : i32
    %c0_i32_1 = arith.constant 0 : i32
    return %c0_i32, %c0_i32_0 : i32, i32
  }
  func.func @transform_1(%arg0: i32) -> (i32, i32) {
    %c0_i32 = arith.constant 0 : i32
    %c0_i32_0 = arith.constant 0 : i32
    return %c0_i32, %arg0 : i32, i32
  }
  func.func @transform_2(%arg0: i32) -> (i32, i32) {
    %c0_i32 = arith.constant 0 : i32
    %c0_i32_0 = arith.constant 0 : i32
    %c0_i32_1 = arith.constant 0 : i32
    return %c0_i32, %c0_i32_0 : i32, i32
  }
  func.func @transform_3(%arg0: i32) -> (i32, i32) {
    %c0_i32 = arith.constant 0 : i32
    %c0_i32_0 = arith.constant 0 : i32
    return %c0_i32, %arg0 : i32, i32
  }
}

module attributes {stable_mosaic.version = 11 : i64} {
  func.func @kernel(%arg0: i32, %arg1: memref<8x16xbf16, #tpu.memory_space<vmem>>, %arg2: memref<16x1024xbf16, #tpu.memory_space<vmem>>, %arg3: memref<8x1xf32, #tpu.memory_space<vmem>>, %arg4: memref<8x1024xbf16, #tpu.memory_space<vmem>>) attributes {dimension_semantics = [#tpu.dimension_semantics<parallel>], iteration_bounds = array<i64: 1>, scalar_prefetch = 0 : i64, scratch_operands = 0 : i64, tpu.core_type = #tpu.core_type<tc>, window_params = [{pipeline_mode = #tpu.pipeline_mode<synchronous>, transform_indices = @transform_0, window_bounds = array<i64: 8, 16>}, {transform_indices = @transform_1, window_bounds = array<i64: 16, 1024>}, {pipeline_mode = #tpu.pipeline_mode<synchronous>, transform_indices = @transform_2, window_bounds = array<i64: 8, 1>}, {transform_indices = @transform_3, window_bounds = array<i64: 8, 1024>}]} {
    %c0 = arith.constant 0 : index
    %c0_0 = arith.constant 0 : index
    %0 = vector.load %arg1[%c0, %c0_0] : memref<8x16xbf16, #tpu.memory_space<vmem>>, vector<8x16xbf16>
    %c0_1 = arith.constant 0 : index
    %c0_2 = arith.constant 0 : index
    %1 = vector.load %arg2[%c0_1, %c0_2] : memref<16x1024xbf16, #tpu.memory_space<vmem>>, vector<16x1024xbf16>
    %cst = arith.constant dense<0.000000e+00> : vector<8x1024xf32>
    %2 = tpu.matmul %0, %1, %cst {dimension_numbers = #tpu.dot_dimension_numbers<[1], [0], [0], [1], [0, 0, 1, 1], [], []>} : vector<8x16xbf16>, vector<16x1024xbf16>, vector<8x1024xf32> -> vector<8x1024xf32>
    %c0_3 = arith.constant 0 : index
    %c0_4 = arith.constant 0 : index
    %3 = vector.load %arg3[%c0_3, %c0_4] : memref<8x1xf32, #tpu.memory_space<vmem>>, vector<8x1xf32>
    %4 = vector.broadcast %3 : vector<8x1xf32> to vector<8x1024xf32>
    %5 = arith.addf %2, %4 : vector<8x1024xf32>
    %6 = arith.truncf %5 : vector<8x1024xf32> to vector<8x1024xbf16>
    %c0_5 = arith.constant 0 : index
    %c0_6 = arith.constant 0 : index
    %7 = vector.load %arg4[%c0_5, %c0_6] : memref<8x1024xbf16, #tpu.memory_space<vmem>>, vector<8x1024xbf16>
    tpu.vector_store %arg4[%c0_5, %c0_6], %6 {strides = array<i32>} : memref<8x1024xbf16, #tpu.memory_space<vmem>>, vector<8x1024xbf16>,
    return
  }
  func.func @transform_0(%arg0: i32) -> (i32, i32) {
    %c0_i32 = arith.constant 0 : i32
    %c0_i32_0 = arith.constant 0 : i32
    %c0_i32_1 = arith.constant 0 : i32
    return %c0_i32, %c0_i32_0 : i32, i32
  }
  func.func @transform_1(%arg0: i32) -> (i32, i32) {
    %c0_i32 = arith.constant 0 : i32
    %c0_i32_0 = arith.constant 0 : i32
    return %c0_i32, %arg0 : i32, i32
  }
  func.func @transform_2(%arg0: i32) -> (i32, i32) {
    %c0_i32 = arith.constant 0 : i32
    %c0_i32_0 = arith.constant 0 : i32
    %c0_i32_1 = arith.constant 0 : i32
    return %c0_i32, %c0_i32_0 : i32, i32
  }
  func.func @transform_3(%arg0: i32) -> (i32, i32) {
    %c0_i32 = arith.constant 0 : i32
    %c0_i32_0 = arith.constant 0 : i32
    return %c0_i32, %arg0 : i32, i32
  }
}

module attributes {stable_mosaic.version = 11 : i64} {
  func.func @kernel(%arg0: i32, %arg1: memref<8x432xbf16, #tpu.memory_space<vmem>>, %arg2: memref<432x1024xbf16, #tpu.memory_space<vmem>>, %arg3: memref<8x1xf32, #tpu.memory_space<vmem>>, %arg4: memref<8x1024xbf16, #tpu.memory_space<vmem>>) attributes {dimension_semantics = [#tpu.dimension_semantics<parallel>], iteration_bounds = array<i64: 1>, scalar_prefetch = 0 : i64, scratch_operands = 0 : i64, tpu.core_type = #tpu.core_type<tc>, window_params = [{pipeline_mode = #tpu.pipeline_mode<synchronous>, transform_indices = @transform_0, window_bounds = array<i64: 8, 432>}, {transform_indices = @transform_1, window_bounds = array<i64: 432, 1024>}, {pipeline_mode = #tpu.pipeline_mode<synchronous>, transform_indices = @transform_2, window_bounds = array<i64: 8, 1>}, {transform_indices = @transform_3, window_bounds = array<i64: 8, 1024>}]} {
    %c0 = arith.constant 0 : index
    %c0_0 = arith.constant 0 : index
    %0 = vector.load %arg1[%c0, %c0_0] : memref<8x432xbf16, #tpu.memory_space<vmem>>, vector<8x432xbf16>
    %c0_1 = arith.constant 0 : index
    %c0_2 = arith.constant 0 : index
    %1 = vector.load %arg2[%c0_1, %c0_2] : memref<432x1024xbf16, #tpu.memory_space<vmem>>, vector<432x1024xbf16>
    %cst = arith.constant dense<0.000000e+00> : vector<8x1024xf32>
    %2 = tpu.matmul %0, %1, %cst {dimension_numbers = #tpu.dot_dimension_numbers<[1], [0], [0], [1], [0, 0, 1, 1], [], []>} : vector<8x432xbf16>, vector<432x1024xbf16>, vector<8x1024xf32> -> vector<8x1024xf32>
    %c0_3 = arith.constant 0 : index
    %c0_4 = arith.constant 0 : index
    %3 = vector.load %arg3[%c0_3, %c0_4] : memref<8x1xf32, #tpu.memory_space<vmem>>, vector<8x1xf32>
    %4 = vector.broadcast %3 : vector<8x1xf32> to vector<8x1024xf32>
    %5 = arith.addf %2, %4 : vector<8x1024xf32>
    %cst_5 = arith.constant 0.000000e+00 : f32
    %6 = vector.broadcast %cst_5 : f32 to vector<8x1024xf32>
    %7 = arith.maximumf %5, %6 : vector<8x1024xf32>
    %8 = arith.truncf %7 : vector<8x1024xf32> to vector<8x1024xbf16>
    %c0_6 = arith.constant 0 : index
    %c0_7 = arith.constant 0 : index
    %9 = vector.load %arg4[%c0_6, %c0_7] : memref<8x1024xbf16, #tpu.memory_space<vmem>>, vector<8x1024xbf16>
    tpu.vector_store %arg4[%c0_6, %c0_7], %8 {strides = array<i32>} : memref<8x1024xbf16, #tpu.memory_space<vmem>>, vector<8x1024xbf16>,
    return
  }
  func.func @transform_0(%arg0: i32) -> (i32, i32) {
    %c0_i32 = arith.constant 0 : i32
    %c0_i32_0 = arith.constant 0 : i32
    %c0_i32_1 = arith.constant 0 : i32
    return %c0_i32, %c0_i32_0 : i32, i32
  }
  func.func @transform_1(%arg0: i32) -> (i32, i32) {
    %c0_i32 = arith.constant 0 : i32
    %c0_i32_0 = arith.constant 0 : i32
    return %c0_i32, %arg0 : i32, i32
  }
  func.func @transform_2(%arg0: i32) -> (i32, i32) {
    %c0_i32 = arith.constant 0 : i32
    %c0_i32_0 = arith.constant 0 : i32
    %c0_i32_1 = arith.constant 0 : i32
    return %c0_i32, %c0_i32_0 : i32, i32
  }
  func.func @transform_3(%arg0: i32) -> (i32, i32) {
    %c0_i32 = arith.constant 0 : i32
    %c0_i32_0 = arith.constant 0 : i32
    return %c0_i32, %arg0 : i32, i32
  }
}

module attributes {stable_mosaic.version = 11 : i64} {
  func.func @kernel(%arg0: i32, %arg1: memref<4x8xbf16, #tpu.memory_space<vmem>>, %arg2: memref<8x2048xbf16, #tpu.memory_space<vmem>>, %arg3: memref<4x1xf32, #tpu.memory_space<vmem>>, %arg4: memref<4x2048xbf16, #tpu.memory_space<vmem>>) attributes {dimension_semantics = [#tpu.dimension_semantics<parallel>], iteration_bounds = array<i64: 4>, scalar_prefetch = 0 : i64, scratch_operands = 0 : i64, tpu.core_type = #tpu.core_type<tc>, window_params = [{pipeline_mode = #tpu.pipeline_mode<synchronous>, transform_indices = @transform_0, window_bounds = array<i64: 4, 8>}, {transform_indices = @transform_1, window_bounds = array<i64: 8, 2048>}, {pipeline_mode = #tpu.pipeline_mode<synchronous>, transform_indices = @transform_2, window_bounds = array<i64: 4, 1>}, {transform_indices = @transform_3, window_bounds = array<i64: 4, 2048>}]} {
    %c0 = arith.constant 0 : index
    %c0_0 = arith.constant 0 : index
    %0 = vector.load %arg1[%c0, %c0_0] : memref<4x8xbf16, #tpu.memory_space<vmem>>, vector<4x8xbf16>
    %c0_1 = arith.constant 0 : index
    %c0_2 = arith.constant 0 : index
    %1 = vector.load %arg2[%c0_1, %c0_2] : memref<8x2048xbf16, #tpu.memory_space<vmem>>, vector<8x2048xbf16>
    %cst = arith.constant dense<0.000000e+00> : vector<4x2048xf32>
    %2 = tpu.matmul %0, %1, %cst {dimension_numbers = #tpu.dot_dimension_numbers<[1], [0], [0], [1], [0, 0, 1, 1], [], []>} : vector<4x8xbf16>, vector<8x2048xbf16>, vector<4x2048xf32> -> vector<4x2048xf32>
    %c0_3 = arith.constant 0 : index
    %c0_4 = arith.constant 0 : index
    %3 = vector.load %arg3[%c0_3, %c0_4] : memref<4x1xf32, #tpu.memory_space<vmem>>, vector<4x1xf32>
    %4 = vector.broadcast %3 : vector<4x1xf32> to vector<4x2048xf32>
    %5 = arith.addf %2, %4 : vector<4x2048xf32>
    %6 = arith.truncf %5 : vector<4x2048xf32> to vector<4x2048xbf16>
    %c0_5 = arith.constant 0 : index
    %c0_6 = arith.constant 0 : index
    %7 = vector.load %arg4[%c0_5, %c0_6] : memref<4x2048xbf16, #tpu.memory_space<vmem>>, vector<4x2048xbf16>
    tpu.vector_store %arg4[%c0_5, %c0_6], %6 {strides = array<i32>} : memref<4x2048xbf16, #tpu.memory_space<vmem>>, vector<4x2048xbf16>,
    return
  }
  func.func @transform_0(%arg0: i32) -> (i32, i32) {
    %c0_i32 = arith.constant 0 : i32
    %c0_i32_0 = arith.constant 0 : i32
    %c0_i32_1 = arith.constant 0 : i32
    return %c0_i32, %c0_i32_0 : i32, i32
  }
  func.func @transform_1(%arg0: i32) -> (i32, i32) {
    %c0_i32 = arith.constant 0 : i32
    %c0_i32_0 = arith.constant 0 : i32
    return %c0_i32, %arg0 : i32, i32
  }
  func.func @transform_2(%arg0: i32) -> (i32, i32) {
    %c0_i32 = arith.constant 0 : i32
    %c0_i32_0 = arith.constant 0 : i32
    %c0_i32_1 = arith.constant 0 : i32
    return %c0_i32, %c0_i32_0 : i32, i32
  }
  func.func @transform_3(%arg0: i32) -> (i32, i32) {
    %c0_i32 = arith.constant 0 : i32
    %c0_i32_0 = arith.constant 0 : i32
    return %c0_i32, %arg0 : i32, i32
  }
}

module attributes {stable_mosaic.version = 11 : i64} {
  func.func @kernel(%arg0: i32, %arg1: memref<4x216xbf16, #tpu.memory_space<vmem>>, %arg2: memref<216x2048xbf16, #tpu.memory_space<vmem>>, %arg3: memref<4x1xf32, #tpu.memory_space<vmem>>, %arg4: memref<4x2048xbf16, #tpu.memory_space<vmem>>) attributes {dimension_semantics = [#tpu.dimension_semantics<parallel>], iteration_bounds = array<i64: 4>, scalar_prefetch = 0 : i64, scratch_operands = 0 : i64, tpu.core_type = #tpu.core_type<tc>, window_params = [{pipeline_mode = #tpu.pipeline_mode<synchronous>, transform_indices = @transform_0, window_bounds = array<i64: 4, 216>}, {transform_indices = @transform_1, window_bounds = array<i64: 216, 2048>}, {pipeline_mode = #tpu.pipeline_mode<synchronous>, transform_indices = @transform_2, window_bounds = array<i64: 4, 1>}, {transform_indices = @transform_3, window_bounds = array<i64: 4, 2048>}]} {
    %c0 = arith.constant 0 : index
    %c0_0 = arith.constant 0 : index
    %0 = vector.load %arg1[%c0, %c0_0] : memref<4x216xbf16, #tpu.memory_space<vmem>>, vector<4x216xbf16>
    %c0_1 = arith.constant 0 : index
    %c0_2 = arith.constant 0 : index
    %1 = vector.load %arg2[%c0_1, %c0_2] : memref<216x2048xbf16, #tpu.memory_space<vmem>>, vector<216x2048xbf16>
    %cst = arith.constant dense<0.000000e+00> : vector<4x2048xf32>
    %2 = tpu.matmul %0, %1, %cst {dimension_numbers = #tpu.dot_dimension_numbers<[1], [0], [0], [1], [0, 0, 1, 1], [], []>} : vector<4x216xbf16>, vector<216x2048xbf16>, vector<4x2048xf32> -> vector<4x2048xf32>
    %c0_3 = arith.constant 0 : index
    %c0_4 = arith.constant 0 : index
    %3 = vector.load %arg3[%c0_3, %c0_4] : memref<4x1xf32, #tpu.memory_space<vmem>>, vector<4x1xf32>
    %4 = vector.broadcast %3 : vector<4x1xf32> to vector<4x2048xf32>
    %5 = arith.addf %2, %4 : vector<4x2048xf32>
    %cst_5 = arith.constant 0.000000e+00 : f32
    %6 = vector.broadcast %cst_5 : f32 to vector<4x2048xf32>
    %7 = arith.maximumf %5, %6 : vector<4x2048xf32>
    %8 = arith.truncf %7 : vector<4x2048xf32> to vector<4x2048xbf16>
    %c0_6 = arith.constant 0 : index
    %c0_7 = arith.constant 0 : index
    %9 = vector.load %arg4[%c0_6, %c0_7] : memref<4x2048xbf16, #tpu.memory_space<vmem>>, vector<4x2048xbf16>
    tpu.vector_store %arg4[%c0_6, %c0_7], %8 {strides = array<i32>} : memref<4x2048xbf16, #tpu.memory_space<vmem>>, vector<4x2048xbf16>,
    return
  }
  func.func @transform_0(%arg0: i32) -> (i32, i32) {
    %c0_i32 = arith.constant 0 : i32
    %c0_i32_0 = arith.constant 0 : i32
    %c0_i32_1 = arith.constant 0 : i32
    return %c0_i32, %c0_i32_0 : i32, i32
  }
  func.func @transform_1(%arg0: i32) -> (i32, i32) {
    %c0_i32 = arith.constant 0 : i32
    %c0_i32_0 = arith.constant 0 : i32
    return %c0_i32, %arg0 : i32, i32
  }
  func.func @transform_2(%arg0: i32) -> (i32, i32) {
    %c0_i32 = arith.constant 0 : i32
    %c0_i32_0 = arith.constant 0 : i32
    %c0_i32_1 = arith.constant 0 : i32
    return %c0_i32, %c0_i32_0 : i32, i32
  }
  func.func @transform_3(%arg0: i32) -> (i32, i32) {
    %c0_i32 = arith.constant 0 : i32
    %c0_i32_0 = arith.constant 0 : i32
    return %c0_i32, %arg0 : i32, i32
  }
}

module attributes {stable_mosaic.version = 11 : i64} {
  func.func @kernel(%arg0: i32, %arg1: memref<8x216xbf16, #tpu.memory_space<vmem>>, %arg2: memref<216x2048xbf16, #tpu.memory_space<vmem>>, %arg3: memref<8x1xf32, #tpu.memory_space<vmem>>, %arg4: memref<8x2048xbf16, #tpu.memory_space<vmem>>) attributes {dimension_semantics = [#tpu.dimension_semantics<parallel>], iteration_bounds = array<i64: 4>, scalar_prefetch = 0 : i64, scratch_operands = 0 : i64, tpu.core_type = #tpu.core_type<tc>, window_params = [{pipeline_mode = #tpu.pipeline_mode<synchronous>, transform_indices = @transform_0, window_bounds = array<i64: 8, 216>}, {transform_indices = @transform_1, window_bounds = array<i64: 216, 2048>}, {pipeline_mode = #tpu.pipeline_mode<synchronous>, transform_indices = @transform_2, window_bounds = array<i64: 8, 1>}, {transform_indices = @transform_3, window_bounds = array<i64: 8, 2048>}]} {
    %c0 = arith.constant 0 : index
    %c0_0 = arith.constant 0 : index
    %0 = vector.load %arg1[%c0, %c0_0] : memref<8x216xbf16, #tpu.memory_space<vmem>>, vector<8x216xbf16>
    %c0_1 = arith.constant 0 : index
    %c0_2 = arith.constant 0 : index
    %1 = vector.load %arg2[%c0_1, %c0_2] : memref<216x2048xbf16, #tpu.memory_space<vmem>>, vector<216x2048xbf16>
    %cst = arith.constant dense<0.000000e+00> : vector<8x2048xf32>
    %2 = tpu.matmul %0, %1, %cst {dimension_numbers = #tpu.dot_dimension_numbers<[1], [0], [0], [1], [0, 0, 1, 1], [], []>} : vector<8x216xbf16>, vector<216x2048xbf16>, vector<8x2048xf32> -> vector<8x2048xf32>
    %c0_3 = arith.constant 0 : index
    %c0_4 = arith.constant 0 : index
    %3 = vector.load %arg3[%c0_3, %c0_4] : memref<8x1xf32, #tpu.memory_space<vmem>>, vector<8x1xf32>
    %4 = vector.broadcast %3 : vector<8x1xf32> to vector<8x2048xf32>
    %5 = arith.addf %2, %4 : vector<8x2048xf32>
    %cst_5 = arith.constant 0.000000e+00 : f32
    %6 = vector.broadcast %cst_5 : f32 to vector<8x2048xf32>
    %7 = arith.maximumf %5, %6 : vector<8x2048xf32>
    %8 = arith.truncf %7 : vector<8x2048xf32> to vector<8x2048xbf16>
    %c0_6 = arith.constant 0 : index
    %c0_7 = arith.constant 0 : index
    %9 = vector.load %arg4[%c0_6, %c0_7] : memref<8x2048xbf16, #tpu.memory_space<vmem>>, vector<8x2048xbf16>
    tpu.vector_store %arg4[%c0_6, %c0_7], %8 {strides = array<i32>} : memref<8x2048xbf16, #tpu.memory_space<vmem>>, vector<8x2048xbf16>,
    return
  }
  func.func @transform_0(%arg0: i32) -> (i32, i32) {
    %c0_i32 = arith.constant 0 : i32
    %c0_i32_0 = arith.constant 0 : i32
    %c0_i32_1 = arith.constant 0 : i32
    return %c0_i32, %c0_i32_0 : i32, i32
  }
  func.func @transform_1(%arg0: i32) -> (i32, i32) {
    %c0_i32 = arith.constant 0 : i32
    %c0_i32_0 = arith.constant 0 : i32
    return %c0_i32, %arg0 : i32, i32
  }
  func.func @transform_2(%arg0: i32) -> (i32, i32) {
    %c0_i32 = arith.constant 0 : i32
    %c0_i32_0 = arith.constant 0 : i32
    %c0_i32_1 = arith.constant 0 : i32
    return %c0_i32, %c0_i32_0 : i32, i32
  }
  func.func @transform_3(%arg0: i32) -> (i32, i32) {
    %c0_i32 = arith.constant 0 : i32
    %c0_i32_0 = arith.constant 0 : i32
    return %c0_i32, %arg0 : i32, i32
  }
}

module attributes {stable_mosaic.version = 11 : i64} {
  func.func @kernel(%arg0: i32, %arg1: memref<1x4xbf16, #tpu.memory_space<vmem>>, %arg2: memref<4x2048xbf16, #tpu.memory_space<vmem>>, %arg3: memref<1x1xf32, #tpu.memory_space<vmem>>, %arg4: memref<1x2048xf32, #tpu.memory_space<vmem>>) attributes {dimension_semantics = [#tpu.dimension_semantics<parallel>], iteration_bounds = array<i64: 4>, scalar_prefetch = 0 : i64, scratch_operands = 0 : i64, tpu.core_type = #tpu.core_type<tc>, window_params = [{pipeline_mode = #tpu.pipeline_mode<synchronous>, transform_indices = @transform_0, window_bounds = array<i64: 1, 4>}, {transform_indices = @transform_1, window_bounds = array<i64: 4, 2048>}, {pipeline_mode = #tpu.pipeline_mode<synchronous>, transform_indices = @transform_2, window_bounds = array<i64: 1, 1>}, {transform_indices = @transform_3, window_bounds = array<i64: 1, 2048>}]} {
    %c0 = arith.constant 0 : index
    %c0_0 = arith.constant 0 : index
    %0 = vector.load %arg1[%c0, %c0_0] : memref<1x4xbf16, #tpu.memory_space<vmem>>, vector<1x4xbf16>
    %c0_1 = arith.constant 0 : index
    %c0_2 = arith.constant 0 : index
    %1 = vector.load %arg2[%c0_1, %c0_2] : memref<4x2048xbf16, #tpu.memory_space<vmem>>, vector<4x2048xbf16>
    %cst = arith.constant dense<0.000000e+00> : vector<1x2048xf32>
    %2 = tpu.matmul %0, %1, %cst {dimension_numbers = #tpu.dot_dimension_numbers<[1], [0], [0], [1], [0, 0, 1, 1], [], []>} : vector<1x4xbf16>, vector<4x2048xbf16>, vector<1x2048xf32> -> vector<1x2048xf32>
    %c0_3 = arith.constant 0 : index
    %c0_4 = arith.constant 0 : index
    %3 = vector.load %arg3[%c0_3, %c0_4] : memref<1x1xf32, #tpu.memory_space<vmem>>, vector<1x1xf32>
    %4 = vector.broadcast %3 : vector<1x1xf32> to vector<1x2048xf32>
    %5 = arith.addf %2, %4 : vector<1x2048xf32>
    %6 = arith.negf %5 : vector<1x2048xf32>
    %7 = math.exp %6 : vector<1x2048xf32>
    %cst_5 = arith.constant 1.000000e+00 : f32
    %8 = vector.broadcast %cst_5 : f32 to vector<1x2048xf32>
    %9 = arith.addf %8, %7 : vector<1x2048xf32>
    %10 = arith.divf %8, %9 : vector<1x2048xf32>
    %c0_6 = arith.constant 0 : index
    %c0_7 = arith.constant 0 : index
    %11 = vector.load %arg4[%c0_6, %c0_7] : memref<1x2048xf32, #tpu.memory_space<vmem>>, vector<1x2048xf32>
    tpu.vector_store %arg4[%c0_6, %c0_7], %10 {strides = array<i32>} : memref<1x2048xf32, #tpu.memory_space<vmem>>, vector<1x2048xf32>,
    return
  }
  func.func @transform_0(%arg0: i32) -> (i32, i32) {
    %c0_i32 = arith.constant 0 : i32
    %c0_i32_0 = arith.constant 0 : i32
    %c0_i32_1 = arith.constant 0 : i32
    return %c0_i32, %c0_i32_0 : i32, i32
  }
  func.func @transform_1(%arg0: i32) -> (i32, i32) {
    %c0_i32 = arith.constant 0 : i32
    %c0_i32_0 = arith.constant 0 : i32
    return %c0_i32, %arg0 : i32, i32
  }
  func.func @transform_2(%arg0: i32) -> (i32, i32) {
    %c0_i32 = arith.constant 0 : i32
    %c0_i32_0 = arith.constant 0 : i32
    %c0_i32_1 = arith.constant 0 : i32
    return %c0_i32, %c0_i32_0 : i32, i32
  }
  func.func @transform_3(%arg0: i32) -> (i32, i32) {
    %c0_i32 = arith.constant 0 : i32
    %c0_i32_0 = arith.constant 0 : i32
    return %c0_i32, %arg0 : i32, i32
  }
}

module attributes {stable_mosaic.version = 11 : i64} {
  func.func @kernel(%arg0: i32, %arg1: memref<4x108xbf16, #tpu.memory_space<vmem>>, %arg2: memref<108x2048xbf16, #tpu.memory_space<vmem>>, %arg3: memref<4x1xf32, #tpu.memory_space<vmem>>, %arg4: memref<4x2048xbf16, #tpu.memory_space<vmem>>) attributes {dimension_semantics = [#tpu.dimension_semantics<parallel>], iteration_bounds = array<i64: 4>, scalar_prefetch = 0 : i64, scratch_operands = 0 : i64, tpu.core_type = #tpu.core_type<tc>, window_params = [{pipeline_mode = #tpu.pipeline_mode<synchronous>, transform_indices = @transform_0, window_bounds = array<i64: 4, 108>}, {transform_indices = @transform_1, window_bounds = array<i64: 108, 2048>}, {pipeline_mode = #tpu.pipeline_mode<synchronous>, transform_indices = @transform_2, window_bounds = array<i64: 4, 1>}, {transform_indices = @transform_3, window_bounds = array<i64: 4, 2048>}]} {
    %c0 = arith.constant 0 : index
    %c0_0 = arith.constant 0 : index
    %0 = vector.load %arg1[%c0, %c0_0] : memref<4x108xbf16, #tpu.memory_space<vmem>>, vector<4x108xbf16>
    %c0_1 = arith.constant 0 : index
    %c0_2 = arith.constant 0 : index
    %1 = vector.load %arg2[%c0_1, %c0_2] : memref<108x2048xbf16, #tpu.memory_space<vmem>>, vector<108x2048xbf16>
    %cst = arith.constant dense<0.000000e+00> : vector<4x2048xf32>
    %2 = tpu.matmul %0, %1, %cst {dimension_numbers = #tpu.dot_dimension_numbers<[1], [0], [0], [1], [0, 0, 1, 1], [], []>} : vector<4x108xbf16>, vector<108x2048xbf16>, vector<4x2048xf32> -> vector<4x2048xf32>
    %c0_3 = arith.constant 0 : index
    %c0_4 = arith.constant 0 : index
    %3 = vector.load %arg3[%c0_3, %c0_4] : memref<4x1xf32, #tpu.memory_space<vmem>>, vector<4x1xf32>
    %4 = vector.broadcast %3 : vector<4x1xf32> to vector<4x2048xf32>
    %5 = arith.addf %2, %4 : vector<4x2048xf32>
    %cst_5 = arith.constant 0.000000e+00 : f32
    %6 = vector.broadcast %cst_5 : f32 to vector<4x2048xf32>
    %7 = arith.maximumf %5, %6 : vector<4x2048xf32>
    %8 = arith.truncf %7 : vector<4x2048xf32> to vector<4x2048xbf16>
    %c0_6 = arith.constant 0 : index
    %c0_7 = arith.constant 0 : index
    %9 = vector.load %arg4[%c0_6, %c0_7] : memref<4x2048xbf16, #tpu.memory_space<vmem>>, vector<4x2048xbf16>
    tpu.vector_store %arg4[%c0_6, %c0_7], %8 {strides = array<i32>} : memref<4x2048xbf16, #tpu.memory_space<vmem>>, vector<4x2048xbf16>,
    return
  }
  func.func @transform_0(%arg0: i32) -> (i32, i32) {
    %c0_i32 = arith.constant 0 : i32
    %c0_i32_0 = arith.constant 0 : i32
    %c0_i32_1 = arith.constant 0 : i32
    return %c0_i32, %c0_i32_0 : i32, i32
  }
  func.func @transform_1(%arg0: i32) -> (i32, i32) {
    %c0_i32 = arith.constant 0 : i32
    %c0_i32_0 = arith.constant 0 : i32
    return %c0_i32, %arg0 : i32, i32
  }
  func.func @transform_2(%arg0: i32) -> (i32, i32) {
    %c0_i32 = arith.constant 0 : i32
    %c0_i32_0 = arith.constant 0 : i32
    %c0_i32_1 = arith.constant 0 : i32
    return %c0_i32, %c0_i32_0 : i32, i32
  }
  func.func @transform_3(%arg0: i32) -> (i32, i32) {
    %c0_i32 = arith.constant 0 : i32
    %c0_i32_0 = arith.constant 0 : i32
    return %c0_i32, %arg0 : i32, i32
  }
}

</mosaic_0001>

<bundles_post_ra>
// kernel: unet_confidnet_forward.14
= control target key start
LH: loop header
LB: loop body
LE: loop exit
PB: predicated region body
PF: predicated region fallthrough
CT: control target
= control target key end

     0   :  { %s1146_s12 = smov 0   ;;  %s1148_s13 = smov 0   ;;  %s1386_s0 = inlined_call_operand.vmem [shape: bf16[4,27], index: 0, kind: input, shape index: {}]   ;;  %s1387_s1 = inlined_call_operand.vmem [shape: bf16[27,8192], index: 1, kind: input, shape index: {}]   ;;  %s1388_s2 = inlined_call_operand.vmem [shape: f32[4,1], index: 2, kind: input, shape index: {}]   ;;  %s1389_s3 = inlined_call_operand.vmem [shape: bf16[4,8192], index: 3, kind: output, shape index: {}]  }
   0x1   :  { %s1150_s14 = smov 0  }
   0x2 LB: > { %s1009_s15 = sadd.s32 4294967295, %s1121_s14   ;;  %s1163_s16 = sadd.s32 1, %s1121_s14   ;;  %s1121_s14 = sphi %s1150_s14, %s1392_s14   ;;  %s1117_s13 = sphi %s1148_s13, %s1391_s13   ;;  %s1113_s12 = sphi %s1146_s12, %s1390_s12  }
   0x3   : > { %s38_s17 = ssub.s32 %s1121_s14, %s1163_s16  ;;  %s41_s18 = sadd.s32 1, %s1117_s13 }
   0x4   : > { %p39_p0 = scmp.eq.s32.totalorder %s38_s17, 0  ;;  %p48_p1 = scmp.ne.s32.totalorder %s1117_s13, %s1113_s12 }
   0x5   : > { %p49_p2 = scmp.eq.s32.totalorder %s1121_s14, 0  ;;  %p1012_p4 = scmp.ge.s32.totalorder %s1121_s14, 4 }
   0x6   : > { %s1172_s19 = scalar_select %p39_p0, %s1117_s13, %s41_s18  }
   0x7   : > { %p50_p3 = por %p49_p2, %p48_p1  ;;  %127 = sbr.rel (%p1012_p4) target bundleno = 34 (0x22), region = 24 }
   0xe   : > { %130 = sbr.rel (!%p50_p3) target bundleno = 34 (0x22), region = 28  ;;  %s132_s20 = sand.u32 (%p50_p3), 1, %s1117_s13  }
   0xf   : > { %s1070_s21 = sshll.u32 (%p50_p3), %s1121_s14, 6  ;;  %s1013_s22 = sshll.u32 (%p50_p3), %s132_s20, 8 }
  0x10   : > { %s1180_s25 = scalar_lea.vmem (%p50_p3), %s1387_s1, %s1070_s21  ;;  %s1185_s26 = scalar_lea.vmem (%p50_p3), [#allocation2], %s1013_s22 }
  0x11   : > { %v150_v0 = vld [vmem:[%s1180_s25] sm:$0xff] (%p50_p3)  ;;  %v152_v1 = vld [vmem:[%s1180_s25 + $0x8] sm:$0xff] (%p50_p3)  ;;  %v154_v2 = vld [vmem:[%s1180_s25 + $0x10] sm:$0xff] (%p50_p3) }
  0x12   : > { %151 = vst [vmem:[%s1185_s26] sm:$0xff] (%p50_p3), %v150_v0  ;;  %153 = vst [vmem:[%s1185_s26 + $0x8] sm:$0xff] (%p50_p3), %v152_v1  ;;  %v156_v3 = vld [vmem:[%s1180_s25 + $0x18] sm:$0xff] (%p50_p3)  ;;  %v158_v4 = vld [vmem:[%s1180_s25 + $0x20] sm:$0xff] (%p50_p3) }
  0x13   : > { %155 = vst [vmem:[%s1185_s26 + $0x10] sm:$0xff] (%p50_p3), %v154_v2  ;;  %v160_v5 = vld [vmem:[%s1180_s25 + $0x28] sm:$0xff] (%p50_p3)  ;;  %157 = vst [vmem:[%s1185_s26 + $0x18] sm:$0xff] (%p50_p3), %v156_v3  ;;  %v162_v6 = vld [vmem:[%s1180_s25 + $0x30] sm:$0xff] (%p50_p3) }
  0x14   : > { %159 = vst [vmem:[%s1185_s26 + $0x20] sm:$0xff] (%p50_p3), %v158_v4  ;;  %161 = vst [vmem:[%s1185_s26 + $0x28] sm:$0xff] (%p50_p3), %v160_v5  ;;  %v164_v7 = vld [vmem:[%s1180_s25 + $0x38] sm:$0xff] (%p50_p3)  ;;  %v166_v8 = vld [vmem:[%s1180_s25 + $0x100] sm:$0xff] (%p50_p3) }
  0x15   : > { %163 = vst [vmem:[%s1185_s26 + $0x30] sm:$0xff] %v162_v6  ;;  %165 = vst [vmem:[%s1185_s26 + $0x38] sm:$0xff] %v164_v7  ;;  %v168_v9 = vld [vmem:[%s1180_s25 + $0x108] sm:$0xff]  ;;  %v170_v10 = vld [vmem:[%s1180_s25 + $0x110] sm:$0xff] }
  0x16   : > { %167 = vst [vmem:[%s1185_s26 + $0x40] sm:$0xff] %v166_v8  ;;  %v172_v11 = vld [vmem:[%s1180_s25 + $0x118] sm:$0xff]  ;;  %169 = vst [vmem:[%s1185_s26 + $0x48] sm:$0xff] %v168_v9  ;;  %v174_v12 = vld [vmem:[%s1180_s25 + $0x120] sm:$0xff] }
  0x17   : > { %171 = vst [vmem:[%s1185_s26 + $0x50] sm:$0xff] %v170_v10  ;;  %173 = vst [vmem:[%s1185_s26 + $0x58] sm:$0xff] %v172_v11  ;;  %v176_v13 = vld [vmem:[%s1180_s25 + $0x128] sm:$0xff]  ;;  %v178_v14 = vld [vmem:[%s1180_s25 + $0x130] sm:$0xff] }
  0x18   : > { %175 = vst [vmem:[%s1185_s26 + $0x60] sm:$0xff] %v174_v12  ;;  %177 = vst [vmem:[%s1185_s26 + $0x68] sm:$0xff] %v176_v13  ;;  %v180_v15 = vld [vmem:[%s1180_s25 + $0x138] sm:$0xff]  ;;  %v182_v16 = vld [vmem:[%s1180_s25 + $0x200] sm:$0xff] }
  0x19   : > { %179 = vst [vmem:[%s1185_s26 + $0x70] sm:$0xff] %v178_v14  ;;  %v184_v17 = vld [vmem:[%s1180_s25 + $0x208] sm:$0xff]  ;;  %181 = vst [vmem:[%s1185_s26 + $0x78] sm:$0xff] %v180_v15  ;;  %v186_v18 = vld [vmem:[%s1180_s25 + $0x210] sm:$0xff] }
  0x1a   : > { %183 = vst [vmem:[%s1185_s26 + $0x80] sm:$0xff] %v182_v16  ;;  %185 = vst [vmem:[%s1185_s26 + $0x88] sm:$0xff] %v184_v17  ;;  %v188_v19 = vld [vmem:[%s1180_s25 + $0x218] sm:$0xff]  ;;  %v190_v20 = vld [vmem:[%s1180_s25 + $0x220] sm:$0xff] }
  0x1b   : > { %187 = vst [vmem:[%s1185_s26 + $0x90] sm:$0xff] %v186_v18  ;;  %189 = vst [vmem:[%s1185_s26 + $0x98] sm:$0xff] %v188_v19  ;;  %v192_v21 = vld [vmem:[%s1180_s25 + $0x228] sm:$0xff]  ;;  %v194_v22 = vld [vmem:[%s1180_s25 + $0x230] sm:$0xff] }
  0x1c   : > { %191 = vst [vmem:[%s1185_s26 + $0xa0] sm:$0xff] %v190_v20  ;;  %v196_v23 = vld [vmem:[%s1180_s25 + $0x238] sm:$0xff]  ;;  %193 = vst [vmem:[%s1185_s26 + $0xa8] sm:$0xff] %v192_v21  ;;  %v198_v24 = vld [vmem:[%s1180_s25 + $0x300] sm:$0xff] }
  0x1d   : > { %195 = vst [vmem:[%s1185_s26 + $0xb0] sm:$0xff] %v194_v22  ;;  %197 = vst [vmem:[%s1185_s26 + $0xb8] sm:$0xff] %v196_v23  ;;  %v200_v25 = vld [vmem:[%s1180_s25 + $0x308] sm:$0xff]  ;;  %v202_v26 = vld [vmem:[%s1180_s25 + $0x310] sm:$0xff] }
  0x1e   : > { %199 = vst [vmem:[%s1185_s26 + $0xc0] sm:$0xff] %v198_v24  ;;  %201 = vst [vmem:[%s1185_s26 + $0xc8] sm:$0xff] %v200_v25  ;;  %v204_v27 = vld [vmem:[%s1180_s25 + $0x318] sm:$0xff]  ;;  %v206_v28 = vld [vmem:[%s1180_s25 + $0x320] sm:$0xff] }
  0x1f   : > { %203 = vst [vmem:[%s1185_s26 + $0xd0] sm:$0xff] %v202_v26  ;;  %v208_v29 = vld [vmem:[%s1180_s25 + $0x328] sm:$0xff]  ;;  %205 = vst [vmem:[%s1185_s26 + $0xd8] sm:$0xff] %v204_v27  ;;  %v210_v30 = vld [vmem:[%s1180_s25 + $0x330] sm:$0xff] }
  0x20   : > { %207 = vst [vmem:[%s1185_s26 + $0xe0] sm:$0xff] %v206_v28  ;;  %209 = vst [vmem:[%s1185_s26 + $0xe8] sm:$0xff] %v208_v29  ;;  %v212_v31 = vld [vmem:[%s1180_s25 + $0x338] sm:$0xff] }
  0x21   : > { %211 = vst [vmem:[%s1185_s26 + $0xf0] sm:$0xff] %v210_v30  ;;  %213 = vst [vmem:[%s1185_s26 + $0xf8] sm:$0xff] %v212_v31 }
  0x22 PF: > { %p1016_p5 = scmp.ge.s32.totalorder %s1121_s14, 1  ;;  %p218_p6 = scmp.lt.s32.totalorder %s1121_s14, 5 }
  0x24   : > { %p219_p7 = pnand %p1016_p5, %p218_p6 }
  0x25   : > { %s225_s27 = sand.u32 (!%p219_p7), 1, %s1113_s12   ;;  %vm443_vm0 = vcmask (!%p219_p7), 1044480   ;;  %vm444_vm1 = vcmask (!%p219_p7), 1045504   ;;  %v1123_v32 = vmov (!%p219_p7), 65535   ;;  %v1124_v34 = vmov (!%p219_p7), 0   ;;  %s1018_s7 = sshll.u32 (!%p219_p7), %s1009_s15, 4 }
  0x26   : > { %222 = sbr.rel (%p219_p7) target bundleno = 301 (0x12d), region = 51  ;;  %s1017_s28 = sshll.u32 (!%p219_p7), %s225_s27, 8  ;;  %v445_v33 = vsel (!%p219_p7), %vm443_vm0, 4294967295, %v1123_v32  ;;  %527 = vmatprep.mubr.bf16.mxu0 (!%p219_p7), %v1124_v34  ;;  %568 = vmatprep.mubr.bf16.mxu1 (!%p219_p7), %v1124_v34  ;;  %v289_v35 = vld [vmem:[%s1388_s2] sm:$0xf] (!%p219_p7)  ;;  %vm439_vm2 = vcmask (!%p219_p7), 220160  }
  0x27   : > { %1098 = vset.pattern.permute.xlu0 (!%p219_p7), %v1124_v34  ;;  %s1257_s4 = scalar_lea.vmem (!%p219_p7), [#allocation2], %s1017_s28  ;;  %v1266_v44 = vsel (!%p219_p7), %vm444_vm1, %v445_v33, 0  ;;  %v1285_v5 = vld [vmem:[%s1386_s0] sm:$0x3] (!%p219_p7)  ;;  %p250_p8 = scmp.lt.s32.totalorder (!%p219_p7), %s1018_s7, 63 }
  0x28   : > { %v257_v36 = vld [vmem:[%s1257_s4] sm:$0xff] (!%p219_p7)  ;;  %v258_v38 = vld [vmem:[%s1257_s4 + $0x8] sm:$0xff] (!%p219_p7)  ;;  %292 = vperm.xlu0 (!%p219_p7), %1098, %v289_v35   ;;  %v259_v51 = vld [vmem:[%s1257_s4 + $0x10] sm:$0xff] (!%p219_p7) }
  0x29   : > { %v265_v37 = vld [vmem:[%s1257_s4 + $0x40] sm:$0xff] (!%p219_p7)  ;;  %v266_v40 = vld [vmem:[%s1257_s4 + $0x48] sm:$0xff] (!%p219_p7)  ;;  %v267_v54 = vld [vmem:[%s1257_s4 + $0x50] sm:$0xff] (!%p219_p7) }
  0x2a   : > { %v1021_v39 = vcombine.high (!%p219_p7), %v257_v36, %v265_v37  ;;  %v1020_v41 = vcombine.low (!%p219_p7), %v257_v36, %v265_v37  ;;  %v273_v42 = vld [vmem:[%s1257_s4 + $0x80] sm:$0xff] (!%p219_p7)  ;;  %v1023_v45 = vcombine.high (!%p219_p7), %v258_v38, %v266_v40  ;;  %v1022_v46 = vcombine.low (!%p219_p7), %v258_v38, %v266_v40  ;;  %v274_v48 = vld [vmem:[%s1257_s4 + $0x88] sm:$0xff] (!%p219_p7)  ;;  %v260_v55 = vld [vmem:[%s1257_s4 + $0x18] sm:$0xff] (!%p219_p7) }
  0x2b   : > { %v281_v43 = vld [vmem:[%s1257_s4 + $0xc0] sm:$0x33] (!%p219_p7)  ;;  %v282_v49 = vld [vmem:[%s1257_s4 + $0xc8] sm:$0x33] (!%p219_p7)  ;;  %v268_v56 = vld [vmem:[%s1257_s4 + $0x58] sm:$0xff] (!%p219_p7)  ;;  %v1025_v0 = vcombine.high (!%p219_p7), %v259_v51, %v267_v54  ;;  %v1024_v6 = vcombine.low (!%p219_p7), %v259_v51, %v267_v54 }
  0x2c   : > { %v1037_v47 = vcombine.high (!%p219_p7), %v273_v42, %v281_v43  ;;  %v1036_v50 = vcombine.low (!%p219_p7), %v273_v42, %v281_v43  ;;  %495 = vmatprep.subr.bf16.mxu0 (!%p219_p7), %v1021_v39  ;;  %v1039_v52 = vcombine.high (!%p219_p7), %v274_v48, %v282_v49  ;;  %v1038_v53 = vcombine.low (!%p219_p7), %v274_v48, %v282_v49  ;;  %v275_v59 = vld [vmem:[%s1257_s4 + $0x90] sm:$0xff] (!%p219_p7)  ;;  %v276_v61 = vld [vmem:[%s1257_s4 + $0x98] sm:$0xff] (!%p219_p7)  ;;  %v261_v11 = vld [vmem:[%s1257_s4 + $0x20] sm:$0xff] (!%p219_p7) }
  0x2d   : > { %536 = vmatprep.subr.bf16.mxu1 %v1023_v45  ;;  %496 = vmatpush1.bf16.msra.mxu0 %v1020_v41  ;;  %v283_v60 = vld [vmem:[%s1257_s4 + $0xd0] sm:$0x33]  ;;  %v284_v1 = vld [vmem:[%s1257_s4 + $0xd8] sm:$0x33]  ;;  %v1027_v2 = vcombine.high %v260_v55, %v268_v56  ;;  %v1026_v8 = vcombine.low %v260_v55, %v268_v56  ;;  %v269_v12 = vld [vmem:[%s1257_s4 + $0x60] sm:$0xff]  ;;  %s1394_s7 = smov (!%p250_p8, %s1018_s7), 63 }
  0x2e   : > { %v451_v57 = vand.u32 %v1037_v47, %v1266_v44  ;;  %v448_v58 = vand.u32 %v1036_v50, %v1266_v44  ;;  %537 = vmatpush1.bf16.msra.mxu1 %v1022_v46  ;;  %v457_v62 = vand.u32 %v1039_v52, %v1266_v44  ;;  %v454_v63 = vand.u32 %v1038_v53, %v1266_v44  ;;  %v262_v14 = vld [vmem:[%s1257_s4 + $0x28] sm:$0xff]  ;;  %v277_v15 = vld [vmem:[%s1257_s4 + $0xa0] sm:$0xff]  ;;  %v263_v31 = vld [vmem:[%s1257_s4 + $0x30] sm:$0xff]  ;;  %s1019_s8 = sshll.u32 %s1394_s7, 1 }
  0x2f   : > { %v1041_v3 = vcombine.high %v275_v59, %v283_v60  ;;  %v1043_v4 = vcombine.high %v276_v61, %v284_v1  ;;  %v1040_v7 = vcombine.low %v275_v59, %v283_v60  ;;  %v1042_v10 = vcombine.low %v276_v61, %v284_v1  ;;  %v285_v16 = vld [vmem:[%s1257_s4 + $0xe0] sm:$0x33]  ;;  %v270_v17 = vld [vmem:[%s1257_s4 + $0x68] sm:$0xff]  ;;  %v271_v32 = vld [vmem:[%s1257_s4 + $0x70] sm:$0xff]  ;;  %s1353_s11 = scalar_lea.vmem %s1389_s3, %s1019_s8 }
  0x30   : > { %497 = vmatprep.subr.bf16.mxu0 %v451_v57  ;;  %538 = vmatprep.subr.bf16.mxu1 %v457_v62  ;;  %v278_v18 = vld [vmem:[%s1257_s4 + $0xa8] sm:$0xff]  ;;  %v1029_v22 = vcombine.high %v261_v11, %v269_v12  ;;  %v1045_v23 = vcombine.high %v277_v15, %v285_v16  ;;  %v1031_v24 = vcombine.high %v262_v14, %v270_v17  ;;  %v264_v35 = vld [vmem:[%s1257_s4 + $0x38] sm:$0xff]  ;;  %v279_v36 = vld [vmem:[%s1257_s4 + $0xb0] sm:$0xff]  ;;  %v1125_v56 = vmov 1983009808  }
  0x31   : > { %498 = vmatpush1.bf16.msra.mxu0 %v448_v58  ;;  %v463_v9 = vand.u32 %v1041_v3, %v1266_v44  ;;  %v469_v13 = vand.u32 %v1043_v4, %v1266_v44  ;;  %v286_v19 = vld [vmem:[%s1257_s4 + $0xe8] sm:$0x33]  ;;  %v460_v20 = vand.u32 %v1040_v7, %v1266_v44  ;;  %v466_v21 = vand.u32 %v1042_v10, %v1266_v44  ;;  %v287_v37 = vld [vmem:[%s1257_s4 + $0xf0] sm:$0x33]  ;;  %v272_v38 = vld [vmem:[%s1257_s4 + $0x78] sm:$0xff] }
  0x32   : > { %539 = vmatpush1.bf16.msra.mxu1 %v454_v63  ;;  %577 = vmatprep.subr.bf16.mxu0 %v1025_v0  ;;  %v1047_v25 = vcombine.high %v278_v18, %v286_v19  ;;  %v1028_v26 = vcombine.low %v261_v11, %v269_v12  ;;  %v1044_v27 = vcombine.low %v277_v15, %v285_v16  ;;  %v280_v39 = vld [vmem:[%s1257_s4 + $0xb8] sm:$0xff]  ;;  %v874_v57 = vunpack.c.l.s4 %v1125_v56 }
  0x33   : > { %618 = vmatprep.subr.bf16.mxu1 %v1027_v2  ;;  %v1030_v28 = vcombine.low %v262_v14, %v270_v17  ;;  %v475_v29 = vand.u32 %v1045_v23, %v1266_v44  ;;  %v1046_v30 = vcombine.low %v278_v18, %v286_v19  ;;  %v288_v40 = vld [vmem:[%s1257_s4 + $0xf8] sm:$0x33]  ;;  %v1033_v43 = vcombine.high %v263_v31, %v271_v32 }
  0x34   : > { %1052 = vmatmul.mubr.msk.bf16.vlgmr.msra.gmra.mrb[0].mxu0 %vm439_vm2, %v1285_v5  ;;  %v481_v33 = vand.u32 %v1047_v25, %v1266_v44  ;;  %v472_v41 = vand.u32 %v1044_v27, %v1266_v44  ;;  %v1049_v45 = vcombine.high %v279_v36, %v287_v37  ;;  %v1035_v46 = vcombine.high %v264_v35, %v272_v38 }
  0x35   : > { %1053 = vmatmul.mubr.msk.bf16.vlgmr.msra.gmra.mrb[0].mxu1 %vm439_vm2, %v1285_v5  ;;  %578 = vmatpush1.bf16.msra.mxu0 %v1024_v6  ;;  %v478_v42 = vand.u32 %v1046_v30, %v1266_v44  ;;  %v1051_v47 = vcombine.high %v280_v39, %v288_v40  ;;  %v1032_v48 = vcombine.low %v263_v31, %v271_v32  ;;  %v876_v58 = vlaneseq }
  0x36   : > { %619 = vmatpush1.bf16.msra.mxu1 %v1026_v8  ;;  %579 = vmatprep.subr.bf16.mxu0 %v463_v9  ;;  %v1048_v49 = vcombine.low %v279_v36, %v287_v37  ;;  %v1034_v50 = vcombine.low %v264_v35, %v272_v38  ;;  %v487_v51 = vand.u32 %v1049_v45, %v1266_v44  ;;  %v875_v60 = vunpack.c.0.s8 %v874_v57 }
  0x37   : > { %620 = vmatprep.subr.bf16.mxu1 %v469_v13  ;;  %609 = vmatprep.mubr.bf16.mxu0 %v1124_v34  ;;  %v1050_v52 = vcombine.low %v280_v39, %v288_v40  ;;  %v493_v53 = vand.u32 %v1051_v47, %v1266_v44  ;;  %v877_v61 = vshrl.u32 %v876_v58, 7 }
  0x38   : > { %650 = vmatprep.mubr.bf16.mxu1 %v1124_v34  ;;  %v484_v54 = vand.u32 %v1048_v49, %v1266_v44 }
  0x39   : > { %580 = vmatpush1.bf16.msra.mxu0 %v460_v20  ;;  %v490_v55 = vand.u32 %v1050_v52, %v1266_v44  ;;  %v1345_v9 = vsub.s32 %v875_v60, %v877_v61 }
  0x3a   : > { %621 = vmatpush1.bf16.msra.mxu1 %v466_v21  ;;  %659 = vmatprep.subr.bf16.mxu0 %v1029_v22 }
  0x3b   : > { %700 = vmatprep.subr.bf16.mxu1 %v1031_v24 }
  0x3c   : > { %1054 = vmatmul.mubr.msk.bf16.vlgmr.msra.gmra.mrb[4].mxu0 %vm439_vm2, %v1285_v5 }
  0x3d   : > { %1055 = vmatmul.mubr.msk.bf16.vlgmr.msra.gmra.mrb[4].mxu1 %vm439_vm2, %v1285_v5  ;;  %660 = vmatpush1.bf16.msra.mxu0 %v1028_v26 }
  0x3e   : > { %701 = vmatpush1.bf16.msra.mxu1 %v1030_v28  ;;  %661 = vmatprep.subr.bf16.mxu0 %v475_v29 }
  0x3f   : > { %702 = vmatprep.subr.bf16.mxu1 %v481_v33  ;;  %691 = vmatprep.mubr.bf16.mxu0 %v1124_v34 }
  0x40   : > { %732 = vmatprep.mubr.bf16.mxu1 %v1124_v34 }
  0x41   : > { %662 = vmatpush1.bf16.msra.mxu0 %v472_v41 }
  0x42   : > { %703 = vmatpush1.bf16.msra.mxu1 %v478_v42  ;;  %741 = vmatprep.subr.bf16.mxu0 %v1033_v43 }
  0x43   : > { %782 = vmatprep.subr.bf16.mxu1 %v1035_v46 }
  0x44   : > { %1056 = vmatmul.mubr.msk.bf16.vlgmr.msra.gmra.mrb[8].mxu0 %vm439_vm2, %v1285_v5 }
  0x45   : > { %1057 = vmatmul.mubr.msk.bf16.vlgmr.msra.gmra.mrb[8].mxu1 %vm439_vm2, %v1285_v5  ;;  %742 = vmatpush1.bf16.msra.mxu0 %v1032_v48 }
  0x46   : > { %783 = vmatpush1.bf16.msra.mxu1 %v1034_v50  ;;  %743 = vmatprep.subr.bf16.mxu0 %v487_v51 }
  0x47   : > { %784 = vmatprep.subr.bf16.mxu1 %v493_v53  ;;  %773 = vmatprep.mubr.bf16.mxu0 %v1124_v34 }
  0x48   : > { %814 = vmatprep.mubr.bf16.mxu1 %v1124_v34 }
  0x49   : > { %744 = vmatpush1.bf16.msra.mxu0 %v484_v54 }
  0x4a   : > { %785 = vmatpush1.bf16.msra.mxu1 %v490_v55 }
  0x4c   : > { %1058 = vmatmul.mubr.msk.bf16.vlgmr.msra.gmra.mrb[12].mxu0 %vm439_vm2, %v1285_v5 }
  0x4d   : > { %1059 = vmatmul.mubr.msk.bf16.vlgmr.msra.gmra.mrb[12].mxu1 %vm439_vm2, %v1285_v5 }
  0xa7   : > { %v1339_v59 = vpop.permute.xlu0 %292 }
 0x107   : > { %v529_v44 = vpop.f32.mrb[0].mxu0 }
 0x108   : > { %v570_v34 = vpop.f32.mrb[0].mxu1  ;;  %v530_v62 = vadd.f32 %v529_v44, %v1339_v59  ;;  %v531_v63 = vpop.f32.mrb[1].mxu0 }
 0x109   : > { %v532_v0 = vadd.f32 %v531_v63, %v1339_v59  ;;  %v571_v1 = vadd.f32 %v570_v34, %v1339_v59  ;;  %v572_v2 = vpop.f32.mrb[1].mxu1  ;;  %v533_v3 = vpop.f32.mrb[2].mxu0 }
 0x10a   : > { %v823_v4 = vmax.f32 %v530_v62, 0.0  ;;  %v573_v5 = vadd.f32 %v572_v2, %v1339_v59  ;;  %v574_v6 = vpop.f32.mrb[2].mxu1  ;;  %v534_v7 = vpop.f32.mrb[3].mxu0 }
 0x10b   : > { %v824_v8 = vmax.f32 %v532_v0, 0.0  ;;  %v825_v10 = vmax.f32 %v571_v1, 0.0  ;;  %v575_v11 = vpop.f32.mrb[3].mxu1 }
 0x10c   : > { %v826_v12 = vmax.f32 %v573_v5, 0.0 }
 0x10d   : > { %v1060_v13 = vpack.c.bf16 %v824_v8, %v823_v4 }
 0x10e   : > { %v1061_v14 = vpack.c.bf16 %v826_v12, %v825_v10 }
 0x10f   : > { %v879_v15 = vrot.slane %v1060_v13, %v1345_v9  ;;  %v611_v16 = vpop.f32.mrb[4].mxu0 }
 0x110   : > { %v886_v17 = vrot.slane %v1061_v14, %v1345_v9  ;;  %v612_v18 = vadd.f32 %v611_v16, %v1339_v59  ;;  %v652_v19 = vpop.f32.mrb[4].mxu1  ;;  %v613_v20 = vpop.f32.mrb[5].mxu0 }
 0x111   : > { %v653_v21 = vadd.f32 %v652_v19, %v1339_v59  ;;  %v614_v22 = vadd.f32 %v613_v20, %v1339_v59  ;;  %v654_v23 = vpop.f32.mrb[5].mxu1  ;;  %v615_v24 = vpop.f32.mrb[6].mxu0 }
 0x112   : > { %v887_v25 = vcombine.low %v879_v15, %v886_v17  ;;  %v827_v26 = vmax.f32 %v612_v18, 0.0  ;;  %v655_v27 = vadd.f32 %v654_v23, %v1339_v59  ;;  %v656_v28 = vpop.f32.mrb[6].mxu1  ;;  %v616_v29 = vpop.f32.mrb[7].mxu0 }
 0x113   : > { %v829_v30 = vmax.f32 %v653_v21, 0.0  ;;  %v828_v31 = vmax.f32 %v614_v22, 0.0  ;;  %v657_v32 = vpop.f32.mrb[7].mxu1 }
 0x114   : > { %943 = vst [vmem:[%s1353_s11] sm:$0xff] %v887_v25  ;;  %v830_v33 = vmax.f32 %v655_v27, 0.0 }
 0x115   : > { %v1062_v35 = vpack.c.bf16 %v828_v31, %v827_v26 }
 0x116   : > { %v1063_v36 = vpack.c.bf16 %v830_v33, %v829_v30 }
 0x117   : > { %v896_v37 = vrot.slane %v1062_v35, %v1345_v9  ;;  %v693_v38 = vpop.f32.mrb[8].mxu0 }
 0x118   : > { %v903_v39 = vrot.slane %v1063_v36, %v1345_v9  ;;  %v694_v40 = vadd.f32 %v693_v38, %v1339_v59  ;;  %v734_v41 = vpop.f32.mrb[8].mxu1  ;;  %v695_v42 = vpop.f32.mrb[9].mxu0 }
 0x119   : > { %v735_v43 = vadd.f32 %v734_v41, %v1339_v59  ;;  %v696_v45 = vadd.f32 %v695_v42, %v1339_v59  ;;  %v736_v46 = vpop.f32.mrb[9].mxu1  ;;  %v697_v47 = vpop.f32.mrb[10].mxu0 }
 0x11a   : > { %v904_v48 = vcombine.low %v896_v37, %v903_v39  ;;  %v831_v49 = vmax.f32 %v694_v40, 0.0  ;;  %v737_v50 = vadd.f32 %v736_v46, %v1339_v59  ;;  %v738_v51 = vpop.f32.mrb[10].mxu1  ;;  %v698_v52 = vpop.f32.mrb[11].mxu0 }
 0x11b   : > { %v833_v53 = vmax.f32 %v735_v43, 0.0  ;;  %v832_v54 = vmax.f32 %v696_v45, 0.0  ;;  %v739_v55 = vpop.f32.mrb[11].mxu1 }
 0x11c   : > { %944 = vst [vmem:[%s1353_s11 + $0x8] sm:$0xff] %v904_v48  ;;  %v834_v56 = vmax.f32 %v737_v50, 0.0 }
 0x11d   : > { %v1064_v57 = vpack.c.bf16 %v832_v54, %v831_v49 }
 0x11e   : > { %v1065_v58 = vpack.c.bf16 %v834_v56, %v833_v53 }
 0x11f   : > { %v913_v44 = vrot.slane %v1064_v57, %v1345_v9  ;;  %v775_v60 = vpop.f32.mrb[12].mxu0 }
 0x120   : > { %v920_v61 = vrot.slane %v1065_v58, %v1345_v9  ;;  %v776_v34 = vadd.f32 %v775_v60, %v1339_v59  ;;  %v816_v62 = vpop.f32.mrb[12].mxu1  ;;  %v777_v63 = vpop.f32.mrb[13].mxu0 }
 0x121   : > { %v817_v0 = vadd.f32 %v816_v62, %v1339_v59  ;;  %v778_v1 = vadd.f32 %v777_v63, %v1339_v59  ;;  %v818_v2 = vpop.f32.mrb[13].mxu1  ;;  %v779_v3 = vpop.f32.mrb[14].mxu0 }
 0x122   : > { %v921_v4 = vcombine.low %v913_v44, %v920_v61  ;;  %v835_v5 = vmax.f32 %v776_v34, 0.0  ;;  %v819_v6 = vadd.f32 %v818_v2, %v1339_v59  ;;  %v820_v7 = vpop.f32.mrb[14].mxu1  ;;  %v780_v8 = vpop.f32.mrb[15].mxu0 }
 0x123   : > { %v837_v10 = vmax.f32 %v817_v0, 0.0  ;;  %v836_v11 = vmax.f32 %v778_v1, 0.0  ;;  %v821_v12 = vpop.f32.mrb[15].mxu1 }
 0x124   : > { %945 = vst [vmem:[%s1353_s11 + $0x10] sm:$0xff] %v921_v4  ;;  %v838_v13 = vmax.f32 %v819_v6, 0.0 }
 0x125   : > { %v1066_v14 = vpack.c.bf16 %v836_v11, %v835_v5 }
 0x126   : > { %v1067_v15 = vpack.c.bf16 %v838_v13, %v837_v10 }
 0x127   : > { %v930_v16 = vrot.slane %v1066_v14, %v1345_v9 }
 0x128   : > { %v937_v17 = vrot.slane %v1067_v15, %v1345_v9 }
 0x12a   : > { %v938_v18 = vcombine.low %v930_v16, %v937_v17 }
 0x12c   : > { %946 = vst [vmem:[%s1353_s11 + $0x18] sm:$0xff] %v938_v18 }
 0x12d PF: > { %p10_p9 = scmp.ge.s32.totalorder %s1163_s16, 6   ;;  %s1390_s12 = smov %s1117_s13 }
 0x12e   : > { %s1391_s13 = smov %s1172_s19  ;;  %s1392_s14 = smov %s1163_s16 }
 0x12f   :  { %12 = sbr.rel (!%p10_p9) target bundleno = 2 (0x2), region = 90 }

// kernel: unet_confidnet_forward.15
= control target key start
LH: loop header
LB: loop body
LE: loop exit
PB: predicated region body
PF: predicated region fallthrough
CT: control target
= control target key end

     0   :  { %v665_v3 = vmov 0   ;;  %vm354_vm0 = vcmask 1045504   ;;  %vm350_vm1 = vcmask 883712   ;;  %s895_s1 = inlined_call_operand.vmem [shape: bf16[108,1024], index: 1, kind: input, shape index: {}]   ;;  %s896_s2 = inlined_call_operand.vmem [shape: f32[8,1], index: 2, kind: input, shape index: {}]   ;;  %s897_s0 = inlined_call_operand.vmem [shape: bf16[8,108], index: 0, kind: input, shape index: {}]   ;;  %s898_s3 = inlined_call_operand.vmem [shape: bf16[8,1024], index: 3, kind: output, shape index: {}]  }
   0x1   :  { %v16_v0 = vld [vmem:[%s895_s1] sm:$0xff]  ;;  %v17_v2 = vld [vmem:[%s895_s1 + $0x8] sm:$0xff]  ;;  %411 = vmatprep.mubr.bf16.mxu0 %v665_v3  ;;  %452 = vmatprep.mubr.bf16.mxu1 %v665_v3  ;;  %v18_v58 = vld [vmem:[%s895_s1 + $0x10] sm:$0xff] }
   0x2   :  { %v20_v1 = vld [vmem:[%s895_s1 + $0x20] sm:$0xff]  ;;  %v21_v5 = vld [vmem:[%s895_s1 + $0x28] sm:$0xff]  ;;  %664 = vset.pattern.permute.xlu0 %v665_v3  ;;  %v22_v59 = vld [vmem:[%s895_s1 + $0x30] sm:$0xff] }
   0x3   :  { %v592_v4 = vcombine.high %v16_v0, %v20_v1  ;;  %v591_v6 = vcombine.low %v16_v0, %v20_v1  ;;  %v24_v7 = vld [vmem:[%s895_s1 + $0x40] sm:$0xff]  ;;  %v594_v9 = vcombine.high %v17_v2, %v21_v5  ;;  %v593_v10 = vcombine.low %v17_v2, %v21_v5  ;;  %v25_v12 = vld [vmem:[%s895_s1 + $0x48] sm:$0xff]  ;;  %v19_v60 = vld [vmem:[%s895_s1 + $0x18] sm:$0xff] }
   0x4   :  { %v28_v8 = vld [vmem:[%s895_s1 + $0x60] sm:$0xff]  ;;  %v29_v13 = vld [vmem:[%s895_s1 + $0x68] sm:$0xff]  ;;  %v23_v61 = vld [vmem:[%s895_s1 + $0x38] sm:$0xff]  ;;  %v596_v63 = vcombine.high %v18_v58, %v22_v59 }
   0x5   :  { %v600_v11 = vcombine.high %v24_v7, %v28_v8  ;;  %v32_v14 = vld [vmem:[%s895_s1 + $0x80] sm:$0xff]  ;;  %379 = vmatprep.subr.bf16.mxu0 %v592_v4  ;;  %v602_v15 = vcombine.high %v25_v12, %v29_v13  ;;  %v33_v17 = vld [vmem:[%s895_s1 + $0x88] sm:$0xff]  ;;  %420 = vmatprep.subr.bf16.mxu1 %v594_v9  ;;  %v599_v19 = vcombine.low %v24_v7, %v28_v8  ;;  %v26_v2 = vld [vmem:[%s895_s1 + $0x50] sm:$0xff] }
   0x6   :  { %v36_v16 = vld [vmem:[%s895_s1 + $0xa0] sm:$0xff]  ;;  %v37_v18 = vld [vmem:[%s895_s1 + $0xa8] sm:$0xff]  ;;  %380 = vmatpush1.bf16.msra.mxu0 %v591_v6  ;;  %421 = vmatpush1.bf16.msra.mxu1 %v593_v10  ;;  %v601_v20 = vcombine.low %v25_v12, %v29_v13  ;;  %v598_v1 = vcombine.high %v19_v60, %v23_v61  ;;  %v30_v4 = vld [vmem:[%s895_s1 + $0x70] sm:$0xff]  ;;  %v595_v8 = vcombine.low %v18_v58, %v22_v59 }
   0x7   :  { %381 = vmatprep.subr.bf16.mxu0 %v600_v11  ;;  %v608_v21 = vcombine.high %v32_v14, %v36_v16  ;;  %422 = vmatprep.subr.bf16.mxu1 %v602_v15  ;;  %v610_v22 = vcombine.high %v33_v17, %v37_v18  ;;  %v40_v23 = vld [vmem:[%s895_s1 + $0xc0] sm:$0xff]  ;;  %v41_v25 = vld [vmem:[%s895_s1 + $0xc8] sm:$0xff]  ;;  %v607_v27 = vcombine.low %v32_v14, %v36_v16  ;;  %v27_v5 = vld [vmem:[%s895_s1 + $0x58] sm:$0xff] }
   0x8   :  { %v44_v24 = vld [vmem:[%s895_s1 + $0xe0] sm:$0xff]  ;;  %v45_v26 = vld [vmem:[%s895_s1 + $0xe8] sm:$0xff]  ;;  %v609_v28 = vcombine.low %v33_v17, %v37_v18  ;;  %v31_v6 = vld [vmem:[%s895_s1 + $0x78] sm:$0xff]  ;;  %v597_v9 = vcombine.low %v19_v60, %v23_v61  ;;  %v604_v10 = vcombine.high %v26_v2, %v30_v4  ;;  %v603_v16 = vcombine.low %v26_v2, %v30_v4 }
   0x9   :  { %v616_v29 = vcombine.high %v40_v23, %v44_v24  ;;  %v618_v30 = vcombine.high %v41_v25, %v45_v26  ;;  %v48_v31 = vld [vmem:[%s895_s1 + $0x100] sm:$0xff]  ;;  %v49_v33 = vld [vmem:[%s895_s1 + $0x108] sm:$0xff]  ;;  %v615_v35 = vcombine.low %v40_v23, %v44_v24  ;;  %v617_v36 = vcombine.low %v41_v25, %v45_v26  ;;  %v34_v12 = vld [vmem:[%s895_s1 + $0x90] sm:$0xff] }
   0xa   :  { %382 = vmatpush1.bf16.msra.mxu0 %v599_v19  ;;  %423 = vmatpush1.bf16.msra.mxu1 %v601_v20  ;;  %v52_v32 = vld [vmem:[%s895_s1 + $0x120] sm:$0xff]  ;;  %v53_v34 = vld [vmem:[%s895_s1 + $0x128] sm:$0xff]  ;;  %v606_v11 = vcombine.high %v27_v5, %v31_v6  ;;  %v38_v13 = vld [vmem:[%s895_s1 + $0xb0] sm:$0xff]  ;;  %v605_v17 = vcombine.low %v27_v5, %v31_v6 }
   0xb   :  { %383 = vmatprep.subr.bf16.mxu0 %v608_v21  ;;  %424 = vmatprep.subr.bf16.mxu1 %v610_v22  ;;  %v624_v37 = vcombine.high %v48_v31, %v52_v32  ;;  %v626_v38 = vcombine.high %v49_v33, %v53_v34  ;;  %v56_v39 = vld [vmem:[%s895_s1 + $0x140] sm:$0xff]  ;;  %v57_v41 = vld [vmem:[%s895_s1 + $0x148] sm:$0xff]  ;;  %v623_v43 = vcombine.low %v48_v31, %v52_v32  ;;  %v35_v14 = vld [vmem:[%s895_s1 + $0x98] sm:$0xff] }
   0xc   :  { %v60_v40 = vld [vmem:[%s895_s1 + $0x160] sm:$0xff]  ;;  %v61_v42 = vld [vmem:[%s895_s1 + $0x168] sm:$0xff]  ;;  %v625_v44 = vcombine.low %v49_v33, %v53_v34  ;;  %v39_v15 = vld [vmem:[%s895_s1 + $0xb8] sm:$0xff]  ;;  %v612_v18 = vcombine.high %v34_v12, %v38_v13  ;;  %v611_v24 = vcombine.low %v34_v12, %v38_v13 }
   0xd   :  { %v632_v45 = vcombine.high %v56_v39, %v60_v40  ;;  %v634_v46 = vcombine.high %v57_v41, %v61_v42  ;;  %v64_v47 = vld [vmem:[%s895_s1 + $0x180] sm:$0xff]  ;;  %v65_v49 = vld [vmem:[%s895_s1 + $0x188] sm:$0xff]  ;;  %v631_v52 = vcombine.low %v56_v39, %v60_v40  ;;  %v633_v53 = vcombine.low %v57_v41, %v61_v42  ;;  %v42_v20 = vld [vmem:[%s895_s1 + $0xd0] sm:$0xff] }
   0xe   :  { %384 = vmatpush1.bf16.msra.mxu0 %v607_v27  ;;  %425 = vmatpush1.bf16.msra.mxu1 %v609_v28  ;;  %v68_v48 = vld [vmem:[%s895_s1 + $0x1a0] sm:$0x33]  ;;  %v69_v50 = vld [vmem:[%s895_s1 + $0x1a8] sm:$0x33]  ;;  %v614_v19 = vcombine.high %v35_v14, %v39_v15  ;;  %v46_v21 = vld [vmem:[%s895_s1 + $0xf0] sm:$0xff]  ;;  %v613_v25 = vcombine.low %v35_v14, %v39_v15 }
   0xf   :  { %385 = vmatprep.subr.bf16.mxu0 %v616_v29  ;;  %426 = vmatprep.subr.bf16.mxu1 %v618_v30  ;;  %v72_v51 = vld [vmem:[%s896_s2] sm:$0xff]  ;;  %v640_v54 = vcombine.high %v64_v47, %v68_v48  ;;  %v639_v55 = vcombine.low %v64_v47, %v68_v48  ;;  %v642_v56 = vcombine.high %v65_v49, %v69_v50  ;;  %v43_v22 = vld [vmem:[%s895_s1 + $0xd8] sm:$0xff]  ;;  %v50_v28 = vld [vmem:[%s895_s1 + $0x110] sm:$0xff] }
  0x10   :  { %75 = vperm.xlu0 %664, %v72_v51   ;;  %v641_v57 = vcombine.low %v65_v49, %v69_v50  ;;  %v807_v7 = vld [vmem:[%s897_s0] sm:$0xf]  ;;  %v47_v23 = vld [vmem:[%s895_s1 + $0xf8] sm:$0xff]  ;;  %v620_v26 = vcombine.high %v42_v20, %v46_v21  ;;  %v54_v29 = vld [vmem:[%s895_s1 + $0x130] sm:$0xff]  ;;  %v619_v31 = vcombine.low %v42_v20, %v46_v21 }
  0x11   :  { %v356_v62 = vsel %vm354_vm0, %v639_v55, 0  ;;  %v622_v27 = vcombine.high %v43_v22, %v47_v23  ;;  %v55_v30 = vld [vmem:[%s895_s1 + $0x138] sm:$0xff]  ;;  %v621_v32 = vcombine.low %v43_v22, %v47_v23  ;;  %v628_v33 = vcombine.high %v50_v28, %v54_v29 }
  0x12   :  { %386 = vmatpush1.bf16.msra.mxu0 %v615_v35  ;;  %427 = vmatpush1.bf16.msra.mxu1 %v617_v36  ;;  %v362_v0 = vsel %vm354_vm0, %v641_v57, 0  ;;  %v58_v35 = vld [vmem:[%s895_s1 + $0x150] sm:$0xff]  ;;  %v627_v39 = vcombine.low %v50_v28, %v54_v29 }
  0x13   :  { %387 = vmatprep.subr.bf16.mxu0 %v624_v37  ;;  %428 = vmatprep.subr.bf16.mxu1 %v626_v38  ;;  %v62_v36 = vld [vmem:[%s895_s1 + $0x170] sm:$0xff]  ;;  %v59_v37 = vld [vmem:[%s895_s1 + $0x158] sm:$0xff] }
  0x14   :  { %v63_v38 = vld [vmem:[%s895_s1 + $0x178] sm:$0xff]  ;;  %v636_v41 = vcombine.high %v58_v35, %v62_v36  ;;  %v635_v47 = vcombine.low %v58_v35, %v62_v36 }
  0x15   :  { %v638_v42 = vcombine.high %v59_v37, %v63_v38  ;;  %v637_v48 = vcombine.low %v59_v37, %v63_v38 }
  0x16   :  { %388 = vmatpush1.bf16.msra.mxu0 %v623_v43  ;;  %429 = vmatpush1.bf16.msra.mxu1 %v625_v44  ;;  %v66_v43 = vld [vmem:[%s895_s1 + $0x190] sm:$0xff] }
  0x17   :  { %389 = vmatprep.subr.bf16.mxu0 %v632_v45  ;;  %430 = vmatprep.subr.bf16.mxu1 %v634_v46  ;;  %v70_v44 = vld [vmem:[%s895_s1 + $0x1b0] sm:$0x33]  ;;  %v67_v45 = vld [vmem:[%s895_s1 + $0x198] sm:$0xff] }
  0x18   :  { %v71_v46 = vld [vmem:[%s895_s1 + $0x1b8] sm:$0x33]  ;;  %v644_v49 = vcombine.high %v66_v43, %v70_v44  ;;  %v643_v50 = vcombine.low %v66_v43, %v70_v44 }
  0x19   :  { %v646_v51 = vcombine.high %v67_v45, %v71_v46 }
  0x1a   :  { %390 = vmatpush1.bf16.msra.mxu0 %v631_v52  ;;  %431 = vmatpush1.bf16.msra.mxu1 %v633_v53  ;;  %v645_v52 = vcombine.low %v67_v45, %v71_v46  ;;  %v368_v53 = vsel %vm354_vm0, %v643_v50, 0 }
  0x1b   :  { %647 = vmatprep.subr.msk.bf16.mxu0 %vm354_vm0, %v640_v54  ;;  %649 = vmatprep.subr.msk.bf16.mxu1 %vm354_vm0, %v642_v56 }
  0x1c   :  { %v374_v54 = vsel %vm354_vm0, %v645_v52, 0 }
  0x1e   :  { %392 = vmatpush1.bf16.msra.mxu0 %v356_v62  ;;  %433 = vmatpush1.bf16.msra.mxu1 %v362_v0 }
  0x1f   :  { %461 = vmatprep.subr.bf16.mxu0 %v596_v63  ;;  %502 = vmatprep.subr.bf16.mxu1 %v598_v1 }
  0x21   :  { %648 = vmatmul.mubr.msk.bf16.vlgmr.msra.gmra.mrb[0].mxu0 %vm350_vm1, %v807_v7  ;;  %650 = vmatmul.mubr.msk.bf16.vlgmr.msra.gmra.mrb[0].mxu1 %vm350_vm1, %v807_v7 }
  0x22   :  { %462 = vmatpush1.bf16.msra.mxu0 %v595_v8  ;;  %503 = vmatpush1.bf16.msra.mxu1 %v597_v9 }
  0x23   :  { %463 = vmatprep.subr.bf16.mxu0 %v604_v10  ;;  %504 = vmatprep.subr.bf16.mxu1 %v606_v11 }
  0x24   :  { %493 = vmatprep.mubr.bf16.mxu0 %v665_v3  ;;  %534 = vmatprep.mubr.bf16.mxu1 %v665_v3  ;;  %v51_v3 = vld [vmem:[%s895_s1 + $0x118] sm:$0xff] }
  0x25   :  { %v630_v34 = vcombine.high %v51_v3, %v55_v30  ;;  %v629_v40 = vcombine.low %v51_v3, %v55_v30 }
  0x26   :  { %464 = vmatpush1.bf16.msra.mxu0 %v603_v16  ;;  %505 = vmatpush1.bf16.msra.mxu1 %v605_v17 }
  0x27   :  { %465 = vmatprep.subr.bf16.mxu0 %v612_v18  ;;  %506 = vmatprep.subr.bf16.mxu1 %v614_v19 }
  0x2a   :  { %466 = vmatpush1.bf16.msra.mxu0 %v611_v24  ;;  %507 = vmatpush1.bf16.msra.mxu1 %v613_v25 }
  0x2b   :  { %467 = vmatprep.subr.bf16.mxu0 %v620_v26  ;;  %508 = vmatprep.subr.bf16.mxu1 %v622_v27 }
  0x2e   :  { %468 = vmatpush1.bf16.msra.mxu0 %v619_v31  ;;  %509 = vmatpush1.bf16.msra.mxu1 %v621_v32 }
  0x2f   :  { %469 = vmatprep.subr.bf16.mxu0 %v628_v33  ;;  %510 = vmatprep.subr.bf16.mxu1 %v630_v34 }
  0x32   :  { %470 = vmatpush1.bf16.msra.mxu0 %v627_v39  ;;  %511 = vmatpush1.bf16.msra.mxu1 %v629_v40 }
  0x33   :  { %471 = vmatprep.subr.bf16.mxu0 %v636_v41  ;;  %512 = vmatprep.subr.bf16.mxu1 %v638_v42 }
  0x36   :  { %472 = vmatpush1.bf16.msra.mxu0 %v635_v47  ;;  %513 = vmatpush1.bf16.msra.mxu1 %v637_v48 }
  0x37   :  { %651 = vmatprep.subr.msk.bf16.mxu0 %vm354_vm0, %v644_v49  ;;  %653 = vmatprep.subr.msk.bf16.mxu1 %vm354_vm0, %v646_v51 }
  0x3a   :  { %474 = vmatpush1.bf16.msra.mxu0 %v368_v53  ;;  %515 = vmatpush1.bf16.msra.mxu1 %v374_v54 }
  0x3d   :  { %652 = vmatmul.mubr.msk.bf16.vlgmr.msra.gmra.mrb[4].mxu0 %vm350_vm1, %v807_v7  ;;  %654 = vmatmul.mubr.msk.bf16.vlgmr.msra.gmra.mrb[4].mxu1 %vm350_vm1, %v807_v7 }
  0x8f   :  { %v76_v55 = vpop.permute.xlu0 %75 }
  0xf4   :  { %v413_v56 = vpop.f32.mrb[0].mxu0  ;;  %v454_v57 = vpop.f32.mrb[0].mxu1 }
  0xf5   :  { %v414_v58 = vadd.f32 %v413_v56, %v76_v55  ;;  %v415_v59 = vpop.f32.mrb[1].mxu0  ;;  %v455_v61 = vadd.f32 %v454_v57, %v76_v55  ;;  %v456_v62 = vpop.f32.mrb[1].mxu1 }
  0xf6   :  { %v416_v60 = vadd.f32 %v415_v59, %v76_v55  ;;  %v417_v63 = vpop.f32.mrb[2].mxu0  ;;  %v457_v1 = vadd.f32 %v456_v62, %v76_v55  ;;  %v458_v2 = vpop.f32.mrb[2].mxu1 }
  0xf7   :  { %v543_v0 = vmax.f32 %v414_v58, 0.0  ;;  %v418_v4 = vpop.f32.mrb[3].mxu0  ;;  %v545_v6 = vmax.f32 %v455_v61, 0.0  ;;  %v459_v8 = vpop.f32.mrb[3].mxu1 }
  0xf8   :  { %v544_v5 = vmax.f32 %v416_v60, 0.0  ;;  %v546_v9 = vmax.f32 %v457_v1, 0.0 }
  0xfa   :  { %v659_v10 = vpack.c.bf16 %v544_v5, %v543_v0  ;;  %v660_v11 = vpack.c.bf16 %v546_v9, %v545_v6 }
  0xfc   :  { %583 = vst [vmem:[%s898_s3] sm:$0xff] %v659_v10  ;;  %584 = vst [vmem:[%s898_s3 + $0x8] sm:$0xff] %v660_v11 }
 0x110   :  { %v495_v7 = vpop.f32.mrb[4].mxu0  ;;  %v536_v13 = vpop.f32.mrb[4].mxu1 }
 0x111   :  { %v496_v12 = vadd.f32 %v495_v7, %v76_v55  ;;  %v497_v14 = vpop.f32.mrb[5].mxu0  ;;  %v537_v15 = vadd.f32 %v536_v13, %v76_v55  ;;  %v538_v17 = vpop.f32.mrb[5].mxu1 }
 0x112   :  { %v498_v16 = vadd.f32 %v497_v14, %v76_v55  ;;  %v499_v18 = vpop.f32.mrb[6].mxu0  ;;  %v539_v20 = vadd.f32 %v538_v17, %v76_v55  ;;  %v540_v21 = vpop.f32.mrb[6].mxu1 }
 0x113   :  { %v547_v19 = vmax.f32 %v496_v12, 0.0  ;;  %v500_v22 = vpop.f32.mrb[7].mxu0  ;;  %v549_v23 = vmax.f32 %v537_v15, 0.0  ;;  %v541_v25 = vpop.f32.mrb[7].mxu1 }
 0x114   :  { %v548_v24 = vmax.f32 %v498_v16, 0.0  ;;  %v550_v26 = vmax.f32 %v539_v20, 0.0 }
 0x116   :  { %v661_v27 = vpack.c.bf16 %v548_v24, %v547_v19  ;;  %v662_v28 = vpack.c.bf16 %v550_v26, %v549_v23 }
 0x118   :  { %585 = vst [vmem:[%s898_s3 + $0x10] sm:$0xff] %v661_v27  ;;  %586 = vst [vmem:[%s898_s3 + $0x18] sm:$0xff] %v662_v28 }

// kernel: unet_confidnet_forward.16
= control target key start
LH: loop header
LB: loop body
LE: loop exit
PB: predicated region body
PF: predicated region fallthrough
CT: control target
= control target key end

     0   :  { %v256_v0 = vmov 0   ;;  %vm146_vm0 = vcmask 719872   ;;  %vm150_vm1 = vcmask 1043456   ;;  %s334_s1 = inlined_call_operand.vmem [shape: bf16[216,128], index: 1, kind: input, shape index: {}]   ;;  %s335_s0 = inlined_call_operand.vmem [shape: bf16[16,216], index: 0, kind: input, shape index: {}]   ;;  %s336_s2 = inlined_call_operand.vmem [shape: f32[16,1], index: 2, kind: input, shape index: {}]   ;;  %s337_s3 = inlined_call_operand.vmem [shape: bf16[16,128], index: 3, kind: output, shape index: {}]  }
   0x1   :  { %154 = vmatprep.subr.bf16.mxu0 %v256_v0  ;;  %v239_v1 = vld [vmem:[%s334_s1] sm:$0xff]   ;;  %238 = vset.pattern.permute.xlu0 %v256_v0  ;;  %v240_v2 = vld [vmem:[%s334_s1 + $0x8] sm:$0xff]   ;;  %v241_v3 = vld [vmem:[%s334_s1 + $0x10] sm:$0xff]  }
   0x2   :  { %155 = vmatpush1.bf16.msra.mxu0 %v239_v1  ;;  %v242_v4 = vld [vmem:[%s334_s1 + $0x18] sm:$0xff]   ;;  %v243_v5 = vld [vmem:[%s334_s1 + $0x20] sm:$0xff]   ;;  %v45_v8 = vld [vmem:[%s336_s2 + $0x8] sm:$0xff] }
   0x3   :  { %156 = vmatprep.subr.bf16.mxu0 %v256_v0  ;;  %v255_v6 = vld [vmem:[%s335_s0 + $0x4] ss:$8 sps:$4 sm:$0xff]   ;;  %v245_v10 = vld [vmem:[%s334_s1 + $0x30] sm:$0xff]   ;;  %v246_v11 = vld [vmem:[%s334_s1 + $0x38] sm:$0xff]  }
   0x4   :  { %v44_v7 = vld [vmem:[%s336_s2] sm:$0xff]  ;;  %227 = vmatprep.mubr.msk.bf16.mxu0 %vm146_vm0, %v255_v6  ;;  %v244_v9 = vld [vmem:[%s334_s1 + $0x28] sm:$0xff]   ;;  %v249_v14 = vld [vmem:[%s334_s1 + $0x50] sm:$0xff]  }
   0x5   :  { %48 = vperm.xlu0 %238, %v44_v7   ;;  %v247_v12 = vld [vmem:[%s334_s1 + $0x40] sm:$0xff]   ;;  %v248_v13 = vld [vmem:[%s334_s1 + $0x48] sm:$0xff]   ;;  %v250_v15 = vld [vmem:[%s334_s1 + $0x58] sm:$0xff]  }
   0x6   :  { %157 = vmatpush1.bf16.msra.mxu0 %v240_v2  ;;  %v251_v16 = vld [vmem:[%s334_s1 + $0x60] sm:$0xff]   ;;  %v252_v17 = vld [vmem:[%s334_s1 + $0x68] ss:$0 sps:$4 sm:$0xff]  }
   0x7   :  { %158 = vmatprep.subr.bf16.mxu0 %v256_v0  ;;  %v152_v18 = vsel %vm150_vm1, %v252_v17, 0  ;;  %v253_v19 = vld [vmem:[%s335_s0] ss:$8 sps:$4 sm:$0xff]  }
   0x9   :  { %53 = vperm.xlu0 %238, %v45_v8  }
   0xa   :  { %159 = vmatpush1.bf16.msra.mxu0 %v241_v3 }
   0xb   :  { %160 = vmatprep.subr.bf16.mxu0 %v256_v0 }
   0xe   :  { %161 = vmatpush1.bf16.msra.mxu0 %v242_v4 }
   0xf   :  { %162 = vmatprep.subr.bf16.mxu0 %v256_v0 }
  0x12   :  { %163 = vmatpush1.bf16.msra.mxu0 %v243_v5 }
  0x13   :  { %164 = vmatprep.subr.bf16.mxu0 %v256_v0 }
  0x16   :  { %165 = vmatpush1.bf16.msra.mxu0 %v244_v9 }
  0x17   :  { %166 = vmatprep.subr.bf16.mxu0 %v256_v0 }
  0x1a   :  { %167 = vmatpush1.bf16.msra.mxu0 %v245_v10 }
  0x1b   :  { %168 = vmatprep.subr.bf16.mxu0 %v256_v0 }
  0x1e   :  { %169 = vmatpush1.bf16.msra.mxu0 %v246_v11 }
  0x1f   :  { %170 = vmatprep.subr.bf16.mxu0 %v256_v0 }
  0x22   :  { %171 = vmatpush1.bf16.msra.mxu0 %v247_v12 }
  0x23   :  { %172 = vmatprep.subr.bf16.mxu0 %v256_v0 }
  0x26   :  { %173 = vmatpush1.bf16.msra.mxu0 %v248_v13 }
  0x27   :  { %174 = vmatprep.subr.bf16.mxu0 %v256_v0 }
  0x2a   :  { %175 = vmatpush1.bf16.msra.mxu0 %v249_v14 }
  0x2b   :  { %176 = vmatprep.subr.bf16.mxu0 %v256_v0 }
  0x2e   :  { %177 = vmatpush1.bf16.msra.mxu0 %v250_v15 }
  0x2f   :  { %178 = vmatprep.subr.bf16.mxu0 %v256_v0 }
  0x32   :  { %179 = vmatpush1.bf16.msra.mxu0 %v251_v16 }
  0x33   :  { %180 = vmatprep.subr.bf16.mxu0 %v256_v0 }
  0x36   :  { %181 = vmatpush1.bf16.msra.mxu0 %v152_v18 }
  0x39   :  { %187 = vmatmul.mubr.bf16.vlgmr.msra.gmra.mrb[0].mxu0 %v253_v19 }
  0x84   :  { %v49_v20 = vpop.permute.xlu0 %48 }
  0x88   :  { %v54_v24 = vpop.permute.xlu0 %53 }
 0x10c   :  { %v188_v21 = vpop.f32.mrb[0].mxu0 }
 0x10d   :  { %v189_v22 = vadd.f32 %v188_v21, %v49_v20  ;;  %v190_v23 = vpop.f32.mrb[1].mxu0 }
 0x10e   :  { %v191_v25 = vpop.f32.mrb[2].mxu0 }
 0x10f   :  { %v192_v26 = vadd.f32 %v191_v25, %v54_v24  ;;  %v193_v27 = vpop.f32.mrb[3].mxu0  ;;  %v195_v28 = vmax.f32 %v189_v22, 0.0 }
 0x111   :  { %v196_v29 = vmax.f32 %v192_v26, 0.0 }
 0x113   :  { %v235_v30 = vpack.c.bf16 %v196_v29, %v195_v28 }
 0x115   :  { %236 = vst [vmem:[%s337_s3] sm:$0xff] %v235_v30  }

// kernel: unet_confidnet_forward.17
= control target key start
LH: loop header
LB: loop body
LE: loop exit
PB: predicated region body
PF: predicated region fallthrough
CT: control target
= control target key end

     0   :  { %v300_v3 = vmov 0   ;;  %vm70_vm0 = vcmask 130048   ;;  %s363_s1 = inlined_call_operand.vmem [shape: bf16[16,1024], index: 1, kind: input, shape index: {}]   ;;  %s364_s2 = inlined_call_operand.vmem [shape: f32[8,1], index: 2, kind: input, shape index: {}]   ;;  %s365_s0 = inlined_call_operand.vmem [shape: bf16[8,16], index: 0, kind: input, shape index: {}]   ;;  %s366_s3 = inlined_call_operand.vmem [shape: bf16[8,1024], index: 3, kind: output, shape index: {}]  }
   0x1   :  { %v16_v0 = vld [vmem:[%s363_s1] sm:$0xff]  ;;  %v17_v2 = vld [vmem:[%s363_s1 + $0x8] sm:$0xff]  ;;  %106 = vmatprep.mubr.bf16.mxu0 %v300_v3  ;;  %147 = vmatprep.mubr.bf16.mxu1 %v300_v3  ;;  %v18_v7 = vld [vmem:[%s363_s1 + $0x10] sm:$0xff] }
   0x2   :  { %v20_v1 = vld [vmem:[%s363_s1 + $0x20] sm:$0xff]  ;;  %v21_v5 = vld [vmem:[%s363_s1 + $0x28] sm:$0xff]  ;;  %299 = vset.pattern.permute.xlu0 %v300_v3  ;;  %v22_v10 = vld [vmem:[%s363_s1 + $0x30] sm:$0xff] }
   0x3   :  { %v279_v4 = vcombine.high %v16_v0, %v20_v1  ;;  %v278_v6 = vcombine.low %v16_v0, %v20_v1  ;;  %v281_v8 = vcombine.high %v17_v2, %v21_v5  ;;  %v280_v9 = vcombine.low %v17_v2, %v21_v5  ;;  %v19_v11 = vld [vmem:[%s363_s1 + $0x18] sm:$0xff]  ;;  %v24_v15 = vld [vmem:[%s364_s2] sm:$0xff] }
   0x4   :  { %v23_v12 = vld [vmem:[%s363_s1 + $0x38] sm:$0xff]  ;;  %v283_v13 = vcombine.high %v18_v7, %v22_v10  ;;  %v15_v16 = vld [vmem:[%s365_s0] sm:$0xf]  ;;  %v282_v17 = vcombine.low %v18_v7, %v22_v10  ;;  %27 = vperm.xlu0 %299, %v24_v15  }
   0x5   :  { %74 = vmatprep.subr.bf16.mxu0 %v279_v4  ;;  %v285_v14 = vcombine.high %v19_v11, %v23_v12  ;;  %115 = vmatprep.subr.bf16.mxu1 %v281_v8  ;;  %v284_v18 = vcombine.low %v19_v11, %v23_v12 }
   0x6   :  { %75 = vmatpush1.bf16.msra.mxu0 %v278_v6  ;;  %116 = vmatpush1.bf16.msra.mxu1 %v280_v9 }
   0x7   :  { %156 = vmatprep.subr.bf16.mxu0 %v283_v13  ;;  %197 = vmatprep.subr.bf16.mxu1 %v285_v14 }
   0x9   :  { %286 = vmatmul.mubr.msk.bf16.vlgmr.msra.gmra.mrb[0].mxu0 %vm70_vm0, %v15_v16  ;;  %287 = vmatmul.mubr.msk.bf16.vlgmr.msra.gmra.mrb[0].mxu1 %vm70_vm0, %v15_v16 }
   0xa   :  { %157 = vmatpush1.bf16.msra.mxu0 %v282_v17  ;;  %198 = vmatpush1.bf16.msra.mxu1 %v284_v18 }
   0xb   :  { %188 = vmatprep.mubr.bf16.mxu0 %v300_v3  ;;  %229 = vmatprep.mubr.bf16.mxu1 %v300_v3 }
  0x11   :  { %288 = vmatmul.mubr.msk.bf16.vlgmr.msra.gmra.mrb[4].mxu0 %vm70_vm0, %v15_v16  ;;  %289 = vmatmul.mubr.msk.bf16.vlgmr.msra.gmra.mrb[4].mxu1 %vm70_vm0, %v15_v16 }
  0x83   :  { %v28_v19 = vpop.permute.xlu0 %27 }
  0xdc   :  { %v108_v20 = vpop.f32.mrb[0].mxu0  ;;  %v149_v21 = vpop.f32.mrb[0].mxu1 }
  0xdd   :  { %v109_v22 = vadd.f32 %v108_v20, %v28_v19  ;;  %v110_v23 = vpop.f32.mrb[1].mxu0  ;;  %v150_v25 = vadd.f32 %v149_v21, %v28_v19  ;;  %v151_v26 = vpop.f32.mrb[1].mxu1 }
  0xde   :  { %v111_v24 = vadd.f32 %v110_v23, %v28_v19  ;;  %v112_v27 = vpop.f32.mrb[2].mxu0  ;;  %v152_v28 = vadd.f32 %v151_v26, %v28_v19  ;;  %v153_v29 = vpop.f32.mrb[2].mxu1 }
  0xdf   :  { %v113_v30 = vpop.f32.mrb[3].mxu0  ;;  %v154_v32 = vpop.f32.mrb[3].mxu1 }
  0xe0   :  { %v294_v31 = vpack.c.bf16 %v111_v24, %v109_v22  ;;  %v295_v33 = vpack.c.bf16 %v152_v28, %v150_v25 }
  0xe2   :  { %270 = vst [vmem:[%s366_s3] sm:$0xff] %v294_v31  ;;  %271 = vst [vmem:[%s366_s3 + $0x8] sm:$0xff] %v295_v33 }
  0xe4   :  { %v190_v34 = vpop.f32.mrb[4].mxu0  ;;  %v231_v36 = vpop.f32.mrb[4].mxu1 }
  0xe5   :  { %v191_v35 = vadd.f32 %v190_v34, %v28_v19  ;;  %v192_v37 = vpop.f32.mrb[5].mxu0  ;;  %v232_v38 = vadd.f32 %v231_v36, %v28_v19  ;;  %v233_v40 = vpop.f32.mrb[5].mxu1 }
  0xe6   :  { %v193_v39 = vadd.f32 %v192_v37, %v28_v19  ;;  %v194_v41 = vpop.f32.mrb[6].mxu0  ;;  %v234_v42 = vadd.f32 %v233_v40, %v28_v19  ;;  %v235_v43 = vpop.f32.mrb[6].mxu1 }
  0xe7   :  { %v195_v44 = vpop.f32.mrb[7].mxu0  ;;  %v236_v46 = vpop.f32.mrb[7].mxu1 }
  0xe8   :  { %v296_v45 = vpack.c.bf16 %v193_v39, %v191_v35  ;;  %v297_v47 = vpack.c.bf16 %v234_v42, %v232_v38 }
  0xea   :  { %272 = vst [vmem:[%s366_s3 + $0x10] sm:$0xff] %v296_v45  ;;  %273 = vst [vmem:[%s366_s3 + $0x18] sm:$0xff] %v297_v47 }

// kernel: unet_confidnet_forward.18
= control target key start
LH: loop header
LB: loop body
LE: loop exit
PB: predicated region body
PF: predicated region fallthrough
CT: control target
= control target key end

     0   :  { %vm1332_vm0 = vcmask 392192   ;;  %s2704_s1 = inlined_call_operand.vmem [shape: bf16[432,1024], index: 1, kind: input, shape index: {}]   ;;  %s2705_s0 = inlined_call_operand.vmem [shape: bf16[8,432], index: 0, kind: input, shape index: {}]   ;;  %s2706_s2 = inlined_call_operand.vmem [shape: f32[8,1], index: 2, kind: input, shape index: {}]   ;;  %s2707_s3 = inlined_call_operand.vmem [shape: bf16[8,1024], index: 3, kind: output, shape index: {}]  }
   0x1   :  { %v17_v0 = vld [vmem:[%s2704_s1] sm:$0xff]  ;;  %v18_v2 = vld [vmem:[%s2704_s1 + $0x8] sm:$0xff] }
   0x2   :  { %v21_v1 = vld [vmem:[%s2704_s1 + $0x20] sm:$0xff]  ;;  %v22_v4 = vld [vmem:[%s2704_s1 + $0x28] sm:$0xff] }
   0x3   :  { %v1717_v3 = vcombine.high %v17_v0, %v21_v1  ;;  %v1716_v5 = vcombine.low %v17_v0, %v21_v1  ;;  %v25_v6 = vld [vmem:[%s2704_s1 + $0x40] sm:$0xff]  ;;  %v1719_v8 = vcombine.high %v18_v2, %v22_v4  ;;  %v1718_v9 = vcombine.low %v18_v2, %v22_v4  ;;  %v26_v11 = vld [vmem:[%s2704_s1 + $0x48] sm:$0xff] }
   0x4   :  { %v29_v7 = vld [vmem:[%s2704_s1 + $0x60] sm:$0xff]  ;;  %v30_v12 = vld [vmem:[%s2704_s1 + $0x68] sm:$0xff] }
   0x5   :  { %v1725_v10 = vcombine.high %v25_v6, %v29_v7  ;;  %v33_v13 = vld [vmem:[%s2704_s1 + $0x80] sm:$0xff]  ;;  %1336 = vmatprep.subr.bf16.mxu0 %v1717_v3  ;;  %v1727_v14 = vcombine.high %v26_v11, %v30_v12  ;;  %v34_v16 = vld [vmem:[%s2704_s1 + $0x88] sm:$0xff]  ;;  %1418 = vmatprep.subr.bf16.mxu1 %v1719_v8  ;;  %v1724_v18 = vcombine.low %v25_v6, %v29_v7 }
   0x6   :  { %v37_v15 = vld [vmem:[%s2704_s1 + $0xa0] sm:$0xff]  ;;  %v38_v17 = vld [vmem:[%s2704_s1 + $0xa8] sm:$0xff]  ;;  %1337 = vmatpush1.bf16.msra.mxu0 %v1716_v5  ;;  %1419 = vmatpush1.bf16.msra.mxu1 %v1718_v9  ;;  %v1726_v19 = vcombine.low %v26_v11, %v30_v12 }
   0x7   :  { %1338 = vmatprep.subr.bf16.mxu0 %v1725_v10  ;;  %v1733_v20 = vcombine.high %v33_v13, %v37_v15  ;;  %1420 = vmatprep.subr.bf16.mxu1 %v1727_v14  ;;  %v1735_v21 = vcombine.high %v34_v16, %v38_v17  ;;  %v41_v22 = vld [vmem:[%s2704_s1 + $0xc0] sm:$0xff]  ;;  %v42_v24 = vld [vmem:[%s2704_s1 + $0xc8] sm:$0xff]  ;;  %v1732_v26 = vcombine.low %v33_v13, %v37_v15 }
   0x8   :  { %v45_v23 = vld [vmem:[%s2704_s1 + $0xe0] sm:$0xff]  ;;  %v46_v25 = vld [vmem:[%s2704_s1 + $0xe8] sm:$0xff]  ;;  %v1734_v27 = vcombine.low %v34_v16, %v38_v17 }
   0x9   :  { %v1741_v28 = vcombine.high %v41_v22, %v45_v23  ;;  %v1743_v29 = vcombine.high %v42_v24, %v46_v25  ;;  %v49_v30 = vld [vmem:[%s2704_s1 + $0x100] sm:$0xff]  ;;  %v50_v32 = vld [vmem:[%s2704_s1 + $0x108] sm:$0xff]  ;;  %v1740_v34 = vcombine.low %v41_v22, %v45_v23  ;;  %v1742_v35 = vcombine.low %v42_v24, %v46_v25 }
   0xa   :  { %1339 = vmatpush1.bf16.msra.mxu0 %v1724_v18  ;;  %1421 = vmatpush1.bf16.msra.mxu1 %v1726_v19  ;;  %v53_v31 = vld [vmem:[%s2704_s1 + $0x120] sm:$0xff]  ;;  %v54_v33 = vld [vmem:[%s2704_s1 + $0x128] sm:$0xff] }
   0xb   :  { %1340 = vmatprep.subr.bf16.mxu0 %v1733_v20  ;;  %1422 = vmatprep.subr.bf16.mxu1 %v1735_v21  ;;  %v1749_v36 = vcombine.high %v49_v30, %v53_v31  ;;  %v1751_v37 = vcombine.high %v50_v32, %v54_v33  ;;  %v57_v38 = vld [vmem:[%s2704_s1 + $0x140] sm:$0xff]  ;;  %v58_v40 = vld [vmem:[%s2704_s1 + $0x148] sm:$0xff]  ;;  %v1748_v42 = vcombine.low %v49_v30, %v53_v31 }
   0xc   :  { %v61_v39 = vld [vmem:[%s2704_s1 + $0x160] sm:$0xff]  ;;  %v62_v41 = vld [vmem:[%s2704_s1 + $0x168] sm:$0xff]  ;;  %v1750_v43 = vcombine.low %v50_v32, %v54_v33 }
   0xd   :  { %v1757_v44 = vcombine.high %v57_v38, %v61_v39  ;;  %v1759_v45 = vcombine.high %v58_v40, %v62_v41  ;;  %v65_v46 = vld [vmem:[%s2704_s1 + $0x180] sm:$0xff]  ;;  %v66_v48 = vld [vmem:[%s2704_s1 + $0x188] sm:$0xff]  ;;  %v1756_v50 = vcombine.low %v57_v38, %v61_v39  ;;  %v1758_v51 = vcombine.low %v58_v40, %v62_v41 }
   0xe   :  { %1341 = vmatpush1.bf16.msra.mxu0 %v1732_v26  ;;  %1423 = vmatpush1.bf16.msra.mxu1 %v1734_v27  ;;  %v69_v47 = vld [vmem:[%s2704_s1 + $0x1a0] sm:$0xff]  ;;  %v70_v49 = vld [vmem:[%s2704_s1 + $0x1a8] sm:$0xff] }
   0xf   :  { %1342 = vmatprep.subr.bf16.mxu0 %v1741_v28  ;;  %1424 = vmatprep.subr.bf16.mxu1 %v1743_v29  ;;  %v1765_v52 = vcombine.high %v65_v46, %v69_v47  ;;  %v2082_v53 = vld [vmem:[%s2705_s0] sm:$0xff]  ;;  %v1767_v54 = vcombine.high %v66_v48, %v70_v49  ;;  %v74_v58 = vld [vmem:[%s2704_s1 + $0x1c8] sm:$0xff]  ;;  %v1764_v60 = vcombine.low %v65_v46, %v69_v47 }
  0x10   :  { %v73_v55 = vld [vmem:[%s2704_s1 + $0x1c0] sm:$0xff]  ;;  %v2092_v57 = vcombine.high %v2082_v53, %v2082_v53  ;;  %v78_v59 = vld [vmem:[%s2704_s1 + $0x1e8] sm:$0xff]  ;;  %v1766_v61 = vcombine.low %v66_v48, %v70_v49 }
  0x11   :  { %v77_v56 = vld [vmem:[%s2704_s1 + $0x1e0] sm:$0xff]  ;;  %v1775_v63 = vcombine.high %v74_v58, %v78_v59  ;;  %v82_v2 = vld [vmem:[%s2704_s1 + $0x208] sm:$0xff]  ;;  %v1774_v5 = vcombine.low %v74_v58, %v78_v59 }
  0x12   :  { %1343 = vmatpush1.bf16.msra.mxu0 %v1740_v34  ;;  %1425 = vmatpush1.bf16.msra.mxu1 %v1742_v35  ;;  %v1773_v62 = vcombine.high %v73_v55, %v77_v56  ;;  %v81_v0 = vld [vmem:[%s2704_s1 + $0x200] sm:$0xff]  ;;  %v86_v3 = vld [vmem:[%s2704_s1 + $0x228] sm:$0xff]  ;;  %v1772_v4 = vcombine.low %v73_v55, %v77_v56 }
  0x13   :  { %1344 = vmatprep.subr.bf16.mxu0 %v1749_v36  ;;  %1426 = vmatprep.subr.bf16.mxu1 %v1751_v37  ;;  %v85_v1 = vld [vmem:[%s2704_s1 + $0x220] sm:$0xff]  ;;  %v1783_v7 = vcombine.high %v82_v2, %v86_v3  ;;  %v90_v10 = vld [vmem:[%s2704_s1 + $0x248] sm:$0xff]  ;;  %v1782_v13 = vcombine.low %v82_v2, %v86_v3 }
  0x14   :  { %1368 = vmatprep.mubr.bf16.mxu0 %v2092_v57  ;;  %1450 = vmatprep.mubr.bf16.mxu1 %v2092_v57  ;;  %v1781_v6 = vcombine.high %v81_v0, %v85_v1  ;;  %v89_v8 = vld [vmem:[%s2704_s1 + $0x240] sm:$0xff]  ;;  %v94_v11 = vld [vmem:[%s2704_s1 + $0x268] sm:$0xff]  ;;  %v1780_v12 = vcombine.low %v81_v0, %v85_v1 }
  0x15   :  { %v93_v9 = vld [vmem:[%s2704_s1 + $0x260] sm:$0xff]  ;;  %v1791_v15 = vcombine.high %v90_v10, %v94_v11  ;;  %v98_v18 = vld [vmem:[%s2704_s1 + $0x288] sm:$0xff]  ;;  %v1790_v21 = vcombine.low %v90_v10, %v94_v11 }
  0x16   :  { %1345 = vmatpush1.bf16.msra.mxu0 %v1748_v42  ;;  %1427 = vmatpush1.bf16.msra.mxu1 %v1750_v43  ;;  %v1789_v14 = vcombine.high %v89_v8, %v93_v9  ;;  %v97_v16 = vld [vmem:[%s2704_s1 + $0x280] sm:$0xff]  ;;  %v102_v19 = vld [vmem:[%s2704_s1 + $0x2a8] sm:$0xff]  ;;  %v1788_v20 = vcombine.low %v89_v8, %v93_v9 }
  0x17   :  { %1346 = vmatprep.subr.bf16.mxu0 %v1757_v44  ;;  %1428 = vmatprep.subr.bf16.mxu1 %v1759_v45  ;;  %v101_v17 = vld [vmem:[%s2704_s1 + $0x2a0] sm:$0xff]  ;;  %v1799_v23 = vcombine.high %v98_v18, %v102_v19  ;;  %v106_v26 = vld [vmem:[%s2704_s1 + $0x2c8] sm:$0xff]  ;;  %v1798_v29 = vcombine.low %v98_v18, %v102_v19 }
  0x18   :  { %v1797_v22 = vcombine.high %v97_v16, %v101_v17  ;;  %v105_v24 = vld [vmem:[%s2704_s1 + $0x2c0] sm:$0xff]  ;;  %v110_v27 = vld [vmem:[%s2704_s1 + $0x2e8] sm:$0xff]  ;;  %v1796_v28 = vcombine.low %v97_v16, %v101_v17 }
  0x19   :  { %v109_v25 = vld [vmem:[%s2704_s1 + $0x2e0] sm:$0xff]  ;;  %v1807_v31 = vcombine.high %v106_v26, %v110_v27  ;;  %v114_v34 = vld [vmem:[%s2704_s1 + $0x308] sm:$0xff]  ;;  %v1806_v37 = vcombine.low %v106_v26, %v110_v27 }
  0x1a   :  { %1347 = vmatpush1.bf16.msra.mxu0 %v1756_v50  ;;  %1429 = vmatpush1.bf16.msra.mxu1 %v1758_v51  ;;  %v1805_v30 = vcombine.high %v105_v24, %v109_v25  ;;  %v113_v32 = vld [vmem:[%s2704_s1 + $0x300] sm:$0xff]  ;;  %v118_v35 = vld [vmem:[%s2704_s1 + $0x328] sm:$0xff]  ;;  %v1804_v36 = vcombine.low %v105_v24, %v109_v25 }
  0x1b   :  { %1348 = vmatprep.subr.bf16.mxu0 %v1765_v52  ;;  %1430 = vmatprep.subr.bf16.mxu1 %v1767_v54  ;;  %v117_v33 = vld [vmem:[%s2704_s1 + $0x320] sm:$0xff]  ;;  %v1815_v39 = vcombine.high %v114_v34, %v118_v35  ;;  %v122_v42 = vld [vmem:[%s2704_s1 + $0x348] sm:$0xff]  ;;  %v1814_v45 = vcombine.low %v114_v34, %v118_v35 }
  0x1c   :  { %v1813_v38 = vcombine.high %v113_v32, %v117_v33  ;;  %v121_v40 = vld [vmem:[%s2704_s1 + $0x340] sm:$0xff]  ;;  %v126_v43 = vld [vmem:[%s2704_s1 + $0x368] sm:$0xff]  ;;  %v1812_v44 = vcombine.low %v113_v32, %v117_v33 }
  0x1d   :  { %v125_v41 = vld [vmem:[%s2704_s1 + $0x360] sm:$0xff]  ;;  %v1823_v47 = vcombine.high %v122_v42, %v126_v43  ;;  %v130_v50 = vld [vmem:[%s2704_s1 + $0x388] sm:$0xff]  ;;  %v1822_v54 = vcombine.low %v122_v42, %v126_v43 }
  0x1e   :  { %1349 = vmatpush1.bf16.msra.mxu0 %v1764_v60  ;;  %1431 = vmatpush1.bf16.msra.mxu1 %v1766_v61  ;;  %v1821_v46 = vcombine.high %v121_v40, %v125_v41  ;;  %v129_v48 = vld [vmem:[%s2704_s1 + $0x380] sm:$0xff]  ;;  %v134_v51 = vld [vmem:[%s2704_s1 + $0x3a8] sm:$0xff]  ;;  %v1820_v52 = vcombine.low %v121_v40, %v125_v41 }
  0x1f   :  { %1350 = vmatprep.subr.bf16.mxu0 %v1773_v62  ;;  %1432 = vmatprep.subr.bf16.mxu1 %v1775_v63  ;;  %v133_v49 = vld [vmem:[%s2704_s1 + $0x3a0] sm:$0xff]  ;;  %v1831_v56 = vcombine.high %v130_v50, %v134_v51  ;;  %v138_v60 = vld [vmem:[%s2704_s1 + $0x3c8] sm:$0xff]  ;;  %v1830_v63 = vcombine.low %v130_v50, %v134_v51 }
  0x20   :  { %v1829_v55 = vcombine.high %v129_v48, %v133_v49  ;;  %v137_v58 = vld [vmem:[%s2704_s1 + $0x3c0] sm:$0xff]  ;;  %v142_v61 = vld [vmem:[%s2704_s1 + $0x3e8] sm:$0xff]  ;;  %v1828_v62 = vcombine.low %v129_v48, %v133_v49 }
  0x21   :  { %v141_v59 = vld [vmem:[%s2704_s1 + $0x3e0] sm:$0xff]  ;;  %v1839_v1 = vcombine.high %v138_v60, %v142_v61  ;;  %v162_v24 = vld [vmem:[%s2704_s1 + $0x488] sm:$0xff] }
  0x22   :  { %1351 = vmatpush1.bf16.msra.mxu0 %v1772_v4  ;;  %1433 = vmatpush1.bf16.msra.mxu1 %v1774_v5  ;;  %v1837_v0 = vcombine.high %v137_v58, %v141_v59  ;;  %v145_v2 = vld [vmem:[%s2704_s1 + $0x400] sm:$0xff]  ;;  %v146_v4 = vld [vmem:[%s2704_s1 + $0x408] sm:$0xff] }
  0x23   :  { %1352 = vmatprep.subr.bf16.mxu0 %v1781_v6  ;;  %1434 = vmatprep.subr.bf16.mxu1 %v1783_v7  ;;  %v149_v3 = vld [vmem:[%s2704_s1 + $0x420] sm:$0xff]  ;;  %v150_v5 = vld [vmem:[%s2704_s1 + $0x428] sm:$0xff]  ;;  %v1836_v6 = vcombine.low %v137_v58, %v141_v59  ;;  %v1838_v7 = vcombine.low %v138_v60, %v142_v61 }
  0x24   :  { %v1845_v8 = vcombine.high %v145_v2, %v149_v3  ;;  %v1847_v9 = vcombine.high %v146_v4, %v150_v5  ;;  %v153_v10 = vld [vmem:[%s2704_s1 + $0x440] sm:$0xff]  ;;  %v1844_v16 = vcombine.low %v145_v2, %v149_v3  ;;  %v1846_v17 = vcombine.low %v146_v4, %v150_v5  ;;  %v166_v25 = vld [vmem:[%s2704_s1 + $0x4a8] sm:$0xff] }
  0x25   :  { %v157_v11 = vld [vmem:[%s2704_s1 + $0x460] sm:$0xff]  ;;  %v170_v32 = vld [vmem:[%s2704_s1 + $0x4c8] sm:$0xff]  ;;  %v1862_v35 = vcombine.low %v162_v24, %v166_v25 }
  0x26   :  { %1353 = vmatpush1.bf16.msra.mxu0 %v1780_v12  ;;  %1435 = vmatpush1.bf16.msra.mxu1 %v1782_v13  ;;  %v2218_v12 = vcombine.low %v2082_v53, %v2082_v53  ;;  %v154_v13 = vld [vmem:[%s2704_s1 + $0x448] sm:$0xff]  ;;  %v1853_v53 = vcombine.high %v153_v10, %v157_v11  ;;  %v161_v19 = vld [vmem:[%s2704_s1 + $0x480] sm:$0xff]  ;;  %v1852_v26 = vcombine.low %v153_v10, %v157_v11 }
  0x27   :  { %1354 = vmatprep.subr.bf16.mxu0 %v1789_v14  ;;  %1436 = vmatprep.subr.bf16.mxu1 %v1791_v15  ;;  %v158_v14 = vld [vmem:[%s2704_s1 + $0x468] sm:$0xff] }
  0x28   :  { %v2229_v15 = vld [vmem:[%s2705_s0 + $0x8] sm:$0xff]  ;;  %v1855_v18 = vcombine.high %v154_v13, %v158_v14  ;;  %v1854_v27 = vcombine.low %v154_v13, %v158_v14 }
  0x29   :  { %v174_v33 = vld [vmem:[%s2704_s1 + $0x4e8] sm:$0xff] }
  0x2a   :  { %1355 = vmatpush1.bf16.msra.mxu0 %v1788_v20  ;;  %1437 = vmatpush1.bf16.msra.mxu1 %v1790_v21  ;;  %v165_v20 = vld [vmem:[%s2704_s1 + $0x4a0] sm:$0xff]  ;;  %v2239_v21 = vcombine.high %v2229_v15, %v2229_v15  ;;  %v178_v40 = vld [vmem:[%s2704_s1 + $0x508] sm:$0xff]  ;;  %v1870_v43 = vcombine.low %v170_v32, %v174_v33 }
  0x2b   :  { %1356 = vmatprep.subr.bf16.mxu0 %v1797_v22  ;;  %1438 = vmatprep.subr.bf16.mxu1 %v1799_v23  ;;  %v1974_v22 = vmov 0   ;;  %v233_v23 = vld [vmem:[%s2706_s2] sm:$0xff]  ;;  %v1860_v34 = vcombine.low %v161_v19, %v165_v20  ;;  %v182_v41 = vld [vmem:[%s2704_s1 + $0x528] sm:$0xff] }
  0x2c   :  { %1969 = vset.pattern.permute.xlu0 %v1974_v22  ;;  %v186_v48 = vld [vmem:[%s2704_s1 + $0x548] sm:$0xff]  ;;  %v1878_v51 = vcombine.low %v178_v40, %v182_v41 }
  0x2d   :  { %236 = vperm.xlu0 %1969, %v233_v23   ;;  %v190_v49 = vld [vmem:[%s2704_s1 + $0x568] sm:$0xff] }
  0x2e   :  { %1357 = vmatpush1.bf16.msra.mxu0 %v1796_v28  ;;  %1439 = vmatpush1.bf16.msra.mxu1 %v1798_v29  ;;  %v1861_v28 = vcombine.high %v161_v19, %v165_v20  ;;  %v1863_v29 = vcombine.high %v162_v24, %v166_v25  ;;  %v194_v58 = vld [vmem:[%s2704_s1 + $0x588] sm:$0xff]  ;;  %v1886_v61 = vcombine.low %v186_v48, %v190_v49 }
  0x2f   :  { %1358 = vmatprep.subr.bf16.mxu0 %v1805_v30  ;;  %1440 = vmatprep.subr.bf16.mxu1 %v1807_v31  ;;  %v169_v30 = vld [vmem:[%s2704_s1 + $0x4c0] sm:$0xff]  ;;  %v198_v59 = vld [vmem:[%s2704_s1 + $0x5a8] sm:$0xff] }
  0x30   :  { %v173_v31 = vld [vmem:[%s2704_s1 + $0x4e0] sm:$0xff]  ;;  %v202_v2 = vld [vmem:[%s2704_s1 + $0x5c8] sm:$0xff]  ;;  %v1894_v5 = vcombine.low %v194_v58, %v198_v59 }
  0x31   :  { %v1868_v42 = vcombine.low %v169_v30, %v173_v31  ;;  %v206_v3 = vld [vmem:[%s2704_s1 + $0x5e8] sm:$0xff] }
  0x32   :  { %1359 = vmatpush1.bf16.msra.mxu0 %v1804_v36  ;;  %1441 = vmatpush1.bf16.msra.mxu1 %v1806_v37  ;;  %v1869_v36 = vcombine.high %v169_v30, %v173_v31  ;;  %v1871_v37 = vcombine.high %v170_v32, %v174_v33  ;;  %v210_v10 = vld [vmem:[%s2704_s1 + $0x608] sm:$0xff]  ;;  %v1902_v14 = vcombine.low %v202_v2, %v206_v3 }
  0x33   :  { %1360 = vmatprep.subr.bf16.mxu0 %v1813_v38  ;;  %1442 = vmatprep.subr.bf16.mxu1 %v1815_v39  ;;  %v177_v38 = vld [vmem:[%s2704_s1 + $0x500] sm:$0xff]  ;;  %v214_v11 = vld [vmem:[%s2704_s1 + $0x628] sm:$0xff] }
  0x34   :  { %v181_v39 = vld [vmem:[%s2704_s1 + $0x520] sm:$0xff]  ;;  %v218_v19 = vld [vmem:[%s2704_s1 + $0x648] sm:$0xff]  ;;  %v1910_v23 = vcombine.low %v210_v10, %v214_v11 }
  0x35   :  { %v1876_v50 = vcombine.low %v177_v38, %v181_v39  ;;  %v222_v20 = vld [vmem:[%s2704_s1 + $0x668] sm:$0xff] }
  0x36   :  { %1361 = vmatpush1.bf16.msra.mxu0 %v1812_v44  ;;  %1443 = vmatpush1.bf16.msra.mxu1 %v1814_v45  ;;  %v1877_v44 = vcombine.high %v177_v38, %v181_v39  ;;  %v1879_v45 = vcombine.high %v178_v40, %v182_v41  ;;  %v1919_v25 = vcombine.high %v218_v19, %v222_v20 }
  0x37   :  { %1362 = vmatprep.subr.bf16.mxu0 %v1821_v46  ;;  %1444 = vmatprep.subr.bf16.mxu1 %v1823_v47  ;;  %v185_v46 = vld [vmem:[%s2704_s1 + $0x540] sm:$0xff]  ;;  %v1918_v31 = vcombine.low %v218_v19, %v222_v20  ;;  %v67_v20 = vld [vmem:[%s2704_s1 + $0x190] sm:$0xff] }
  0x38   :  { %v189_v47 = vld [vmem:[%s2704_s1 + $0x560] sm:$0xff] }
  0x39   :  { %v1884_v60 = vcombine.low %v185_v46, %v189_v47 }
  0x3a   :  { %1363 = vmatpush1.bf16.msra.mxu0 %v1820_v52  ;;  %1445 = vmatpush1.bf16.msra.mxu1 %v1822_v54  ;;  %v1885_v52 = vcombine.high %v185_v46, %v189_v47  ;;  %v1887_v54 = vcombine.high %v186_v48, %v190_v49  ;;  %v32_v46 = vld [vmem:[%s2704_s1 + $0x78] sm:$0xff] }
  0x3b   :  { %1364 = vmatprep.subr.bf16.mxu0 %v1829_v55  ;;  %1446 = vmatprep.subr.bf16.mxu1 %v1831_v56  ;;  %v193_v55 = vld [vmem:[%s2704_s1 + $0x580] sm:$0xff] }
  0x3c   :  { %v197_v56 = vld [vmem:[%s2704_s1 + $0x5a0] sm:$0xff] }
  0x3d   :  { %v1892_v4 = vcombine.low %v193_v55, %v197_v56 }
  0x3e   :  { %1365 = vmatpush1.bf16.msra.mxu0 %v1828_v62  ;;  %1447 = vmatpush1.bf16.msra.mxu1 %v1830_v63  ;;  %v1893_v62 = vcombine.high %v193_v55, %v197_v56  ;;  %v1895_v63 = vcombine.high %v194_v58, %v198_v59 }
  0x3f   :  { %1366 = vmatprep.subr.bf16.mxu0 %v1837_v0  ;;  %1448 = vmatprep.subr.bf16.mxu1 %v1839_v1  ;;  %v201_v0 = vld [vmem:[%s2704_s1 + $0x5c0] sm:$0xff] }
  0x40   :  { %v205_v1 = vld [vmem:[%s2704_s1 + $0x5e0] sm:$0xff] }
  0x41   :  { %v1900_v13 = vcombine.low %v201_v0, %v205_v1 }
  0x42   :  { %1367 = vmatpush1.bf16.msra.mxu0 %v1836_v6  ;;  %1449 = vmatpush1.bf16.msra.mxu1 %v1838_v7  ;;  %v1901_v6 = vcombine.high %v201_v0, %v205_v1  ;;  %v1903_v7 = vcombine.high %v202_v2, %v206_v3 }
  0x43   :  { %1377 = vmatprep.subr.bf16.mxu0 %v1845_v8  ;;  %1459 = vmatprep.subr.bf16.mxu1 %v1847_v9  ;;  %v209_v8 = vld [vmem:[%s2704_s1 + $0x600] sm:$0xff] }
  0x44   :  { %v213_v9 = vld [vmem:[%s2704_s1 + $0x620] sm:$0xff] }
  0x45   :  { %1369 = vmatmul.mubr.bf16.vlgmr.msra.gmra.mrb[0].mxu0 %v2218_v12  ;;  %1451 = vmatmul.mubr.bf16.vlgmr.msra.gmra.mrb[0].mxu1 %v2218_v12  ;;  %v1908_v22 = vcombine.low %v209_v8, %v213_v9 }
  0x46   :  { %1378 = vmatpush1.bf16.msra.mxu0 %v1844_v16  ;;  %1460 = vmatpush1.bf16.msra.mxu1 %v1846_v17  ;;  %v1909_v16 = vcombine.high %v209_v8, %v213_v9  ;;  %v1911_v17 = vcombine.high %v210_v10, %v214_v11  ;;  %v59_v11 = vld [vmem:[%s2704_s1 + $0x150] sm:$0xff] }
  0x47   :  { %1379 = vmatprep.subr.bf16.mxu0 %v1853_v53  ;;  %1461 = vmatprep.subr.bf16.mxu1 %v1855_v18  ;;  %v217_v53 = vld [vmem:[%s2704_s1 + $0x640] sm:$0xff] }
  0x48   :  { %1932 = vmatprep.mubr.msk.bf16.mxu0 %vm1332_vm0, %v2239_v21  ;;  %1933 = vmatprep.mubr.msk.bf16.mxu1 %vm1332_vm0, %v2239_v21  ;;  %v221_v18 = vld [vmem:[%s2704_s1 + $0x660] sm:$0xff] }
  0x49   :  { %v1917_v24 = vcombine.high %v217_v53, %v221_v18  ;;  %v1916_v30 = vcombine.low %v217_v53, %v221_v18 }
  0x4a   :  { %1380 = vmatpush1.bf16.msra.mxu0 %v1852_v26  ;;  %1462 = vmatpush1.bf16.msra.mxu1 %v1854_v27  ;;  %v225_v26 = vld [vmem:[%s2704_s1 + $0x680] sm:$0xff] }
  0x4b   :  { %1381 = vmatprep.subr.bf16.mxu0 %v1861_v28  ;;  %1463 = vmatprep.subr.bf16.mxu1 %v1863_v29  ;;  %v229_v27 = vld [vmem:[%s2704_s1 + $0x6a0] sm:$0xff]  ;;  %v226_v28 = vld [vmem:[%s2704_s1 + $0x688] sm:$0xff] }
  0x4c   :  { %v230_v29 = vld [vmem:[%s2704_s1 + $0x6a8] sm:$0xff]  ;;  %v1925_v32 = vcombine.high %v225_v26, %v229_v27  ;;  %v1924_v38 = vcombine.low %v225_v26, %v229_v27 }
  0x4d   :  { %v1927_v33 = vcombine.high %v226_v28, %v230_v29  ;;  %v1926_v39 = vcombine.low %v226_v28, %v230_v29  ;;  %v75_v29 = vld [vmem:[%s2704_s1 + $0x1d0] sm:$0xff] }
  0x4e   :  { %1382 = vmatpush1.bf16.msra.mxu0 %v1860_v34  ;;  %1464 = vmatpush1.bf16.msra.mxu1 %v1862_v35  ;;  %v19_v34 = vld [vmem:[%s2704_s1 + $0x10] sm:$0xff] }
  0x4f   :  { %1383 = vmatprep.subr.bf16.mxu0 %v1869_v36  ;;  %1465 = vmatprep.subr.bf16.mxu1 %v1871_v37  ;;  %v23_v35 = vld [vmem:[%s2704_s1 + $0x30] sm:$0xff]  ;;  %v20_v36 = vld [vmem:[%s2704_s1 + $0x18] sm:$0xff] }
  0x50   :  { %v24_v37 = vld [vmem:[%s2704_s1 + $0x38] sm:$0xff]  ;;  %v1721_v40 = vcombine.high %v19_v34, %v23_v35  ;;  %v1720_v47 = vcombine.low %v19_v34, %v23_v35 }
  0x51   :  { %v1723_v41 = vcombine.high %v20_v36, %v24_v37  ;;  %v1722_v48 = vcombine.low %v20_v36, %v24_v37  ;;  %v83_v37 = vld [vmem:[%s2704_s1 + $0x210] sm:$0xff] }
  0x52   :  { %1384 = vmatpush1.bf16.msra.mxu0 %v1868_v42  ;;  %1466 = vmatpush1.bf16.msra.mxu1 %v1870_v43  ;;  %v27_v42 = vld [vmem:[%s2704_s1 + $0x50] sm:$0xff] }
  0x53   :  { %1385 = vmatprep.subr.bf16.mxu0 %v1877_v44  ;;  %1467 = vmatprep.subr.bf16.mxu1 %v1879_v45  ;;  %v31_v43 = vld [vmem:[%s2704_s1 + $0x70] sm:$0xff]  ;;  %v2372_v44 = vcombine.low %v2229_v15, %v2229_v15  ;;  %v28_v45 = vld [vmem:[%s2704_s1 + $0x58] sm:$0xff] }
  0x54   :  { %v1729_v49 = vcombine.high %v27_v42, %v31_v43  ;;  %v35_v15 = vld [vmem:[%s2704_s1 + $0x90] sm:$0xff]  ;;  %v1728_v55 = vcombine.low %v27_v42, %v31_v43  ;;  %v1730_v56 = vcombine.low %v28_v45, %v32_v46 }
  0x56   :  { %1386 = vmatpush1.bf16.msra.mxu0 %v1876_v50  ;;  %1468 = vmatpush1.bf16.msra.mxu1 %v1878_v51  ;;  %v1731_v50 = vcombine.high %v28_v45, %v32_v46  ;;  %v39_v51 = vld [vmem:[%s2704_s1 + $0xb0] sm:$0xff] }
  0x57   :  { %1387 = vmatprep.subr.bf16.mxu0 %v1885_v52  ;;  %1469 = vmatprep.subr.bf16.mxu1 %v1887_v54  ;;  %v36_v52 = vld [vmem:[%s2704_s1 + $0x98] sm:$0xff]  ;;  %v1737_v58 = vcombine.high %v35_v15, %v39_v51  ;;  %v1736_v0 = vcombine.low %v35_v15, %v39_v51  ;;  %v91_v46 = vld [vmem:[%s2704_s1 + $0x250] sm:$0xff] }
  0x58   :  { %v40_v54 = vld [vmem:[%s2704_s1 + $0xb8] sm:$0xff] }
  0x59   :  { %v1739_v59 = vcombine.high %v36_v52, %v40_v54  ;;  %v1738_v1 = vcombine.low %v36_v52, %v40_v54  ;;  %v99_v54 = vld [vmem:[%s2704_s1 + $0x290] sm:$0xff] }
  0x5a   :  { %1388 = vmatpush1.bf16.msra.mxu0 %v1884_v60  ;;  %1470 = vmatpush1.bf16.msra.mxu1 %v1886_v61  ;;  %v43_v60 = vld [vmem:[%s2704_s1 + $0xd0] sm:$0xff] }
  0x5b   :  { %1389 = vmatprep.subr.bf16.mxu0 %v1893_v62  ;;  %1471 = vmatprep.subr.bf16.mxu1 %v1895_v63  ;;  %v47_v61 = vld [vmem:[%s2704_s1 + $0xf0] sm:$0xff]  ;;  %v44_v62 = vld [vmem:[%s2704_s1 + $0xd8] sm:$0xff] }
  0x5c   :  { %v48_v63 = vld [vmem:[%s2704_s1 + $0xf8] sm:$0xff]  ;;  %v1745_v2 = vcombine.high %v43_v60, %v47_v61 }
  0x5d   :  { %v1747_v3 = vcombine.high %v44_v62, %v48_v63  ;;  %v1746_v8 = vcombine.low %v44_v62, %v48_v63  ;;  %v107_v63 = vld [vmem:[%s2704_s1 + $0x2d0] sm:$0xff] }
  0x5e   :  { %1390 = vmatpush1.bf16.msra.mxu0 %v1892_v4  ;;  %1472 = vmatpush1.bf16.msra.mxu1 %v1894_v5  ;;  %v51_v4 = vld [vmem:[%s2704_s1 + $0x110] sm:$0xff] }
  0x5f   :  { %1391 = vmatprep.subr.bf16.mxu0 %v1901_v6  ;;  %1473 = vmatprep.subr.bf16.mxu1 %v1903_v7  ;;  %v55_v5 = vld [vmem:[%s2704_s1 + $0x130] sm:$0xff]  ;;  %v56_v6 = vld [vmem:[%s2704_s1 + $0x138] sm:$0xff]  ;;  %v1744_v7 = vcombine.low %v43_v60, %v47_v61 }
  0x60   :  { %v1753_v9 = vcombine.high %v51_v4, %v55_v5 }
  0x62   :  { %1392 = vmatpush1.bf16.msra.mxu0 %v1900_v13  ;;  %1474 = vmatpush1.bf16.msra.mxu1 %v1902_v14  ;;  %v63_v13 = vld [vmem:[%s2704_s1 + $0x170] sm:$0xff]  ;;  %v60_v14 = vld [vmem:[%s2704_s1 + $0x158] sm:$0xff] }
  0x63   :  { %1393 = vmatprep.subr.bf16.mxu0 %v1909_v16  ;;  %1475 = vmatprep.subr.bf16.mxu1 %v1911_v17  ;;  %v64_v16 = vld [vmem:[%s2704_s1 + $0x178] sm:$0xff]  ;;  %v1752_v17 = vcombine.low %v51_v4, %v55_v5  ;;  %v1761_v18 = vcombine.high %v59_v11, %v63_v13 }
  0x64   :  { %v1763_v19 = vcombine.high %v60_v14, %v64_v16  ;;  %v1762_v26 = vcombine.low %v60_v14, %v64_v16  ;;  %v123_v16 = vld [vmem:[%s2704_s1 + $0x350] sm:$0xff] }
  0x66   :  { %1394 = vmatpush1.bf16.msra.mxu0 %v1908_v22  ;;  %1476 = vmatpush1.bf16.msra.mxu1 %v1910_v23  ;;  %v71_v22 = vld [vmem:[%s2704_s1 + $0x1b0] sm:$0xff]  ;;  %v68_v23 = vld [vmem:[%s2704_s1 + $0x198] sm:$0xff] }
  0x67   :  { %1395 = vmatprep.subr.bf16.mxu0 %v1917_v24  ;;  %1477 = vmatprep.subr.bf16.mxu1 %v1919_v25  ;;  %v72_v24 = vld [vmem:[%s2704_s1 + $0x1b8] sm:$0xff]  ;;  %v1760_v25 = vcombine.low %v59_v11, %v63_v13  ;;  %v1769_v27 = vcombine.high %v67_v20, %v71_v22 }
  0x68   :  { %v1771_v28 = vcombine.high %v68_v23, %v72_v24  ;;  %v1770_v34 = vcombine.low %v68_v23, %v72_v24  ;;  %v131_v24 = vld [vmem:[%s2704_s1 + $0x390] sm:$0xff] }
  0x6a   :  { %1396 = vmatpush1.bf16.msra.mxu0 %v1916_v30  ;;  %1478 = vmatpush1.bf16.msra.mxu1 %v1918_v31  ;;  %v79_v30 = vld [vmem:[%s2704_s1 + $0x1f0] sm:$0xff]  ;;  %v76_v31 = vld [vmem:[%s2704_s1 + $0x1d8] sm:$0xff] }
  0x6b   :  { %1397 = vmatprep.subr.bf16.mxu0 %v1925_v32  ;;  %1479 = vmatprep.subr.bf16.mxu1 %v1927_v33  ;;  %v80_v32 = vld [vmem:[%s2704_s1 + $0x1f8] sm:$0xff]  ;;  %v1768_v33 = vcombine.low %v67_v20, %v71_v22  ;;  %v1777_v35 = vcombine.high %v75_v29, %v79_v30 }
  0x6c   :  { %v1779_v36 = vcombine.high %v76_v31, %v80_v32  ;;  %v1778_v42 = vcombine.low %v76_v31, %v80_v32  ;;  %v139_v32 = vld [vmem:[%s2704_s1 + $0x3d0] sm:$0xff] }
  0x6e   :  { %1398 = vmatpush1.bf16.msra.mxu0 %v1924_v38  ;;  %1480 = vmatpush1.bf16.msra.mxu1 %v1926_v39  ;;  %v87_v38 = vld [vmem:[%s2704_s1 + $0x230] sm:$0xff]  ;;  %v84_v39 = vld [vmem:[%s2704_s1 + $0x218] sm:$0xff] }
  0x6f   :  { %1500 = vmatprep.subr.bf16.mxu0 %v1721_v40  ;;  %1582 = vmatprep.subr.bf16.mxu1 %v1723_v41  ;;  %v88_v40 = vld [vmem:[%s2704_s1 + $0x238] sm:$0xff]  ;;  %v1776_v41 = vcombine.low %v75_v29, %v79_v30  ;;  %v1785_v43 = vcombine.high %v83_v37, %v87_v38 }
  0x70   :  { %v1787_v45 = vcombine.high %v84_v39, %v88_v40  ;;  %v1786_v15 = vcombine.low %v84_v39, %v88_v40  ;;  %v147_v40 = vld [vmem:[%s2704_s1 + $0x410] sm:$0xff] }
  0x71   :  { %1410 = vmatmul.mubr.bf16.vlgmr.msra.gmra.mrb[0].mxu0 %v2372_v44  ;;  %1492 = vmatmul.mubr.bf16.vlgmr.msra.gmra.mrb[0].mxu1 %v2372_v44 }
  0x72   :  { %1501 = vmatpush1.bf16.msra.mxu0 %v1720_v47  ;;  %1583 = vmatpush1.bf16.msra.mxu1 %v1722_v48  ;;  %v95_v47 = vld [vmem:[%s2704_s1 + $0x270] sm:$0xff]  ;;  %v92_v48 = vld [vmem:[%s2704_s1 + $0x258] sm:$0xff] }
  0x73   :  { %1502 = vmatprep.subr.bf16.mxu0 %v1729_v49  ;;  %1584 = vmatprep.subr.bf16.mxu1 %v1731_v50  ;;  %v96_v49 = vld [vmem:[%s2704_s1 + $0x278] sm:$0xff]  ;;  %v1784_v50 = vcombine.low %v83_v37, %v87_v38  ;;  %v1793_v51 = vcombine.high %v91_v46, %v95_v47 }
  0x74   :  { %1532 = vmatprep.mubr.bf16.mxu0 %v2092_v57  ;;  %1614 = vmatprep.mubr.bf16.mxu1 %v2092_v57  ;;  %v52_v57 = vld [vmem:[%s2704_s1 + $0x118] sm:$0xff]  ;;  %v1795_v52 = vcombine.high %v92_v48, %v96_v49  ;;  %v1794_v60 = vcombine.low %v92_v48, %v96_v49  ;;  %v155_v49 = vld [vmem:[%s2704_s1 + $0x450] sm:$0xff] }
  0x75   :  { %v1755_v10 = vcombine.high %v52_v57, %v56_v6  ;;  %v1754_v53 = vcombine.low %v52_v57, %v56_v6  ;;  %v115_v6 = vld [vmem:[%s2704_s1 + $0x310] sm:$0xff] }
  0x76   :  { %1503 = vmatpush1.bf16.msra.mxu0 %v1728_v55  ;;  %1585 = vmatpush1.bf16.msra.mxu1 %v1730_v56  ;;  %v103_v55 = vld [vmem:[%s2704_s1 + $0x2b0] sm:$0xff]  ;;  %v100_v56 = vld [vmem:[%s2704_s1 + $0x298] sm:$0xff] }
  0x77   :  { %1504 = vmatprep.subr.bf16.mxu0 %v1737_v58  ;;  %1586 = vmatprep.subr.bf16.mxu1 %v1739_v59  ;;  %v104_v58 = vld [vmem:[%s2704_s1 + $0x2b8] sm:$0xff]  ;;  %v1792_v59 = vcombine.low %v91_v46, %v95_v47  ;;  %v1801_v61 = vcombine.high %v99_v54, %v103_v55 }
  0x78   :  { %v1803_v62 = vcombine.high %v100_v56, %v104_v58  ;;  %v1802_v4 = vcombine.low %v100_v56, %v104_v58  ;;  %v163_v58 = vld [vmem:[%s2704_s1 + $0x490] sm:$0xff] }
  0x7a   :  { %1505 = vmatpush1.bf16.msra.mxu0 %v1736_v0  ;;  %1587 = vmatpush1.bf16.msra.mxu1 %v1738_v1  ;;  %v111_v0 = vld [vmem:[%s2704_s1 + $0x2f0] sm:$0xff]  ;;  %v108_v1 = vld [vmem:[%s2704_s1 + $0x2d8] sm:$0xff] }
  0x7b   :  { %1506 = vmatprep.subr.bf16.mxu0 %v1745_v2  ;;  %1588 = vmatprep.subr.bf16.mxu1 %v1747_v3  ;;  %v112_v2 = vld [vmem:[%s2704_s1 + $0x2f8] sm:$0xff]  ;;  %v1800_v3 = vcombine.low %v99_v54, %v103_v55  ;;  %v1809_v5 = vcombine.high %v107_v63, %v111_v0 }
  0x7c   :  { %v1811_v57 = vcombine.high %v108_v1, %v112_v2  ;;  %v1810_v11 = vcombine.low %v108_v1, %v112_v2  ;;  %v171_v2 = vld [vmem:[%s2704_s1 + $0x4d0] sm:$0xff] }
  0x7e   :  { %1507 = vmatpush1.bf16.msra.mxu0 %v1744_v7  ;;  %1589 = vmatpush1.bf16.msra.mxu1 %v1746_v8  ;;  %v119_v7 = vld [vmem:[%s2704_s1 + $0x330] sm:$0xff]  ;;  %v116_v8 = vld [vmem:[%s2704_s1 + $0x318] sm:$0xff] }
  0x7f   :  { %1508 = vmatprep.subr.bf16.mxu0 %v1753_v9  ;;  %1590 = vmatprep.subr.bf16.mxu1 %v1755_v10  ;;  %v120_v9 = vld [vmem:[%s2704_s1 + $0x338] sm:$0xff]  ;;  %v1808_v10 = vcombine.low %v107_v63, %v111_v0  ;;  %v1817_v13 = vcombine.high %v115_v6, %v119_v7 }
  0x80   :  { %v1819_v14 = vcombine.high %v116_v8, %v120_v9  ;;  %v1818_v20 = vcombine.low %v116_v8, %v120_v9  ;;  %v179_v8 = vld [vmem:[%s2704_s1 + $0x510] sm:$0xff] }
  0x81   :  { %v183_v9 = vld [vmem:[%s2704_s1 + $0x530] sm:$0xff] }
  0x82   :  { %1509 = vmatpush1.bf16.msra.mxu0 %v1752_v17  ;;  %1591 = vmatpush1.bf16.msra.mxu1 %v1754_v53  ;;  %v127_v17 = vld [vmem:[%s2704_s1 + $0x370] sm:$0xff]  ;;  %v124_v53 = vld [vmem:[%s2704_s1 + $0x358] sm:$0xff] }
  0x83   :  { %1510 = vmatprep.subr.bf16.mxu0 %v1761_v18  ;;  %1592 = vmatprep.subr.bf16.mxu1 %v1763_v19  ;;  %v128_v18 = vld [vmem:[%s2704_s1 + $0x378] sm:$0xff]  ;;  %v1816_v19 = vcombine.low %v115_v6, %v119_v7  ;;  %v1825_v22 = vcombine.high %v123_v16, %v127_v17 }
  0x84   :  { %v1827_v23 = vcombine.high %v124_v53, %v128_v18  ;;  %v1826_v29 = vcombine.low %v124_v53, %v128_v18  ;;  %v191_v53 = vld [vmem:[%s2704_s1 + $0x570] sm:$0xff]  ;;  %v188_v18 = vld [vmem:[%s2704_s1 + $0x558] sm:$0xff] }
  0x86   :  { %1511 = vmatpush1.bf16.msra.mxu0 %v1760_v25  ;;  %1593 = vmatpush1.bf16.msra.mxu1 %v1762_v26  ;;  %v135_v25 = vld [vmem:[%s2704_s1 + $0x3b0] sm:$0xff]  ;;  %v132_v26 = vld [vmem:[%s2704_s1 + $0x398] sm:$0xff] }
  0x87   :  { %1512 = vmatprep.subr.bf16.mxu0 %v1769_v27  ;;  %1594 = vmatprep.subr.bf16.mxu1 %v1771_v28  ;;  %v136_v27 = vld [vmem:[%s2704_s1 + $0x3b8] sm:$0xff]  ;;  %v1824_v28 = vcombine.low %v123_v16, %v127_v17  ;;  %v1833_v30 = vcombine.high %v131_v24, %v135_v25  ;;  %v187_v17 = vld [vmem:[%s2704_s1 + $0x550] sm:$0xff] }
  0x88   :  { %v1835_v31 = vcombine.high %v132_v26, %v136_v27  ;;  %v1834_v37 = vcombine.low %v132_v26, %v136_v27  ;;  %v199_v26 = vld [vmem:[%s2704_s1 + $0x5b0] sm:$0xff]  ;;  %v196_v27 = vld [vmem:[%s2704_s1 + $0x598] sm:$0xff] }
  0x8a   :  { %1513 = vmatpush1.bf16.msra.mxu0 %v1768_v33  ;;  %1595 = vmatpush1.bf16.msra.mxu1 %v1770_v34  ;;  %v143_v33 = vld [vmem:[%s2704_s1 + $0x3f0] sm:$0xff]  ;;  %v140_v34 = vld [vmem:[%s2704_s1 + $0x3d8] sm:$0xff] }
  0x8b   :  { %1514 = vmatprep.subr.bf16.mxu0 %v1777_v35  ;;  %1596 = vmatprep.subr.bf16.mxu1 %v1779_v36  ;;  %v144_v35 = vld [vmem:[%s2704_s1 + $0x3f8] sm:$0xff]  ;;  %v1832_v36 = vcombine.low %v131_v24, %v135_v25  ;;  %v1841_v38 = vcombine.high %v139_v32, %v143_v33  ;;  %v195_v25 = vld [vmem:[%s2704_s1 + $0x590] sm:$0xff] }
  0x8c   :  { %v1843_v39 = vcombine.high %v140_v34, %v144_v35  ;;  %v1842_v46 = vcombine.low %v140_v34, %v144_v35  ;;  %v207_v34 = vld [vmem:[%s2704_s1 + $0x5f0] sm:$0xff]  ;;  %v204_v35 = vld [vmem:[%s2704_s1 + $0x5d8] sm:$0xff] }
  0x8e   :  { %1515 = vmatpush1.bf16.msra.mxu0 %v1776_v41  ;;  %1597 = vmatpush1.bf16.msra.mxu1 %v1778_v42  ;;  %v151_v41 = vld [vmem:[%s2704_s1 + $0x430] sm:$0xff]  ;;  %v148_v42 = vld [vmem:[%s2704_s1 + $0x418] sm:$0xff] }
  0x8f   :  { %1516 = vmatprep.subr.bf16.mxu0 %v1785_v43  ;;  %1598 = vmatprep.subr.bf16.mxu1 %v1787_v45  ;;  %v152_v43 = vld [vmem:[%s2704_s1 + $0x438] sm:$0xff]  ;;  %v1840_v45 = vcombine.low %v139_v32, %v143_v33  ;;  %v1849_v47 = vcombine.high %v147_v40, %v151_v41  ;;  %v203_v33 = vld [vmem:[%s2704_s1 + $0x5d0] sm:$0xff] }
  0x90   :  { %v1851_v48 = vcombine.high %v148_v42, %v152_v43  ;;  %v1850_v54 = vcombine.low %v148_v42, %v152_v43  ;;  %v215_v42 = vld [vmem:[%s2704_s1 + $0x630] sm:$0xff]  ;;  %v212_v43 = vld [vmem:[%s2704_s1 + $0x618] sm:$0xff] }
  0x92   :  { %1517 = vmatpush1.bf16.msra.mxu0 %v1784_v50  ;;  %1599 = vmatpush1.bf16.msra.mxu1 %v1786_v15  ;;  %v159_v50 = vld [vmem:[%s2704_s1 + $0x470] sm:$0xff]  ;;  %v156_v15 = vld [vmem:[%s2704_s1 + $0x458] sm:$0xff] }
  0x93   :  { %1518 = vmatprep.subr.bf16.mxu0 %v1793_v51  ;;  %1600 = vmatprep.subr.bf16.mxu1 %v1795_v52  ;;  %v160_v51 = vld [vmem:[%s2704_s1 + $0x478] sm:$0xff]  ;;  %v1848_v52 = vcombine.low %v147_v40, %v151_v41  ;;  %v1857_v55 = vcombine.high %v155_v49, %v159_v50  ;;  %v211_v41 = vld [vmem:[%s2704_s1 + $0x610] sm:$0xff] }
  0x94   :  { %v1859_v56 = vcombine.high %v156_v15, %v160_v51  ;;  %v1858_v63 = vcombine.low %v156_v15, %v160_v51  ;;  %v223_v15 = vld [vmem:[%s2704_s1 + $0x670] sm:$0xff]  ;;  %v220_v51 = vld [vmem:[%s2704_s1 + $0x658] sm:$0xff] }
  0x96   :  { %1519 = vmatpush1.bf16.msra.mxu0 %v1792_v59  ;;  %1601 = vmatpush1.bf16.msra.mxu1 %v1794_v60  ;;  %v167_v59 = vld [vmem:[%s2704_s1 + $0x4b0] sm:$0xff]  ;;  %v164_v60 = vld [vmem:[%s2704_s1 + $0x498] sm:$0xff] }
  0x97   :  { %1520 = vmatprep.subr.bf16.mxu0 %v1801_v61  ;;  %1602 = vmatprep.subr.bf16.mxu1 %v1803_v62  ;;  %v168_v61 = vld [vmem:[%s2704_s1 + $0x4b8] sm:$0xff]  ;;  %v1856_v62 = vcombine.low %v155_v49, %v159_v50  ;;  %v1865_v0 = vcombine.high %v163_v58, %v167_v59  ;;  %v219_v50 = vld [vmem:[%s2704_s1 + $0x650] sm:$0xff] }
  0x98   :  { %v1867_v1 = vcombine.high %v164_v60, %v168_v61 }
  0x9a   :  { %1521 = vmatpush1.bf16.msra.mxu0 %v1800_v3  ;;  %1603 = vmatpush1.bf16.msra.mxu1 %v1802_v4  ;;  %v175_v3 = vld [vmem:[%s2704_s1 + $0x4f0] sm:$0xff]  ;;  %v176_v4 = vld [vmem:[%s2704_s1 + $0x4f8] sm:$0xff] }
  0x9b   :  { %1522 = vmatprep.subr.bf16.mxu0 %v1809_v5  ;;  %1604 = vmatprep.subr.bf16.mxu1 %v1811_v57  ;;  %v1864_v5 = vcombine.low %v163_v58, %v167_v59  ;;  %v1866_v57 = vcombine.low %v164_v60, %v168_v61  ;;  %v1873_v6 = vcombine.high %v171_v2, %v175_v3  ;;  %v227_v59 = vld [vmem:[%s2704_s1 + $0x690] sm:$0xff]  ;;  %v228_v61 = vld [vmem:[%s2704_s1 + $0x698] sm:$0xff] }
  0x9c   :  { %v231_v60 = vld [vmem:[%s2704_s1 + $0x6b0] sm:$0xff] }
  0x9e   :  { %1523 = vmatpush1.bf16.msra.mxu0 %v1808_v10  ;;  %1605 = vmatpush1.bf16.msra.mxu1 %v1810_v11  ;;  %v184_v10 = vld [vmem:[%s2704_s1 + $0x538] sm:$0xff]  ;;  %v1872_v11 = vcombine.low %v171_v2, %v175_v3  ;;  %v1928_v3 = vcombine.low %v227_v59, %v231_v60 }
  0x9f   :  { %1524 = vmatprep.subr.bf16.mxu0 %v1817_v13  ;;  %1606 = vmatprep.subr.bf16.mxu1 %v1819_v14  ;;  %v1881_v14 = vcombine.high %v179_v8, %v183_v9 }
  0xa2   :  { %1525 = vmatpush1.bf16.msra.mxu0 %v1816_v19  ;;  %1607 = vmatpush1.bf16.msra.mxu1 %v1818_v20  ;;  %v192_v19 = vld [vmem:[%s2704_s1 + $0x578] sm:$0xff]  ;;  %v1880_v20 = vcombine.low %v179_v8, %v183_v9 }
  0xa3   :  { %1526 = vmatprep.subr.bf16.mxu0 %v1825_v22  ;;  %1608 = vmatprep.subr.bf16.mxu1 %v1827_v23  ;;  %v1889_v23 = vcombine.high %v187_v17, %v191_v53  ;;  %v1891_v24 = vcombine.high %v188_v18, %v192_v19 }
  0xa6   :  { %1527 = vmatpush1.bf16.msra.mxu0 %v1824_v28  ;;  %1609 = vmatpush1.bf16.msra.mxu1 %v1826_v29  ;;  %v200_v28 = vld [vmem:[%s2704_s1 + $0x5b8] sm:$0xff]  ;;  %v1888_v29 = vcombine.low %v187_v17, %v191_v53 }
  0xa7   :  { %1528 = vmatprep.subr.bf16.mxu0 %v1833_v30  ;;  %1610 = vmatprep.subr.bf16.mxu1 %v1835_v31  ;;  %v1890_v30 = vcombine.low %v188_v18, %v192_v19  ;;  %v1897_v31 = vcombine.high %v195_v25, %v199_v26  ;;  %v1899_v32 = vcombine.high %v196_v27, %v200_v28 }
  0xaa   :  { %1529 = vmatpush1.bf16.msra.mxu0 %v1832_v36  ;;  %1611 = vmatpush1.bf16.msra.mxu1 %v1834_v37  ;;  %v208_v36 = vld [vmem:[%s2704_s1 + $0x5f8] sm:$0xff]  ;;  %v1896_v37 = vcombine.low %v195_v25, %v199_v26 }
  0xab   :  { %1530 = vmatprep.subr.bf16.mxu0 %v1841_v38  ;;  %1612 = vmatprep.subr.bf16.mxu1 %v1843_v39  ;;  %v1898_v38 = vcombine.low %v196_v27, %v200_v28  ;;  %v1905_v39 = vcombine.high %v203_v33, %v207_v34  ;;  %v1907_v40 = vcombine.high %v204_v35, %v208_v36 }
  0xae   :  { %1531 = vmatpush1.bf16.msra.mxu0 %v1840_v45  ;;  %1613 = vmatpush1.bf16.msra.mxu1 %v1842_v46  ;;  %v216_v45 = vld [vmem:[%s2704_s1 + $0x638] sm:$0xff]  ;;  %v1904_v46 = vcombine.low %v203_v33, %v207_v34 }
  0xaf   :  { %1541 = vmatprep.subr.bf16.mxu0 %v1849_v47  ;;  %1623 = vmatprep.subr.bf16.mxu1 %v1851_v48  ;;  %v1906_v47 = vcombine.low %v204_v35, %v208_v36  ;;  %v1913_v48 = vcombine.high %v211_v41, %v215_v42  ;;  %v1915_v49 = vcombine.high %v212_v43, %v216_v45 }
  0xb1   :  { %1533 = vmatmul.mubr.bf16.vlgmr.msra.gmra.mrb[4].mxu0 %v2218_v12  ;;  %1615 = vmatmul.mubr.bf16.vlgmr.msra.gmra.mrb[4].mxu1 %v2218_v12  ;;  %v172_v12 = vld [vmem:[%s2704_s1 + $0x4d8] sm:$0xff] }
  0xb2   :  { %1542 = vmatpush1.bf16.msra.mxu0 %v1848_v52  ;;  %1624 = vmatpush1.bf16.msra.mxu1 %v1850_v54  ;;  %v1875_v7 = vcombine.high %v172_v12, %v176_v4  ;;  %v1874_v13 = vcombine.low %v172_v12, %v176_v4  ;;  %v224_v52 = vld [vmem:[%s2704_s1 + $0x678] sm:$0xff]  ;;  %v1912_v54 = vcombine.low %v211_v41, %v215_v42  ;;  %v237_v4 = vpop.permute.xlu0 %236 }
  0xb3   :  { %1543 = vmatprep.subr.bf16.mxu0 %v1857_v55  ;;  %1625 = vmatprep.subr.bf16.mxu1 %v1859_v56  ;;  %v1914_v55 = vcombine.low %v212_v43, %v216_v45  ;;  %v1921_v56 = vcombine.high %v219_v50, %v223_v15  ;;  %v1923_v58 = vcombine.high %v220_v51, %v224_v52 }
  0xb4   :  { %1934 = vmatprep.mubr.msk.bf16.mxu0 %vm1332_vm0, %v2239_v21  ;;  %1935 = vmatprep.mubr.msk.bf16.mxu1 %vm1332_vm0, %v2239_v21  ;;  %v180_v21 = vld [vmem:[%s2704_s1 + $0x518] sm:$0xff] }
  0xb5   :  { %v1883_v16 = vcombine.high %v180_v21, %v184_v10  ;;  %v1882_v22 = vcombine.low %v180_v21, %v184_v10 }
  0xb6   :  { %1544 = vmatpush1.bf16.msra.mxu0 %v1856_v62  ;;  %1626 = vmatpush1.bf16.msra.mxu1 %v1858_v63  ;;  %v232_v62 = vld [vmem:[%s2704_s1 + $0x6b8] sm:$0xff]  ;;  %v1920_v63 = vcombine.low %v219_v50, %v223_v15 }
  0xb7   :  { %1545 = vmatprep.subr.bf16.mxu0 %v1865_v0  ;;  %1627 = vmatprep.subr.bf16.mxu1 %v1867_v1  ;;  %v1922_v0 = vcombine.low %v220_v51, %v224_v52  ;;  %v1929_v1 = vcombine.high %v227_v59, %v231_v60  ;;  %v1931_v2 = vcombine.high %v228_v61, %v232_v62 }
  0xb8   :  { %v1930_v12 = vcombine.low %v228_v61, %v232_v62 }
  0xba   :  { %1546 = vmatpush1.bf16.msra.mxu0 %v1864_v5  ;;  %1628 = vmatpush1.bf16.msra.mxu1 %v1866_v57 }
  0xbb   :  { %1547 = vmatprep.subr.bf16.mxu0 %v1873_v6  ;;  %1629 = vmatprep.subr.bf16.mxu1 %v1875_v7 }
  0xbe   :  { %1548 = vmatpush1.bf16.msra.mxu0 %v1872_v11  ;;  %1630 = vmatpush1.bf16.msra.mxu1 %v1874_v13 }
  0xbf   :  { %1549 = vmatprep.subr.bf16.mxu0 %v1881_v14  ;;  %1631 = vmatprep.subr.bf16.mxu1 %v1883_v16 }
  0xc2   :  { %1550 = vmatpush1.bf16.msra.mxu0 %v1880_v20  ;;  %1632 = vmatpush1.bf16.msra.mxu1 %v1882_v22 }
  0xc3   :  { %1551 = vmatprep.subr.bf16.mxu0 %v1889_v23  ;;  %1633 = vmatprep.subr.bf16.mxu1 %v1891_v24 }
  0xc6   :  { %1552 = vmatpush1.bf16.msra.mxu0 %v1888_v29  ;;  %1634 = vmatpush1.bf16.msra.mxu1 %v1890_v30 }
  0xc7   :  { %1553 = vmatprep.subr.bf16.mxu0 %v1897_v31  ;;  %1635 = vmatprep.subr.bf16.mxu1 %v1899_v32 }
  0xca   :  { %1554 = vmatpush1.bf16.msra.mxu0 %v1896_v37  ;;  %1636 = vmatpush1.bf16.msra.mxu1 %v1898_v38 }
  0xcb   :  { %1555 = vmatprep.subr.bf16.mxu0 %v1905_v39  ;;  %1637 = vmatprep.subr.bf16.mxu1 %v1907_v40 }
  0xce   :  { %1556 = vmatpush1.bf16.msra.mxu0 %v1904_v46  ;;  %1638 = vmatpush1.bf16.msra.mxu1 %v1906_v47 }
  0xcf   :  { %1557 = vmatprep.subr.bf16.mxu0 %v1913_v48  ;;  %1639 = vmatprep.subr.bf16.mxu1 %v1915_v49 }
  0xd2   :  { %1558 = vmatpush1.bf16.msra.mxu0 %v1912_v54  ;;  %1640 = vmatpush1.bf16.msra.mxu1 %v1914_v55 }
  0xd3   :  { %1559 = vmatprep.subr.bf16.mxu0 %v1921_v56  ;;  %1641 = vmatprep.subr.bf16.mxu1 %v1923_v58 }
  0xd6   :  { %1560 = vmatpush1.bf16.msra.mxu0 %v1920_v63  ;;  %1642 = vmatpush1.bf16.msra.mxu1 %v1922_v0 }
  0xd7   :  { %1561 = vmatprep.subr.bf16.mxu0 %v1929_v1  ;;  %1643 = vmatprep.subr.bf16.mxu1 %v1931_v2 }
  0xda   :  { %1562 = vmatpush1.bf16.msra.mxu0 %v1928_v3  ;;  %1644 = vmatpush1.bf16.msra.mxu1 %v1930_v12 }
  0xdd   :  { %1574 = vmatmul.mubr.bf16.vlgmr.msra.gmra.mrb[4].mxu0 %v2372_v44  ;;  %1656 = vmatmul.mubr.bf16.vlgmr.msra.gmra.mrb[4].mxu1 %v2372_v44 }
 0x144   :  { %v1411_v5 = vpop.f32.mrb[0].mxu0  ;;  %v1493_v6 = vpop.f32.mrb[0].mxu1 }
 0x145   :  { %v1944_v57 = vadd.f32 %v1411_v5, %v237_v4  ;;  %v1413_v7 = vpop.f32.mrb[1].mxu0  ;;  %v1946_v8 = vadd.f32 %v1493_v6, %v237_v4  ;;  %v1495_v21 = vpop.f32.mrb[1].mxu1 }
 0x146   :  { %v1945_v9 = vadd.f32 %v1413_v7, %v237_v4  ;;  %v1415_v10 = vpop.f32.mrb[2].mxu0  ;;  %v1947_v13 = vadd.f32 %v1495_v21, %v237_v4  ;;  %v1497_v14 = vpop.f32.mrb[2].mxu1 }
 0x147   :  { %v1664_v11 = vmax.f32 %v1944_v57, 0.0  ;;  %v1416_v16 = vpop.f32.mrb[3].mxu0  ;;  %v1666_v17 = vmax.f32 %v1946_v8, 0.0  ;;  %v1498_v18 = vpop.f32.mrb[3].mxu1 }
 0x148   :  { %v1665_v53 = vmax.f32 %v1945_v9, 0.0  ;;  %v1667_v19 = vmax.f32 %v1947_v13, 0.0 }
 0x14a   :  { %v1940_v20 = vpack.c.bf16 %v1665_v53, %v1664_v11  ;;  %v1941_v22 = vpack.c.bf16 %v1667_v19, %v1666_v17 }
 0x14c   :  { %1704 = vst [vmem:[%s2707_s3] sm:$0xff] %v1940_v20  ;;  %1705 = vst [vmem:[%s2707_s3 + $0x8] sm:$0xff] %v1941_v22 }
 0x1b0   :  { %v1575_v44 = vpop.f32.mrb[4].mxu0  ;;  %v1657_v24 = vpop.f32.mrb[4].mxu1 }
 0x1b1   :  { %v1948_v23 = vadd.f32 %v1575_v44, %v237_v4  ;;  %v1577_v25 = vpop.f32.mrb[5].mxu0  ;;  %v1950_v26 = vadd.f32 %v1657_v24, %v237_v4  ;;  %v1659_v28 = vpop.f32.mrb[5].mxu1 }
 0x1b2   :  { %v1949_v27 = vadd.f32 %v1577_v25, %v237_v4  ;;  %v1579_v29 = vpop.f32.mrb[6].mxu0  ;;  %v1951_v31 = vadd.f32 %v1659_v28, %v237_v4  ;;  %v1661_v32 = vpop.f32.mrb[6].mxu1 }
 0x1b3   :  { %v1668_v30 = vmax.f32 %v1948_v23, 0.0  ;;  %v1580_v33 = vpop.f32.mrb[7].mxu0  ;;  %v1670_v34 = vmax.f32 %v1950_v26, 0.0  ;;  %v1662_v36 = vpop.f32.mrb[7].mxu1 }
 0x1b4   :  { %v1669_v35 = vmax.f32 %v1949_v27, 0.0  ;;  %v1671_v37 = vmax.f32 %v1951_v31, 0.0 }
 0x1b6   :  { %v1942_v38 = vpack.c.bf16 %v1669_v35, %v1668_v30  ;;  %v1943_v39 = vpack.c.bf16 %v1671_v37, %v1670_v34 }
 0x1b8   :  { %1706 = vst [vmem:[%s2707_s3 + $0x10] sm:$0xff] %v1942_v38  ;;  %1707 = vst [vmem:[%s2707_s3 + $0x18] sm:$0xff] %v1943_v39 }

// kernel: unet_confidnet_forward.21
= control target key start
LH: loop header
LB: loop body
LE: loop exit
PB: predicated region body
PF: predicated region fallthrough
CT: control target
= control target key end

     0   :  { %s883_s12 = smov 0   ;;  %s987_s0 = inlined_call_operand.vmem [shape: bf16[4,8], index: 0, kind: input, shape index: {}]   ;;  %s988_s1 = inlined_call_operand.vmem [shape: bf16[8,8192], index: 1, kind: input, shape index: {}]   ;;  %s989_s2 = inlined_call_operand.vmem [shape: f32[4,1], index: 2, kind: input, shape index: {}]   ;;  %s990_s3 = inlined_call_operand.vmem [shape: bf16[4,8192], index: 3, kind: output, shape index: {}]  }
   0x1 LB: > { %s775_s13 = sadd.s32 4294967295, %s859_s12   ;;  %p779_p0 = scmp.ge.s32.totalorder %s859_s12, 1  ;;  %s859_s12 = sphi %s883_s12, %s13_s12  }
   0x2   : > { %p138_p1 = scmp.lt.s32.totalorder %s859_s12, 5 }
   0x4   : > { %p139_p2 = pnand %p779_p0, %p138_p1 }
   0x5   : > { %s780_s14 = sshll.u32 (!%p139_p2), %s775_s13, 4  ;;  %v861_v0 = vmov (!%p139_p2), 0   ;;  %v184_v1 = vld [vmem:[%s989_s2] sm:$0xf] (!%p139_p2)  ;;  %vm234_vm0 = vcmask (!%p139_p2), 1043456   ;;  %vm230_vm1 = vcmask (!%p139_p2), 64512   ;;  %v648_v37 = vlaneseq (!%p139_p2) }
   0x6   : > { %142 = sbr.rel (%p139_p2) target bundleno = 269 (0x10d), region = 32  ;;  %p163_p3 = scmp.lt.s32.totalorder (!%p139_p2), %s780_s14, 63  ;;  %315 = vmatprep.mubr.bf16.mxu0 (!%p139_p2), %v861_v0  ;;  %356 = vmatprep.mubr.bf16.mxu1 (!%p139_p2), %v861_v0  ;;  %v175_v18 = vld [vmem:[%s987_s0] sm:$0x3] (!%p139_p2)  ;;  %v862_v35 = vmov (!%p139_p2), 1983009808  }
   0x7   : > { %836 = vset.pattern.permute.xlu0 (!%p139_p2), %v861_v0  ;;  %v646_v36 = vunpack.c.l.s4 (!%p139_p2), %v862_v35  ;;  %v649_v40 = vshrl.u32 (!%p139_p2), %v648_v37, 7 }
   0x8   : > { %187 = vperm.xlu0 (!%p139_p2), %836, %v184_v1  }
   0x9   : > { %v647_v39 = vunpack.c.0.s8 (!%p139_p2), %v646_v36 }
   0xb   : > { %v951_v48 = vsub.s32 (!%p139_p2), %v647_v39, %v649_v40 }
   0xd   : > { %s992_s14 = smov (!%p163_p3, %s780_s14), 63 }
   0xe   : > { %s781_s17 = sshll.u32 %s992_s14, 2  ;;  %s783_s23 = sshll.u32 %s992_s14, 1 }
   0xf   : > { %s903_s20 = scalar_lea.vmem %s988_s1, %s781_s17  ;;  %s960_s26 = scalar_lea.vmem %s990_s3, %s783_s23 }
  0x10   : > { %v176_v2 = vld [vmem:[%s903_s20] sm:$0xff]  ;;  %v177_v3 = vld [vmem:[%s903_s20 + $0x8] sm:$0xff]  ;;  %v178_v4 = vld [vmem:[%s903_s20 + $0x10] sm:$0xff] }
  0x11   : > { %v785_v5 = vcombine.high %v176_v2, %v176_v2  ;;  %v787_v6 = vcombine.high %v177_v3, %v177_v3  ;;  %v784_v7 = vcombine.low %v176_v2, %v176_v2  ;;  %v786_v8 = vcombine.low %v177_v3, %v177_v3  ;;  %v179_v9 = vld [vmem:[%s903_s20 + $0x18] sm:$0xff]  ;;  %v180_v16 = vld [vmem:[%s903_s20 + $0x20] sm:$0xff]  ;;  %v181_v17 = vld [vmem:[%s903_s20 + $0x28] sm:$0xff] }
  0x12   : > { %v789_v10 = vcombine.high %v178_v4, %v178_v4  ;;  %v791_v11 = vcombine.high %v179_v9, %v179_v9  ;;  %v788_v12 = vcombine.low %v178_v4, %v178_v4  ;;  %v790_v13 = vcombine.low %v179_v9, %v179_v9  ;;  %v182_v25 = vld [vmem:[%s903_s20 + $0x30] sm:$0xff]  ;;  %v183_v26 = vld [vmem:[%s903_s20 + $0x38] sm:$0xff] }
  0x13   : > { %800 = vmatprep.subr.msk.bf16.mxu0 %vm234_vm0, %v785_v5  ;;  %802 = vmatprep.subr.msk.bf16.mxu1 %vm234_vm0, %v787_v6  ;;  %v236_v14 = vsel %vm234_vm0, %v784_v7, 0  ;;  %v242_v15 = vsel %vm234_vm0, %v786_v8, 0  ;;  %v793_v21 = vcombine.high %v180_v16, %v180_v16  ;;  %v795_v22 = vcombine.high %v181_v17, %v181_v17 }
  0x14   : > { %284 = vmatpush1.bf16.msra.mxu0 %v236_v14  ;;  %325 = vmatpush1.bf16.msra.mxu1 %v242_v15  ;;  %v248_v19 = vsel %vm234_vm0, %v788_v12, 0  ;;  %v254_v20 = vsel %vm234_vm0, %v790_v13, 0  ;;  %v792_v23 = vcombine.low %v180_v16, %v180_v16  ;;  %v794_v24 = vcombine.low %v181_v17, %v181_v17 }
  0x15   : > { %804 = vmatprep.subr.msk.bf16.mxu0 %vm234_vm0, %v789_v10  ;;  %806 = vmatprep.subr.msk.bf16.mxu1 %vm234_vm0, %v791_v11  ;;  %v797_v29 = vcombine.high %v182_v25, %v182_v25  ;;  %v799_v30 = vcombine.high %v183_v26, %v183_v26  ;;  %v796_v31 = vcombine.low %v182_v25, %v182_v25 }
  0x16   : > { %v260_v27 = vsel %vm234_vm0, %v792_v23, 0  ;;  %v266_v28 = vsel %vm234_vm0, %v794_v24, 0  ;;  %v798_v32 = vcombine.low %v183_v26, %v183_v26 }
  0x17   : > { %801 = vmatmul.mubr.msk.bf16.vlgmr.msra.gmra.mrb[0].mxu0 %vm230_vm1, %v175_v18  ;;  %803 = vmatmul.mubr.msk.bf16.vlgmr.msra.gmra.mrb[0].mxu1 %vm230_vm1, %v175_v18  ;;  %v272_v33 = vsel %vm234_vm0, %v796_v31, 0 }
  0x18   : > { %366 = vmatpush1.bf16.msra.mxu0 %v248_v19  ;;  %407 = vmatpush1.bf16.msra.mxu1 %v254_v20  ;;  %v278_v34 = vsel %vm234_vm0, %v798_v32, 0 }
  0x19   : > { %397 = vmatprep.mubr.bf16.mxu0 %v861_v0  ;;  %438 = vmatprep.mubr.bf16.mxu1 %v861_v0 }
  0x1a   : > { %808 = vmatprep.subr.msk.bf16.mxu0 %vm234_vm0, %v793_v21  ;;  %810 = vmatprep.subr.msk.bf16.mxu1 %vm234_vm0, %v795_v22 }
  0x1f   : > { %805 = vmatmul.mubr.msk.bf16.vlgmr.msra.gmra.mrb[4].mxu0 %vm230_vm1, %v175_v18  ;;  %807 = vmatmul.mubr.msk.bf16.vlgmr.msra.gmra.mrb[4].mxu1 %vm230_vm1, %v175_v18 }
  0x20   : > { %448 = vmatpush1.bf16.msra.mxu0 %v260_v27  ;;  %489 = vmatpush1.bf16.msra.mxu1 %v266_v28 }
  0x21   : > { %479 = vmatprep.mubr.bf16.mxu0 %v861_v0  ;;  %520 = vmatprep.mubr.bf16.mxu1 %v861_v0 }
  0x22   : > { %812 = vmatprep.subr.msk.bf16.mxu0 %vm234_vm0, %v797_v29  ;;  %814 = vmatprep.subr.msk.bf16.mxu1 %vm234_vm0, %v799_v30 }
  0x27   : > { %809 = vmatmul.mubr.msk.bf16.vlgmr.msra.gmra.mrb[8].mxu0 %vm230_vm1, %v175_v18  ;;  %811 = vmatmul.mubr.msk.bf16.vlgmr.msra.gmra.mrb[8].mxu1 %vm230_vm1, %v175_v18 }
  0x28   : > { %530 = vmatpush1.bf16.msra.mxu0 %v272_v33  ;;  %571 = vmatpush1.bf16.msra.mxu1 %v278_v34 }
  0x29   : > { %561 = vmatprep.mubr.bf16.mxu0 %v861_v0  ;;  %602 = vmatprep.mubr.bf16.mxu1 %v861_v0 }
  0x2f   : > { %813 = vmatmul.mubr.msk.bf16.vlgmr.msra.gmra.mrb[12].mxu0 %vm230_vm1, %v175_v18  ;;  %815 = vmatmul.mubr.msk.bf16.vlgmr.msra.gmra.mrb[12].mxu1 %vm230_vm1, %v175_v18 }
  0x87   : > { %v946_v38 = vpop.permute.xlu0 %187 }
  0xea   : > { %v317_v41 = vpop.f32.mrb[0].mxu0  ;;  %v358_v42 = vpop.f32.mrb[0].mxu1 }
  0xeb   : > { %v318_v43 = vadd.f32 %v317_v41, %v946_v38  ;;  %v319_v44 = vpop.f32.mrb[1].mxu0  ;;  %v359_v45 = vadd.f32 %v358_v42, %v946_v38  ;;  %v360_v46 = vpop.f32.mrb[1].mxu1 }
  0xec   : > { %v320_v47 = vadd.f32 %v319_v44, %v946_v38  ;;  %v361_v49 = vadd.f32 %v360_v46, %v946_v38  ;;  %v321_v50 = vpop.f32.mrb[2].mxu0  ;;  %v362_v51 = vpop.f32.mrb[2].mxu1 }
  0xed   : > { %v322_v52 = vpop.f32.mrb[3].mxu0  ;;  %v363_v53 = vpop.f32.mrb[3].mxu1 }
  0xee   : > { %v816_v54 = vpack.c.bf16 %v320_v47, %v318_v43  ;;  %v817_v55 = vpack.c.bf16 %v361_v49, %v359_v45 }
  0xf0   : > { %v651_v56 = vrot.slane %v816_v54, %v951_v48  ;;  %v658_v57 = vrot.slane %v817_v55, %v951_v48 }
  0xf2   : > { %v659_v58 = vcombine.low %v651_v56, %v658_v57  ;;  %v399_v59 = vpop.f32.mrb[4].mxu0  ;;  %v440_v60 = vpop.f32.mrb[4].mxu1 }
  0xf3   : > { %v400_v61 = vadd.f32 %v399_v59, %v946_v38  ;;  %v441_v62 = vadd.f32 %v440_v60, %v946_v38  ;;  %v401_v63 = vpop.f32.mrb[5].mxu0  ;;  %v442_v0 = vpop.f32.mrb[5].mxu1 }
  0xf4   : > { %715 = vst [vmem:[%s960_s26] sm:$0xff] %v659_v58  ;;  %v402_v1 = vadd.f32 %v401_v63, %v946_v38  ;;  %v443_v2 = vadd.f32 %v442_v0, %v946_v38  ;;  %v403_v3 = vpop.f32.mrb[6].mxu0  ;;  %v444_v4 = vpop.f32.mrb[6].mxu1 }
  0xf5   : > { %v404_v5 = vpop.f32.mrb[7].mxu0  ;;  %v445_v6 = vpop.f32.mrb[7].mxu1 }
  0xf6   : > { %v818_v7 = vpack.c.bf16 %v402_v1, %v400_v61  ;;  %v819_v8 = vpack.c.bf16 %v443_v2, %v441_v62 }
  0xf8   : > { %v668_v9 = vrot.slane %v818_v7, %v951_v48  ;;  %v675_v10 = vrot.slane %v819_v8, %v951_v48 }
  0xfa   : > { %v676_v11 = vcombine.low %v668_v9, %v675_v10  ;;  %v481_v12 = vpop.f32.mrb[8].mxu0  ;;  %v522_v13 = vpop.f32.mrb[8].mxu1 }
  0xfb   : > { %v482_v14 = vadd.f32 %v481_v12, %v946_v38  ;;  %v523_v15 = vadd.f32 %v522_v13, %v946_v38  ;;  %v483_v16 = vpop.f32.mrb[9].mxu0  ;;  %v524_v17 = vpop.f32.mrb[9].mxu1 }
  0xfc   : > { %716 = vst [vmem:[%s960_s26 + $0x8] sm:$0xff] %v676_v11  ;;  %v484_v18 = vadd.f32 %v483_v16, %v946_v38  ;;  %v525_v19 = vadd.f32 %v524_v17, %v946_v38  ;;  %v485_v20 = vpop.f32.mrb[10].mxu0  ;;  %v526_v21 = vpop.f32.mrb[10].mxu1 }
  0xfd   : > { %v486_v22 = vpop.f32.mrb[11].mxu0  ;;  %v527_v23 = vpop.f32.mrb[11].mxu1 }
  0xfe   : > { %v820_v24 = vpack.c.bf16 %v484_v18, %v482_v14  ;;  %v821_v25 = vpack.c.bf16 %v525_v19, %v523_v15 }
 0x100   : > { %v685_v26 = vrot.slane %v820_v24, %v951_v48  ;;  %v692_v27 = vrot.slane %v821_v25, %v951_v48 }
 0x102   : > { %v693_v28 = vcombine.low %v685_v26, %v692_v27  ;;  %v563_v29 = vpop.f32.mrb[12].mxu0  ;;  %v604_v30 = vpop.f32.mrb[12].mxu1 }
 0x103   : > { %v564_v31 = vadd.f32 %v563_v29, %v946_v38  ;;  %v605_v32 = vadd.f32 %v604_v30, %v946_v38  ;;  %v565_v33 = vpop.f32.mrb[13].mxu0  ;;  %v606_v34 = vpop.f32.mrb[13].mxu1 }
 0x104   : > { %717 = vst [vmem:[%s960_s26 + $0x10] sm:$0xff] %v693_v28  ;;  %v566_v35 = vadd.f32 %v565_v33, %v946_v38  ;;  %v607_v36 = vadd.f32 %v606_v34, %v946_v38  ;;  %v567_v37 = vpop.f32.mrb[14].mxu0  ;;  %v608_v39 = vpop.f32.mrb[14].mxu1 }
 0x105   : > { %v568_v40 = vpop.f32.mrb[15].mxu0  ;;  %v609_v41 = vpop.f32.mrb[15].mxu1 }
 0x106   : > { %v822_v42 = vpack.c.bf16 %v566_v35, %v564_v31  ;;  %v823_v43 = vpack.c.bf16 %v607_v36, %v605_v32 }
 0x108   : > { %v702_v44 = vrot.slane %v822_v42, %v951_v48  ;;  %v709_v45 = vrot.slane %v823_v43, %v951_v48 }
 0x10a   : > { %v710_v46 = vcombine.low %v702_v44, %v709_v45 }
 0x10c   : > { %718 = vst [vmem:[%s960_s26 + $0x18] sm:$0xff] %v710_v46 }
 0x10d PF: > { %s13_s12 = sadd.s32 1, %s859_s12  }
 0x10e   : > { %p10_p4 = scmp.ge.s32.totalorder %s13_s12, 6  }
 0x110   :  { %12 = sbr.rel (!%p10_p4) target bundleno = 1 (0x1), region = 62 }

// kernel: unet_confidnet_forward.19
= control target key start
LH: loop header
LB: loop body
LE: loop exit
PB: predicated region body
PF: predicated region fallthrough
CT: control target
= control target key end

     0   :  { %s2857_s12 = smov 0   ;;  %s2859_s13 = smov 0   ;;  %s3654_s0 = inlined_call_operand.vmem [shape: bf16[4,216], index: 0, kind: input, shape index: {}]   ;;  %s3655_s1 = inlined_call_operand.vmem [shape: bf16[216,8192], index: 1, kind: input, shape index: {}]   ;;  %s3656_s2 = inlined_call_operand.vmem [shape: f32[4,1], index: 2, kind: input, shape index: {}]   ;;  %s3657_s3 = inlined_call_operand.vmem [shape: bf16[4,8192], index: 3, kind: output, shape index: {}]  }
   0x1   :  { %s2861_s14 = smov 0  }
   0x2 LB: > { %s2504_s15 = sadd.s32 4294967295, %s2833_s14   ;;  %s2874_s16 = sadd.s32 1, %s2833_s14   ;;  %s2833_s14 = sphi %s2861_s14, %s3660_s14   ;;  %s2829_s13 = sphi %s2859_s13, %s3659_s13   ;;  %s2825_s12 = sphi %s2857_s12, %s3658_s12  }
   0x3   : > { %s38_s17 = ssub.s32 %s2833_s14, %s2874_s16  ;;  %s41_s18 = sadd.s32 1, %s2829_s13 }
   0x4   : > { %p39_p0 = scmp.eq.s32.totalorder %s38_s17, 0  ;;  %p48_p1 = scmp.ne.s32.totalorder %s2829_s13, %s2825_s12 }
   0x5   : > { %p49_p2 = scmp.eq.s32.totalorder %s2833_s14, 0  ;;  %p2507_p4 = scmp.ge.s32.totalorder %s2833_s14, 4 }
   0x6   : > { %s2883_s19 = scalar_select %p39_p0, %s2829_s13, %s41_s18  }
   0x7   : > { %p50_p3 = por %p49_p2, %p48_p1  ;;  %127 = sbr.rel (%p2507_p4) target bundleno = 127 (0x7f), region = 24 }
   0xe   : > { %130 = sbr.rel (!%p50_p3) target bundleno = 127 (0x7f), region = 28  ;;  %s132_s20 = sand.u32 (%p50_p3), 1, %s2829_s13  }
   0xf   : > { %s2764_s21 = sshll.u32 (%p50_p3), %s2833_s14, 6  ;;  %s2765_s22 = smul.u32 (%p50_p3), 1728, %s132_s20 }
  0x10   : > { %s2891_s25 = scalar_lea.vmem (%p50_p3), %s3655_s1, %s2764_s21 }
  0x11   : > { %v150_v0 = vld [vmem:[%s2891_s25] sm:$0xff] (%p50_p3)  ;;  %v152_v1 = vld [vmem:[%s2891_s25 + $0x8] sm:$0xff] (%p50_p3)  ;;  %v154_v2 = vld [vmem:[%s2891_s25 + $0x10] sm:$0xff] (%p50_p3)  ;;  %s2899_s26 = scalar_lea.vmem (%p50_p3), [#allocation2], %s2765_s22 }
  0x12   : > { %v156_v3 = vld [vmem:[%s2891_s25 + $0x18] sm:$0xff] (%p50_p3)  ;;  %v158_v4 = vld [vmem:[%s2891_s25 + $0x20] sm:$0xff] (%p50_p3)  ;;  %v160_v5 = vld [vmem:[%s2891_s25 + $0x28] sm:$0xff] (%p50_p3)  ;;  %151 = vst [vmem:[%s2899_s26] sm:$0xff] (%p50_p3), %v150_v0 }
  0x13   : > { %153 = vst [vmem:[%s2899_s26 + $0x8] sm:$0xff] (%p50_p3), %v152_v1  ;;  %155 = vst [vmem:[%s2899_s26 + $0x10] sm:$0xff] (%p50_p3), %v154_v2  ;;  %v162_v6 = vld [vmem:[%s2891_s25 + $0x30] sm:$0xff] (%p50_p3)  ;;  %v164_v7 = vld [vmem:[%s2891_s25 + $0x38] sm:$0xff] (%p50_p3) }
  0x14   : > { %157 = vst [vmem:[%s2899_s26 + $0x18] sm:$0xff] (%p50_p3), %v156_v3  ;;  %159 = vst [vmem:[%s2899_s26 + $0x20] sm:$0xff] (%p50_p3), %v158_v4  ;;  %v166_v8 = vld [vmem:[%s2891_s25 + $0x100] sm:$0xff] (%p50_p3)  ;;  %v168_v9 = vld [vmem:[%s2891_s25 + $0x108] sm:$0xff] (%p50_p3) }
  0x15   : > { %161 = vst [vmem:[%s2899_s26 + $0x28] sm:$0xff] %v160_v5  ;;  %163 = vst [vmem:[%s2899_s26 + $0x30] sm:$0xff] %v162_v6  ;;  %v170_v10 = vld [vmem:[%s2891_s25 + $0x110] sm:$0xff]  ;;  %v172_v11 = vld [vmem:[%s2891_s25 + $0x118] sm:$0xff] }
  0x16   : > { %165 = vst [vmem:[%s2899_s26 + $0x38] sm:$0xff] %v164_v7  ;;  %167 = vst [vmem:[%s2899_s26 + $0x40] sm:$0xff] %v166_v8  ;;  %v174_v12 = vld [vmem:[%s2891_s25 + $0x120] sm:$0xff]  ;;  %v176_v13 = vld [vmem:[%s2891_s25 + $0x128] sm:$0xff] }
  0x17   : > { %169 = vst [vmem:[%s2899_s26 + $0x48] sm:$0xff] %v168_v9  ;;  %171 = vst [vmem:[%s2899_s26 + $0x50] sm:$0xff] %v170_v10  ;;  %v178_v14 = vld [vmem:[%s2891_s25 + $0x130] sm:$0xff]  ;;  %v180_v15 = vld [vmem:[%s2891_s25 + $0x138] sm:$0xff] }
  0x18   : > { %173 = vst [vmem:[%s2899_s26 + $0x58] sm:$0xff] %v172_v11  ;;  %175 = vst [vmem:[%s2899_s26 + $0x60] sm:$0xff] %v174_v12  ;;  %v182_v16 = vld [vmem:[%s2891_s25 + $0x200] sm:$0xff]  ;;  %v184_v17 = vld [vmem:[%s2891_s25 + $0x208] sm:$0xff] }
  0x19   : > { %177 = vst [vmem:[%s2899_s26 + $0x68] sm:$0xff] %v176_v13  ;;  %179 = vst [vmem:[%s2899_s26 + $0x70] sm:$0xff] %v178_v14  ;;  %v186_v18 = vld [vmem:[%s2891_s25 + $0x210] sm:$0xff]  ;;  %v188_v19 = vld [vmem:[%s2891_s25 + $0x218] sm:$0xff] }
  0x1a   : > { %181 = vst [vmem:[%s2899_s26 + $0x78] sm:$0xff] %v180_v15  ;;  %183 = vst [vmem:[%s2899_s26 + $0x80] sm:$0xff] %v182_v16  ;;  %v190_v20 = vld [vmem:[%s2891_s25 + $0x220] sm:$0xff]  ;;  %v192_v21 = vld [vmem:[%s2891_s25 + $0x228] sm:$0xff] }
  0x1b   : > { %185 = vst [vmem:[%s2899_s26 + $0x88] sm:$0xff] %v184_v17  ;;  %187 = vst [vmem:[%s2899_s26 + $0x90] sm:$0xff] %v186_v18  ;;  %v194_v22 = vld [vmem:[%s2891_s25 + $0x230] sm:$0xff]  ;;  %v196_v23 = vld [vmem:[%s2891_s25 + $0x238] sm:$0xff] }
  0x1c   : > { %189 = vst [vmem:[%s2899_s26 + $0x98] sm:$0xff] %v188_v19  ;;  %191 = vst [vmem:[%s2899_s26 + $0xa0] sm:$0xff] %v190_v20  ;;  %v198_v24 = vld [vmem:[%s2891_s25 + $0x300] sm:$0xff]  ;;  %v200_v25 = vld [vmem:[%s2891_s25 + $0x308] sm:$0xff] }
  0x1d   : > { %193 = vst [vmem:[%s2899_s26 + $0xa8] sm:$0xff] %v192_v21  ;;  %195 = vst [vmem:[%s2899_s26 + $0xb0] sm:$0xff] %v194_v22  ;;  %v202_v26 = vld [vmem:[%s2891_s25 + $0x310] sm:$0xff]  ;;  %v204_v27 = vld [vmem:[%s2891_s25 + $0x318] sm:$0xff] }
  0x1e   : > { %197 = vst [vmem:[%s2899_s26 + $0xb8] sm:$0xff] %v196_v23  ;;  %199 = vst [vmem:[%s2899_s26 + $0xc0] sm:$0xff] %v198_v24  ;;  %v206_v28 = vld [vmem:[%s2891_s25 + $0x320] sm:$0xff]  ;;  %v208_v29 = vld [vmem:[%s2891_s25 + $0x328] sm:$0xff] }
  0x1f   : > { %201 = vst [vmem:[%s2899_s26 + $0xc8] sm:$0xff] %v200_v25  ;;  %203 = vst [vmem:[%s2899_s26 + $0xd0] sm:$0xff] %v202_v26  ;;  %v210_v30 = vld [vmem:[%s2891_s25 + $0x330] sm:$0xff]  ;;  %v212_v31 = vld [vmem:[%s2891_s25 + $0x338] sm:$0xff] }
  0x20   : > { %205 = vst [vmem:[%s2899_s26 + $0xd8] sm:$0xff] %v204_v27  ;;  %207 = vst [vmem:[%s2899_s26 + $0xe0] sm:$0xff] %v206_v28  ;;  %v214_v32 = vld [vmem:[%s2891_s25 + $0x400] sm:$0xff]  ;;  %v216_v33 = vld [vmem:[%s2891_s25 + $0x408] sm:$0xff] }
  0x21   : > { %209 = vst [vmem:[%s2899_s26 + $0xe8] sm:$0xff] %v208_v29  ;;  %211 = vst [vmem:[%s2899_s26 + $0xf0] sm:$0xff] %v210_v30  ;;  %v218_v34 = vld [vmem:[%s2891_s25 + $0x410] sm:$0xff]  ;;  %v220_v35 = vld [vmem:[%s2891_s25 + $0x418] sm:$0xff] }
  0x22   : > { %213 = vst [vmem:[%s2899_s26 + $0xf8] sm:$0xff] %v212_v31  ;;  %215 = vst [vmem:[%s2899_s26 + $0x100] sm:$0xff] %v214_v32  ;;  %v222_v36 = vld [vmem:[%s2891_s25 + $0x420] sm:$0xff]  ;;  %v224_v37 = vld [vmem:[%s2891_s25 + $0x428] sm:$0xff] }
  0x23   : > { %217 = vst [vmem:[%s2899_s26 + $0x108] sm:$0xff] %v216_v33  ;;  %219 = vst [vmem:[%s2899_s26 + $0x110] sm:$0xff] %v218_v34  ;;  %v226_v38 = vld [vmem:[%s2891_s25 + $0x430] sm:$0xff]  ;;  %v228_v39 = vld [vmem:[%s2891_s25 + $0x438] sm:$0xff] }
  0x24   : > { %221 = vst [vmem:[%s2899_s26 + $0x118] sm:$0xff] %v220_v35  ;;  %223 = vst [vmem:[%s2899_s26 + $0x120] sm:$0xff] %v222_v36  ;;  %v230_v40 = vld [vmem:[%s2891_s25 + $0x500] sm:$0xff]  ;;  %v232_v41 = vld [vmem:[%s2891_s25 + $0x508] sm:$0xff] }
  0x25   : > { %225 = vst [vmem:[%s2899_s26 + $0x128] sm:$0xff] %v224_v37  ;;  %227 = vst [vmem:[%s2899_s26 + $0x130] sm:$0xff] %v226_v38  ;;  %v234_v42 = vld [vmem:[%s2891_s25 + $0x510] sm:$0xff]  ;;  %v236_v43 = vld [vmem:[%s2891_s25 + $0x518] sm:$0xff] }
  0x26   : > { %229 = vst [vmem:[%s2899_s26 + $0x138] sm:$0xff] %v228_v39  ;;  %231 = vst [vmem:[%s2899_s26 + $0x140] sm:$0xff] %v230_v40  ;;  %v238_v44 = vld [vmem:[%s2891_s25 + $0x520] sm:$0xff]  ;;  %v240_v45 = vld [vmem:[%s2891_s25 + $0x528] sm:$0xff] }
  0x27   : > { %233 = vst [vmem:[%s2899_s26 + $0x148] sm:$0xff] %v232_v41  ;;  %235 = vst [vmem:[%s2899_s26 + $0x150] sm:$0xff] %v234_v42  ;;  %v242_v46 = vld [vmem:[%s2891_s25 + $0x530] sm:$0xff]  ;;  %v244_v47 = vld [vmem:[%s2891_s25 + $0x538] sm:$0xff] }
  0x28   : > { %237 = vst [vmem:[%s2899_s26 + $0x158] sm:$0xff] %v236_v43  ;;  %239 = vst [vmem:[%s2899_s26 + $0x160] sm:$0xff] %v238_v44  ;;  %v246_v48 = vld [vmem:[%s2891_s25 + $0x600] sm:$0xff]  ;;  %v248_v49 = vld [vmem:[%s2891_s25 + $0x608] sm:$0xff] }
  0x29   : > { %241 = vst [vmem:[%s2899_s26 + $0x168] sm:$0xff] %v240_v45  ;;  %243 = vst [vmem:[%s2899_s26 + $0x170] sm:$0xff] %v242_v46  ;;  %v250_v50 = vld [vmem:[%s2891_s25 + $0x610] sm:$0xff]  ;;  %v252_v51 = vld [vmem:[%s2891_s25 + $0x618] sm:$0xff] }
  0x2a   : > { %245 = vst [vmem:[%s2899_s26 + $0x178] sm:$0xff] %v244_v47  ;;  %247 = vst [vmem:[%s2899_s26 + $0x180] sm:$0xff] %v246_v48  ;;  %v254_v52 = vld [vmem:[%s2891_s25 + $0x620] sm:$0xff]  ;;  %v256_v53 = vld [vmem:[%s2891_s25 + $0x628] sm:$0xff] }
  0x2b   : > { %249 = vst [vmem:[%s2899_s26 + $0x188] sm:$0xff] %v248_v49  ;;  %251 = vst [vmem:[%s2899_s26 + $0x190] sm:$0xff] %v250_v50  ;;  %v258_v54 = vld [vmem:[%s2891_s25 + $0x630] sm:$0xff]  ;;  %v260_v55 = vld [vmem:[%s2891_s25 + $0x638] sm:$0xff] }
  0x2c   : > { %253 = vst [vmem:[%s2899_s26 + $0x198] sm:$0xff] %v252_v51  ;;  %255 = vst [vmem:[%s2899_s26 + $0x1a0] sm:$0xff] %v254_v52  ;;  %v262_v56 = vld [vmem:[%s2891_s25 + $0x700] sm:$0xff]  ;;  %v264_v57 = vld [vmem:[%s2891_s25 + $0x708] sm:$0xff] }
  0x2d   : > { %257 = vst [vmem:[%s2899_s26 + $0x1a8] sm:$0xff] %v256_v53  ;;  %259 = vst [vmem:[%s2899_s26 + $0x1b0] sm:$0xff] %v258_v54  ;;  %v266_v58 = vld [vmem:[%s2891_s25 + $0x710] sm:$0xff]  ;;  %v268_v59 = vld [vmem:[%s2891_s25 + $0x718] sm:$0xff] }
  0x2e   : > { %261 = vst [vmem:[%s2899_s26 + $0x1b8] sm:$0xff] %v260_v55  ;;  %263 = vst [vmem:[%s2899_s26 + $0x1c0] sm:$0xff] %v262_v56  ;;  %v270_v60 = vld [vmem:[%s2891_s25 + $0x720] sm:$0xff]  ;;  %v272_v61 = vld [vmem:[%s2891_s25 + $0x728] sm:$0xff] }
  0x2f   : > { %265 = vst [vmem:[%s2899_s26 + $0x1c8] sm:$0xff] %v264_v57  ;;  %267 = vst [vmem:[%s2899_s26 + $0x1d0] sm:$0xff] %v266_v58  ;;  %v274_v62 = vld [vmem:[%s2891_s25 + $0x730] sm:$0xff]  ;;  %v276_v63 = vld [vmem:[%s2891_s25 + $0x738] sm:$0xff] }
  0x30   : > { %269 = vst [vmem:[%s2899_s26 + $0x1d8] sm:$0xff] %v268_v59  ;;  %271 = vst [vmem:[%s2899_s26 + $0x1e0] sm:$0xff] %v270_v60  ;;  %v278_v0 = vld [vmem:[%s2891_s25 + $0x800] sm:$0xff]  ;;  %v280_v1 = vld [vmem:[%s2891_s25 + $0x808] sm:$0xff] }
  0x31   : > { %273 = vst [vmem:[%s2899_s26 + $0x1e8] sm:$0xff] %v272_v61  ;;  %275 = vst [vmem:[%s2899_s26 + $0x1f0] sm:$0xff] %v274_v62  ;;  %v282_v2 = vld [vmem:[%s2891_s25 + $0x810] sm:$0xff]  ;;  %v284_v3 = vld [vmem:[%s2891_s25 + $0x818] sm:$0xff] }
  0x32   : > { %277 = vst [vmem:[%s2899_s26 + $0x1f8] sm:$0xff] %v276_v63  ;;  %279 = vst [vmem:[%s2899_s26 + $0x200] sm:$0xff] %v278_v0  ;;  %v286_v4 = vld [vmem:[%s2891_s25 + $0x820] sm:$0xff]  ;;  %v288_v5 = vld [vmem:[%s2891_s25 + $0x828] sm:$0xff] }
  0x33   : > { %281 = vst [vmem:[%s2899_s26 + $0x208] sm:$0xff] %v280_v1  ;;  %283 = vst [vmem:[%s2899_s26 + $0x210] sm:$0xff] %v282_v2  ;;  %v290_v6 = vld [vmem:[%s2891_s25 + $0x830] sm:$0xff]  ;;  %v292_v7 = vld [vmem:[%s2891_s25 + $0x838] sm:$0xff] }
  0x34   : > { %285 = vst [vmem:[%s2899_s26 + $0x218] sm:$0xff] %v284_v3  ;;  %287 = vst [vmem:[%s2899_s26 + $0x220] sm:$0xff] %v286_v4  ;;  %v294_v8 = vld [vmem:[%s2891_s25 + $0x900] sm:$0xff]  ;;  %v296_v9 = vld [vmem:[%s2891_s25 + $0x908] sm:$0xff] }
  0x35   : > { %289 = vst [vmem:[%s2899_s26 + $0x228] sm:$0xff] %v288_v5  ;;  %291 = vst [vmem:[%s2899_s26 + $0x230] sm:$0xff] %v290_v6  ;;  %v298_v10 = vld [vmem:[%s2891_s25 + $0x910] sm:$0xff]  ;;  %v300_v11 = vld [vmem:[%s2891_s25 + $0x918] sm:$0xff] }
  0x36   : > { %293 = vst [vmem:[%s2899_s26 + $0x238] sm:$0xff] %v292_v7  ;;  %295 = vst [vmem:[%s2899_s26 + $0x240] sm:$0xff] %v294_v8  ;;  %v302_v12 = vld [vmem:[%s2891_s25 + $0x920] sm:$0xff]  ;;  %v304_v13 = vld [vmem:[%s2891_s25 + $0x928] sm:$0xff] }
  0x37   : > { %297 = vst [vmem:[%s2899_s26 + $0x248] sm:$0xff] %v296_v9  ;;  %299 = vst [vmem:[%s2899_s26 + $0x250] sm:$0xff] %v298_v10  ;;  %v306_v14 = vld [vmem:[%s2891_s25 + $0x930] sm:$0xff]  ;;  %v308_v15 = vld [vmem:[%s2891_s25 + $0x938] sm:$0xff] }
  0x38   : > { %301 = vst [vmem:[%s2899_s26 + $0x258] sm:$0xff] %v300_v11  ;;  %303 = vst [vmem:[%s2899_s26 + $0x260] sm:$0xff] %v302_v12  ;;  %v310_v16 = vld [vmem:[%s2891_s25 + $0xa00] sm:$0xff]  ;;  %v312_v17 = vld [vmem:[%s2891_s25 + $0xa08] sm:$0xff] }
  0x39   : > { %305 = vst [vmem:[%s2899_s26 + $0x268] sm:$0xff] %v304_v13  ;;  %307 = vst [vmem:[%s2899_s26 + $0x270] sm:$0xff] %v306_v14  ;;  %v314_v18 = vld [vmem:[%s2891_s25 + $0xa10] sm:$0xff]  ;;  %v316_v19 = vld [vmem:[%s2891_s25 + $0xa18] sm:$0xff] }
  0x3a   : > { %309 = vst [vmem:[%s2899_s26 + $0x278] sm:$0xff] %v308_v15  ;;  %311 = vst [vmem:[%s2899_s26 + $0x280] sm:$0xff] %v310_v16  ;;  %v318_v20 = vld [vmem:[%s2891_s25 + $0xa20] sm:$0xff]  ;;  %v320_v21 = vld [vmem:[%s2891_s25 + $0xa28] sm:$0xff] }
  0x3b   : > { %313 = vst [vmem:[%s2899_s26 + $0x288] sm:$0xff] %v312_v17  ;;  %315 = vst [vmem:[%s2899_s26 + $0x290] sm:$0xff] %v314_v18  ;;  %v322_v22 = vld [vmem:[%s2891_s25 + $0xa30] sm:$0xff]  ;;  %v324_v23 = vld [vmem:[%s2891_s25 + $0xa38] sm:$0xff] }
  0x3c   : > { %317 = vst [vmem:[%s2899_s26 + $0x298] sm:$0xff] %v316_v19  ;;  %319 = vst [vmem:[%s2899_s26 + $0x2a0] sm:$0xff] %v318_v20  ;;  %v326_v24 = vld [vmem:[%s2891_s25 + $0xb00] sm:$0xff]  ;;  %v328_v25 = vld [vmem:[%s2891_s25 + $0xb08] sm:$0xff] }
  0x3d   : > { %321 = vst [vmem:[%s2899_s26 + $0x2a8] sm:$0xff] %v320_v21  ;;  %323 = vst [vmem:[%s2899_s26 + $0x2b0] sm:$0xff] %v322_v22  ;;  %v330_v26 = vld [vmem:[%s2891_s25 + $0xb10] sm:$0xff]  ;;  %v332_v27 = vld [vmem:[%s2891_s25 + $0xb18] sm:$0xff] }
  0x3e   : > { %325 = vst [vmem:[%s2899_s26 + $0x2b8] sm:$0xff] %v324_v23  ;;  %327 = vst [vmem:[%s2899_s26 + $0x2c0] sm:$0xff] %v326_v24  ;;  %v334_v28 = vld [vmem:[%s2891_s25 + $0xb20] sm:$0xff]  ;;  %v336_v29 = vld [vmem:[%s2891_s25 + $0xb28] sm:$0xff] }
  0x3f   : > { %329 = vst [vmem:[%s2899_s26 + $0x2c8] sm:$0xff] %v328_v25  ;;  %331 = vst [vmem:[%s2899_s26 + $0x2d0] sm:$0xff] %v330_v26  ;;  %v338_v30 = vld [vmem:[%s2891_s25 + $0xb30] sm:$0xff]  ;;  %v340_v31 = vld [vmem:[%s2891_s25 + $0xb38] sm:$0xff] }
  0x40   : > { %333 = vst [vmem:[%s2899_s26 + $0x2d8] sm:$0xff] %v332_v27  ;;  %335 = vst [vmem:[%s2899_s26 + $0x2e0] sm:$0xff] %v334_v28  ;;  %v342_v32 = vld [vmem:[%s2891_s25 + $0xc00] sm:$0xff]  ;;  %v344_v33 = vld [vmem:[%s2891_s25 + $0xc08] sm:$0xff] }
  0x41   : > { %337 = vst [vmem:[%s2899_s26 + $0x2e8] sm:$0xff] %v336_v29  ;;  %339 = vst [vmem:[%s2899_s26 + $0x2f0] sm:$0xff] %v338_v30  ;;  %v346_v34 = vld [vmem:[%s2891_s25 + $0xc10] sm:$0xff]  ;;  %v348_v35 = vld [vmem:[%s2891_s25 + $0xc18] sm:$0xff] }
  0x42   : > { %341 = vst [vmem:[%s2899_s26 + $0x2f8] sm:$0xff] %v340_v31  ;;  %343 = vst [vmem:[%s2899_s26 + $0x300] sm:$0xff] %v342_v32  ;;  %v350_v36 = vld [vmem:[%s2891_s25 + $0xc20] sm:$0xff]  ;;  %v352_v37 = vld [vmem:[%s2891_s25 + $0xc28] sm:$0xff] }
  0x43   : > { %345 = vst [vmem:[%s2899_s26 + $0x308] sm:$0xff] %v344_v33  ;;  %347 = vst [vmem:[%s2899_s26 + $0x310] sm:$0xff] %v346_v34  ;;  %v354_v38 = vld [vmem:[%s2891_s25 + $0xc30] sm:$0xff]  ;;  %v356_v39 = vld [vmem:[%s2891_s25 + $0xc38] sm:$0xff] }
  0x44   : > { %349 = vst [vmem:[%s2899_s26 + $0x318] sm:$0xff] %v348_v35  ;;  %351 = vst [vmem:[%s2899_s26 + $0x320] sm:$0xff] %v350_v36  ;;  %v358_v40 = vld [vmem:[%s2891_s25 + $0xd00] sm:$0xff]  ;;  %v360_v41 = vld [vmem:[%s2891_s25 + $0xd08] sm:$0xff] }
  0x45   : > { %353 = vst [vmem:[%s2899_s26 + $0x328] sm:$0xff] %v352_v37  ;;  %355 = vst [vmem:[%s2899_s26 + $0x330] sm:$0xff] %v354_v38  ;;  %v362_v42 = vld [vmem:[%s2891_s25 + $0xd10] sm:$0xff]  ;;  %v364_v43 = vld [vmem:[%s2891_s25 + $0xd18] sm:$0xff] }
  0x46   : > { %357 = vst [vmem:[%s2899_s26 + $0x338] sm:$0xff] %v356_v39  ;;  %359 = vst [vmem:[%s2899_s26 + $0x340] sm:$0xff] %v358_v40  ;;  %v366_v44 = vld [vmem:[%s2891_s25 + $0xd20] sm:$0xff]  ;;  %v368_v45 = vld [vmem:[%s2891_s25 + $0xd28] sm:$0xff] }
  0x47   : > { %361 = vst [vmem:[%s2899_s26 + $0x348] sm:$0xff] %v360_v41  ;;  %363 = vst [vmem:[%s2899_s26 + $0x350] sm:$0xff] %v362_v42  ;;  %v370_v46 = vld [vmem:[%s2891_s25 + $0xd30] sm:$0xff]  ;;  %v372_v47 = vld [vmem:[%s2891_s25 + $0xd38] sm:$0xff] }
  0x48   : > { %365 = vst [vmem:[%s2899_s26 + $0x358] sm:$0xff] %v364_v43  ;;  %367 = vst [vmem:[%s2899_s26 + $0x360] sm:$0xff] %v366_v44  ;;  %v374_v48 = vld [vmem:[%s2891_s25 + $0xe00] sm:$0xff]  ;;  %v376_v49 = vld [vmem:[%s2891_s25 + $0xe08] sm:$0xff] }
  0x49   : > { %369 = vst [vmem:[%s2899_s26 + $0x368] sm:$0xff] %v368_v45  ;;  %371 = vst [vmem:[%s2899_s26 + $0x370] sm:$0xff] %v370_v46  ;;  %v378_v50 = vld [vmem:[%s2891_s25 + $0xe10] sm:$0xff]  ;;  %v380_v51 = vld [vmem:[%s2891_s25 + $0xe18] sm:$0xff] }
  0x4a   : > { %373 = vst [vmem:[%s2899_s26 + $0x378] sm:$0xff] %v372_v47  ;;  %375 = vst [vmem:[%s2899_s26 + $0x380] sm:$0xff] %v374_v48  ;;  %v382_v52 = vld [vmem:[%s2891_s25 + $0xe20] sm:$0xff]  ;;  %v384_v53 = vld [vmem:[%s2891_s25 + $0xe28] sm:$0xff] }
  0x4b   : > { %377 = vst [vmem:[%s2899_s26 + $0x388] sm:$0xff] %v376_v49  ;;  %379 = vst [vmem:[%s2899_s26 + $0x390] sm:$0xff] %v378_v50  ;;  %v386_v54 = vld [vmem:[%s2891_s25 + $0xe30] sm:$0xff]  ;;  %v388_v55 = vld [vmem:[%s2891_s25 + $0xe38] sm:$0xff] }
  0x4c   : > { %381 = vst [vmem:[%s2899_s26 + $0x398] sm:$0xff] %v380_v51  ;;  %383 = vst [vmem:[%s2899_s26 + $0x3a0] sm:$0xff] %v382_v52  ;;  %v390_v56 = vld [vmem:[%s2891_s25 + $0xf00] sm:$0xff]  ;;  %v392_v57 = vld [vmem:[%s2891_s25 + $0xf08] sm:$0xff] }
  0x4d   : > { %385 = vst [vmem:[%s2899_s26 + $0x3a8] sm:$0xff] %v384_v53  ;;  %387 = vst [vmem:[%s2899_s26 + $0x3b0] sm:$0xff] %v386_v54  ;;  %v394_v58 = vld [vmem:[%s2891_s25 + $0xf10] sm:$0xff]  ;;  %v396_v59 = vld [vmem:[%s2891_s25 + $0xf18] sm:$0xff] }
  0x4e   : > { %389 = vst [vmem:[%s2899_s26 + $0x3b8] sm:$0xff] %v388_v55  ;;  %391 = vst [vmem:[%s2899_s26 + $0x3c0] sm:$0xff] %v390_v56  ;;  %v398_v60 = vld [vmem:[%s2891_s25 + $0xf20] sm:$0xff]  ;;  %v400_v61 = vld [vmem:[%s2891_s25 + $0xf28] sm:$0xff] }
  0x4f   : > { %393 = vst [vmem:[%s2899_s26 + $0x3c8] sm:$0xff] %v392_v57  ;;  %395 = vst [vmem:[%s2899_s26 + $0x3d0] sm:$0xff] %v394_v58  ;;  %v402_v62 = vld [vmem:[%s2891_s25 + $0xf30] sm:$0xff]  ;;  %v404_v63 = vld [vmem:[%s2891_s25 + $0xf38] sm:$0xff] }
  0x50   : > { %397 = vst [vmem:[%s2899_s26 + $0x3d8] sm:$0xff] %v396_v59  ;;  %399 = vst [vmem:[%s2899_s26 + $0x3e0] sm:$0xff] %v398_v60  ;;  %v406_v0 = vld [vmem:[%s2891_s25 + $0x1000] sm:$0xff]  ;;  %v408_v1 = vld [vmem:[%s2891_s25 + $0x1008] sm:$0xff] }
  0x51   : > { %401 = vst [vmem:[%s2899_s26 + $0x3e8] sm:$0xff] %v400_v61  ;;  %403 = vst [vmem:[%s2899_s26 + $0x3f0] sm:$0xff] %v402_v62  ;;  %v410_v2 = vld [vmem:[%s2891_s25 + $0x1010] sm:$0xff]  ;;  %v412_v3 = vld [vmem:[%s2891_s25 + $0x1018] sm:$0xff] }
  0x52   : > { %405 = vst [vmem:[%s2899_s26 + $0x3f8] sm:$0xff] %v404_v63  ;;  %407 = vst [vmem:[%s2899_s26 + $0x400] sm:$0xff] %v406_v0  ;;  %v414_v4 = vld [vmem:[%s2891_s25 + $0x1020] sm:$0xff]  ;;  %v416_v5 = vld [vmem:[%s2891_s25 + $0x1028] sm:$0xff] }
  0x53   : > { %409 = vst [vmem:[%s2899_s26 + $0x408] sm:$0xff] %v408_v1  ;;  %411 = vst [vmem:[%s2899_s26 + $0x410] sm:$0xff] %v410_v2  ;;  %v418_v6 = vld [vmem:[%s2891_s25 + $0x1030] sm:$0xff]  ;;  %v420_v7 = vld [vmem:[%s2891_s25 + $0x1038] sm:$0xff] }
  0x54   : > { %413 = vst [vmem:[%s2899_s26 + $0x418] sm:$0xff] %v412_v3  ;;  %415 = vst [vmem:[%s2899_s26 + $0x420] sm:$0xff] %v414_v4  ;;  %v422_v8 = vld [vmem:[%s2891_s25 + $0x1100] sm:$0xff]  ;;  %v424_v9 = vld [vmem:[%s2891_s25 + $0x1108] sm:$0xff] }
  0x55   : > { %417 = vst [vmem:[%s2899_s26 + $0x428] sm:$0xff] %v416_v5  ;;  %419 = vst [vmem:[%s2899_s26 + $0x430] sm:$0xff] %v418_v6  ;;  %v426_v10 = vld [vmem:[%s2891_s25 + $0x1110] sm:$0xff]  ;;  %v428_v11 = vld [vmem:[%s2891_s25 + $0x1118] sm:$0xff] }
  0x56   : > { %421 = vst [vmem:[%s2899_s26 + $0x438] sm:$0xff] %v420_v7  ;;  %423 = vst [vmem:[%s2899_s26 + $0x440] sm:$0xff] %v422_v8  ;;  %v430_v12 = vld [vmem:[%s2891_s25 + $0x1120] sm:$0xff]  ;;  %v432_v13 = vld [vmem:[%s2891_s25 + $0x1128] sm:$0xff] }
  0x57   : > { %425 = vst [vmem:[%s2899_s26 + $0x448] sm:$0xff] %v424_v9  ;;  %427 = vst [vmem:[%s2899_s26 + $0x450] sm:$0xff] %v426_v10  ;;  %v434_v14 = vld [vmem:[%s2891_s25 + $0x1130] sm:$0xff]  ;;  %v436_v15 = vld [vmem:[%s2891_s25 + $0x1138] sm:$0xff] }
  0x58   : > { %429 = vst [vmem:[%s2899_s26 + $0x458] sm:$0xff] %v428_v11  ;;  %431 = vst [vmem:[%s2899_s26 + $0x460] sm:$0xff] %v430_v12  ;;  %v438_v16 = vld [vmem:[%s2891_s25 + $0x1200] sm:$0xff]  ;;  %v440_v17 = vld [vmem:[%s2891_s25 + $0x1208] sm:$0xff] }
  0x59   : > { %433 = vst [vmem:[%s2899_s26 + $0x468] sm:$0xff] %v432_v13  ;;  %435 = vst [vmem:[%s2899_s26 + $0x470] sm:$0xff] %v434_v14  ;;  %v442_v18 = vld [vmem:[%s2891_s25 + $0x1210] sm:$0xff]  ;;  %v444_v19 = vld [vmem:[%s2891_s25 + $0x1218] sm:$0xff] }
  0x5a   : > { %437 = vst [vmem:[%s2899_s26 + $0x478] sm:$0xff] %v436_v15  ;;  %439 = vst [vmem:[%s2899_s26 + $0x480] sm:$0xff] %v438_v16  ;;  %v446_v20 = vld [vmem:[%s2891_s25 + $0x1220] sm:$0xff]  ;;  %v448_v21 = vld [vmem:[%s2891_s25 + $0x1228] sm:$0xff] }
  0x5b   : > { %441 = vst [vmem:[%s2899_s26 + $0x488] sm:$0xff] %v440_v17  ;;  %443 = vst [vmem:[%s2899_s26 + $0x490] sm:$0xff] %v442_v18  ;;  %v450_v22 = vld [vmem:[%s2891_s25 + $0x1230] sm:$0xff]  ;;  %v452_v23 = vld [vmem:[%s2891_s25 + $0x1238] sm:$0xff] }
  0x5c   : > { %445 = vst [vmem:[%s2899_s26 + $0x498] sm:$0xff] %v444_v19  ;;  %447 = vst [vmem:[%s2899_s26 + $0x4a0] sm:$0xff] %v446_v20  ;;  %v454_v24 = vld [vmem:[%s2891_s25 + $0x1300] sm:$0xff]  ;;  %v456_v25 = vld [vmem:[%s2891_s25 + $0x1308] sm:$0xff] }
  0x5d   : > { %449 = vst [vmem:[%s2899_s26 + $0x4a8] sm:$0xff] %v448_v21  ;;  %451 = vst [vmem:[%s2899_s26 + $0x4b0] sm:$0xff] %v450_v22  ;;  %v458_v26 = vld [vmem:[%s2891_s25 + $0x1310] sm:$0xff]  ;;  %v460_v27 = vld [vmem:[%s2891_s25 + $0x1318] sm:$0xff] }
  0x5e   : > { %453 = vst [vmem:[%s2899_s26 + $0x4b8] sm:$0xff] %v452_v23  ;;  %455 = vst [vmem:[%s2899_s26 + $0x4c0] sm:$0xff] %v454_v24  ;;  %v462_v28 = vld [vmem:[%s2891_s25 + $0x1320] sm:$0xff]  ;;  %v464_v29 = vld [vmem:[%s2891_s25 + $0x1328] sm:$0xff] }
  0x5f   : > { %457 = vst [vmem:[%s2899_s26 + $0x4c8] sm:$0xff] %v456_v25  ;;  %459 = vst [vmem:[%s2899_s26 + $0x4d0] sm:$0xff] %v458_v26  ;;  %v466_v30 = vld [vmem:[%s2891_s25 + $0x1330] sm:$0xff]  ;;  %v468_v31 = vld [vmem:[%s2891_s25 + $0x1338] sm:$0xff] }
  0x60   : > { %461 = vst [vmem:[%s2899_s26 + $0x4d8] sm:$0xff] %v460_v27  ;;  %463 = vst [vmem:[%s2899_s26 + $0x4e0] sm:$0xff] %v462_v28  ;;  %v470_v32 = vld [vmem:[%s2891_s25 + $0x1400] sm:$0xff]  ;;  %v472_v33 = vld [vmem:[%s2891_s25 + $0x1408] sm:$0xff] }
  0x61   : > { %465 = vst [vmem:[%s2899_s26 + $0x4e8] sm:$0xff] %v464_v29  ;;  %467 = vst [vmem:[%s2899_s26 + $0x4f0] sm:$0xff] %v466_v30  ;;  %v474_v34 = vld [vmem:[%s2891_s25 + $0x1410] sm:$0xff]  ;;  %v476_v35 = vld [vmem:[%s2891_s25 + $0x1418] sm:$0xff] }
  0x62   : > { %469 = vst [vmem:[%s2899_s26 + $0x4f8] sm:$0xff] %v468_v31  ;;  %471 = vst [vmem:[%s2899_s26 + $0x500] sm:$0xff] %v470_v32  ;;  %v478_v36 = vld [vmem:[%s2891_s25 + $0x1420] sm:$0xff]  ;;  %v480_v37 = vld [vmem:[%s2891_s25 + $0x1428] sm:$0xff] }
  0x63   : > { %473 = vst [vmem:[%s2899_s26 + $0x508] sm:$0xff] %v472_v33  ;;  %475 = vst [vmem:[%s2899_s26 + $0x510] sm:$0xff] %v474_v34  ;;  %v482_v38 = vld [vmem:[%s2891_s25 + $0x1430] sm:$0xff]  ;;  %v484_v39 = vld [vmem:[%s2891_s25 + $0x1438] sm:$0xff] }
  0x64   : > { %477 = vst [vmem:[%s2899_s26 + $0x518] sm:$0xff] %v476_v35  ;;  %479 = vst [vmem:[%s2899_s26 + $0x520] sm:$0xff] %v478_v36  ;;  %v486_v40 = vld [vmem:[%s2891_s25 + $0x1500] sm:$0xff]  ;;  %v488_v41 = vld [vmem:[%s2891_s25 + $0x1508] sm:$0xff] }
  0x65   : > { %481 = vst [vmem:[%s2899_s26 + $0x528] sm:$0xff] %v480_v37  ;;  %483 = vst [vmem:[%s2899_s26 + $0x530] sm:$0xff] %v482_v38  ;;  %v490_v42 = vld [vmem:[%s2891_s25 + $0x1510] sm:$0xff]  ;;  %v492_v43 = vld [vmem:[%s2891_s25 + $0x1518] sm:$0xff] }
  0x66   : > { %485 = vst [vmem:[%s2899_s26 + $0x538] sm:$0xff] %v484_v39  ;;  %487 = vst [vmem:[%s2899_s26 + $0x540] sm:$0xff] %v486_v40  ;;  %v494_v44 = vld [vmem:[%s2891_s25 + $0x1520] sm:$0xff]  ;;  %v496_v45 = vld [vmem:[%s2891_s25 + $0x1528] sm:$0xff] }
  0x67   : > { %489 = vst [vmem:[%s2899_s26 + $0x548] sm:$0xff] %v488_v41  ;;  %491 = vst [vmem:[%s2899_s26 + $0x550] sm:$0xff] %v490_v42  ;;  %v498_v46 = vld [vmem:[%s2891_s25 + $0x1530] sm:$0xff]  ;;  %v500_v47 = vld [vmem:[%s2891_s25 + $0x1538] sm:$0xff] }
  0x68   : > { %493 = vst [vmem:[%s2899_s26 + $0x558] sm:$0xff] %v492_v43  ;;  %495 = vst [vmem:[%s2899_s26 + $0x560] sm:$0xff] %v494_v44  ;;  %v502_v48 = vld [vmem:[%s2891_s25 + $0x1600] sm:$0xff]  ;;  %v504_v49 = vld [vmem:[%s2891_s25 + $0x1608] sm:$0xff] }
  0x69   : > { %497 = vst [vmem:[%s2899_s26 + $0x568] sm:$0xff] %v496_v45  ;;  %499 = vst [vmem:[%s2899_s26 + $0x570] sm:$0xff] %v498_v46  ;;  %v506_v50 = vld [vmem:[%s2891_s25 + $0x1610] sm:$0xff]  ;;  %v508_v51 = vld [vmem:[%s2891_s25 + $0x1618] sm:$0xff] }
  0x6a   : > { %501 = vst [vmem:[%s2899_s26 + $0x578] sm:$0xff] %v500_v47  ;;  %503 = vst [vmem:[%s2899_s26 + $0x580] sm:$0xff] %v502_v48  ;;  %v510_v52 = vld [vmem:[%s2891_s25 + $0x1620] sm:$0xff]  ;;  %v512_v53 = vld [vmem:[%s2891_s25 + $0x1628] sm:$0xff] }
  0x6b   : > { %505 = vst [vmem:[%s2899_s26 + $0x588] sm:$0xff] %v504_v49  ;;  %507 = vst [vmem:[%s2899_s26 + $0x590] sm:$0xff] %v506_v50  ;;  %v514_v54 = vld [vmem:[%s2891_s25 + $0x1630] sm:$0xff]  ;;  %v516_v55 = vld [vmem:[%s2891_s25 + $0x1638] sm:$0xff] }
  0x6c   : > { %509 = vst [vmem:[%s2899_s26 + $0x598] sm:$0xff] %v508_v51  ;;  %511 = vst [vmem:[%s2899_s26 + $0x5a0] sm:$0xff] %v510_v52  ;;  %v518_v56 = vld [vmem:[%s2891_s25 + $0x1700] sm:$0xff]  ;;  %v520_v57 = vld [vmem:[%s2891_s25 + $0x1708] sm:$0xff] }
  0x6d   : > { %513 = vst [vmem:[%s2899_s26 + $0x5a8] sm:$0xff] %v512_v53  ;;  %515 = vst [vmem:[%s2899_s26 + $0x5b0] sm:$0xff] %v514_v54  ;;  %v522_v58 = vld [vmem:[%s2891_s25 + $0x1710] sm:$0xff]  ;;  %v524_v59 = vld [vmem:[%s2891_s25 + $0x1718] sm:$0xff] }
  0x6e   : > { %517 = vst [vmem:[%s2899_s26 + $0x5b8] sm:$0xff] %v516_v55  ;;  %519 = vst [vmem:[%s2899_s26 + $0x5c0] sm:$0xff] %v518_v56  ;;  %v526_v60 = vld [vmem:[%s2891_s25 + $0x1720] sm:$0xff]  ;;  %v528_v61 = vld [vmem:[%s2891_s25 + $0x1728] sm:$0xff] }
  0x6f   : > { %521 = vst [vmem:[%s2899_s26 + $0x5c8] sm:$0xff] %v520_v57  ;;  %523 = vst [vmem:[%s2899_s26 + $0x5d0] sm:$0xff] %v522_v58  ;;  %v530_v62 = vld [vmem:[%s2891_s25 + $0x1730] sm:$0xff]  ;;  %v532_v63 = vld [vmem:[%s2891_s25 + $0x1738] sm:$0xff] }
  0x70   : > { %525 = vst [vmem:[%s2899_s26 + $0x5d8] sm:$0xff] %v524_v59  ;;  %527 = vst [vmem:[%s2899_s26 + $0x5e0] sm:$0xff] %v526_v60  ;;  %v534_v0 = vld [vmem:[%s2891_s25 + $0x1800] sm:$0xff]  ;;  %v536_v1 = vld [vmem:[%s2891_s25 + $0x1808] sm:$0xff] }
  0x71   : > { %529 = vst [vmem:[%s2899_s26 + $0x5e8] sm:$0xff] %v528_v61  ;;  %531 = vst [vmem:[%s2899_s26 + $0x5f0] sm:$0xff] %v530_v62  ;;  %v538_v2 = vld [vmem:[%s2891_s25 + $0x1810] sm:$0xff]  ;;  %v540_v3 = vld [vmem:[%s2891_s25 + $0x1818] sm:$0xff] }
  0x72   : > { %533 = vst [vmem:[%s2899_s26 + $0x5f8] sm:$0xff] %v532_v63  ;;  %535 = vst [vmem:[%s2899_s26 + $0x600] sm:$0xff] %v534_v0  ;;  %v542_v4 = vld [vmem:[%s2891_s25 + $0x1820] sm:$0xff]  ;;  %v544_v5 = vld [vmem:[%s2891_s25 + $0x1828] sm:$0xff] }
  0x73   : > { %537 = vst [vmem:[%s2899_s26 + $0x608] sm:$0xff] %v536_v1  ;;  %539 = vst [vmem:[%s2899_s26 + $0x610] sm:$0xff] %v538_v2  ;;  %v546_v6 = vld [vmem:[%s2891_s25 + $0x1830] sm:$0xff]  ;;  %v548_v7 = vld [vmem:[%s2891_s25 + $0x1838] sm:$0xff] }
  0x74   : > { %541 = vst [vmem:[%s2899_s26 + $0x618] sm:$0xff] %v540_v3  ;;  %543 = vst [vmem:[%s2899_s26 + $0x620] sm:$0xff] %v542_v4  ;;  %v550_v8 = vld [vmem:[%s2891_s25 + $0x1900] sm:$0xff]  ;;  %v552_v9 = vld [vmem:[%s2891_s25 + $0x1908] sm:$0xff] }
  0x75   : > { %545 = vst [vmem:[%s2899_s26 + $0x628] sm:$0xff] %v544_v5  ;;  %547 = vst [vmem:[%s2899_s26 + $0x630] sm:$0xff] %v546_v6  ;;  %v554_v10 = vld [vmem:[%s2891_s25 + $0x1910] sm:$0xff]  ;;  %v556_v11 = vld [vmem:[%s2891_s25 + $0x1918] sm:$0xff] }
  0x76   : > { %549 = vst [vmem:[%s2899_s26 + $0x638] sm:$0xff] %v548_v7  ;;  %551 = vst [vmem:[%s2899_s26 + $0x640] sm:$0xff] %v550_v8  ;;  %v558_v12 = vld [vmem:[%s2891_s25 + $0x1920] sm:$0xff]  ;;  %v560_v13 = vld [vmem:[%s2891_s25 + $0x1928] sm:$0xff] }
  0x77   : > { %553 = vst [vmem:[%s2899_s26 + $0x648] sm:$0xff] %v552_v9  ;;  %555 = vst [vmem:[%s2899_s26 + $0x650] sm:$0xff] %v554_v10  ;;  %v562_v14 = vld [vmem:[%s2891_s25 + $0x1930] sm:$0xff]  ;;  %v564_v15 = vld [vmem:[%s2891_s25 + $0x1938] sm:$0xff] }
  0x78   : > { %557 = vst [vmem:[%s2899_s26 + $0x658] sm:$0xff] %v556_v11  ;;  %559 = vst [vmem:[%s2899_s26 + $0x660] sm:$0xff] %v558_v12  ;;  %v566_v16 = vld [vmem:[%s2891_s25 + $0x1a00] sm:$0xff]  ;;  %v568_v17 = vld [vmem:[%s2891_s25 + $0x1a08] sm:$0xff] }
  0x79   : > { %561 = vst [vmem:[%s2899_s26 + $0x668] sm:$0xff] %v560_v13  ;;  %563 = vst [vmem:[%s2899_s26 + $0x670] sm:$0xff] %v562_v14  ;;  %v570_v18 = vld [vmem:[%s2891_s25 + $0x1a10] sm:$0xff]  ;;  %v572_v19 = vld [vmem:[%s2891_s25 + $0x1a18] sm:$0xff] }
  0x7a   : > { %565 = vst [vmem:[%s2899_s26 + $0x678] sm:$0xff] %v564_v15  ;;  %567 = vst [vmem:[%s2899_s26 + $0x680] sm:$0xff] %v566_v16  ;;  %v574_v20 = vld [vmem:[%s2891_s25 + $0x1a20] sm:$0xff]  ;;  %v576_v21 = vld [vmem:[%s2891_s25 + $0x1a28] sm:$0xff] }
  0x7b   : > { %569 = vst [vmem:[%s2899_s26 + $0x688] sm:$0xff] %v568_v17  ;;  %571 = vst [vmem:[%s2899_s26 + $0x690] sm:$0xff] %v570_v18  ;;  %v578_v22 = vld [vmem:[%s2891_s25 + $0x1a30] sm:$0xff]  ;;  %v580_v23 = vld [vmem:[%s2891_s25 + $0x1a38] sm:$0xff] }
  0x7c   : > { %573 = vst [vmem:[%s2899_s26 + $0x698] sm:$0xff] %v572_v19  ;;  %575 = vst [vmem:[%s2899_s26 + $0x6a0] sm:$0xff] %v574_v20 }
  0x7d   : > { %577 = vst [vmem:[%s2899_s26 + $0x6a8] sm:$0xff] %v576_v21  ;;  %579 = vst [vmem:[%s2899_s26 + $0x6b0] sm:$0xff] %v578_v22 }
  0x7e   : > { %581 = vst [vmem:[%s2899_s26 + $0x6b8] sm:$0xff] %v580_v23 }
  0x7f PF: > { %p2510_p5 = scmp.ge.s32.totalorder %s2833_s14, 1  ;;  %p586_p6 = scmp.lt.s32.totalorder %s2833_s14, 5 }
  0x81   : > { %p587_p7 = pnand %p2510_p5, %p586_p6 }
  0x82   : > { %s593_s27 = sand.u32 (!%p587_p7), 1, %s2825_s12   ;;  %v3333_v24 = vld.sshfl [vmem:[%s3654_s0] sm:$0x33 pattern:$0x76325410] (!%p587_p7)  ;;  %vm1937_vm0 = vcmask (!%p587_p7), 719872  }
  0x83   : > { %590 = sbr.rel (%p587_p7) target bundleno = 587 (0x24b), region = 51  ;;  %v3337_v25 = vcombine.high (!%p587_p7), %v3333_v24, %v3333_v24  ;;  %v2835_v4 = vmov (!%p587_p7), 0   ;;  %vm1941_vm1 = vcmask (!%p587_p7), 1043456   ;;  %s2511_s9 = sshll.u32 (!%p587_p7), %s2504_s15, 4 }
  0x84   : > { %s2766_s30 = smul.u32 (!%p587_p7), 1728, %s593_s27  ;;  %2793 = vset.pattern.permute.xlu0 (!%p587_p7), %v2835_v4  ;;  %v841_v4 = vld [vmem:[%s3656_s2] sm:$0xf] (!%p587_p7)  ;;  %p618_p8 = scmp.lt.s32.totalorder (!%p587_p7), %s2511_s9, 63 }
  0x85   : > { %2739 = vmatprep.mubr.msk.bf16.mxu0 (!%p587_p7), %vm1937_vm0, %v3337_v25  ;;  %2741 = vmatprep.mubr.msk.bf16.mxu1 (!%p587_p7), %vm1937_vm0, %v3337_v25 }
  0x86   : > { %s3343_s4 = scalar_lea.vmem (!%p587_p7), [#allocation2], %s2766_s30  ;;  %844 = vperm.xlu0 (!%p587_p7), %2793, %v841_v4  }
  0x87   : > { %v625_v26 = vld [vmem:[%s3343_s4] sm:$0xff] (!%p587_p7)  ;;  %v626_v28 = vld [vmem:[%s3343_s4 + $0x8] sm:$0xff] (!%p587_p7) }
  0x88   : > { %v633_v27 = vld [vmem:[%s3343_s4 + $0x40] sm:$0xff] (!%p587_p7)  ;;  %v634_v30 = vld [vmem:[%s3343_s4 + $0x48] sm:$0xff] (!%p587_p7) }
  0x89   : > { %v2515_v29 = vcombine.high (!%p587_p7), %v625_v26, %v633_v27  ;;  %v2514_v31 = vcombine.low (!%p587_p7), %v625_v26, %v633_v27  ;;  %v641_v32 = vld [vmem:[%s3343_s4 + $0x80] sm:$0xff] (!%p587_p7)  ;;  %v2517_v34 = vcombine.high (!%p587_p7), %v626_v28, %v634_v30  ;;  %v2516_v35 = vcombine.low (!%p587_p7), %v626_v28, %v634_v30  ;;  %v642_v37 = vld [vmem:[%s3343_s4 + $0x88] sm:$0xff] (!%p587_p7) }
  0x8a   : > { %v649_v33 = vld [vmem:[%s3343_s4 + $0xc0] sm:$0xff]  ;;  %v650_v38 = vld [vmem:[%s3343_s4 + $0xc8] sm:$0xff]  ;;  %s3662_s9 = smov (!%p618_p8, %s2511_s9), 63 }
  0x8b   : > { %v2531_v36 = vcombine.high %v641_v32, %v649_v33  ;;  %v657_v39 = vld [vmem:[%s3343_s4 + $0x100] sm:$0xff]  ;;  %1990 = vmatprep.subr.bf16.mxu0 %v2515_v29  ;;  %v2533_v40 = vcombine.high %v642_v37, %v650_v38  ;;  %v658_v42 = vld [vmem:[%s3343_s4 + $0x108] sm:$0xff]  ;;  %2031 = vmatprep.subr.bf16.mxu1 %v2517_v34  ;;  %v2530_v44 = vcombine.low %v641_v32, %v649_v33  ;;  %s2512_s10 = sshll.u32 %s3662_s9, 1 }
  0x8c   : > { %v665_v41 = vld [vmem:[%s3343_s4 + $0x140] sm:$0xff]  ;;  %v666_v43 = vld [vmem:[%s3343_s4 + $0x148] sm:$0xff]  ;;  %1991 = vmatpush1.bf16.msra.mxu0 %v2514_v31  ;;  %2032 = vmatpush1.bf16.msra.mxu1 %v2516_v35  ;;  %v2532_v45 = vcombine.low %v642_v37, %v650_v38  ;;  %s3620_s14 = scalar_lea.vmem %s3657_s3, %s2512_s10 }
  0x8d   : > { %1992 = vmatprep.subr.bf16.mxu0 %v2531_v36  ;;  %v2547_v46 = vcombine.high %v657_v39, %v665_v41  ;;  %2033 = vmatprep.subr.bf16.mxu1 %v2533_v40  ;;  %v2549_v47 = vcombine.high %v658_v42, %v666_v43  ;;  %v673_v48 = vld [vmem:[%s3343_s4 + $0x180] sm:$0xff]  ;;  %v674_v50 = vld [vmem:[%s3343_s4 + $0x188] sm:$0xff]  ;;  %v2546_v52 = vcombine.low %v657_v39, %v665_v41 }
  0x8e   : > { %v681_v49 = vld [vmem:[%s3343_s4 + $0x1c0] sm:$0xff]  ;;  %v682_v51 = vld [vmem:[%s3343_s4 + $0x1c8] sm:$0xff]  ;;  %v2548_v53 = vcombine.low %v658_v42, %v666_v43 }
  0x8f   : > { %v2563_v54 = vcombine.high %v673_v48, %v681_v49  ;;  %v2565_v55 = vcombine.high %v674_v50, %v682_v51  ;;  %v689_v56 = vld [vmem:[%s3343_s4 + $0x200] sm:$0xff]  ;;  %v690_v58 = vld [vmem:[%s3343_s4 + $0x208] sm:$0xff]  ;;  %v2562_v60 = vcombine.low %v673_v48, %v681_v49  ;;  %v2564_v61 = vcombine.low %v674_v50, %v682_v51 }
  0x90   : > { %1993 = vmatpush1.bf16.msra.mxu0 %v2530_v44  ;;  %2034 = vmatpush1.bf16.msra.mxu1 %v2532_v45  ;;  %v697_v57 = vld [vmem:[%s3343_s4 + $0x240] sm:$0xff]  ;;  %v698_v59 = vld [vmem:[%s3343_s4 + $0x248] sm:$0xff] }
  0x91   : > { %1994 = vmatprep.subr.bf16.mxu0 %v2547_v46  ;;  %2035 = vmatprep.subr.bf16.mxu1 %v2549_v47  ;;  %v2579_v62 = vcombine.high %v689_v56, %v697_v57  ;;  %v2581_v63 = vcombine.high %v690_v58, %v698_v59  ;;  %v705_v0 = vld [vmem:[%s3343_s4 + $0x280] sm:$0xff]  ;;  %v706_v2 = vld [vmem:[%s3343_s4 + $0x288] sm:$0xff]  ;;  %v2578_v5 = vcombine.low %v689_v56, %v697_v57 }
  0x92   : > { %v713_v1 = vld [vmem:[%s3343_s4 + $0x2c0] sm:$0xff]  ;;  %v714_v3 = vld [vmem:[%s3343_s4 + $0x2c8] sm:$0xff]  ;;  %v2580_v6 = vcombine.low %v690_v58, %v698_v59 }
  0x93   : > { %v2595_v7 = vcombine.high %v705_v0, %v713_v1  ;;  %v2597_v8 = vcombine.high %v706_v2, %v714_v3  ;;  %v721_v9 = vld [vmem:[%s3343_s4 + $0x300] sm:$0xff]  ;;  %v722_v11 = vld [vmem:[%s3343_s4 + $0x308] sm:$0xff]  ;;  %v2594_v13 = vcombine.low %v705_v0, %v713_v1  ;;  %v2596_v14 = vcombine.low %v706_v2, %v714_v3 }
  0x94   : > { %1995 = vmatpush1.bf16.msra.mxu0 %v2546_v52  ;;  %2036 = vmatpush1.bf16.msra.mxu1 %v2548_v53  ;;  %v729_v10 = vld [vmem:[%s3343_s4 + $0x340] sm:$0xff]  ;;  %v730_v12 = vld [vmem:[%s3343_s4 + $0x348] sm:$0xff] }
  0x95   : > { %1996 = vmatprep.subr.bf16.mxu0 %v2563_v54  ;;  %2037 = vmatprep.subr.bf16.mxu1 %v2565_v55  ;;  %v2611_v15 = vcombine.high %v721_v9, %v729_v10  ;;  %v2613_v16 = vcombine.high %v722_v11, %v730_v12  ;;  %v737_v17 = vld [vmem:[%s3343_s4 + $0x380] sm:$0xff]  ;;  %v738_v19 = vld [vmem:[%s3343_s4 + $0x388] sm:$0xff]  ;;  %v2610_v21 = vcombine.low %v721_v9, %v729_v10 }
  0x96   : > { %v745_v18 = vld [vmem:[%s3343_s4 + $0x3c0] sm:$0xff]  ;;  %v746_v20 = vld [vmem:[%s3343_s4 + $0x3c8] sm:$0xff]  ;;  %v2612_v22 = vcombine.low %v722_v11, %v730_v12  ;;  %v627_v12 = vld [vmem:[%s3343_s4 + $0x10] sm:$0xff] }
  0x97   : > { %v2627_v23 = vcombine.high %v737_v17, %v745_v18  ;;  %v2629_v26 = vcombine.high %v738_v19, %v746_v20  ;;  %v753_v27 = vld [vmem:[%s3343_s4 + $0x400] sm:$0xff]  ;;  %v754_v29 = vld [vmem:[%s3343_s4 + $0x408] sm:$0xff]  ;;  %v2626_v31 = vcombine.low %v737_v17, %v745_v18  ;;  %v2628_v32 = vcombine.low %v738_v19, %v746_v20  ;;  %v643_v20 = vld [vmem:[%s3343_s4 + $0x90] sm:$0xff] }
  0x98   : > { %1997 = vmatpush1.bf16.msra.mxu0 %v2562_v60  ;;  %2038 = vmatpush1.bf16.msra.mxu1 %v2564_v61  ;;  %v761_v28 = vld [vmem:[%s3343_s4 + $0x440] sm:$0xff]  ;;  %v762_v30 = vld [vmem:[%s3343_s4 + $0x448] sm:$0xff] }
  0x99   : > { %1998 = vmatprep.subr.bf16.mxu0 %v2579_v62  ;;  %2039 = vmatprep.subr.bf16.mxu1 %v2581_v63  ;;  %v2643_v33 = vcombine.high %v753_v27, %v761_v28  ;;  %v2645_v34 = vcombine.high %v754_v29, %v762_v30  ;;  %v769_v35 = vld [vmem:[%s3343_s4 + $0x480] sm:$0xff]  ;;  %v770_v37 = vld [vmem:[%s3343_s4 + $0x488] sm:$0xff]  ;;  %v2642_v39 = vcombine.low %v753_v27, %v761_v28 }
  0x9a   : > { %v777_v36 = vld [vmem:[%s3343_s4 + $0x4c0] sm:$0xff]  ;;  %v778_v38 = vld [vmem:[%s3343_s4 + $0x4c8] sm:$0xff]  ;;  %v2644_v40 = vcombine.low %v754_v29, %v762_v30  ;;  %v659_v30 = vld [vmem:[%s3343_s4 + $0x110] sm:$0xff] }
  0x9b   : > { %v2659_v41 = vcombine.high %v769_v35, %v777_v36  ;;  %v2661_v42 = vcombine.high %v770_v37, %v778_v38  ;;  %v785_v43 = vld [vmem:[%s3343_s4 + $0x500] sm:$0xff]  ;;  %v786_v45 = vld [vmem:[%s3343_s4 + $0x508] sm:$0xff]  ;;  %v2658_v47 = vcombine.low %v769_v35, %v777_v36  ;;  %v2660_v48 = vcombine.low %v770_v37, %v778_v38  ;;  %v675_v38 = vld [vmem:[%s3343_s4 + $0x190] sm:$0xff] }
  0x9c   : > { %1999 = vmatpush1.bf16.msra.mxu0 %v2578_v5  ;;  %2040 = vmatpush1.bf16.msra.mxu1 %v2580_v6  ;;  %v793_v44 = vld [vmem:[%s3343_s4 + $0x540] sm:$0xff]  ;;  %v794_v46 = vld [vmem:[%s3343_s4 + $0x548] sm:$0xff] }
  0x9d   : > { %2000 = vmatprep.subr.bf16.mxu0 %v2595_v7  ;;  %2041 = vmatprep.subr.bf16.mxu1 %v2597_v8  ;;  %v2675_v49 = vcombine.high %v785_v43, %v793_v44  ;;  %v2677_v50 = vcombine.high %v786_v45, %v794_v46  ;;  %v801_v51 = vld [vmem:[%s3343_s4 + $0x580] sm:$0xff]  ;;  %v802_v53 = vld [vmem:[%s3343_s4 + $0x588] sm:$0xff]  ;;  %v2674_v55 = vcombine.low %v785_v43, %v793_v44 }
  0x9e   : > { %v809_v52 = vld [vmem:[%s3343_s4 + $0x5c0] sm:$0xff]  ;;  %v810_v54 = vld [vmem:[%s3343_s4 + $0x5c8] sm:$0xff]  ;;  %v2676_v56 = vcombine.low %v786_v45, %v794_v46  ;;  %v691_v46 = vld [vmem:[%s3343_s4 + $0x210] sm:$0xff] }
  0x9f   : > { %v2691_v57 = vcombine.high %v801_v51, %v809_v52  ;;  %v2693_v58 = vcombine.high %v802_v53, %v810_v54  ;;  %v817_v59 = vld [vmem:[%s3343_s4 + $0x600] sm:$0xff]  ;;  %v818_v61 = vld [vmem:[%s3343_s4 + $0x608] sm:$0xff]  ;;  %v2690_v63 = vcombine.low %v801_v51, %v809_v52  ;;  %v2692_v0 = vcombine.low %v802_v53, %v810_v54  ;;  %v707_v54 = vld [vmem:[%s3343_s4 + $0x290] sm:$0xff] }
  0xa0   : > { %2001 = vmatpush1.bf16.msra.mxu0 %v2594_v13  ;;  %2042 = vmatpush1.bf16.msra.mxu1 %v2596_v14  ;;  %v825_v60 = vld [vmem:[%s3343_s4 + $0x640] sm:$0xff]  ;;  %v826_v62 = vld [vmem:[%s3343_s4 + $0x648] sm:$0xff]  ;;  %v635_v13 = vld [vmem:[%s3343_s4 + $0x50] sm:$0xff] }
  0xa1   : > { %2002 = vmatprep.subr.bf16.mxu0 %v2611_v15  ;;  %2043 = vmatprep.subr.bf16.mxu1 %v2613_v16  ;;  %v2707_v1 = vcombine.high %v817_v59, %v825_v60  ;;  %v2709_v2 = vcombine.high %v818_v61, %v826_v62  ;;  %v833_v3 = vld [vmem:[%s3343_s4 + $0x680] sm:$0xff]  ;;  %v834_v5 = vld [vmem:[%s3343_s4 + $0x688] sm:$0xff]  ;;  %v2706_v6 = vcombine.low %v817_v59, %v825_v60  ;;  %v628_v14 = vld [vmem:[%s3343_s4 + $0x18] sm:$0xff] }
  0xa2   : > { %v2708_v7 = vcombine.low %v818_v61, %v826_v62  ;;  %v2723_v8 = vcombine.high %v833_v3, %v833_v3  ;;  %v2722_v9 = vcombine.low %v833_v3, %v833_v3  ;;  %v2725_v10 = vcombine.high %v834_v5, %v834_v5  ;;  %v636_v15 = vld [vmem:[%s3343_s4 + $0x58] sm:$0xff]  ;;  %v723_v62 = vld [vmem:[%s3343_s4 + $0x310] sm:$0xff] }
  0xa3   : > { %v2724_v11 = vcombine.low %v834_v5, %v834_v5  ;;  %v2519_v17 = vcombine.high %v627_v12, %v635_v13  ;;  %v2521_v19 = vcombine.high %v628_v14, %v636_v15  ;;  %v2520_v27 = vcombine.low %v628_v14, %v636_v15  ;;  %v755_v14 = vld [vmem:[%s3343_s4 + $0x410] sm:$0xff] }
  0xa4   : > { %2003 = vmatpush1.bf16.msra.mxu0 %v2610_v21  ;;  %2044 = vmatpush1.bf16.msra.mxu1 %v2612_v22  ;;  %v1943_v16 = vsel %vm1941_vm1, %v2722_v9, 0  ;;  %v651_v21 = vld [vmem:[%s3343_s4 + $0xd0] sm:$0xff]  ;;  %v644_v22 = vld [vmem:[%s3343_s4 + $0x98] sm:$0xff] }
  0xa5   : > { %2004 = vmatprep.subr.bf16.mxu0 %v2627_v23  ;;  %2045 = vmatprep.subr.bf16.mxu1 %v2629_v26  ;;  %v1949_v18 = vsel %vm1941_vm1, %v2724_v11, 0  ;;  %v652_v23 = vld [vmem:[%s3343_s4 + $0xd8] sm:$0xff]  ;;  %v2518_v26 = vcombine.low %v627_v12, %v635_v13  ;;  %v2535_v28 = vcombine.high %v643_v20, %v651_v21  ;;  %v763_v15 = vld [vmem:[%s3343_s4 + $0x450] sm:$0xff] }
  0xa6   : > { %v2537_v29 = vcombine.high %v644_v22, %v652_v23  ;;  %v2536_v35 = vcombine.low %v644_v22, %v652_v23  ;;  %v748_v9 = vld [vmem:[%s3343_s4 + $0x3d8] sm:$0xff]  ;;  %v771_v22 = vld [vmem:[%s3343_s4 + $0x490] sm:$0xff] }
  0xa7   : > { %v779_v23 = vld [vmem:[%s3343_s4 + $0x4d0] sm:$0xff] }
  0xa8   : > { %2005 = vmatpush1.bf16.msra.mxu0 %v2626_v31  ;;  %2046 = vmatpush1.bf16.msra.mxu1 %v2628_v32  ;;  %v667_v31 = vld [vmem:[%s3343_s4 + $0x150] sm:$0xff]  ;;  %v660_v32 = vld [vmem:[%s3343_s4 + $0x118] sm:$0xff] }
  0xa9   : > { %2006 = vmatprep.subr.bf16.mxu0 %v2643_v33  ;;  %2047 = vmatprep.subr.bf16.mxu1 %v2645_v34  ;;  %v668_v33 = vld [vmem:[%s3343_s4 + $0x158] sm:$0xff]  ;;  %v2534_v34 = vcombine.low %v643_v20, %v651_v21  ;;  %v2551_v36 = vcombine.high %v659_v30, %v667_v31  ;;  %v2647_v20 = vcombine.high %v755_v14, %v763_v15 }
  0xaa   : > { %v2553_v37 = vcombine.high %v660_v32, %v668_v33  ;;  %v2552_v43 = vcombine.low %v660_v32, %v668_v33  ;;  %v787_v32 = vld [vmem:[%s3343_s4 + $0x510] sm:$0xff] }
  0xab   : > { %v795_v33 = vld [vmem:[%s3343_s4 + $0x550] sm:$0xff] }
  0xac   : > { %2007 = vmatpush1.bf16.msra.mxu0 %v2642_v39  ;;  %2048 = vmatpush1.bf16.msra.mxu1 %v2644_v40  ;;  %v683_v39 = vld [vmem:[%s3343_s4 + $0x1d0] sm:$0xff]  ;;  %v676_v40 = vld [vmem:[%s3343_s4 + $0x198] sm:$0xff] }
  0xad   : > { %2008 = vmatprep.subr.bf16.mxu0 %v2659_v41  ;;  %2049 = vmatprep.subr.bf16.mxu1 %v2661_v42  ;;  %v684_v41 = vld [vmem:[%s3343_s4 + $0x1d8] sm:$0xff]  ;;  %v2550_v42 = vcombine.low %v659_v30, %v667_v31  ;;  %v2567_v44 = vcombine.high %v675_v38, %v683_v39  ;;  %v2663_v30 = vcombine.high %v771_v22, %v779_v23 }
  0xae   : > { %v2569_v45 = vcombine.high %v676_v40, %v684_v41  ;;  %v2568_v51 = vcombine.low %v676_v40, %v684_v41  ;;  %v803_v40 = vld [vmem:[%s3343_s4 + $0x590] sm:$0xff] }
  0xaf   : > { %v811_v41 = vld [vmem:[%s3343_s4 + $0x5d0] sm:$0xff] }
  0xb0   : > { %2009 = vmatpush1.bf16.msra.mxu0 %v2658_v47  ;;  %2050 = vmatpush1.bf16.msra.mxu1 %v2660_v48  ;;  %v699_v47 = vld [vmem:[%s3343_s4 + $0x250] sm:$0xff]  ;;  %v692_v48 = vld [vmem:[%s3343_s4 + $0x218] sm:$0xff] }
  0xb1   : > { %2010 = vmatprep.subr.bf16.mxu0 %v2675_v49  ;;  %2051 = vmatprep.subr.bf16.mxu1 %v2677_v50  ;;  %v700_v49 = vld [vmem:[%s3343_s4 + $0x258] sm:$0xff]  ;;  %v2566_v50 = vcombine.low %v675_v38, %v683_v39  ;;  %v2583_v52 = vcombine.high %v691_v46, %v699_v47  ;;  %v2679_v38 = vcombine.high %v787_v32, %v795_v33 }
  0xb2   : > { %v2585_v53 = vcombine.high %v692_v48, %v700_v49  ;;  %v2584_v59 = vcombine.low %v692_v48, %v700_v49  ;;  %v819_v48 = vld [vmem:[%s3343_s4 + $0x610] sm:$0xff] }
  0xb3   : > { %v827_v49 = vld [vmem:[%s3343_s4 + $0x650] sm:$0xff] }
  0xb4   : > { %2011 = vmatpush1.bf16.msra.mxu0 %v2674_v55  ;;  %2052 = vmatpush1.bf16.msra.mxu1 %v2676_v56  ;;  %v715_v55 = vld [vmem:[%s3343_s4 + $0x2d0] sm:$0xff]  ;;  %v708_v56 = vld [vmem:[%s3343_s4 + $0x298] sm:$0xff] }
  0xb5   : > { %2012 = vmatprep.subr.bf16.mxu0 %v2691_v57  ;;  %2053 = vmatprep.subr.bf16.mxu1 %v2693_v58  ;;  %v716_v57 = vld [vmem:[%s3343_s4 + $0x2d8] sm:$0xff]  ;;  %v2582_v58 = vcombine.low %v691_v46, %v699_v47  ;;  %v2599_v60 = vcombine.high %v707_v54, %v715_v55  ;;  %v2695_v46 = vcombine.high %v803_v40, %v811_v41 }
  0xb6   : > { %v2601_v61 = vcombine.high %v708_v56, %v716_v57  ;;  %v2600_v3 = vcombine.low %v708_v56, %v716_v57  ;;  %v835_v56 = vld [vmem:[%s3343_s4 + $0x690] sm:$0xff]  ;;  %v836_v57 = vld [vmem:[%s3343_s4 + $0x698] sm:$0xff] }
  0xb8   : > { %2013 = vmatpush1.bf16.msra.mxu0 %v2690_v63  ;;  %2054 = vmatpush1.bf16.msra.mxu1 %v2692_v0  ;;  %v731_v63 = vld [vmem:[%s3343_s4 + $0x350] sm:$0xff]  ;;  %v724_v0 = vld [vmem:[%s3343_s4 + $0x318] sm:$0xff] }
  0xb9   : > { %2014 = vmatprep.subr.bf16.mxu0 %v2707_v1  ;;  %2055 = vmatprep.subr.bf16.mxu1 %v2709_v2  ;;  %v732_v1 = vld [vmem:[%s3343_s4 + $0x358] sm:$0xff]  ;;  %v2598_v2 = vcombine.low %v707_v54, %v715_v55  ;;  %v2615_v4 = vcombine.high %v723_v62, %v731_v63  ;;  %v2711_v54 = vcombine.high %v819_v48, %v827_v49 }
  0xba   : > { %v2617_v5 = vcombine.high %v724_v0, %v732_v1  ;;  %v2616_v11 = vcombine.low %v724_v0, %v732_v1  ;;  %v629_v0 = vld [vmem:[%s3343_s4 + $0x20] sm:$0xff] }
  0xbb   : > { %v637_v1 = vld [vmem:[%s3343_s4 + $0x60] sm:$0xff] }
  0xbc   : > { %2015 = vmatpush1.bf16.msra.mxu0 %v2706_v6  ;;  %2056 = vmatpush1.bf16.msra.mxu1 %v2708_v7  ;;  %v739_v6 = vld [vmem:[%s3343_s4 + $0x390] sm:$0xff] }
  0xbd   : > { %2738 = vmatprep.subr.msk.bf16.mxu0 %vm1941_vm1, %v2723_v8  ;;  %2740 = vmatprep.subr.msk.bf16.mxu1 %vm1941_vm1, %v2725_v10  ;;  %v747_v7 = vld [vmem:[%s3343_s4 + $0x3d0] sm:$0xff]  ;;  %v740_v8 = vld [vmem:[%s3343_s4 + $0x398] sm:$0xff]  ;;  %v2614_v10 = vcombine.low %v723_v62, %v731_v63  ;;  %v2729_v62 = vcombine.high %v836_v57, %v836_v57  ;;  %v2728_v63 = vcombine.low %v836_v57, %v836_v57  ;;  %v741_v57 = vld [vmem:[%s3343_s4 + $0x3a0] sm:$0xff] }
  0xbe   : > { %v2631_v12 = vcombine.high %v739_v6, %v747_v7  ;;  %v2633_v13 = vcombine.high %v740_v8, %v748_v9 }
  0xc0   : > { %2017 = vmatpush1.bf16.msra.mxu0 %v1943_v16  ;;  %2058 = vmatpush1.bf16.msra.mxu1 %v1949_v18  ;;  %v756_v16 = vld [vmem:[%s3343_s4 + $0x418] sm:$0xff]  ;;  %v2630_v18 = vcombine.low %v739_v6, %v747_v7  ;;  %v1961_v6 = vsel %vm1941_vm1, %v2728_v63, 0 }
  0xc1   : > { %2072 = vmatprep.subr.bf16.mxu0 %v2519_v17  ;;  %2113 = vmatprep.subr.bf16.mxu1 %v2521_v19  ;;  %v764_v17 = vld [vmem:[%s3343_s4 + $0x458] sm:$0xff]  ;;  %v2632_v19 = vcombine.low %v740_v8, %v748_v9  ;;  %v645_v8 = vld [vmem:[%s3343_s4 + $0xa0] sm:$0xff] }
  0xc2   : > { %v2649_v21 = vcombine.high %v756_v16, %v764_v17  ;;  %v653_v9 = vld [vmem:[%s3343_s4 + $0xe0] sm:$0xff] }
  0xc3   : > { %2023 = vmatmul.mubr.bf16.vlgmr.msra.gmra.mrb[0].mxu0 %v3333_v24  ;;  %2064 = vmatmul.mubr.bf16.vlgmr.msra.gmra.mrb[0].mxu1 %v3333_v24 }
  0xc4   : > { %2073 = vmatpush1.bf16.msra.mxu0 %v2518_v26  ;;  %2114 = vmatpush1.bf16.msra.mxu1 %v2520_v27  ;;  %v772_v26 = vld [vmem:[%s3343_s4 + $0x498] sm:$0xff] }
  0xc5   : > { %2074 = vmatprep.subr.bf16.mxu0 %v2535_v28  ;;  %2115 = vmatprep.subr.bf16.mxu1 %v2537_v29  ;;  %v780_v27 = vld [vmem:[%s3343_s4 + $0x4d8] sm:$0xff]  ;;  %v2646_v28 = vcombine.low %v755_v14, %v763_v15  ;;  %v2648_v29 = vcombine.low %v756_v16, %v764_v17  ;;  %v2539_v14 = vcombine.high %v645_v8, %v653_v9  ;;  %v661_v16 = vld [vmem:[%s3343_s4 + $0x120] sm:$0xff] }
  0xc6   : > { %2743 = vmatprep.mubr.msk.bf16.mxu0 %vm1937_vm0, %v3337_v25  ;;  %2745 = vmatprep.mubr.msk.bf16.mxu1 %vm1937_vm0, %v3337_v25  ;;  %v2665_v31 = vcombine.high %v772_v26, %v780_v27  ;;  %v669_v17 = vld [vmem:[%s3343_s4 + $0x160] sm:$0xff] }
  0xc8   : > { %2075 = vmatpush1.bf16.msra.mxu0 %v2534_v34  ;;  %2116 = vmatpush1.bf16.msra.mxu1 %v2536_v35  ;;  %v788_v34 = vld [vmem:[%s3343_s4 + $0x518] sm:$0xff] }
  0xc9   : > { %2076 = vmatprep.subr.bf16.mxu0 %v2551_v36  ;;  %2117 = vmatprep.subr.bf16.mxu1 %v2553_v37  ;;  %v796_v35 = vld [vmem:[%s3343_s4 + $0x558] sm:$0xff]  ;;  %v2662_v36 = vcombine.low %v771_v22, %v779_v23  ;;  %v2664_v37 = vcombine.low %v772_v26, %v780_v27  ;;  %v2555_v22 = vcombine.high %v661_v16, %v669_v17  ;;  %v677_v26 = vld [vmem:[%s3343_s4 + $0x1a0] sm:$0xff] }
  0xca   : > { %v2681_v39 = vcombine.high %v788_v34, %v796_v35  ;;  %v685_v27 = vld [vmem:[%s3343_s4 + $0x1e0] sm:$0xff] }
  0xcc   : > { %2077 = vmatpush1.bf16.msra.mxu0 %v2550_v42  ;;  %2118 = vmatpush1.bf16.msra.mxu1 %v2552_v43  ;;  %v804_v42 = vld [vmem:[%s3343_s4 + $0x598] sm:$0xff] }
  0xcd   : > { %2078 = vmatprep.subr.bf16.mxu0 %v2567_v44  ;;  %2119 = vmatprep.subr.bf16.mxu1 %v2569_v45  ;;  %v812_v43 = vld [vmem:[%s3343_s4 + $0x5d8] sm:$0xff]  ;;  %v2678_v44 = vcombine.low %v787_v32, %v795_v33  ;;  %v2680_v45 = vcombine.low %v788_v34, %v796_v35  ;;  %v693_v33 = vld [vmem:[%s3343_s4 + $0x220] sm:$0xff]  ;;  %v694_v35 = vld [vmem:[%s3343_s4 + $0x228] sm:$0xff] }
  0xce   : > { %v2697_v47 = vcombine.high %v804_v42, %v812_v43  ;;  %v701_v34 = vld [vmem:[%s3343_s4 + $0x260] sm:$0xff] }
  0xd0   : > { %2079 = vmatpush1.bf16.msra.mxu0 %v2566_v50  ;;  %2120 = vmatpush1.bf16.msra.mxu1 %v2568_v51  ;;  %v820_v50 = vld [vmem:[%s3343_s4 + $0x618] sm:$0xff] }
  0xd1   : > { %2080 = vmatprep.subr.bf16.mxu0 %v2583_v52  ;;  %2121 = vmatprep.subr.bf16.mxu1 %v2585_v53  ;;  %v828_v51 = vld [vmem:[%s3343_s4 + $0x658] sm:$0xff]  ;;  %v2694_v52 = vcombine.low %v803_v40, %v811_v41  ;;  %v2696_v53 = vcombine.low %v804_v42, %v812_v43  ;;  %v709_v41 = vld [vmem:[%s3343_s4 + $0x2a0] sm:$0xff]  ;;  %v710_v43 = vld [vmem:[%s3343_s4 + $0x2a8] sm:$0xff] }
  0xd2   : > { %v2713_v55 = vcombine.high %v820_v50, %v828_v51  ;;  %v717_v42 = vld [vmem:[%s3343_s4 + $0x2e0] sm:$0xff] }
  0xd4   : > { %2081 = vmatpush1.bf16.msra.mxu0 %v2582_v58  ;;  %2122 = vmatpush1.bf16.msra.mxu1 %v2584_v59  ;;  %v2710_v58 = vcombine.low %v819_v48, %v827_v49  ;;  %v2712_v59 = vcombine.low %v820_v50, %v828_v51  ;;  %v725_v49 = vld [vmem:[%s3343_s4 + $0x320] sm:$0xff]  ;;  %v726_v51 = vld [vmem:[%s3343_s4 + $0x328] sm:$0xff] }
  0xd5   : > { %2082 = vmatprep.subr.bf16.mxu0 %v2599_v60  ;;  %2123 = vmatprep.subr.bf16.mxu1 %v2601_v61  ;;  %v2727_v60 = vcombine.high %v835_v56, %v835_v56  ;;  %v2726_v61 = vcombine.low %v835_v56, %v835_v56  ;;  %v733_v50 = vld [vmem:[%s3343_s4 + $0x360] sm:$0xff] }
  0xd8   : > { %2083 = vmatpush1.bf16.msra.mxu0 %v2598_v2  ;;  %2124 = vmatpush1.bf16.msra.mxu1 %v2600_v3  ;;  %v630_v2 = vld [vmem:[%s3343_s4 + $0x28] sm:$0xff] }
  0xd9   : > { %2084 = vmatprep.subr.bf16.mxu0 %v2615_v4  ;;  %2125 = vmatprep.subr.bf16.mxu1 %v2617_v5  ;;  %v638_v3 = vld [vmem:[%s3343_s4 + $0x68] sm:$0xff]  ;;  %v1955_v4 = vsel %vm1941_vm1, %v2726_v61, 0  ;;  %v2523_v5 = vcombine.high %v629_v0, %v637_v1  ;;  %v2618_v61 = vcombine.low %v725_v49, %v733_v50 }
  0xda   : > { %v2525_v7 = vcombine.high %v630_v2, %v638_v3 }
  0xdc   : > { %2085 = vmatpush1.bf16.msra.mxu0 %v2614_v10  ;;  %2126 = vmatpush1.bf16.msra.mxu1 %v2616_v11  ;;  %v646_v10 = vld [vmem:[%s3343_s4 + $0xa8] sm:$0xff] }
  0xdd   : > { %2086 = vmatprep.subr.bf16.mxu0 %v2631_v12  ;;  %2127 = vmatprep.subr.bf16.mxu1 %v2633_v13  ;;  %v654_v11 = vld [vmem:[%s3343_s4 + $0xe8] sm:$0xff]  ;;  %v2522_v12 = vcombine.low %v629_v0, %v637_v1  ;;  %v2524_v13 = vcombine.low %v630_v2, %v638_v3  ;;  %v757_v1 = vld [vmem:[%s3343_s4 + $0x420] sm:$0xff] }
  0xde   : > { %v2541_v15 = vcombine.high %v646_v10, %v654_v11  ;;  %v765_v2 = vld [vmem:[%s3343_s4 + $0x460] sm:$0xff]  ;;  %v758_v3 = vld [vmem:[%s3343_s4 + $0x428] sm:$0xff] }
  0xe0   : > { %2087 = vmatpush1.bf16.msra.mxu0 %v2630_v18  ;;  %2128 = vmatpush1.bf16.msra.mxu1 %v2632_v19  ;;  %v662_v18 = vld [vmem:[%s3343_s4 + $0x128] sm:$0xff] }
  0xe1   : > { %2088 = vmatprep.subr.bf16.mxu0 %v2647_v20  ;;  %2129 = vmatprep.subr.bf16.mxu1 %v2649_v21  ;;  %v670_v19 = vld [vmem:[%s3343_s4 + $0x168] sm:$0xff]  ;;  %v2538_v20 = vcombine.low %v645_v8, %v653_v9  ;;  %v2540_v21 = vcombine.low %v646_v10, %v654_v11  ;;  %v773_v9 = vld [vmem:[%s3343_s4 + $0x4a0] sm:$0xff] }
  0xe2   : > { %v2557_v23 = vcombine.high %v662_v18, %v670_v19  ;;  %v781_v10 = vld [vmem:[%s3343_s4 + $0x4e0] sm:$0xff]  ;;  %v774_v11 = vld [vmem:[%s3343_s4 + $0x4a8] sm:$0xff] }
  0xe4   : > { %2089 = vmatpush1.bf16.msra.mxu0 %v2646_v28  ;;  %2130 = vmatpush1.bf16.msra.mxu1 %v2648_v29  ;;  %v678_v28 = vld [vmem:[%s3343_s4 + $0x1a8] sm:$0xff] }
  0xe5   : > { %2090 = vmatprep.subr.bf16.mxu0 %v2663_v30  ;;  %2131 = vmatprep.subr.bf16.mxu1 %v2665_v31  ;;  %v686_v29 = vld [vmem:[%s3343_s4 + $0x1e8] sm:$0xff]  ;;  %v2556_v30 = vcombine.low %v662_v18, %v670_v19  ;;  %v2571_v31 = vcombine.high %v677_v26, %v685_v27  ;;  %v797_v18 = vld [vmem:[%s3343_s4 + $0x560] sm:$0xff] }
  0xe6   : > { %v2573_v32 = vcombine.high %v678_v28, %v686_v29  ;;  %v790_v19 = vld [vmem:[%s3343_s4 + $0x528] sm:$0xff] }
  0xe8   : > { %2091 = vmatpush1.bf16.msra.mxu0 %v2662_v36  ;;  %2132 = vmatpush1.bf16.msra.mxu1 %v2664_v37  ;;  %v702_v36 = vld [vmem:[%s3343_s4 + $0x268] sm:$0xff]  ;;  %v2570_v37 = vcombine.low %v677_v26, %v685_v27  ;;  %v805_v27 = vld [vmem:[%s3343_s4 + $0x5a0] sm:$0xff] }
  0xe9   : > { %2092 = vmatprep.subr.bf16.mxu0 %v2679_v38  ;;  %2133 = vmatprep.subr.bf16.mxu1 %v2681_v39  ;;  %v2572_v38 = vcombine.low %v678_v28, %v686_v29  ;;  %v2587_v39 = vcombine.high %v693_v33, %v701_v34  ;;  %v2589_v40 = vcombine.high %v694_v35, %v702_v36  ;;  %v813_v28 = vld [vmem:[%s3343_s4 + $0x5e0] sm:$0xff]  ;;  %v806_v29 = vld [vmem:[%s3343_s4 + $0x5a8] sm:$0xff] }
  0xec   : > { %2093 = vmatpush1.bf16.msra.mxu0 %v2678_v44  ;;  %2134 = vmatpush1.bf16.msra.mxu1 %v2680_v45  ;;  %v718_v44 = vld [vmem:[%s3343_s4 + $0x2e8] sm:$0xff]  ;;  %v2586_v45 = vcombine.low %v693_v33, %v701_v34  ;;  %v821_v34 = vld [vmem:[%s3343_s4 + $0x620] sm:$0xff] }
  0xed   : > { %2094 = vmatprep.subr.bf16.mxu0 %v2695_v46  ;;  %2135 = vmatprep.subr.bf16.mxu1 %v2697_v47  ;;  %v2588_v46 = vcombine.low %v694_v35, %v702_v36  ;;  %v2603_v47 = vcombine.high %v709_v41, %v717_v42  ;;  %v2605_v48 = vcombine.high %v710_v43, %v718_v44  ;;  %v829_v35 = vld [vmem:[%s3343_s4 + $0x660] sm:$0xff]  ;;  %v822_v36 = vld [vmem:[%s3343_s4 + $0x628] sm:$0xff] }
  0xf0   : > { %2095 = vmatpush1.bf16.msra.mxu0 %v2694_v52  ;;  %2136 = vmatpush1.bf16.msra.mxu1 %v2696_v53  ;;  %v734_v52 = vld [vmem:[%s3343_s4 + $0x368] sm:$0xff]  ;;  %v2602_v53 = vcombine.low %v709_v41, %v717_v42  ;;  %v837_v42 = vld [vmem:[%s3343_s4 + $0x6a0] sm:$0xff] }
  0xf1   : > { %2096 = vmatprep.subr.bf16.mxu0 %v2711_v54  ;;  %2137 = vmatprep.subr.bf16.mxu1 %v2713_v55  ;;  %v2604_v54 = vcombine.low %v710_v43, %v718_v44  ;;  %v2619_v55 = vcombine.high %v725_v49, %v733_v50  ;;  %v2621_v56 = vcombine.high %v726_v51, %v734_v52  ;;  %v838_v43 = vld [vmem:[%s3343_s4 + $0x6a8] sm:$0xff]  ;;  %v631_v50 = vld [vmem:[%s3343_s4 + $0x30] sm:$0xff] }
  0xf2   : > { %v2714_v44 = vcombine.low %v821_v34, %v829_v35  ;;  %v2732_v49 = vcombine.low %v838_v43, %v838_v43 }
  0xf4   : > { %2097 = vmatpush1.bf16.msra.mxu0 %v2710_v58  ;;  %2138 = vmatpush1.bf16.msra.mxu1 %v2712_v59  ;;  %v749_v58 = vld [vmem:[%s3343_s4 + $0x3e0] sm:$0xff]  ;;  %v742_v59 = vld [vmem:[%s3343_s4 + $0x3a8] sm:$0xff] }
  0xf5   : > { %2742 = vmatprep.subr.msk.bf16.mxu0 %vm1941_vm1, %v2727_v60  ;;  %2744 = vmatprep.subr.msk.bf16.mxu1 %vm1941_vm1, %v2729_v62  ;;  %v750_v60 = vld [vmem:[%s3343_s4 + $0x3e8] sm:$0xff]  ;;  %v2620_v62 = vcombine.low %v726_v51, %v734_v52  ;;  %v2635_v63 = vcombine.high %v741_v57, %v749_v58  ;;  %v639_v51 = vld [vmem:[%s3343_s4 + $0x70] sm:$0xff]  ;;  %v632_v52 = vld [vmem:[%s3343_s4 + $0x38] sm:$0xff] }
  0xf6   : > { %v2637_v0 = vcombine.high %v742_v59, %v750_v60 }
  0xf8   : > { %2099 = vmatpush1.bf16.msra.mxu0 %v1955_v4  ;;  %2140 = vmatpush1.bf16.msra.mxu1 %v1961_v6  ;;  %v766_v4 = vld [vmem:[%s3343_s4 + $0x468] sm:$0xff]  ;;  %v2636_v6 = vcombine.low %v742_v59, %v750_v60  ;;  %v655_v59 = vld [vmem:[%s3343_s4 + $0xf0] sm:$0xff]  ;;  %v648_v60 = vld [vmem:[%s3343_s4 + $0xb8] sm:$0xff] }
  0xf9   : > { %2154 = vmatprep.subr.bf16.mxu0 %v2523_v5  ;;  %2195 = vmatprep.subr.bf16.mxu1 %v2525_v7  ;;  %v2634_v5 = vcombine.low %v741_v57, %v749_v58  ;;  %v2651_v7 = vcombine.high %v757_v1, %v765_v2  ;;  %v2653_v8 = vcombine.high %v758_v3, %v766_v4  ;;  %v647_v58 = vld [vmem:[%s3343_s4 + $0xb0] sm:$0xff] }
  0xfb   : > { %2105 = vmatmul.mubr.bf16.vlgmr.msra.gmra.mrb[4].mxu0 %v3333_v24  ;;  %2146 = vmatmul.mubr.bf16.vlgmr.msra.gmra.mrb[4].mxu1 %v3333_v24  ;;  %v2554_v24 = vcombine.low %v661_v16, %v669_v17  ;;  %v789_v17 = vld [vmem:[%s3343_s4 + $0x520] sm:$0xff] }
  0xfc   : > { %2155 = vmatpush1.bf16.msra.mxu0 %v2522_v12  ;;  %2196 = vmatpush1.bf16.msra.mxu1 %v2524_v13  ;;  %v782_v12 = vld [vmem:[%s3343_s4 + $0x4e8] sm:$0xff]  ;;  %v2650_v13 = vcombine.low %v757_v1, %v765_v2  ;;  %v663_v2 = vld [vmem:[%s3343_s4 + $0x130] sm:$0xff] }
  0xfd   : > { %2156 = vmatprep.subr.bf16.mxu0 %v2539_v14  ;;  %2197 = vmatprep.subr.bf16.mxu1 %v2541_v15  ;;  %v2652_v14 = vcombine.low %v758_v3, %v766_v4  ;;  %v2667_v15 = vcombine.high %v773_v9, %v781_v10  ;;  %v2669_v16 = vcombine.high %v774_v11, %v782_v12  ;;  %v671_v3 = vld [vmem:[%s3343_s4 + $0x170] sm:$0xff]  ;;  %v3547_v4 = vld.sshfl [vmem:[%s3654_s0] sm:$0x33 pattern:$0x76325410] }
  0xfe   : > { %2747 = vmatprep.mubr.msk.bf16.mxu0 %vm1937_vm0, %v3337_v25  ;;  %2749 = vmatprep.mubr.msk.bf16.mxu1 %vm1937_vm0, %v3337_v25 }
 0x100   : > { %2157 = vmatpush1.bf16.msra.mxu0 %v2538_v20  ;;  %2198 = vmatpush1.bf16.msra.mxu1 %v2540_v21  ;;  %v798_v20 = vld [vmem:[%s3343_s4 + $0x568] sm:$0xff]  ;;  %v2666_v21 = vcombine.low %v773_v9, %v781_v10  ;;  %v2559_v9 = vcombine.high %v663_v2, %v671_v3 }
 0x101   : > { %2158 = vmatprep.subr.bf16.mxu0 %v2555_v22  ;;  %2199 = vmatprep.subr.bf16.mxu1 %v2557_v23  ;;  %v2668_v22 = vcombine.low %v774_v11, %v782_v12  ;;  %v2683_v23 = vcombine.high %v789_v17, %v797_v18  ;;  %v2685_v26 = vcombine.high %v790_v19, %v798_v20  ;;  %v679_v11 = vld [vmem:[%s3343_s4 + $0x1b0] sm:$0xff] }
 0x102   : > { %v687_v12 = vld [vmem:[%s3343_s4 + $0x1f0] sm:$0xff] }
 0x104   : > { %2159 = vmatpush1.bf16.msra.mxu0 %v2554_v24  ;;  %2200 = vmatpush1.bf16.msra.mxu1 %v2556_v30  ;;  %v814_v24 = vld [vmem:[%s3343_s4 + $0x5e8] sm:$0xff]  ;;  %v2682_v30 = vcombine.low %v789_v17, %v797_v18  ;;  %v2575_v17 = vcombine.high %v679_v11, %v687_v12 }
 0x105   : > { %2160 = vmatprep.subr.bf16.mxu0 %v2571_v31  ;;  %2201 = vmatprep.subr.bf16.mxu1 %v2573_v32  ;;  %v2684_v31 = vcombine.low %v790_v19, %v798_v20  ;;  %v2699_v32 = vcombine.high %v805_v27, %v813_v28  ;;  %v2701_v33 = vcombine.high %v806_v29, %v814_v24  ;;  %v695_v19 = vld [vmem:[%s3343_s4 + $0x230] sm:$0xff] }
 0x106   : > { %v703_v20 = vld [vmem:[%s3343_s4 + $0x270] sm:$0xff] }
 0x108   : > { %2161 = vmatpush1.bf16.msra.mxu0 %v2570_v37  ;;  %2202 = vmatpush1.bf16.msra.mxu1 %v2572_v38  ;;  %v830_v37 = vld [vmem:[%s3343_s4 + $0x668] sm:$0xff]  ;;  %v2698_v38 = vcombine.low %v805_v27, %v813_v28  ;;  %v711_v28 = vld [vmem:[%s3343_s4 + $0x2b0] sm:$0xff] }
 0x109   : > { %2162 = vmatprep.subr.bf16.mxu0 %v2587_v39  ;;  %2203 = vmatprep.subr.bf16.mxu1 %v2589_v40  ;;  %v2700_v39 = vcombine.low %v806_v29, %v814_v24  ;;  %v2715_v40 = vcombine.high %v821_v34, %v829_v35  ;;  %v2717_v41 = vcombine.high %v822_v36, %v830_v37  ;;  %v719_v29 = vld [vmem:[%s3343_s4 + $0x2f0] sm:$0xff]  ;;  %v712_v24 = vld [vmem:[%s3343_s4 + $0x2b8] sm:$0xff] }
 0x10a   : > { %v727_v35 = vld [vmem:[%s3343_s4 + $0x330] sm:$0xff] }
 0x10c   : > { %2163 = vmatpush1.bf16.msra.mxu0 %v2586_v45  ;;  %2204 = vmatpush1.bf16.msra.mxu1 %v2588_v46  ;;  %v2716_v45 = vcombine.low %v822_v36, %v830_v37  ;;  %v2731_v46 = vcombine.high %v837_v42, %v837_v42  ;;  %v735_v36 = vld [vmem:[%s3343_s4 + $0x370] sm:$0xff]  ;;  %v728_v37 = vld [vmem:[%s3343_s4 + $0x338] sm:$0xff] }
 0x10d   : > { %2164 = vmatprep.subr.bf16.mxu0 %v2603_v47  ;;  %2205 = vmatprep.subr.bf16.mxu1 %v2605_v48  ;;  %v2730_v47 = vcombine.low %v837_v42, %v837_v42  ;;  %v2733_v48 = vcombine.high %v838_v43, %v838_v43  ;;  %v743_v43 = vld [vmem:[%s3343_s4 + $0x3b0] sm:$0xff] }
 0x110   : > { %2165 = vmatpush1.bf16.msra.mxu0 %v2602_v53  ;;  %2206 = vmatpush1.bf16.msra.mxu1 %v2604_v54  ;;  %v640_v53 = vld [vmem:[%s3343_s4 + $0x78] sm:$0xff]  ;;  %v1967_v54 = vsel %vm1941_vm1, %v2730_v47, 0  ;;  %v2622_v47 = vcombine.low %v727_v35, %v735_v36 }
 0x111   : > { %2166 = vmatprep.subr.bf16.mxu0 %v2619_v55  ;;  %2207 = vmatprep.subr.bf16.mxu1 %v2621_v56  ;;  %v2527_v55 = vcombine.high %v631_v50, %v639_v51  ;;  %v1973_v56 = vsel %vm1941_vm1, %v2732_v49, 0  ;;  %v2529_v57 = vcombine.high %v632_v52, %v640_v53 }
 0x114   : > { %2167 = vmatpush1.bf16.msra.mxu0 %v2618_v61  ;;  %2208 = vmatpush1.bf16.msra.mxu1 %v2620_v62  ;;  %v656_v61 = vld [vmem:[%s3343_s4 + $0xf8] sm:$0xff]  ;;  %v2526_v62 = vcombine.low %v631_v50, %v639_v51  ;;  %v759_v51 = vld [vmem:[%s3343_s4 + $0x430] sm:$0xff] }
 0x115   : > { %2168 = vmatprep.subr.bf16.mxu0 %v2635_v63  ;;  %2209 = vmatprep.subr.bf16.mxu1 %v2637_v0  ;;  %v2528_v63 = vcombine.low %v632_v52, %v640_v53  ;;  %v2543_v0 = vcombine.high %v647_v58, %v655_v59  ;;  %v2545_v1 = vcombine.high %v648_v60, %v656_v61  ;;  %v767_v52 = vld [vmem:[%s3343_s4 + $0x470] sm:$0xff]  ;;  %v760_v53 = vld [vmem:[%s3343_s4 + $0x438] sm:$0xff] }
 0x118   : > { %2169 = vmatpush1.bf16.msra.mxu0 %v2634_v5  ;;  %2210 = vmatpush1.bf16.msra.mxu1 %v2636_v6  ;;  %v664_v5 = vld [vmem:[%s3343_s4 + $0x138] sm:$0xff] }
 0x119   : > { %2170 = vmatprep.subr.bf16.mxu0 %v2651_v7  ;;  %2211 = vmatprep.subr.bf16.mxu1 %v2653_v8  ;;  %v672_v6 = vld [vmem:[%s3343_s4 + $0x178] sm:$0xff]  ;;  %v2542_v7 = vcombine.low %v647_v58, %v655_v59  ;;  %v2544_v8 = vcombine.low %v648_v60, %v656_v61  ;;  %v775_v59 = vld [vmem:[%s3343_s4 + $0x4b0] sm:$0xff] }
 0x11a   : > { %v2561_v10 = vcombine.high %v664_v5, %v672_v6  ;;  %v783_v60 = vld [vmem:[%s3343_s4 + $0x4f0] sm:$0xff]  ;;  %v776_v61 = vld [vmem:[%s3343_s4 + $0x4b8] sm:$0xff] }
 0x11c   : > { %2171 = vmatpush1.bf16.msra.mxu0 %v2650_v13  ;;  %2212 = vmatpush1.bf16.msra.mxu1 %v2652_v14  ;;  %v680_v13 = vld [vmem:[%s3343_s4 + $0x1b8] sm:$0xff] }
 0x11d   : > { %2172 = vmatprep.subr.bf16.mxu0 %v2667_v15  ;;  %2213 = vmatprep.subr.bf16.mxu1 %v2669_v16  ;;  %v688_v14 = vld [vmem:[%s3343_s4 + $0x1f8] sm:$0xff]  ;;  %v2558_v15 = vcombine.low %v663_v2, %v671_v3  ;;  %v2560_v16 = vcombine.low %v664_v5, %v672_v6  ;;  %v791_v3 = vld [vmem:[%s3343_s4 + $0x530] sm:$0xff] }
 0x11e   : > { %v2577_v18 = vcombine.high %v680_v13, %v688_v14  ;;  %v799_v5 = vld [vmem:[%s3343_s4 + $0x570] sm:$0xff]  ;;  %v792_v6 = vld [vmem:[%s3343_s4 + $0x538] sm:$0xff] }
 0x120   : > { %2173 = vmatpush1.bf16.msra.mxu0 %v2666_v21  ;;  %2214 = vmatpush1.bf16.msra.mxu1 %v2668_v22  ;;  %v696_v21 = vld [vmem:[%s3343_s4 + $0x238] sm:$0xff] }
 0x121   : > { %2174 = vmatprep.subr.bf16.mxu0 %v2683_v23  ;;  %2215 = vmatprep.subr.bf16.mxu1 %v2685_v26  ;;  %v704_v22 = vld [vmem:[%s3343_s4 + $0x278] sm:$0xff]  ;;  %v2574_v23 = vcombine.low %v679_v11, %v687_v12  ;;  %v2591_v26 = vcombine.high %v695_v19, %v703_v20  ;;  %v807_v12 = vld [vmem:[%s3343_s4 + $0x5b0] sm:$0xff] }
 0x122   : > { %v2593_v27 = vcombine.high %v696_v21, %v704_v22 }
 0x124   : > { %2175 = vmatpush1.bf16.msra.mxu0 %v2682_v30  ;;  %2216 = vmatpush1.bf16.msra.mxu1 %v2684_v31  ;;  %v720_v30 = vld [vmem:[%s3343_s4 + $0x2f8] sm:$0xff]  ;;  %v2590_v31 = vcombine.low %v695_v19, %v703_v20  ;;  %v823_v20 = vld [vmem:[%s3343_s4 + $0x630] sm:$0xff] }
 0x125   : > { %2176 = vmatprep.subr.bf16.mxu0 %v2699_v32  ;;  %2217 = vmatprep.subr.bf16.mxu1 %v2701_v33  ;;  %v2592_v32 = vcombine.low %v696_v21, %v704_v22  ;;  %v2607_v33 = vcombine.high %v711_v28, %v719_v29  ;;  %v2609_v34 = vcombine.high %v712_v24, %v720_v30  ;;  %v831_v21 = vld [vmem:[%s3343_s4 + $0x670] sm:$0xff]  ;;  %v824_v22 = vld [vmem:[%s3343_s4 + $0x638] sm:$0xff] }
 0x128   : > { %2177 = vmatpush1.bf16.msra.mxu0 %v2698_v38  ;;  %2218 = vmatpush1.bf16.msra.mxu1 %v2700_v39  ;;  %v736_v38 = vld [vmem:[%s3343_s4 + $0x378] sm:$0xff]  ;;  %v2606_v39 = vcombine.low %v711_v28, %v719_v29  ;;  %v839_v29 = vld [vmem:[%s3343_s4 + $0x6b0] sm:$0xff] }
 0x129   : > { %2178 = vmatprep.subr.bf16.mxu0 %v2715_v40  ;;  %2219 = vmatprep.subr.bf16.mxu1 %v2717_v41  ;;  %v2608_v40 = vcombine.low %v712_v24, %v720_v30  ;;  %v2623_v41 = vcombine.high %v727_v35, %v735_v36  ;;  %v2625_v42 = vcombine.high %v728_v37, %v736_v38  ;;  %v840_v24 = vld [vmem:[%s3343_s4 + $0x6b8] sm:$0xff] }
 0x12a   : > { %v2718_v30 = vcombine.low %v823_v20, %v831_v21  ;;  %v2736_v35 = vcombine.low %v840_v24, %v840_v24 }
 0x12c   : > { %2179 = vmatpush1.bf16.msra.mxu0 %v2714_v44  ;;  %2220 = vmatpush1.bf16.msra.mxu1 %v2716_v45  ;;  %v751_v44 = vld [vmem:[%s3343_s4 + $0x3f0] sm:$0xff]  ;;  %v744_v45 = vld [vmem:[%s3343_s4 + $0x3b8] sm:$0xff] }
 0x12d   : > { %2746 = vmatprep.subr.msk.bf16.mxu0 %vm1941_vm1, %v2731_v46  ;;  %2748 = vmatprep.subr.msk.bf16.mxu1 %vm1941_vm1, %v2733_v48  ;;  %v752_v46 = vld [vmem:[%s3343_s4 + $0x3f8] sm:$0xff]  ;;  %v2624_v48 = vcombine.low %v728_v37, %v736_v38  ;;  %v2639_v49 = vcombine.high %v743_v43, %v751_v44  ;;  %v1985_v37 = vsel %vm1941_vm1, %v2736_v35, 0  ;;  %v2836_v38 = vmov 1983009808  }
 0x12e   : > { %v2641_v50 = vcombine.high %v744_v45, %v752_v46 }
 0x130   : > { %2181 = vmatpush1.bf16.msra.mxu0 %v1967_v54  ;;  %2222 = vmatpush1.bf16.msra.mxu1 %v1973_v56  ;;  %v768_v54 = vld [vmem:[%s3343_s4 + $0x478] sm:$0xff]  ;;  %v2640_v56 = vcombine.low %v744_v45, %v752_v46 }
 0x131   : > { %2236 = vmatprep.subr.bf16.mxu0 %v2527_v55  ;;  %2277 = vmatprep.subr.bf16.mxu1 %v2529_v57  ;;  %v2638_v55 = vcombine.low %v743_v43, %v751_v44  ;;  %v2655_v57 = vcombine.high %v759_v51, %v767_v52  ;;  %v2657_v58 = vcombine.high %v760_v53, %v768_v54 }
 0x133   : > { %2187 = vmatmul.mubr.bf16.vlgmr.msra.gmra.mrb[8].mxu0 %v3547_v4  ;;  %2228 = vmatmul.mubr.bf16.vlgmr.msra.gmra.mrb[8].mxu1 %v3547_v4 }
 0x134   : > { %2237 = vmatpush1.bf16.msra.mxu0 %v2526_v62  ;;  %2278 = vmatpush1.bf16.msra.mxu1 %v2528_v63  ;;  %v784_v62 = vld [vmem:[%s3343_s4 + $0x4f8] sm:$0xff]  ;;  %v2654_v63 = vcombine.low %v759_v51, %v767_v52 }
 0x135   : > { %2238 = vmatprep.subr.bf16.mxu0 %v2543_v0  ;;  %2279 = vmatprep.subr.bf16.mxu1 %v2545_v1  ;;  %v2656_v0 = vcombine.low %v760_v53, %v768_v54  ;;  %v2671_v1 = vcombine.high %v775_v59, %v783_v60  ;;  %v2673_v2 = vcombine.high %v776_v61, %v784_v62 }
 0x136   : > { %2751 = vmatprep.mubr.msk.bf16.mxu0 %vm1937_vm0, %v3337_v25  ;;  %2753 = vmatprep.mubr.msk.bf16.mxu1 %vm1937_vm0, %v3337_v25  ;;  %v2576_v25 = vcombine.low %v680_v13, %v688_v14  ;;  %v815_v13 = vld [vmem:[%s3343_s4 + $0x5f0] sm:$0xff]  ;;  %v808_v14 = vld [vmem:[%s3343_s4 + $0x5b8] sm:$0xff] }
 0x138   : > { %2239 = vmatpush1.bf16.msra.mxu0 %v2542_v7  ;;  %2280 = vmatpush1.bf16.msra.mxu1 %v2544_v8  ;;  %v800_v7 = vld [vmem:[%s3343_s4 + $0x578] sm:$0xff]  ;;  %v2670_v8 = vcombine.low %v775_v59, %v783_v60 }
 0x139   : > { %2240 = vmatprep.subr.bf16.mxu0 %v2559_v9  ;;  %2281 = vmatprep.subr.bf16.mxu1 %v2561_v10  ;;  %v2672_v9 = vcombine.low %v776_v61, %v784_v62  ;;  %v2687_v10 = vcombine.high %v791_v3, %v799_v5  ;;  %v2689_v11 = vcombine.high %v792_v6, %v800_v7 }
 0x13c   : > { %2241 = vmatpush1.bf16.msra.mxu0 %v2558_v15  ;;  %2282 = vmatpush1.bf16.msra.mxu1 %v2560_v16  ;;  %v816_v15 = vld [vmem:[%s3343_s4 + $0x5f8] sm:$0xff]  ;;  %v2686_v16 = vcombine.low %v791_v3, %v799_v5 }
 0x13d   : > { %2242 = vmatprep.subr.bf16.mxu0 %v2575_v17  ;;  %2283 = vmatprep.subr.bf16.mxu1 %v2577_v18  ;;  %v2688_v17 = vcombine.low %v792_v6, %v800_v7  ;;  %v2703_v18 = vcombine.high %v807_v12, %v815_v13  ;;  %v2705_v19 = vcombine.high %v808_v14, %v816_v15 }
 0x140   : > { %2243 = vmatpush1.bf16.msra.mxu0 %v2574_v23  ;;  %2284 = vmatpush1.bf16.msra.mxu1 %v2576_v25  ;;  %v832_v23 = vld [vmem:[%s3343_s4 + $0x678] sm:$0xff]  ;;  %v2702_v25 = vcombine.low %v807_v12, %v815_v13 }
 0x141   : > { %2244 = vmatprep.subr.bf16.mxu0 %v2591_v26  ;;  %2285 = vmatprep.subr.bf16.mxu1 %v2593_v27  ;;  %v2704_v26 = vcombine.low %v808_v14, %v816_v15  ;;  %v2719_v27 = vcombine.high %v823_v20, %v831_v21  ;;  %v2721_v28 = vcombine.high %v824_v22, %v832_v23 }
 0x144   : > { %2245 = vmatpush1.bf16.msra.mxu0 %v2590_v31  ;;  %2286 = vmatpush1.bf16.msra.mxu1 %v2592_v32  ;;  %v2720_v31 = vcombine.low %v824_v22, %v832_v23  ;;  %v2735_v32 = vcombine.high %v839_v29, %v839_v29 }
 0x145   : > { %2246 = vmatprep.subr.bf16.mxu0 %v2607_v33  ;;  %2287 = vmatprep.subr.bf16.mxu1 %v2609_v34  ;;  %v2734_v33 = vcombine.low %v839_v29, %v839_v29  ;;  %v2737_v34 = vcombine.high %v840_v24, %v840_v24 }
 0x147   : > { %v1979_v36 = vsel %vm1941_vm1, %v2734_v33, 0 }
 0x148   : > { %2247 = vmatpush1.bf16.msra.mxu0 %v2606_v39  ;;  %2288 = vmatpush1.bf16.msra.mxu1 %v2608_v40  ;;  %v2369_v39 = vunpack.c.l.s4 %v2836_v38  ;;  %v2371_v40 = vlaneseq }
 0x149   : > { %2248 = vmatprep.subr.bf16.mxu0 %v2623_v41  ;;  %2289 = vmatprep.subr.bf16.mxu1 %v2625_v42  ;;  %v3607_v41 = vpop.permute.xlu0 %844 }
 0x14a   : > { %v2370_v43 = vunpack.c.0.s8 %v2369_v39  ;;  %v2372_v44 = vshrl.u32 %v2371_v40, 7 }
 0x14c   : > { %2249 = vmatpush1.bf16.msra.mxu0 %v2622_v47  ;;  %2290 = vmatpush1.bf16.msra.mxu1 %v2624_v48 }
 0x14d   : > { %2250 = vmatprep.subr.bf16.mxu0 %v2639_v49  ;;  %2291 = vmatprep.subr.bf16.mxu1 %v2641_v50 }
 0x150   : > { %2251 = vmatpush1.bf16.msra.mxu0 %v2638_v55  ;;  %2292 = vmatpush1.bf16.msra.mxu1 %v2640_v56  ;;  %v3613_v56 = vsub.s32 %v2370_v43, %v2372_v44 }
 0x151   : > { %2252 = vmatprep.subr.bf16.mxu0 %v2655_v57  ;;  %2293 = vmatprep.subr.bf16.mxu1 %v2657_v58 }
 0x154   : > { %2253 = vmatpush1.bf16.msra.mxu0 %v2654_v63  ;;  %2294 = vmatpush1.bf16.msra.mxu1 %v2656_v0 }
 0x155   : > { %2254 = vmatprep.subr.bf16.mxu0 %v2671_v1  ;;  %2295 = vmatprep.subr.bf16.mxu1 %v2673_v2 }
 0x158   : > { %2255 = vmatpush1.bf16.msra.mxu0 %v2670_v8  ;;  %2296 = vmatpush1.bf16.msra.mxu1 %v2672_v9 }
 0x159   : > { %2256 = vmatprep.subr.bf16.mxu0 %v2687_v10  ;;  %2297 = vmatprep.subr.bf16.mxu1 %v2689_v11 }
 0x15c   : > { %2257 = vmatpush1.bf16.msra.mxu0 %v2686_v16  ;;  %2298 = vmatpush1.bf16.msra.mxu1 %v2688_v17 }
 0x15d   : > { %2258 = vmatprep.subr.bf16.mxu0 %v2703_v18  ;;  %2299 = vmatprep.subr.bf16.mxu1 %v2705_v19 }
 0x160   : > { %2259 = vmatpush1.bf16.msra.mxu0 %v2702_v25  ;;  %2300 = vmatpush1.bf16.msra.mxu1 %v2704_v26 }
 0x161   : > { %2260 = vmatprep.subr.bf16.mxu0 %v2719_v27  ;;  %2301 = vmatprep.subr.bf16.mxu1 %v2721_v28 }
 0x164   : > { %2261 = vmatpush1.bf16.msra.mxu0 %v2718_v30  ;;  %2302 = vmatpush1.bf16.msra.mxu1 %v2720_v31 }
 0x165   : > { %2750 = vmatprep.subr.msk.bf16.mxu0 %vm1941_vm1, %v2735_v32  ;;  %2752 = vmatprep.subr.msk.bf16.mxu1 %vm1941_vm1, %v2737_v34 }
 0x168   : > { %2263 = vmatpush1.bf16.msra.mxu0 %v1979_v36  ;;  %2304 = vmatpush1.bf16.msra.mxu1 %v1985_v37 }
 0x16b   : > { %2269 = vmatmul.mubr.bf16.vlgmr.msra.gmra.mrb[12].mxu0 %v3547_v4  ;;  %2310 = vmatmul.mubr.bf16.vlgmr.msra.gmra.mrb[12].mxu1 %v3547_v4 }
 0x196   : > { %v2024_v42 = vpop.f32.mrb[0].mxu0  ;;  %v2065_v45 = vpop.f32.mrb[0].mxu1 }
 0x197   : > { %v2025_v46 = vadd.f32 %v2024_v42, %v3607_v41  ;;  %v2026_v47 = vpop.f32.mrb[1].mxu0  ;;  %v2066_v49 = vadd.f32 %v2065_v45, %v3607_v41  ;;  %v2067_v4 = vpop.f32.mrb[1].mxu1 }
 0x198   : > { %v2027_v48 = vadd.f32 %v2026_v47, %v3607_v41  ;;  %v2028_v50 = vpop.f32.mrb[2].mxu0  ;;  %v2068_v52 = vadd.f32 %v2067_v4, %v3607_v41  ;;  %v2069_v53 = vpop.f32.mrb[2].mxu1 }
 0x199   : > { %v2318_v51 = vmax.f32 %v2025_v46, 0.0  ;;  %v2029_v54 = vpop.f32.mrb[3].mxu0  ;;  %v2320_v57 = vmax.f32 %v2066_v49, 0.0  ;;  %v2070_v58 = vpop.f32.mrb[3].mxu1 }
 0x19a   : > { %v2319_v55 = vmax.f32 %v2027_v48, 0.0  ;;  %v2321_v59 = vmax.f32 %v2068_v52, 0.0 }
 0x19c   : > { %v2754_v60 = vpack.c.bf16 %v2319_v55, %v2318_v51  ;;  %v2755_v61 = vpack.c.bf16 %v2321_v59, %v2320_v57 }
 0x19e   : > { %v2374_v62 = vrot.slane %v2754_v60, %v3613_v56  ;;  %v2381_v63 = vrot.slane %v2755_v61, %v3613_v56 }
 0x1a0   : > { %v2382_v0 = vcombine.low %v2374_v62, %v2381_v63 }
 0x1a2   : > { %2438 = vst [vmem:[%s3620_s14] sm:$0xff] %v2382_v0 }
 0x1ce   : > { %v2106_v1 = vpop.f32.mrb[4].mxu0  ;;  %v2147_v3 = vpop.f32.mrb[4].mxu1 }
 0x1cf   : > { %v2107_v2 = vadd.f32 %v2106_v1, %v3607_v41  ;;  %v2108_v5 = vpop.f32.mrb[5].mxu0  ;;  %v2148_v6 = vadd.f32 %v2147_v3, %v3607_v41  ;;  %v2149_v8 = vpop.f32.mrb[5].mxu1 }
 0x1d0   : > { %v2109_v7 = vadd.f32 %v2108_v5, %v3607_v41  ;;  %v2110_v9 = vpop.f32.mrb[6].mxu0  ;;  %v2150_v11 = vadd.f32 %v2149_v8, %v3607_v41  ;;  %v2151_v12 = vpop.f32.mrb[6].mxu1 }
 0x1d1   : > { %v2322_v10 = vmax.f32 %v2107_v2, 0.0  ;;  %v2111_v13 = vpop.f32.mrb[7].mxu0  ;;  %v2324_v14 = vmax.f32 %v2148_v6, 0.0  ;;  %v2152_v16 = vpop.f32.mrb[7].mxu1 }
 0x1d2   : > { %v2323_v15 = vmax.f32 %v2109_v7, 0.0  ;;  %v2325_v17 = vmax.f32 %v2150_v11, 0.0 }
 0x1d4   : > { %v2756_v18 = vpack.c.bf16 %v2323_v15, %v2322_v10  ;;  %v2757_v19 = vpack.c.bf16 %v2325_v17, %v2324_v14 }
 0x1d6   : > { %v2391_v20 = vrot.slane %v2756_v18, %v3613_v56  ;;  %v2398_v21 = vrot.slane %v2757_v19, %v3613_v56 }
 0x1d8   : > { %v2399_v22 = vcombine.low %v2391_v20, %v2398_v21 }
 0x1da   : > { %2439 = vst [vmem:[%s3620_s14 + $0x8] sm:$0xff] %v2399_v22 }
 0x206   : > { %v2188_v23 = vpop.f32.mrb[8].mxu0  ;;  %v2229_v26 = vpop.f32.mrb[8].mxu1 }
 0x207   : > { %v2189_v25 = vadd.f32 %v2188_v23, %v3607_v41  ;;  %v2190_v27 = vpop.f32.mrb[9].mxu0  ;;  %v2230_v28 = vadd.f32 %v2229_v26, %v3607_v41  ;;  %v2231_v24 = vpop.f32.mrb[9].mxu1 }
 0x208   : > { %v2191_v29 = vadd.f32 %v2190_v27, %v3607_v41  ;;  %v2192_v30 = vpop.f32.mrb[10].mxu0  ;;  %v2232_v32 = vadd.f32 %v2231_v24, %v3607_v41  ;;  %v2233_v33 = vpop.f32.mrb[10].mxu1 }
 0x209   : > { %v2326_v31 = vmax.f32 %v2189_v25, 0.0  ;;  %v2193_v34 = vpop.f32.mrb[11].mxu0  ;;  %v2328_v35 = vmax.f32 %v2230_v28, 0.0  ;;  %v2234_v37 = vpop.f32.mrb[11].mxu1 }
 0x20a   : > { %v2327_v36 = vmax.f32 %v2191_v29, 0.0  ;;  %v2329_v38 = vmax.f32 %v2232_v32, 0.0 }
 0x20c   : > { %v2758_v39 = vpack.c.bf16 %v2327_v36, %v2326_v31  ;;  %v2759_v40 = vpack.c.bf16 %v2329_v38, %v2328_v35 }
 0x20e   : > { %v2408_v42 = vrot.slane %v2758_v39, %v3613_v56  ;;  %v2415_v43 = vrot.slane %v2759_v40, %v3613_v56 }
 0x210   : > { %v2416_v44 = vcombine.low %v2408_v42, %v2415_v43 }
 0x212   : > { %2440 = vst [vmem:[%s3620_s14 + $0x10] sm:$0xff] %v2416_v44 }
 0x23e   : > { %v2270_v45 = vpop.f32.mrb[12].mxu0  ;;  %v2311_v47 = vpop.f32.mrb[12].mxu1 }
 0x23f   : > { %v2271_v46 = vadd.f32 %v2270_v45, %v3607_v41  ;;  %v2272_v48 = vpop.f32.mrb[13].mxu0  ;;  %v2312_v49 = vadd.f32 %v2311_v47, %v3607_v41  ;;  %v2313_v50 = vpop.f32.mrb[13].mxu1 }
 0x240   : > { %v2273_v4 = vadd.f32 %v2272_v48, %v3607_v41  ;;  %v2274_v51 = vpop.f32.mrb[14].mxu0  ;;  %v2314_v53 = vadd.f32 %v2313_v50, %v3607_v41  ;;  %v2315_v54 = vpop.f32.mrb[14].mxu1 }
 0x241   : > { %v2330_v52 = vmax.f32 %v2271_v46, 0.0  ;;  %v2275_v55 = vpop.f32.mrb[15].mxu0  ;;  %v2332_v57 = vmax.f32 %v2312_v49, 0.0  ;;  %v2316_v59 = vpop.f32.mrb[15].mxu1 }
 0x242   : > { %v2331_v58 = vmax.f32 %v2273_v4, 0.0  ;;  %v2333_v60 = vmax.f32 %v2314_v53, 0.0 }
 0x244   : > { %v2760_v61 = vpack.c.bf16 %v2331_v58, %v2330_v52  ;;  %v2761_v62 = vpack.c.bf16 %v2333_v60, %v2332_v57 }
 0x246   : > { %v2425_v63 = vrot.slane %v2760_v61, %v3613_v56  ;;  %v2432_v0 = vrot.slane %v2761_v62, %v3613_v56 }
 0x248   : > { %v2433_v1 = vcombine.low %v2425_v63, %v2432_v0 }
 0x24a   : > { %2441 = vst [vmem:[%s3620_s14 + $0x18] sm:$0xff] %v2433_v1 }
 0x24b PF: > { %p10_p9 = scmp.ge.s32.totalorder %s2874_s16, 6   ;;  %s3658_s12 = smov %s2829_s13 }
 0x24c   : > { %s3659_s13 = smov %s2883_s19  ;;  %s3660_s14 = smov %s2874_s16 }
 0x24d   :  { %12 = sbr.rel (!%p10_p9) target bundleno = 2 (0x2), region = 90 }

// kernel: unet_confidnet_forward.22
= control target key start
LH: loop header
LB: loop body
LE: loop exit
PB: predicated region body
PF: predicated region fallthrough
CT: control target
= control target key end

     0   :  { %s2825_s12 = smov 0   ;;  %s2827_s13 = smov 0   ;;  %s3615_s0 = inlined_call_operand.vmem [shape: bf16[8,216], index: 0, kind: input, shape index: {}]   ;;  %s3616_s1 = inlined_call_operand.vmem [shape: bf16[216,8192], index: 1, kind: input, shape index: {}]   ;;  %s3617_s2 = inlined_call_operand.vmem [shape: f32[8,1], index: 2, kind: input, shape index: {}]   ;;  %s3618_s3 = inlined_call_operand.vmem [shape: bf16[8,8192], index: 3, kind: output, shape index: {}]  }
   0x1   :  { %s2829_s14 = smov 0  }
   0x2 LB: > { %s2464_s15 = sadd.s32 4294967295, %s2802_s14   ;;  %s2842_s16 = sadd.s32 1, %s2802_s14   ;;  %s2802_s14 = sphi %s2829_s14, %s3621_s14   ;;  %s2798_s13 = sphi %s2827_s13, %s3620_s13   ;;  %s2794_s12 = sphi %s2825_s12, %s3619_s12  }
   0x3   : > { %s38_s17 = ssub.s32 %s2802_s14, %s2842_s16  ;;  %s41_s18 = sadd.s32 1, %s2798_s13 }
   0x4   : > { %p39_p0 = scmp.eq.s32.totalorder %s38_s17, 0  ;;  %p48_p1 = scmp.ne.s32.totalorder %s2798_s13, %s2794_s12 }
   0x5   : > { %p49_p2 = scmp.eq.s32.totalorder %s2802_s14, 0  ;;  %p2467_p4 = scmp.ge.s32.totalorder %s2802_s14, 4 }
   0x6   : > { %s2851_s19 = scalar_select %p39_p0, %s2798_s13, %s41_s18  }
   0x7   : > { %p50_p3 = por %p49_p2, %p48_p1  ;;  %127 = sbr.rel (%p2467_p4) target bundleno = 127 (0x7f), region = 24 }
   0xe   : > { %130 = sbr.rel (!%p50_p3) target bundleno = 127 (0x7f), region = 28  ;;  %s132_s20 = sand.u32 (%p50_p3), 1, %s2798_s13  }
   0xf   : > { %s2725_s21 = sshll.u32 (%p50_p3), %s2802_s14, 6  ;;  %s2734_s22 = smul.u32 (%p50_p3), 1728, %s132_s20 }
  0x10   : > { %s2859_s25 = scalar_lea.vmem (%p50_p3), %s3616_s1, %s2725_s21 }
  0x11   : > { %v150_v0 = vld [vmem:[%s2859_s25] sm:$0xff] (%p50_p3)  ;;  %v152_v1 = vld [vmem:[%s2859_s25 + $0x8] sm:$0xff] (%p50_p3)  ;;  %v154_v2 = vld [vmem:[%s2859_s25 + $0x10] sm:$0xff] (%p50_p3)  ;;  %s2867_s26 = scalar_lea.vmem (%p50_p3), [#allocation2], %s2734_s22 }
  0x12   : > { %v156_v3 = vld [vmem:[%s2859_s25 + $0x18] sm:$0xff] (%p50_p3)  ;;  %v158_v4 = vld [vmem:[%s2859_s25 + $0x20] sm:$0xff] (%p50_p3)  ;;  %v160_v5 = vld [vmem:[%s2859_s25 + $0x28] sm:$0xff] (%p50_p3)  ;;  %151 = vst [vmem:[%s2867_s26] sm:$0xff] (%p50_p3), %v150_v0 }
  0x13   : > { %153 = vst [vmem:[%s2867_s26 + $0x8] sm:$0xff] (%p50_p3), %v152_v1  ;;  %155 = vst [vmem:[%s2867_s26 + $0x10] sm:$0xff] (%p50_p3), %v154_v2  ;;  %v162_v6 = vld [vmem:[%s2859_s25 + $0x30] sm:$0xff] (%p50_p3)  ;;  %v164_v7 = vld [vmem:[%s2859_s25 + $0x38] sm:$0xff] (%p50_p3) }
  0x14   : > { %157 = vst [vmem:[%s2867_s26 + $0x18] sm:$0xff] (%p50_p3), %v156_v3  ;;  %159 = vst [vmem:[%s2867_s26 + $0x20] sm:$0xff] (%p50_p3), %v158_v4  ;;  %v166_v8 = vld [vmem:[%s2859_s25 + $0x100] sm:$0xff] (%p50_p3)  ;;  %v168_v9 = vld [vmem:[%s2859_s25 + $0x108] sm:$0xff] (%p50_p3) }
  0x15   : > { %161 = vst [vmem:[%s2867_s26 + $0x28] sm:$0xff] %v160_v5  ;;  %163 = vst [vmem:[%s2867_s26 + $0x30] sm:$0xff] %v162_v6  ;;  %v170_v10 = vld [vmem:[%s2859_s25 + $0x110] sm:$0xff]  ;;  %v172_v11 = vld [vmem:[%s2859_s25 + $0x118] sm:$0xff] }
  0x16   : > { %165 = vst [vmem:[%s2867_s26 + $0x38] sm:$0xff] %v164_v7  ;;  %167 = vst [vmem:[%s2867_s26 + $0x40] sm:$0xff] %v166_v8  ;;  %v174_v12 = vld [vmem:[%s2859_s25 + $0x120] sm:$0xff]  ;;  %v176_v13 = vld [vmem:[%s2859_s25 + $0x128] sm:$0xff] }
  0x17   : > { %169 = vst [vmem:[%s2867_s26 + $0x48] sm:$0xff] %v168_v9  ;;  %171 = vst [vmem:[%s2867_s26 + $0x50] sm:$0xff] %v170_v10  ;;  %v178_v14 = vld [vmem:[%s2859_s25 + $0x130] sm:$0xff]  ;;  %v180_v15 = vld [vmem:[%s2859_s25 + $0x138] sm:$0xff] }
  0x18   : > { %173 = vst [vmem:[%s2867_s26 + $0x58] sm:$0xff] %v172_v11  ;;  %175 = vst [vmem:[%s2867_s26 + $0x60] sm:$0xff] %v174_v12  ;;  %v182_v16 = vld [vmem:[%s2859_s25 + $0x200] sm:$0xff]  ;;  %v184_v17 = vld [vmem:[%s2859_s25 + $0x208] sm:$0xff] }
  0x19   : > { %177 = vst [vmem:[%s2867_s26 + $0x68] sm:$0xff] %v176_v13  ;;  %179 = vst [vmem:[%s2867_s26 + $0x70] sm:$0xff] %v178_v14  ;;  %v186_v18 = vld [vmem:[%s2859_s25 + $0x210] sm:$0xff]  ;;  %v188_v19 = vld [vmem:[%s2859_s25 + $0x218] sm:$0xff] }
  0x1a   : > { %181 = vst [vmem:[%s2867_s26 + $0x78] sm:$0xff] %v180_v15  ;;  %183 = vst [vmem:[%s2867_s26 + $0x80] sm:$0xff] %v182_v16  ;;  %v190_v20 = vld [vmem:[%s2859_s25 + $0x220] sm:$0xff]  ;;  %v192_v21 = vld [vmem:[%s2859_s25 + $0x228] sm:$0xff] }
  0x1b   : > { %185 = vst [vmem:[%s2867_s26 + $0x88] sm:$0xff] %v184_v17  ;;  %187 = vst [vmem:[%s2867_s26 + $0x90] sm:$0xff] %v186_v18  ;;  %v194_v22 = vld [vmem:[%s2859_s25 + $0x230] sm:$0xff]  ;;  %v196_v23 = vld [vmem:[%s2859_s25 + $0x238] sm:$0xff] }
  0x1c   : > { %189 = vst [vmem:[%s2867_s26 + $0x98] sm:$0xff] %v188_v19  ;;  %191 = vst [vmem:[%s2867_s26 + $0xa0] sm:$0xff] %v190_v20  ;;  %v198_v24 = vld [vmem:[%s2859_s25 + $0x300] sm:$0xff]  ;;  %v200_v25 = vld [vmem:[%s2859_s25 + $0x308] sm:$0xff] }
  0x1d   : > { %193 = vst [vmem:[%s2867_s26 + $0xa8] sm:$0xff] %v192_v21  ;;  %195 = vst [vmem:[%s2867_s26 + $0xb0] sm:$0xff] %v194_v22  ;;  %v202_v26 = vld [vmem:[%s2859_s25 + $0x310] sm:$0xff]  ;;  %v204_v27 = vld [vmem:[%s2859_s25 + $0x318] sm:$0xff] }
  0x1e   : > { %197 = vst [vmem:[%s2867_s26 + $0xb8] sm:$0xff] %v196_v23  ;;  %199 = vst [vmem:[%s2867_s26 + $0xc0] sm:$0xff] %v198_v24  ;;  %v206_v28 = vld [vmem:[%s2859_s25 + $0x320] sm:$0xff]  ;;  %v208_v29 = vld [vmem:[%s2859_s25 + $0x328] sm:$0xff] }
  0x1f   : > { %201 = vst [vmem:[%s2867_s26 + $0xc8] sm:$0xff] %v200_v25  ;;  %203 = vst [vmem:[%s2867_s26 + $0xd0] sm:$0xff] %v202_v26  ;;  %v210_v30 = vld [vmem:[%s2859_s25 + $0x330] sm:$0xff]  ;;  %v212_v31 = vld [vmem:[%s2859_s25 + $0x338] sm:$0xff] }
  0x20   : > { %205 = vst [vmem:[%s2867_s26 + $0xd8] sm:$0xff] %v204_v27  ;;  %207 = vst [vmem:[%s2867_s26 + $0xe0] sm:$0xff] %v206_v28  ;;  %v214_v32 = vld [vmem:[%s2859_s25 + $0x400] sm:$0xff]  ;;  %v216_v33 = vld [vmem:[%s2859_s25 + $0x408] sm:$0xff] }
  0x21   : > { %209 = vst [vmem:[%s2867_s26 + $0xe8] sm:$0xff] %v208_v29  ;;  %211 = vst [vmem:[%s2867_s26 + $0xf0] sm:$0xff] %v210_v30  ;;  %v218_v34 = vld [vmem:[%s2859_s25 + $0x410] sm:$0xff]  ;;  %v220_v35 = vld [vmem:[%s2859_s25 + $0x418] sm:$0xff] }
  0x22   : > { %213 = vst [vmem:[%s2867_s26 + $0xf8] sm:$0xff] %v212_v31  ;;  %215 = vst [vmem:[%s2867_s26 + $0x100] sm:$0xff] %v214_v32  ;;  %v222_v36 = vld [vmem:[%s2859_s25 + $0x420] sm:$0xff]  ;;  %v224_v37 = vld [vmem:[%s2859_s25 + $0x428] sm:$0xff] }
  0x23   : > { %217 = vst [vmem:[%s2867_s26 + $0x108] sm:$0xff] %v216_v33  ;;  %219 = vst [vmem:[%s2867_s26 + $0x110] sm:$0xff] %v218_v34  ;;  %v226_v38 = vld [vmem:[%s2859_s25 + $0x430] sm:$0xff]  ;;  %v228_v39 = vld [vmem:[%s2859_s25 + $0x438] sm:$0xff] }
  0x24   : > { %221 = vst [vmem:[%s2867_s26 + $0x118] sm:$0xff] %v220_v35  ;;  %223 = vst [vmem:[%s2867_s26 + $0x120] sm:$0xff] %v222_v36  ;;  %v230_v40 = vld [vmem:[%s2859_s25 + $0x500] sm:$0xff]  ;;  %v232_v41 = vld [vmem:[%s2859_s25 + $0x508] sm:$0xff] }
  0x25   : > { %225 = vst [vmem:[%s2867_s26 + $0x128] sm:$0xff] %v224_v37  ;;  %227 = vst [vmem:[%s2867_s26 + $0x130] sm:$0xff] %v226_v38  ;;  %v234_v42 = vld [vmem:[%s2859_s25 + $0x510] sm:$0xff]  ;;  %v236_v43 = vld [vmem:[%s2859_s25 + $0x518] sm:$0xff] }
  0x26   : > { %229 = vst [vmem:[%s2867_s26 + $0x138] sm:$0xff] %v228_v39  ;;  %231 = vst [vmem:[%s2867_s26 + $0x140] sm:$0xff] %v230_v40  ;;  %v238_v44 = vld [vmem:[%s2859_s25 + $0x520] sm:$0xff]  ;;  %v240_v45 = vld [vmem:[%s2859_s25 + $0x528] sm:$0xff] }
  0x27   : > { %233 = vst [vmem:[%s2867_s26 + $0x148] sm:$0xff] %v232_v41  ;;  %235 = vst [vmem:[%s2867_s26 + $0x150] sm:$0xff] %v234_v42  ;;  %v242_v46 = vld [vmem:[%s2859_s25 + $0x530] sm:$0xff]  ;;  %v244_v47 = vld [vmem:[%s2859_s25 + $0x538] sm:$0xff] }
  0x28   : > { %237 = vst [vmem:[%s2867_s26 + $0x158] sm:$0xff] %v236_v43  ;;  %239 = vst [vmem:[%s2867_s26 + $0x160] sm:$0xff] %v238_v44  ;;  %v246_v48 = vld [vmem:[%s2859_s25 + $0x600] sm:$0xff]  ;;  %v248_v49 = vld [vmem:[%s2859_s25 + $0x608] sm:$0xff] }
  0x29   : > { %241 = vst [vmem:[%s2867_s26 + $0x168] sm:$0xff] %v240_v45  ;;  %243 = vst [vmem:[%s2867_s26 + $0x170] sm:$0xff] %v242_v46  ;;  %v250_v50 = vld [vmem:[%s2859_s25 + $0x610] sm:$0xff]  ;;  %v252_v51 = vld [vmem:[%s2859_s25 + $0x618] sm:$0xff] }
  0x2a   : > { %245 = vst [vmem:[%s2867_s26 + $0x178] sm:$0xff] %v244_v47  ;;  %247 = vst [vmem:[%s2867_s26 + $0x180] sm:$0xff] %v246_v48  ;;  %v254_v52 = vld [vmem:[%s2859_s25 + $0x620] sm:$0xff]  ;;  %v256_v53 = vld [vmem:[%s2859_s25 + $0x628] sm:$0xff] }
  0x2b   : > { %249 = vst [vmem:[%s2867_s26 + $0x188] sm:$0xff] %v248_v49  ;;  %251 = vst [vmem:[%s2867_s26 + $0x190] sm:$0xff] %v250_v50  ;;  %v258_v54 = vld [vmem:[%s2859_s25 + $0x630] sm:$0xff]  ;;  %v260_v55 = vld [vmem:[%s2859_s25 + $0x638] sm:$0xff] }
  0x2c   : > { %253 = vst [vmem:[%s2867_s26 + $0x198] sm:$0xff] %v252_v51  ;;  %255 = vst [vmem:[%s2867_s26 + $0x1a0] sm:$0xff] %v254_v52  ;;  %v262_v56 = vld [vmem:[%s2859_s25 + $0x700] sm:$0xff]  ;;  %v264_v57 = vld [vmem:[%s2859_s25 + $0x708] sm:$0xff] }
  0x2d   : > { %257 = vst [vmem:[%s2867_s26 + $0x1a8] sm:$0xff] %v256_v53  ;;  %259 = vst [vmem:[%s2867_s26 + $0x1b0] sm:$0xff] %v258_v54  ;;  %v266_v58 = vld [vmem:[%s2859_s25 + $0x710] sm:$0xff]  ;;  %v268_v59 = vld [vmem:[%s2859_s25 + $0x718] sm:$0xff] }
  0x2e   : > { %261 = vst [vmem:[%s2867_s26 + $0x1b8] sm:$0xff] %v260_v55  ;;  %263 = vst [vmem:[%s2867_s26 + $0x1c0] sm:$0xff] %v262_v56  ;;  %v270_v60 = vld [vmem:[%s2859_s25 + $0x720] sm:$0xff]  ;;  %v272_v61 = vld [vmem:[%s2859_s25 + $0x728] sm:$0xff] }
  0x2f   : > { %265 = vst [vmem:[%s2867_s26 + $0x1c8] sm:$0xff] %v264_v57  ;;  %267 = vst [vmem:[%s2867_s26 + $0x1d0] sm:$0xff] %v266_v58  ;;  %v274_v62 = vld [vmem:[%s2859_s25 + $0x730] sm:$0xff]  ;;  %v276_v63 = vld [vmem:[%s2859_s25 + $0x738] sm:$0xff] }
  0x30   : > { %269 = vst [vmem:[%s2867_s26 + $0x1d8] sm:$0xff] %v268_v59  ;;  %271 = vst [vmem:[%s2867_s26 + $0x1e0] sm:$0xff] %v270_v60  ;;  %v278_v0 = vld [vmem:[%s2859_s25 + $0x800] sm:$0xff]  ;;  %v280_v1 = vld [vmem:[%s2859_s25 + $0x808] sm:$0xff] }
  0x31   : > { %273 = vst [vmem:[%s2867_s26 + $0x1e8] sm:$0xff] %v272_v61  ;;  %275 = vst [vmem:[%s2867_s26 + $0x1f0] sm:$0xff] %v274_v62  ;;  %v282_v2 = vld [vmem:[%s2859_s25 + $0x810] sm:$0xff]  ;;  %v284_v3 = vld [vmem:[%s2859_s25 + $0x818] sm:$0xff] }
  0x32   : > { %277 = vst [vmem:[%s2867_s26 + $0x1f8] sm:$0xff] %v276_v63  ;;  %279 = vst [vmem:[%s2867_s26 + $0x200] sm:$0xff] %v278_v0  ;;  %v286_v4 = vld [vmem:[%s2859_s25 + $0x820] sm:$0xff]  ;;  %v288_v5 = vld [vmem:[%s2859_s25 + $0x828] sm:$0xff] }
  0x33   : > { %281 = vst [vmem:[%s2867_s26 + $0x208] sm:$0xff] %v280_v1  ;;  %283 = vst [vmem:[%s2867_s26 + $0x210] sm:$0xff] %v282_v2  ;;  %v290_v6 = vld [vmem:[%s2859_s25 + $0x830] sm:$0xff]  ;;  %v292_v7 = vld [vmem:[%s2859_s25 + $0x838] sm:$0xff] }
  0x34   : > { %285 = vst [vmem:[%s2867_s26 + $0x218] sm:$0xff] %v284_v3  ;;  %287 = vst [vmem:[%s2867_s26 + $0x220] sm:$0xff] %v286_v4  ;;  %v294_v8 = vld [vmem:[%s2859_s25 + $0x900] sm:$0xff]  ;;  %v296_v9 = vld [vmem:[%s2859_s25 + $0x908] sm:$0xff] }
  0x35   : > { %289 = vst [vmem:[%s2867_s26 + $0x228] sm:$0xff] %v288_v5  ;;  %291 = vst [vmem:[%s2867_s26 + $0x230] sm:$0xff] %v290_v6  ;;  %v298_v10 = vld [vmem:[%s2859_s25 + $0x910] sm:$0xff]  ;;  %v300_v11 = vld [vmem:[%s2859_s25 + $0x918] sm:$0xff] }
  0x36   : > { %293 = vst [vmem:[%s2867_s26 + $0x238] sm:$0xff] %v292_v7  ;;  %295 = vst [vmem:[%s2867_s26 + $0x240] sm:$0xff] %v294_v8  ;;  %v302_v12 = vld [vmem:[%s2859_s25 + $0x920] sm:$0xff]  ;;  %v304_v13 = vld [vmem:[%s2859_s25 + $0x928] sm:$0xff] }
  0x37   : > { %297 = vst [vmem:[%s2867_s26 + $0x248] sm:$0xff] %v296_v9  ;;  %299 = vst [vmem:[%s2867_s26 + $0x250] sm:$0xff] %v298_v10  ;;  %v306_v14 = vld [vmem:[%s2859_s25 + $0x930] sm:$0xff]  ;;  %v308_v15 = vld [vmem:[%s2859_s25 + $0x938] sm:$0xff] }
  0x38   : > { %301 = vst [vmem:[%s2867_s26 + $0x258] sm:$0xff] %v300_v11  ;;  %303 = vst [vmem:[%s2867_s26 + $0x260] sm:$0xff] %v302_v12  ;;  %v310_v16 = vld [vmem:[%s2859_s25 + $0xa00] sm:$0xff]  ;;  %v312_v17 = vld [vmem:[%s2859_s25 + $0xa08] sm:$0xff] }
  0x39   : > { %305 = vst [vmem:[%s2867_s26 + $0x268] sm:$0xff] %v304_v13  ;;  %307 = vst [vmem:[%s2867_s26 + $0x270] sm:$0xff] %v306_v14  ;;  %v314_v18 = vld [vmem:[%s2859_s25 + $0xa10] sm:$0xff]  ;;  %v316_v19 = vld [vmem:[%s2859_s25 + $0xa18] sm:$0xff] }
  0x3a   : > { %309 = vst [vmem:[%s2867_s26 + $0x278] sm:$0xff] %v308_v15  ;;  %311 = vst [vmem:[%s2867_s26 + $0x280] sm:$0xff] %v310_v16  ;;  %v318_v20 = vld [vmem:[%s2859_s25 + $0xa20] sm:$0xff]  ;;  %v320_v21 = vld [vmem:[%s2859_s25 + $0xa28] sm:$0xff] }
  0x3b   : > { %313 = vst [vmem:[%s2867_s26 + $0x288] sm:$0xff] %v312_v17  ;;  %315 = vst [vmem:[%s2867_s26 + $0x290] sm:$0xff] %v314_v18  ;;  %v322_v22 = vld [vmem:[%s2859_s25 + $0xa30] sm:$0xff]  ;;  %v324_v23 = vld [vmem:[%s2859_s25 + $0xa38] sm:$0xff] }
  0x3c   : > { %317 = vst [vmem:[%s2867_s26 + $0x298] sm:$0xff] %v316_v19  ;;  %319 = vst [vmem:[%s2867_s26 + $0x2a0] sm:$0xff] %v318_v20  ;;  %v326_v24 = vld [vmem:[%s2859_s25 + $0xb00] sm:$0xff]  ;;  %v328_v25 = vld [vmem:[%s2859_s25 + $0xb08] sm:$0xff] }
  0x3d   : > { %321 = vst [vmem:[%s2867_s26 + $0x2a8] sm:$0xff] %v320_v21  ;;  %323 = vst [vmem:[%s2867_s26 + $0x2b0] sm:$0xff] %v322_v22  ;;  %v330_v26 = vld [vmem:[%s2859_s25 + $0xb10] sm:$0xff]  ;;  %v332_v27 = vld [vmem:[%s2859_s25 + $0xb18] sm:$0xff] }
  0x3e   : > { %325 = vst [vmem:[%s2867_s26 + $0x2b8] sm:$0xff] %v324_v23  ;;  %327 = vst [vmem:[%s2867_s26 + $0x2c0] sm:$0xff] %v326_v24  ;;  %v334_v28 = vld [vmem:[%s2859_s25 + $0xb20] sm:$0xff]  ;;  %v336_v29 = vld [vmem:[%s2859_s25 + $0xb28] sm:$0xff] }
  0x3f   : > { %329 = vst [vmem:[%s2867_s26 + $0x2c8] sm:$0xff] %v328_v25  ;;  %331 = vst [vmem:[%s2867_s26 + $0x2d0] sm:$0xff] %v330_v26  ;;  %v338_v30 = vld [vmem:[%s2859_s25 + $0xb30] sm:$0xff]  ;;  %v340_v31 = vld [vmem:[%s2859_s25 + $0xb38] sm:$0xff] }
  0x40   : > { %333 = vst [vmem:[%s2867_s26 + $0x2d8] sm:$0xff] %v332_v27  ;;  %335 = vst [vmem:[%s2867_s26 + $0x2e0] sm:$0xff] %v334_v28  ;;  %v342_v32 = vld [vmem:[%s2859_s25 + $0xc00] sm:$0xff]  ;;  %v344_v33 = vld [vmem:[%s2859_s25 + $0xc08] sm:$0xff] }
  0x41   : > { %337 = vst [vmem:[%s2867_s26 + $0x2e8] sm:$0xff] %v336_v29  ;;  %339 = vst [vmem:[%s2867_s26 + $0x2f0] sm:$0xff] %v338_v30  ;;  %v346_v34 = vld [vmem:[%s2859_s25 + $0xc10] sm:$0xff]  ;;  %v348_v35 = vld [vmem:[%s2859_s25 + $0xc18] sm:$0xff] }
  0x42   : > { %341 = vst [vmem:[%s2867_s26 + $0x2f8] sm:$0xff] %v340_v31  ;;  %343 = vst [vmem:[%s2867_s26 + $0x300] sm:$0xff] %v342_v32  ;;  %v350_v36 = vld [vmem:[%s2859_s25 + $0xc20] sm:$0xff]  ;;  %v352_v37 = vld [vmem:[%s2859_s25 + $0xc28] sm:$0xff] }
  0x43   : > { %345 = vst [vmem:[%s2867_s26 + $0x308] sm:$0xff] %v344_v33  ;;  %347 = vst [vmem:[%s2867_s26 + $0x310] sm:$0xff] %v346_v34  ;;  %v354_v38 = vld [vmem:[%s2859_s25 + $0xc30] sm:$0xff]  ;;  %v356_v39 = vld [vmem:[%s2859_s25 + $0xc38] sm:$0xff] }
  0x44   : > { %349 = vst [vmem:[%s2867_s26 + $0x318] sm:$0xff] %v348_v35  ;;  %351 = vst [vmem:[%s2867_s26 + $0x320] sm:$0xff] %v350_v36  ;;  %v358_v40 = vld [vmem:[%s2859_s25 + $0xd00] sm:$0xff]  ;;  %v360_v41 = vld [vmem:[%s2859_s25 + $0xd08] sm:$0xff] }
  0x45   : > { %353 = vst [vmem:[%s2867_s26 + $0x328] sm:$0xff] %v352_v37  ;;  %355 = vst [vmem:[%s2867_s26 + $0x330] sm:$0xff] %v354_v38  ;;  %v362_v42 = vld [vmem:[%s2859_s25 + $0xd10] sm:$0xff]  ;;  %v364_v43 = vld [vmem:[%s2859_s25 + $0xd18] sm:$0xff] }
  0x46   : > { %357 = vst [vmem:[%s2867_s26 + $0x338] sm:$0xff] %v356_v39  ;;  %359 = vst [vmem:[%s2867_s26 + $0x340] sm:$0xff] %v358_v40  ;;  %v366_v44 = vld [vmem:[%s2859_s25 + $0xd20] sm:$0xff]  ;;  %v368_v45 = vld [vmem:[%s2859_s25 + $0xd28] sm:$0xff] }
  0x47   : > { %361 = vst [vmem:[%s2867_s26 + $0x348] sm:$0xff] %v360_v41  ;;  %363 = vst [vmem:[%s2867_s26 + $0x350] sm:$0xff] %v362_v42  ;;  %v370_v46 = vld [vmem:[%s2859_s25 + $0xd30] sm:$0xff]  ;;  %v372_v47 = vld [vmem:[%s2859_s25 + $0xd38] sm:$0xff] }
  0x48   : > { %365 = vst [vmem:[%s2867_s26 + $0x358] sm:$0xff] %v364_v43  ;;  %367 = vst [vmem:[%s2867_s26 + $0x360] sm:$0xff] %v366_v44  ;;  %v374_v48 = vld [vmem:[%s2859_s25 + $0xe00] sm:$0xff]  ;;  %v376_v49 = vld [vmem:[%s2859_s25 + $0xe08] sm:$0xff] }
  0x49   : > { %369 = vst [vmem:[%s2867_s26 + $0x368] sm:$0xff] %v368_v45  ;;  %371 = vst [vmem:[%s2867_s26 + $0x370] sm:$0xff] %v370_v46  ;;  %v378_v50 = vld [vmem:[%s2859_s25 + $0xe10] sm:$0xff]  ;;  %v380_v51 = vld [vmem:[%s2859_s25 + $0xe18] sm:$0xff] }
  0x4a   : > { %373 = vst [vmem:[%s2867_s26 + $0x378] sm:$0xff] %v372_v47  ;;  %375 = vst [vmem:[%s2867_s26 + $0x380] sm:$0xff] %v374_v48  ;;  %v382_v52 = vld [vmem:[%s2859_s25 + $0xe20] sm:$0xff]  ;;  %v384_v53 = vld [vmem:[%s2859_s25 + $0xe28] sm:$0xff] }
  0x4b   : > { %377 = vst [vmem:[%s2867_s26 + $0x388] sm:$0xff] %v376_v49  ;;  %379 = vst [vmem:[%s2867_s26 + $0x390] sm:$0xff] %v378_v50  ;;  %v386_v54 = vld [vmem:[%s2859_s25 + $0xe30] sm:$0xff]  ;;  %v388_v55 = vld [vmem:[%s2859_s25 + $0xe38] sm:$0xff] }
  0x4c   : > { %381 = vst [vmem:[%s2867_s26 + $0x398] sm:$0xff] %v380_v51  ;;  %383 = vst [vmem:[%s2867_s26 + $0x3a0] sm:$0xff] %v382_v52  ;;  %v390_v56 = vld [vmem:[%s2859_s25 + $0xf00] sm:$0xff]  ;;  %v392_v57 = vld [vmem:[%s2859_s25 + $0xf08] sm:$0xff] }
  0x4d   : > { %385 = vst [vmem:[%s2867_s26 + $0x3a8] sm:$0xff] %v384_v53  ;;  %387 = vst [vmem:[%s2867_s26 + $0x3b0] sm:$0xff] %v386_v54  ;;  %v394_v58 = vld [vmem:[%s2859_s25 + $0xf10] sm:$0xff]  ;;  %v396_v59 = vld [vmem:[%s2859_s25 + $0xf18] sm:$0xff] }
  0x4e   : > { %389 = vst [vmem:[%s2867_s26 + $0x3b8] sm:$0xff] %v388_v55  ;;  %391 = vst [vmem:[%s2867_s26 + $0x3c0] sm:$0xff] %v390_v56  ;;  %v398_v60 = vld [vmem:[%s2859_s25 + $0xf20] sm:$0xff]  ;;  %v400_v61 = vld [vmem:[%s2859_s25 + $0xf28] sm:$0xff] }
  0x4f   : > { %393 = vst [vmem:[%s2867_s26 + $0x3c8] sm:$0xff] %v392_v57  ;;  %395 = vst [vmem:[%s2867_s26 + $0x3d0] sm:$0xff] %v394_v58  ;;  %v402_v62 = vld [vmem:[%s2859_s25 + $0xf30] sm:$0xff]  ;;  %v404_v63 = vld [vmem:[%s2859_s25 + $0xf38] sm:$0xff] }
  0x50   : > { %397 = vst [vmem:[%s2867_s26 + $0x3d8] sm:$0xff] %v396_v59  ;;  %399 = vst [vmem:[%s2867_s26 + $0x3e0] sm:$0xff] %v398_v60  ;;  %v406_v0 = vld [vmem:[%s2859_s25 + $0x1000] sm:$0xff]  ;;  %v408_v1 = vld [vmem:[%s2859_s25 + $0x1008] sm:$0xff] }
  0x51   : > { %401 = vst [vmem:[%s2867_s26 + $0x3e8] sm:$0xff] %v400_v61  ;;  %403 = vst [vmem:[%s2867_s26 + $0x3f0] sm:$0xff] %v402_v62  ;;  %v410_v2 = vld [vmem:[%s2859_s25 + $0x1010] sm:$0xff]  ;;  %v412_v3 = vld [vmem:[%s2859_s25 + $0x1018] sm:$0xff] }
  0x52   : > { %405 = vst [vmem:[%s2867_s26 + $0x3f8] sm:$0xff] %v404_v63  ;;  %407 = vst [vmem:[%s2867_s26 + $0x400] sm:$0xff] %v406_v0  ;;  %v414_v4 = vld [vmem:[%s2859_s25 + $0x1020] sm:$0xff]  ;;  %v416_v5 = vld [vmem:[%s2859_s25 + $0x1028] sm:$0xff] }
  0x53   : > { %409 = vst [vmem:[%s2867_s26 + $0x408] sm:$0xff] %v408_v1  ;;  %411 = vst [vmem:[%s2867_s26 + $0x410] sm:$0xff] %v410_v2  ;;  %v418_v6 = vld [vmem:[%s2859_s25 + $0x1030] sm:$0xff]  ;;  %v420_v7 = vld [vmem:[%s2859_s25 + $0x1038] sm:$0xff] }
  0x54   : > { %413 = vst [vmem:[%s2867_s26 + $0x418] sm:$0xff] %v412_v3  ;;  %415 = vst [vmem:[%s2867_s26 + $0x420] sm:$0xff] %v414_v4  ;;  %v422_v8 = vld [vmem:[%s2859_s25 + $0x1100] sm:$0xff]  ;;  %v424_v9 = vld [vmem:[%s2859_s25 + $0x1108] sm:$0xff] }
  0x55   : > { %417 = vst [vmem:[%s2867_s26 + $0x428] sm:$0xff] %v416_v5  ;;  %419 = vst [vmem:[%s2867_s26 + $0x430] sm:$0xff] %v418_v6  ;;  %v426_v10 = vld [vmem:[%s2859_s25 + $0x1110] sm:$0xff]  ;;  %v428_v11 = vld [vmem:[%s2859_s25 + $0x1118] sm:$0xff] }
  0x56   : > { %421 = vst [vmem:[%s2867_s26 + $0x438] sm:$0xff] %v420_v7  ;;  %423 = vst [vmem:[%s2867_s26 + $0x440] sm:$0xff] %v422_v8  ;;  %v430_v12 = vld [vmem:[%s2859_s25 + $0x1120] sm:$0xff]  ;;  %v432_v13 = vld [vmem:[%s2859_s25 + $0x1128] sm:$0xff] }
  0x57   : > { %425 = vst [vmem:[%s2867_s26 + $0x448] sm:$0xff] %v424_v9  ;;  %427 = vst [vmem:[%s2867_s26 + $0x450] sm:$0xff] %v426_v10  ;;  %v434_v14 = vld [vmem:[%s2859_s25 + $0x1130] sm:$0xff]  ;;  %v436_v15 = vld [vmem:[%s2859_s25 + $0x1138] sm:$0xff] }
  0x58   : > { %429 = vst [vmem:[%s2867_s26 + $0x458] sm:$0xff] %v428_v11  ;;  %431 = vst [vmem:[%s2867_s26 + $0x460] sm:$0xff] %v430_v12  ;;  %v438_v16 = vld [vmem:[%s2859_s25 + $0x1200] sm:$0xff]  ;;  %v440_v17 = vld [vmem:[%s2859_s25 + $0x1208] sm:$0xff] }
  0x59   : > { %433 = vst [vmem:[%s2867_s26 + $0x468] sm:$0xff] %v432_v13  ;;  %435 = vst [vmem:[%s2867_s26 + $0x470] sm:$0xff] %v434_v14  ;;  %v442_v18 = vld [vmem:[%s2859_s25 + $0x1210] sm:$0xff]  ;;  %v444_v19 = vld [vmem:[%s2859_s25 + $0x1218] sm:$0xff] }
  0x5a   : > { %437 = vst [vmem:[%s2867_s26 + $0x478] sm:$0xff] %v436_v15  ;;  %439 = vst [vmem:[%s2867_s26 + $0x480] sm:$0xff] %v438_v16  ;;  %v446_v20 = vld [vmem:[%s2859_s25 + $0x1220] sm:$0xff]  ;;  %v448_v21 = vld [vmem:[%s2859_s25 + $0x1228] sm:$0xff] }
  0x5b   : > { %441 = vst [vmem:[%s2867_s26 + $0x488] sm:$0xff] %v440_v17  ;;  %443 = vst [vmem:[%s2867_s26 + $0x490] sm:$0xff] %v442_v18  ;;  %v450_v22 = vld [vmem:[%s2859_s25 + $0x1230] sm:$0xff]  ;;  %v452_v23 = vld [vmem:[%s2859_s25 + $0x1238] sm:$0xff] }
  0x5c   : > { %445 = vst [vmem:[%s2867_s26 + $0x498] sm:$0xff] %v444_v19  ;;  %447 = vst [vmem:[%s2867_s26 + $0x4a0] sm:$0xff] %v446_v20  ;;  %v454_v24 = vld [vmem:[%s2859_s25 + $0x1300] sm:$0xff]  ;;  %v456_v25 = vld [vmem:[%s2859_s25 + $0x1308] sm:$0xff] }
  0x5d   : > { %449 = vst [vmem:[%s2867_s26 + $0x4a8] sm:$0xff] %v448_v21  ;;  %451 = vst [vmem:[%s2867_s26 + $0x4b0] sm:$0xff] %v450_v22  ;;  %v458_v26 = vld [vmem:[%s2859_s25 + $0x1310] sm:$0xff]  ;;  %v460_v27 = vld [vmem:[%s2859_s25 + $0x1318] sm:$0xff] }
  0x5e   : > { %453 = vst [vmem:[%s2867_s26 + $0x4b8] sm:$0xff] %v452_v23  ;;  %455 = vst [vmem:[%s2867_s26 + $0x4c0] sm:$0xff] %v454_v24  ;;  %v462_v28 = vld [vmem:[%s2859_s25 + $0x1320] sm:$0xff]  ;;  %v464_v29 = vld [vmem:[%s2859_s25 + $0x1328] sm:$0xff] }
  0x5f   : > { %457 = vst [vmem:[%s2867_s26 + $0x4c8] sm:$0xff] %v456_v25  ;;  %459 = vst [vmem:[%s2867_s26 + $0x4d0] sm:$0xff] %v458_v26  ;;  %v466_v30 = vld [vmem:[%s2859_s25 + $0x1330] sm:$0xff]  ;;  %v468_v31 = vld [vmem:[%s2859_s25 + $0x1338] sm:$0xff] }
  0x60   : > { %461 = vst [vmem:[%s2867_s26 + $0x4d8] sm:$0xff] %v460_v27  ;;  %463 = vst [vmem:[%s2867_s26 + $0x4e0] sm:$0xff] %v462_v28  ;;  %v470_v32 = vld [vmem:[%s2859_s25 + $0x1400] sm:$0xff]  ;;  %v472_v33 = vld [vmem:[%s2859_s25 + $0x1408] sm:$0xff] }
  0x61   : > { %465 = vst [vmem:[%s2867_s26 + $0x4e8] sm:$0xff] %v464_v29  ;;  %467 = vst [vmem:[%s2867_s26 + $0x4f0] sm:$0xff] %v466_v30  ;;  %v474_v34 = vld [vmem:[%s2859_s25 + $0x1410] sm:$0xff]  ;;  %v476_v35 = vld [vmem:[%s2859_s25 + $0x1418] sm:$0xff] }
  0x62   : > { %469 = vst [vmem:[%s2867_s26 + $0x4f8] sm:$0xff] %v468_v31  ;;  %471 = vst [vmem:[%s2867_s26 + $0x500] sm:$0xff] %v470_v32  ;;  %v478_v36 = vld [vmem:[%s2859_s25 + $0x1420] sm:$0xff]  ;;  %v480_v37 = vld [vmem:[%s2859_s25 + $0x1428] sm:$0xff] }
  0x63   : > { %473 = vst [vmem:[%s2867_s26 + $0x508] sm:$0xff] %v472_v33  ;;  %475 = vst [vmem:[%s2867_s26 + $0x510] sm:$0xff] %v474_v34  ;;  %v482_v38 = vld [vmem:[%s2859_s25 + $0x1430] sm:$0xff]  ;;  %v484_v39 = vld [vmem:[%s2859_s25 + $0x1438] sm:$0xff] }
  0x64   : > { %477 = vst [vmem:[%s2867_s26 + $0x518] sm:$0xff] %v476_v35  ;;  %479 = vst [vmem:[%s2867_s26 + $0x520] sm:$0xff] %v478_v36  ;;  %v486_v40 = vld [vmem:[%s2859_s25 + $0x1500] sm:$0xff]  ;;  %v488_v41 = vld [vmem:[%s2859_s25 + $0x1508] sm:$0xff] }
  0x65   : > { %481 = vst [vmem:[%s2867_s26 + $0x528] sm:$0xff] %v480_v37  ;;  %483 = vst [vmem:[%s2867_s26 + $0x530] sm:$0xff] %v482_v38  ;;  %v490_v42 = vld [vmem:[%s2859_s25 + $0x1510] sm:$0xff]  ;;  %v492_v43 = vld [vmem:[%s2859_s25 + $0x1518] sm:$0xff] }
  0x66   : > { %485 = vst [vmem:[%s2867_s26 + $0x538] sm:$0xff] %v484_v39  ;;  %487 = vst [vmem:[%s2867_s26 + $0x540] sm:$0xff] %v486_v40  ;;  %v494_v44 = vld [vmem:[%s2859_s25 + $0x1520] sm:$0xff]  ;;  %v496_v45 = vld [vmem:[%s2859_s25 + $0x1528] sm:$0xff] }
  0x67   : > { %489 = vst [vmem:[%s2867_s26 + $0x548] sm:$0xff] %v488_v41  ;;  %491 = vst [vmem:[%s2867_s26 + $0x550] sm:$0xff] %v490_v42  ;;  %v498_v46 = vld [vmem:[%s2859_s25 + $0x1530] sm:$0xff]  ;;  %v500_v47 = vld [vmem:[%s2859_s25 + $0x1538] sm:$0xff] }
  0x68   : > { %493 = vst [vmem:[%s2867_s26 + $0x558] sm:$0xff] %v492_v43  ;;  %495 = vst [vmem:[%s2867_s26 + $0x560] sm:$0xff] %v494_v44  ;;  %v502_v48 = vld [vmem:[%s2859_s25 + $0x1600] sm:$0xff]  ;;  %v504_v49 = vld [vmem:[%s2859_s25 + $0x1608] sm:$0xff] }
  0x69   : > { %497 = vst [vmem:[%s2867_s26 + $0x568] sm:$0xff] %v496_v45  ;;  %499 = vst [vmem:[%s2867_s26 + $0x570] sm:$0xff] %v498_v46  ;;  %v506_v50 = vld [vmem:[%s2859_s25 + $0x1610] sm:$0xff]  ;;  %v508_v51 = vld [vmem:[%s2859_s25 + $0x1618] sm:$0xff] }
  0x6a   : > { %501 = vst [vmem:[%s2867_s26 + $0x578] sm:$0xff] %v500_v47  ;;  %503 = vst [vmem:[%s2867_s26 + $0x580] sm:$0xff] %v502_v48  ;;  %v510_v52 = vld [vmem:[%s2859_s25 + $0x1620] sm:$0xff]  ;;  %v512_v53 = vld [vmem:[%s2859_s25 + $0x1628] sm:$0xff] }
  0x6b   : > { %505 = vst [vmem:[%s2867_s26 + $0x588] sm:$0xff] %v504_v49  ;;  %507 = vst [vmem:[%s2867_s26 + $0x590] sm:$0xff] %v506_v50  ;;  %v514_v54 = vld [vmem:[%s2859_s25 + $0x1630] sm:$0xff]  ;;  %v516_v55 = vld [vmem:[%s2859_s25 + $0x1638] sm:$0xff] }
  0x6c   : > { %509 = vst [vmem:[%s2867_s26 + $0x598] sm:$0xff] %v508_v51  ;;  %511 = vst [vmem:[%s2867_s26 + $0x5a0] sm:$0xff] %v510_v52  ;;  %v518_v56 = vld [vmem:[%s2859_s25 + $0x1700] sm:$0xff]  ;;  %v520_v57 = vld [vmem:[%s2859_s25 + $0x1708] sm:$0xff] }
  0x6d   : > { %513 = vst [vmem:[%s2867_s26 + $0x5a8] sm:$0xff] %v512_v53  ;;  %515 = vst [vmem:[%s2867_s26 + $0x5b0] sm:$0xff] %v514_v54  ;;  %v522_v58 = vld [vmem:[%s2859_s25 + $0x1710] sm:$0xff]  ;;  %v524_v59 = vld [vmem:[%s2859_s25 + $0x1718] sm:$0xff] }
  0x6e   : > { %517 = vst [vmem:[%s2867_s26 + $0x5b8] sm:$0xff] %v516_v55  ;;  %519 = vst [vmem:[%s2867_s26 + $0x5c0] sm:$0xff] %v518_v56  ;;  %v526_v60 = vld [vmem:[%s2859_s25 + $0x1720] sm:$0xff]  ;;  %v528_v61 = vld [vmem:[%s2859_s25 + $0x1728] sm:$0xff] }
  0x6f   : > { %521 = vst [vmem:[%s2867_s26 + $0x5c8] sm:$0xff] %v520_v57  ;;  %523 = vst [vmem:[%s2867_s26 + $0x5d0] sm:$0xff] %v522_v58  ;;  %v530_v62 = vld [vmem:[%s2859_s25 + $0x1730] sm:$0xff]  ;;  %v532_v63 = vld [vmem:[%s2859_s25 + $0x1738] sm:$0xff] }
  0x70   : > { %525 = vst [vmem:[%s2867_s26 + $0x5d8] sm:$0xff] %v524_v59  ;;  %527 = vst [vmem:[%s2867_s26 + $0x5e0] sm:$0xff] %v526_v60  ;;  %v534_v0 = vld [vmem:[%s2859_s25 + $0x1800] sm:$0xff]  ;;  %v536_v1 = vld [vmem:[%s2859_s25 + $0x1808] sm:$0xff] }
  0x71   : > { %529 = vst [vmem:[%s2867_s26 + $0x5e8] sm:$0xff] %v528_v61  ;;  %531 = vst [vmem:[%s2867_s26 + $0x5f0] sm:$0xff] %v530_v62  ;;  %v538_v2 = vld [vmem:[%s2859_s25 + $0x1810] sm:$0xff]  ;;  %v540_v3 = vld [vmem:[%s2859_s25 + $0x1818] sm:$0xff] }
  0x72   : > { %533 = vst [vmem:[%s2867_s26 + $0x5f8] sm:$0xff] %v532_v63  ;;  %535 = vst [vmem:[%s2867_s26 + $0x600] sm:$0xff] %v534_v0  ;;  %v542_v4 = vld [vmem:[%s2859_s25 + $0x1820] sm:$0xff]  ;;  %v544_v5 = vld [vmem:[%s2859_s25 + $0x1828] sm:$0xff] }
  0x73   : > { %537 = vst [vmem:[%s2867_s26 + $0x608] sm:$0xff] %v536_v1  ;;  %539 = vst [vmem:[%s2867_s26 + $0x610] sm:$0xff] %v538_v2  ;;  %v546_v6 = vld [vmem:[%s2859_s25 + $0x1830] sm:$0xff]  ;;  %v548_v7 = vld [vmem:[%s2859_s25 + $0x1838] sm:$0xff] }
  0x74   : > { %541 = vst [vmem:[%s2867_s26 + $0x618] sm:$0xff] %v540_v3  ;;  %543 = vst [vmem:[%s2867_s26 + $0x620] sm:$0xff] %v542_v4  ;;  %v550_v8 = vld [vmem:[%s2859_s25 + $0x1900] sm:$0xff]  ;;  %v552_v9 = vld [vmem:[%s2859_s25 + $0x1908] sm:$0xff] }
  0x75   : > { %545 = vst [vmem:[%s2867_s26 + $0x628] sm:$0xff] %v544_v5  ;;  %547 = vst [vmem:[%s2867_s26 + $0x630] sm:$0xff] %v546_v6  ;;  %v554_v10 = vld [vmem:[%s2859_s25 + $0x1910] sm:$0xff]  ;;  %v556_v11 = vld [vmem:[%s2859_s25 + $0x1918] sm:$0xff] }
  0x76   : > { %549 = vst [vmem:[%s2867_s26 + $0x638] sm:$0xff] %v548_v7  ;;  %551 = vst [vmem:[%s2867_s26 + $0x640] sm:$0xff] %v550_v8  ;;  %v558_v12 = vld [vmem:[%s2859_s25 + $0x1920] sm:$0xff]  ;;  %v560_v13 = vld [vmem:[%s2859_s25 + $0x1928] sm:$0xff] }
  0x77   : > { %553 = vst [vmem:[%s2867_s26 + $0x648] sm:$0xff] %v552_v9  ;;  %555 = vst [vmem:[%s2867_s26 + $0x650] sm:$0xff] %v554_v10  ;;  %v562_v14 = vld [vmem:[%s2859_s25 + $0x1930] sm:$0xff]  ;;  %v564_v15 = vld [vmem:[%s2859_s25 + $0x1938] sm:$0xff] }
  0x78   : > { %557 = vst [vmem:[%s2867_s26 + $0x658] sm:$0xff] %v556_v11  ;;  %559 = vst [vmem:[%s2867_s26 + $0x660] sm:$0xff] %v558_v12  ;;  %v566_v16 = vld [vmem:[%s2859_s25 + $0x1a00] sm:$0xff]  ;;  %v568_v17 = vld [vmem:[%s2859_s25 + $0x1a08] sm:$0xff] }
  0x79   : > { %561 = vst [vmem:[%s2867_s26 + $0x668] sm:$0xff] %v560_v13  ;;  %563 = vst [vmem:[%s2867_s26 + $0x670] sm:$0xff] %v562_v14  ;;  %v570_v18 = vld [vmem:[%s2859_s25 + $0x1a10] sm:$0xff]  ;;  %v572_v19 = vld [vmem:[%s2859_s25 + $0x1a18] sm:$0xff] }
  0x7a   : > { %565 = vst [vmem:[%s2867_s26 + $0x678] sm:$0xff] %v564_v15  ;;  %567 = vst [vmem:[%s2867_s26 + $0x680] sm:$0xff] %v566_v16  ;;  %v574_v20 = vld [vmem:[%s2859_s25 + $0x1a20] sm:$0xff]  ;;  %v576_v21 = vld [vmem:[%s2859_s25 + $0x1a28] sm:$0xff] }
  0x7b   : > { %569 = vst [vmem:[%s2867_s26 + $0x688] sm:$0xff] %v568_v17  ;;  %571 = vst [vmem:[%s2867_s26 + $0x690] sm:$0xff] %v570_v18  ;;  %v578_v22 = vld [vmem:[%s2859_s25 + $0x1a30] sm:$0xff]  ;;  %v580_v23 = vld [vmem:[%s2859_s25 + $0x1a38] sm:$0xff] }
  0x7c   : > { %573 = vst [vmem:[%s2867_s26 + $0x698] sm:$0xff] %v572_v19  ;;  %575 = vst [vmem:[%s2867_s26 + $0x6a0] sm:$0xff] %v574_v20 }
  0x7d   : > { %577 = vst [vmem:[%s2867_s26 + $0x6a8] sm:$0xff] %v576_v21  ;;  %579 = vst [vmem:[%s2867_s26 + $0x6b0] sm:$0xff] %v578_v22 }
  0x7e   : > { %581 = vst [vmem:[%s2867_s26 + $0x6b8] sm:$0xff] %v580_v23 }
  0x7f PF: > { %p2470_p5 = scmp.ge.s32.totalorder %s2802_s14, 1  ;;  %p586_p6 = scmp.lt.s32.totalorder %s2802_s14, 5 }
  0x81   : > { %p587_p7 = pnand %p2470_p5, %p586_p6 }
  0x82   : > { %s593_s27 = sand.u32 (!%p587_p7), 1, %s2794_s12   ;;  %v3301_v24 = vld [vmem:[%s3615_s0] sm:$0xff] (!%p587_p7)  ;;  %vm1933_vm0 = vcmask (!%p587_p7), 719872   ;;  %v2804_v4 = vmov (!%p587_p7), 0   ;;  %vm1937_vm1 = vcmask (!%p587_p7), 1043456   ;;  %s2471_s7 = sshll.u32 (!%p587_p7), %s2464_s15, 4 }
  0x83   : > { %590 = sbr.rel (%p587_p7) target bundleno = 583 (0x247), region = 51  ;;  %v3305_v25 = vcombine.high (!%p587_p7), %v3301_v24, %v3301_v24  ;;  %2761 = vset.pattern.permute.xlu0 (!%p587_p7), %v2804_v4  ;;  %v841_v4 = vld [vmem:[%s3617_s2] sm:$0xff] (!%p587_p7)  ;;  %p618_p8 = scmp.lt.s32.totalorder (!%p587_p7), %s2471_s7, 63 }
  0x84   : > { %s2735_s30 = smul.u32 (!%p587_p7), 1728, %s593_s27  ;;  %844 = vperm.xlu0 (!%p587_p7), %2761, %v841_v4  }
  0x85   : > { %2700 = vmatprep.mubr.msk.bf16.mxu0 (!%p587_p7), %vm1933_vm0, %v3305_v25  ;;  %2702 = vmatprep.mubr.msk.bf16.mxu1 (!%p587_p7), %vm1933_vm0, %v3305_v25 }
  0x86   : > { %s3311_s4 = scalar_lea.vmem (!%p587_p7), [#allocation2], %s2735_s30 }
  0x87   : > { %v625_v26 = vld [vmem:[%s3311_s4] sm:$0xff] (!%p587_p7)  ;;  %v626_v28 = vld [vmem:[%s3311_s4 + $0x8] sm:$0xff] (!%p587_p7) }
  0x88   : > { %v633_v27 = vld [vmem:[%s3311_s4 + $0x40] sm:$0xff] (!%p587_p7)  ;;  %v634_v30 = vld [vmem:[%s3311_s4 + $0x48] sm:$0xff] (!%p587_p7) }
  0x89   : > { %v2476_v29 = vcombine.high (!%p587_p7), %v625_v26, %v633_v27  ;;  %v2475_v31 = vcombine.low (!%p587_p7), %v625_v26, %v633_v27  ;;  %v641_v32 = vld [vmem:[%s3311_s4 + $0x80] sm:$0xff] (!%p587_p7)  ;;  %v2478_v34 = vcombine.high (!%p587_p7), %v626_v28, %v634_v30  ;;  %v2477_v35 = vcombine.low (!%p587_p7), %v626_v28, %v634_v30  ;;  %v642_v37 = vld [vmem:[%s3311_s4 + $0x88] sm:$0xff] (!%p587_p7) }
  0x8a   : > { %v649_v33 = vld [vmem:[%s3311_s4 + $0xc0] sm:$0xff]  ;;  %v650_v38 = vld [vmem:[%s3311_s4 + $0xc8] sm:$0xff]  ;;  %s3623_s7 = smov (!%p618_p8, %s2471_s7), 63 }
  0x8b   : > { %v2492_v36 = vcombine.high %v641_v32, %v649_v33  ;;  %v657_v39 = vld [vmem:[%s3311_s4 + $0x100] sm:$0xff]  ;;  %1986 = vmatprep.subr.bf16.mxu0 %v2476_v29  ;;  %v2494_v40 = vcombine.high %v642_v37, %v650_v38  ;;  %v658_v42 = vld [vmem:[%s3311_s4 + $0x108] sm:$0xff]  ;;  %2027 = vmatprep.subr.bf16.mxu1 %v2478_v34  ;;  %v2491_v44 = vcombine.low %v641_v32, %v649_v33  ;;  %s2472_s8 = sshll.u32 %s3623_s7, 2 }
  0x8c   : > { %v665_v41 = vld [vmem:[%s3311_s4 + $0x140] sm:$0xff]  ;;  %v666_v43 = vld [vmem:[%s3311_s4 + $0x148] sm:$0xff]  ;;  %1987 = vmatpush1.bf16.msra.mxu0 %v2475_v31  ;;  %2028 = vmatpush1.bf16.msra.mxu1 %v2477_v35  ;;  %v2493_v45 = vcombine.low %v642_v37, %v650_v38  ;;  %s3583_s11 = scalar_lea.vmem %s3618_s3, %s2472_s8 }
  0x8d   : > { %1988 = vmatprep.subr.bf16.mxu0 %v2492_v36  ;;  %v2508_v46 = vcombine.high %v657_v39, %v665_v41  ;;  %2029 = vmatprep.subr.bf16.mxu1 %v2494_v40  ;;  %v2510_v47 = vcombine.high %v658_v42, %v666_v43  ;;  %v673_v48 = vld [vmem:[%s3311_s4 + $0x180] sm:$0xff]  ;;  %v674_v50 = vld [vmem:[%s3311_s4 + $0x188] sm:$0xff]  ;;  %v2507_v52 = vcombine.low %v657_v39, %v665_v41 }
  0x8e   : > { %v681_v49 = vld [vmem:[%s3311_s4 + $0x1c0] sm:$0xff]  ;;  %v682_v51 = vld [vmem:[%s3311_s4 + $0x1c8] sm:$0xff]  ;;  %v2509_v53 = vcombine.low %v658_v42, %v666_v43 }
  0x8f   : > { %v2524_v54 = vcombine.high %v673_v48, %v681_v49  ;;  %v2526_v55 = vcombine.high %v674_v50, %v682_v51  ;;  %v689_v56 = vld [vmem:[%s3311_s4 + $0x200] sm:$0xff]  ;;  %v690_v58 = vld [vmem:[%s3311_s4 + $0x208] sm:$0xff]  ;;  %v2523_v60 = vcombine.low %v673_v48, %v681_v49  ;;  %v2525_v61 = vcombine.low %v674_v50, %v682_v51 }
  0x90   : > { %1989 = vmatpush1.bf16.msra.mxu0 %v2491_v44  ;;  %2030 = vmatpush1.bf16.msra.mxu1 %v2493_v45  ;;  %v697_v57 = vld [vmem:[%s3311_s4 + $0x240] sm:$0xff]  ;;  %v698_v59 = vld [vmem:[%s3311_s4 + $0x248] sm:$0xff] }
  0x91   : > { %1990 = vmatprep.subr.bf16.mxu0 %v2508_v46  ;;  %2031 = vmatprep.subr.bf16.mxu1 %v2510_v47  ;;  %v2540_v62 = vcombine.high %v689_v56, %v697_v57  ;;  %v2542_v63 = vcombine.high %v690_v58, %v698_v59  ;;  %v705_v0 = vld [vmem:[%s3311_s4 + $0x280] sm:$0xff]  ;;  %v706_v2 = vld [vmem:[%s3311_s4 + $0x288] sm:$0xff]  ;;  %v2539_v5 = vcombine.low %v689_v56, %v697_v57 }
  0x92   : > { %v713_v1 = vld [vmem:[%s3311_s4 + $0x2c0] sm:$0xff]  ;;  %v714_v3 = vld [vmem:[%s3311_s4 + $0x2c8] sm:$0xff]  ;;  %v2541_v6 = vcombine.low %v690_v58, %v698_v59 }
  0x93   : > { %v2556_v7 = vcombine.high %v705_v0, %v713_v1  ;;  %v2558_v8 = vcombine.high %v706_v2, %v714_v3  ;;  %v721_v9 = vld [vmem:[%s3311_s4 + $0x300] sm:$0xff]  ;;  %v722_v11 = vld [vmem:[%s3311_s4 + $0x308] sm:$0xff]  ;;  %v2555_v13 = vcombine.low %v705_v0, %v713_v1  ;;  %v2557_v14 = vcombine.low %v706_v2, %v714_v3 }
  0x94   : > { %1991 = vmatpush1.bf16.msra.mxu0 %v2507_v52  ;;  %2032 = vmatpush1.bf16.msra.mxu1 %v2509_v53  ;;  %v729_v10 = vld [vmem:[%s3311_s4 + $0x340] sm:$0xff]  ;;  %v730_v12 = vld [vmem:[%s3311_s4 + $0x348] sm:$0xff] }
  0x95   : > { %1992 = vmatprep.subr.bf16.mxu0 %v2524_v54  ;;  %2033 = vmatprep.subr.bf16.mxu1 %v2526_v55  ;;  %v2572_v15 = vcombine.high %v721_v9, %v729_v10  ;;  %v2574_v16 = vcombine.high %v722_v11, %v730_v12  ;;  %v737_v17 = vld [vmem:[%s3311_s4 + $0x380] sm:$0xff]  ;;  %v738_v19 = vld [vmem:[%s3311_s4 + $0x388] sm:$0xff]  ;;  %v2571_v21 = vcombine.low %v721_v9, %v729_v10 }
  0x96   : > { %v745_v18 = vld [vmem:[%s3311_s4 + $0x3c0] sm:$0xff]  ;;  %v746_v20 = vld [vmem:[%s3311_s4 + $0x3c8] sm:$0xff]  ;;  %v2573_v22 = vcombine.low %v722_v11, %v730_v12  ;;  %v627_v12 = vld [vmem:[%s3311_s4 + $0x10] sm:$0xff] }
  0x97   : > { %v2588_v23 = vcombine.high %v737_v17, %v745_v18  ;;  %v2590_v26 = vcombine.high %v738_v19, %v746_v20  ;;  %v753_v27 = vld [vmem:[%s3311_s4 + $0x400] sm:$0xff]  ;;  %v754_v29 = vld [vmem:[%s3311_s4 + $0x408] sm:$0xff]  ;;  %v2587_v31 = vcombine.low %v737_v17, %v745_v18  ;;  %v2589_v32 = vcombine.low %v738_v19, %v746_v20  ;;  %v643_v20 = vld [vmem:[%s3311_s4 + $0x90] sm:$0xff] }
  0x98   : > { %1993 = vmatpush1.bf16.msra.mxu0 %v2523_v60  ;;  %2034 = vmatpush1.bf16.msra.mxu1 %v2525_v61  ;;  %v761_v28 = vld [vmem:[%s3311_s4 + $0x440] sm:$0xff]  ;;  %v762_v30 = vld [vmem:[%s3311_s4 + $0x448] sm:$0xff] }
  0x99   : > { %1994 = vmatprep.subr.bf16.mxu0 %v2540_v62  ;;  %2035 = vmatprep.subr.bf16.mxu1 %v2542_v63  ;;  %v2604_v33 = vcombine.high %v753_v27, %v761_v28  ;;  %v2606_v34 = vcombine.high %v754_v29, %v762_v30  ;;  %v769_v35 = vld [vmem:[%s3311_s4 + $0x480] sm:$0xff]  ;;  %v770_v37 = vld [vmem:[%s3311_s4 + $0x488] sm:$0xff]  ;;  %v2603_v39 = vcombine.low %v753_v27, %v761_v28 }
  0x9a   : > { %v777_v36 = vld [vmem:[%s3311_s4 + $0x4c0] sm:$0xff]  ;;  %v778_v38 = vld [vmem:[%s3311_s4 + $0x4c8] sm:$0xff]  ;;  %v2605_v40 = vcombine.low %v754_v29, %v762_v30 }
  0x9b   : > { %v2620_v41 = vcombine.high %v769_v35, %v777_v36  ;;  %v2622_v42 = vcombine.high %v770_v37, %v778_v38  ;;  %v785_v43 = vld [vmem:[%s3311_s4 + $0x500] sm:$0xff]  ;;  %v786_v45 = vld [vmem:[%s3311_s4 + $0x508] sm:$0xff]  ;;  %v2619_v47 = vcombine.low %v769_v35, %v777_v36  ;;  %v2621_v48 = vcombine.low %v770_v37, %v778_v38  ;;  %v675_v38 = vld [vmem:[%s3311_s4 + $0x190] sm:$0xff] }
  0x9c   : > { %1995 = vmatpush1.bf16.msra.mxu0 %v2539_v5  ;;  %2036 = vmatpush1.bf16.msra.mxu1 %v2541_v6  ;;  %v793_v44 = vld [vmem:[%s3311_s4 + $0x540] sm:$0xff]  ;;  %v794_v46 = vld [vmem:[%s3311_s4 + $0x548] sm:$0xff] }
  0x9d   : > { %1996 = vmatprep.subr.bf16.mxu0 %v2556_v7  ;;  %2037 = vmatprep.subr.bf16.mxu1 %v2558_v8  ;;  %v2636_v49 = vcombine.high %v785_v43, %v793_v44  ;;  %v2638_v50 = vcombine.high %v786_v45, %v794_v46  ;;  %v801_v51 = vld [vmem:[%s3311_s4 + $0x580] sm:$0xff]  ;;  %v802_v53 = vld [vmem:[%s3311_s4 + $0x588] sm:$0xff]  ;;  %v2635_v55 = vcombine.low %v785_v43, %v793_v44 }
  0x9e   : > { %v809_v52 = vld [vmem:[%s3311_s4 + $0x5c0] sm:$0xff]  ;;  %v810_v54 = vld [vmem:[%s3311_s4 + $0x5c8] sm:$0xff]  ;;  %v2637_v56 = vcombine.low %v786_v45, %v794_v46  ;;  %v691_v46 = vld [vmem:[%s3311_s4 + $0x210] sm:$0xff] }
  0x9f   : > { %v2652_v57 = vcombine.high %v801_v51, %v809_v52  ;;  %v2654_v58 = vcombine.high %v802_v53, %v810_v54  ;;  %v817_v59 = vld [vmem:[%s3311_s4 + $0x600] sm:$0xff]  ;;  %v818_v61 = vld [vmem:[%s3311_s4 + $0x608] sm:$0xff]  ;;  %v2651_v63 = vcombine.low %v801_v51, %v809_v52  ;;  %v2653_v0 = vcombine.low %v802_v53, %v810_v54  ;;  %v707_v54 = vld [vmem:[%s3311_s4 + $0x290] sm:$0xff] }
  0xa0   : > { %1997 = vmatpush1.bf16.msra.mxu0 %v2555_v13  ;;  %2038 = vmatpush1.bf16.msra.mxu1 %v2557_v14  ;;  %v825_v60 = vld [vmem:[%s3311_s4 + $0x640] sm:$0xff]  ;;  %v826_v62 = vld [vmem:[%s3311_s4 + $0x648] sm:$0xff]  ;;  %v635_v13 = vld [vmem:[%s3311_s4 + $0x50] sm:$0xff] }
  0xa1   : > { %1998 = vmatprep.subr.bf16.mxu0 %v2572_v15  ;;  %2039 = vmatprep.subr.bf16.mxu1 %v2574_v16  ;;  %v2668_v1 = vcombine.high %v817_v59, %v825_v60  ;;  %v2670_v2 = vcombine.high %v818_v61, %v826_v62  ;;  %v833_v3 = vld [vmem:[%s3311_s4 + $0x680] sm:$0xff]  ;;  %v834_v5 = vld [vmem:[%s3311_s4 + $0x688] sm:$0xff]  ;;  %v2667_v6 = vcombine.low %v817_v59, %v825_v60  ;;  %v628_v14 = vld [vmem:[%s3311_s4 + $0x18] sm:$0xff] }
  0xa2   : > { %v2669_v7 = vcombine.low %v818_v61, %v826_v62  ;;  %v2684_v8 = vcombine.high %v833_v3, %v833_v3  ;;  %v2683_v9 = vcombine.low %v833_v3, %v833_v3  ;;  %v2686_v10 = vcombine.high %v834_v5, %v834_v5  ;;  %v636_v15 = vld [vmem:[%s3311_s4 + $0x58] sm:$0xff]  ;;  %v723_v62 = vld [vmem:[%s3311_s4 + $0x310] sm:$0xff] }
  0xa3   : > { %v2685_v11 = vcombine.low %v834_v5, %v834_v5  ;;  %v2480_v17 = vcombine.high %v627_v12, %v635_v13  ;;  %v2482_v19 = vcombine.high %v628_v14, %v636_v15  ;;  %v2479_v27 = vcombine.low %v627_v12, %v635_v13 }
  0xa4   : > { %1999 = vmatpush1.bf16.msra.mxu0 %v2571_v21  ;;  %2040 = vmatpush1.bf16.msra.mxu1 %v2573_v22  ;;  %v1939_v16 = vsel %vm1937_vm1, %v2683_v9, 0  ;;  %v651_v21 = vld [vmem:[%s3311_s4 + $0xd0] sm:$0xff]  ;;  %v3382_v22 = vcombine.low %v3301_v24, %v3301_v24  ;;  %v2481_v28 = vcombine.low %v628_v14, %v636_v15  ;;  %v660_v24 = vld [vmem:[%s3311_s4 + $0x118] sm:$0xff] }
  0xa5   : > { %2000 = vmatprep.subr.bf16.mxu0 %v2588_v23  ;;  %2041 = vmatprep.subr.bf16.mxu1 %v2590_v26  ;;  %v1945_v18 = vsel %vm1937_vm1, %v2685_v11, 0  ;;  %v644_v23 = vld [vmem:[%s3311_s4 + $0x98] sm:$0xff]  ;;  %v2496_v29 = vcombine.high %v643_v20, %v651_v21  ;;  %v755_v14 = vld [vmem:[%s3311_s4 + $0x410] sm:$0xff] }
  0xa6   : > { %v652_v26 = vld [vmem:[%s3311_s4 + $0xd8] sm:$0xff]  ;;  %v763_v15 = vld [vmem:[%s3311_s4 + $0x450] sm:$0xff] }
  0xa7   : > { %v2498_v30 = vcombine.high %v644_v23, %v652_v26  ;;  %v2497_v35 = vcombine.low %v644_v23, %v652_v26  ;;  %v748_v9 = vld [vmem:[%s3311_s4 + $0x3d8] sm:$0xff]  ;;  %v771_v23 = vld [vmem:[%s3311_s4 + $0x490] sm:$0xff] }
  0xa8   : > { %2001 = vmatpush1.bf16.msra.mxu0 %v2587_v31  ;;  %2042 = vmatpush1.bf16.msra.mxu1 %v2589_v32  ;;  %v659_v31 = vld [vmem:[%s3311_s4 + $0x110] sm:$0xff] }
  0xa9   : > { %2002 = vmatprep.subr.bf16.mxu0 %v2604_v33  ;;  %2043 = vmatprep.subr.bf16.mxu1 %v2606_v34  ;;  %v667_v32 = vld [vmem:[%s3311_s4 + $0x150] sm:$0xff]  ;;  %v668_v33 = vld [vmem:[%s3311_s4 + $0x158] sm:$0xff]  ;;  %v2495_v34 = vcombine.low %v643_v20, %v651_v21  ;;  %v2608_v20 = vcombine.high %v755_v14, %v763_v15 }
  0xaa   : > { %v2512_v36 = vcombine.high %v659_v31, %v667_v32  ;;  %v2514_v37 = vcombine.high %v660_v24, %v668_v33  ;;  %v2513_v43 = vcombine.low %v660_v24, %v668_v33  ;;  %v779_v26 = vld [vmem:[%s3311_s4 + $0x4d0] sm:$0xff] }
  0xab   : > { %v787_v24 = vld [vmem:[%s3311_s4 + $0x510] sm:$0xff] }
  0xac   : > { %2003 = vmatpush1.bf16.msra.mxu0 %v2603_v39  ;;  %2044 = vmatpush1.bf16.msra.mxu1 %v2605_v40  ;;  %v683_v39 = vld [vmem:[%s3311_s4 + $0x1d0] sm:$0xff]  ;;  %v676_v40 = vld [vmem:[%s3311_s4 + $0x198] sm:$0xff] }
  0xad   : > { %2004 = vmatprep.subr.bf16.mxu0 %v2620_v41  ;;  %2045 = vmatprep.subr.bf16.mxu1 %v2622_v42  ;;  %v684_v41 = vld [vmem:[%s3311_s4 + $0x1d8] sm:$0xff]  ;;  %v2511_v42 = vcombine.low %v659_v31, %v667_v32  ;;  %v2528_v44 = vcombine.high %v675_v38, %v683_v39  ;;  %v2624_v31 = vcombine.high %v771_v23, %v779_v26  ;;  %v795_v33 = vld [vmem:[%s3311_s4 + $0x550] sm:$0xff] }
  0xae   : > { %v2530_v45 = vcombine.high %v676_v40, %v684_v41  ;;  %v2529_v51 = vcombine.low %v676_v40, %v684_v41  ;;  %v803_v40 = vld [vmem:[%s3311_s4 + $0x590] sm:$0xff] }
  0xaf   : > { %v811_v41 = vld [vmem:[%s3311_s4 + $0x5d0] sm:$0xff] }
  0xb0   : > { %2005 = vmatpush1.bf16.msra.mxu0 %v2619_v47  ;;  %2046 = vmatpush1.bf16.msra.mxu1 %v2621_v48  ;;  %v699_v47 = vld [vmem:[%s3311_s4 + $0x250] sm:$0xff]  ;;  %v692_v48 = vld [vmem:[%s3311_s4 + $0x218] sm:$0xff] }
  0xb1   : > { %2006 = vmatprep.subr.bf16.mxu0 %v2636_v49  ;;  %2047 = vmatprep.subr.bf16.mxu1 %v2638_v50  ;;  %v700_v49 = vld [vmem:[%s3311_s4 + $0x258] sm:$0xff]  ;;  %v2527_v50 = vcombine.low %v675_v38, %v683_v39  ;;  %v2544_v52 = vcombine.high %v691_v46, %v699_v47  ;;  %v2640_v38 = vcombine.high %v787_v24, %v795_v33 }
  0xb2   : > { %v2546_v53 = vcombine.high %v692_v48, %v700_v49  ;;  %v2545_v59 = vcombine.low %v692_v48, %v700_v49  ;;  %v819_v48 = vld [vmem:[%s3311_s4 + $0x610] sm:$0xff] }
  0xb3   : > { %v827_v49 = vld [vmem:[%s3311_s4 + $0x650] sm:$0xff] }
  0xb4   : > { %2007 = vmatpush1.bf16.msra.mxu0 %v2635_v55  ;;  %2048 = vmatpush1.bf16.msra.mxu1 %v2637_v56  ;;  %v715_v55 = vld [vmem:[%s3311_s4 + $0x2d0] sm:$0xff]  ;;  %v708_v56 = vld [vmem:[%s3311_s4 + $0x298] sm:$0xff] }
  0xb5   : > { %2008 = vmatprep.subr.bf16.mxu0 %v2652_v57  ;;  %2049 = vmatprep.subr.bf16.mxu1 %v2654_v58  ;;  %v716_v57 = vld [vmem:[%s3311_s4 + $0x2d8] sm:$0xff]  ;;  %v2543_v58 = vcombine.low %v691_v46, %v699_v47  ;;  %v2560_v60 = vcombine.high %v707_v54, %v715_v55  ;;  %v2656_v46 = vcombine.high %v803_v40, %v811_v41 }
  0xb6   : > { %v2562_v61 = vcombine.high %v708_v56, %v716_v57  ;;  %v2561_v3 = vcombine.low %v708_v56, %v716_v57  ;;  %v835_v56 = vld [vmem:[%s3311_s4 + $0x690] sm:$0xff]  ;;  %v836_v57 = vld [vmem:[%s3311_s4 + $0x698] sm:$0xff] }
  0xb8   : > { %2009 = vmatpush1.bf16.msra.mxu0 %v2651_v63  ;;  %2050 = vmatpush1.bf16.msra.mxu1 %v2653_v0  ;;  %v731_v63 = vld [vmem:[%s3311_s4 + $0x350] sm:$0xff]  ;;  %v724_v0 = vld [vmem:[%s3311_s4 + $0x318] sm:$0xff] }
  0xb9   : > { %2010 = vmatprep.subr.bf16.mxu0 %v2668_v1  ;;  %2051 = vmatprep.subr.bf16.mxu1 %v2670_v2  ;;  %v732_v1 = vld [vmem:[%s3311_s4 + $0x358] sm:$0xff]  ;;  %v2559_v2 = vcombine.low %v707_v54, %v715_v55  ;;  %v2576_v4 = vcombine.high %v723_v62, %v731_v63  ;;  %v2672_v54 = vcombine.high %v819_v48, %v827_v49 }
  0xba   : > { %v2578_v5 = vcombine.high %v724_v0, %v732_v1  ;;  %v2577_v11 = vcombine.low %v724_v0, %v732_v1  ;;  %v629_v0 = vld [vmem:[%s3311_s4 + $0x20] sm:$0xff] }
  0xbb   : > { %v637_v1 = vld [vmem:[%s3311_s4 + $0x60] sm:$0xff] }
  0xbc   : > { %2011 = vmatpush1.bf16.msra.mxu0 %v2667_v6  ;;  %2052 = vmatpush1.bf16.msra.mxu1 %v2669_v7  ;;  %v739_v6 = vld [vmem:[%s3311_s4 + $0x390] sm:$0xff] }
  0xbd   : > { %2699 = vmatprep.subr.msk.bf16.mxu0 %vm1937_vm1, %v2684_v8  ;;  %2701 = vmatprep.subr.msk.bf16.mxu1 %vm1937_vm1, %v2686_v10  ;;  %v747_v7 = vld [vmem:[%s3311_s4 + $0x3d0] sm:$0xff]  ;;  %v740_v8 = vld [vmem:[%s3311_s4 + $0x398] sm:$0xff]  ;;  %v2575_v10 = vcombine.low %v723_v62, %v731_v63  ;;  %v2690_v62 = vcombine.high %v836_v57, %v836_v57  ;;  %v2689_v63 = vcombine.low %v836_v57, %v836_v57 }
  0xbe   : > { %v2592_v12 = vcombine.high %v739_v6, %v747_v7  ;;  %v2594_v13 = vcombine.high %v740_v8, %v748_v9 }
  0xc0   : > { %2013 = vmatpush1.bf16.msra.mxu0 %v1939_v16  ;;  %2054 = vmatpush1.bf16.msra.mxu1 %v1945_v18  ;;  %v756_v16 = vld [vmem:[%s3311_s4 + $0x418] sm:$0xff]  ;;  %v2591_v18 = vcombine.low %v739_v6, %v747_v7  ;;  %v1957_v6 = vsel %vm1937_vm1, %v2689_v63, 0 }
  0xc1   : > { %2068 = vmatprep.subr.bf16.mxu0 %v2480_v17  ;;  %2109 = vmatprep.subr.bf16.mxu1 %v2482_v19  ;;  %v764_v17 = vld [vmem:[%s3311_s4 + $0x458] sm:$0xff]  ;;  %v2593_v19 = vcombine.low %v740_v8, %v748_v9  ;;  %v645_v8 = vld [vmem:[%s3311_s4 + $0xa0] sm:$0xff] }
  0xc2   : > { %v2610_v21 = vcombine.high %v756_v16, %v764_v17  ;;  %v653_v9 = vld [vmem:[%s3311_s4 + $0xe0] sm:$0xff] }
  0xc3   : > { %2019 = vmatmul.mubr.bf16.vlgmr.msra.gmra.mrb[0].mxu0 %v3382_v22  ;;  %2060 = vmatmul.mubr.bf16.vlgmr.msra.gmra.mrb[0].mxu1 %v3382_v22 }
  0xc4   : > { %2069 = vmatpush1.bf16.msra.mxu0 %v2479_v27  ;;  %2110 = vmatpush1.bf16.msra.mxu1 %v2481_v28  ;;  %v772_v27 = vld [vmem:[%s3311_s4 + $0x498] sm:$0xff] }
  0xc5   : > { %2070 = vmatprep.subr.bf16.mxu0 %v2496_v29  ;;  %2111 = vmatprep.subr.bf16.mxu1 %v2498_v30  ;;  %v780_v28 = vld [vmem:[%s3311_s4 + $0x4d8] sm:$0xff]  ;;  %v2607_v29 = vcombine.low %v755_v14, %v763_v15  ;;  %v2609_v30 = vcombine.low %v756_v16, %v764_v17  ;;  %v2500_v14 = vcombine.high %v645_v8, %v653_v9  ;;  %v661_v16 = vld [vmem:[%s3311_s4 + $0x120] sm:$0xff] }
  0xc6   : > { %2704 = vmatprep.mubr.msk.bf16.mxu0 %vm1933_vm0, %v3305_v25  ;;  %2706 = vmatprep.mubr.msk.bf16.mxu1 %vm1933_vm0, %v3305_v25  ;;  %v2626_v32 = vcombine.high %v772_v27, %v780_v28  ;;  %v669_v17 = vld [vmem:[%s3311_s4 + $0x160] sm:$0xff] }
  0xc8   : > { %2071 = vmatpush1.bf16.msra.mxu0 %v2495_v34  ;;  %2112 = vmatpush1.bf16.msra.mxu1 %v2497_v35  ;;  %v788_v34 = vld [vmem:[%s3311_s4 + $0x518] sm:$0xff] }
  0xc9   : > { %2072 = vmatprep.subr.bf16.mxu0 %v2512_v36  ;;  %2113 = vmatprep.subr.bf16.mxu1 %v2514_v37  ;;  %v796_v35 = vld [vmem:[%s3311_s4 + $0x558] sm:$0xff]  ;;  %v2623_v36 = vcombine.low %v771_v23, %v779_v26  ;;  %v2625_v37 = vcombine.low %v772_v27, %v780_v28  ;;  %v2516_v23 = vcombine.high %v661_v16, %v669_v17  ;;  %v677_v27 = vld [vmem:[%s3311_s4 + $0x1a0] sm:$0xff] }
  0xca   : > { %v2642_v39 = vcombine.high %v788_v34, %v796_v35  ;;  %v685_v28 = vld [vmem:[%s3311_s4 + $0x1e0] sm:$0xff] }
  0xcc   : > { %2073 = vmatpush1.bf16.msra.mxu0 %v2511_v42  ;;  %2114 = vmatpush1.bf16.msra.mxu1 %v2513_v43  ;;  %v804_v42 = vld [vmem:[%s3311_s4 + $0x598] sm:$0xff] }
  0xcd   : > { %2074 = vmatprep.subr.bf16.mxu0 %v2528_v44  ;;  %2115 = vmatprep.subr.bf16.mxu1 %v2530_v45  ;;  %v812_v43 = vld [vmem:[%s3311_s4 + $0x5d8] sm:$0xff]  ;;  %v2639_v44 = vcombine.low %v787_v24, %v795_v33  ;;  %v2641_v45 = vcombine.low %v788_v34, %v796_v35  ;;  %v2532_v24 = vcombine.high %v677_v27, %v685_v28  ;;  %v693_v34 = vld [vmem:[%s3311_s4 + $0x220] sm:$0xff] }
  0xce   : > { %v2658_v47 = vcombine.high %v804_v42, %v812_v43  ;;  %v701_v35 = vld [vmem:[%s3311_s4 + $0x260] sm:$0xff] }
  0xd0   : > { %2075 = vmatpush1.bf16.msra.mxu0 %v2527_v50  ;;  %2116 = vmatpush1.bf16.msra.mxu1 %v2529_v51  ;;  %v820_v50 = vld [vmem:[%s3311_s4 + $0x618] sm:$0xff] }
  0xd1   : > { %2076 = vmatprep.subr.bf16.mxu0 %v2544_v52  ;;  %2117 = vmatprep.subr.bf16.mxu1 %v2546_v53  ;;  %v828_v51 = vld [vmem:[%s3311_s4 + $0x658] sm:$0xff]  ;;  %v2655_v52 = vcombine.low %v803_v40, %v811_v41  ;;  %v2657_v53 = vcombine.low %v804_v42, %v812_v43  ;;  %v2548_v40 = vcombine.high %v693_v34, %v701_v35  ;;  %v709_v42 = vld [vmem:[%s3311_s4 + $0x2a0] sm:$0xff] }
  0xd2   : > { %v2674_v55 = vcombine.high %v820_v50, %v828_v51  ;;  %v717_v43 = vld [vmem:[%s3311_s4 + $0x2e0] sm:$0xff] }
  0xd4   : > { %2077 = vmatpush1.bf16.msra.mxu0 %v2543_v58  ;;  %2118 = vmatpush1.bf16.msra.mxu1 %v2545_v59  ;;  %v2671_v58 = vcombine.low %v819_v48, %v827_v49  ;;  %v2673_v59 = vcombine.low %v820_v50, %v828_v51  ;;  %v2564_v48 = vcombine.high %v709_v42, %v717_v43  ;;  %v725_v50 = vld [vmem:[%s3311_s4 + $0x320] sm:$0xff] }
  0xd5   : > { %2078 = vmatprep.subr.bf16.mxu0 %v2560_v60  ;;  %2119 = vmatprep.subr.bf16.mxu1 %v2562_v61  ;;  %v2688_v60 = vcombine.high %v835_v56, %v835_v56  ;;  %v2687_v61 = vcombine.low %v835_v56, %v835_v56  ;;  %v733_v51 = vld [vmem:[%s3311_s4 + $0x360] sm:$0xff] }
  0xd6   : > { %v2580_v56 = vcombine.high %v725_v50, %v733_v51 }
  0xd8   : > { %2079 = vmatpush1.bf16.msra.mxu0 %v2559_v2  ;;  %2120 = vmatpush1.bf16.msra.mxu1 %v2561_v3  ;;  %v630_v2 = vld [vmem:[%s3311_s4 + $0x28] sm:$0xff] }
  0xd9   : > { %2080 = vmatprep.subr.bf16.mxu0 %v2576_v4  ;;  %2121 = vmatprep.subr.bf16.mxu1 %v2578_v5  ;;  %v638_v3 = vld [vmem:[%s3311_s4 + $0x68] sm:$0xff]  ;;  %v1951_v4 = vsel %vm1937_vm1, %v2687_v61, 0  ;;  %v2484_v5 = vcombine.high %v629_v0, %v637_v1 }
  0xda   : > { %v2486_v7 = vcombine.high %v630_v2, %v638_v3  ;;  %v750_v61 = vld [vmem:[%s3311_s4 + $0x3e8] sm:$0xff] }
  0xdc   : > { %2081 = vmatpush1.bf16.msra.mxu0 %v2575_v10  ;;  %2122 = vmatpush1.bf16.msra.mxu1 %v2577_v11  ;;  %v646_v10 = vld [vmem:[%s3311_s4 + $0xa8] sm:$0xff] }
  0xdd   : > { %2082 = vmatprep.subr.bf16.mxu0 %v2592_v12  ;;  %2123 = vmatprep.subr.bf16.mxu1 %v2594_v13  ;;  %v654_v11 = vld [vmem:[%s3311_s4 + $0xe8] sm:$0xff]  ;;  %v2483_v12 = vcombine.low %v629_v0, %v637_v1  ;;  %v2485_v13 = vcombine.low %v630_v2, %v638_v3  ;;  %v757_v2 = vld [vmem:[%s3311_s4 + $0x420] sm:$0xff] }
  0xde   : > { %v2502_v15 = vcombine.high %v646_v10, %v654_v11  ;;  %v765_v3 = vld [vmem:[%s3311_s4 + $0x460] sm:$0xff] }
  0xe0   : > { %2083 = vmatpush1.bf16.msra.mxu0 %v2591_v18  ;;  %2124 = vmatpush1.bf16.msra.mxu1 %v2593_v19  ;;  %v662_v18 = vld [vmem:[%s3311_s4 + $0x128] sm:$0xff] }
  0xe1   : > { %2084 = vmatprep.subr.bf16.mxu0 %v2608_v20  ;;  %2125 = vmatprep.subr.bf16.mxu1 %v2610_v21  ;;  %v670_v19 = vld [vmem:[%s3311_s4 + $0x168] sm:$0xff]  ;;  %v2499_v20 = vcombine.low %v645_v8, %v653_v9  ;;  %v2501_v21 = vcombine.low %v646_v10, %v654_v11  ;;  %v2612_v8 = vcombine.high %v757_v2, %v765_v3  ;;  %v773_v10 = vld [vmem:[%s3311_s4 + $0x4a0] sm:$0xff] }
  0xe2   : > { %v2518_v26 = vcombine.high %v662_v18, %v670_v19  ;;  %v781_v11 = vld [vmem:[%s3311_s4 + $0x4e0] sm:$0xff] }
  0xe4   : > { %2085 = vmatpush1.bf16.msra.mxu0 %v2607_v29  ;;  %2126 = vmatpush1.bf16.msra.mxu1 %v2609_v30  ;;  %v678_v29 = vld [vmem:[%s3311_s4 + $0x1a8] sm:$0xff] }
  0xe5   : > { %2086 = vmatprep.subr.bf16.mxu0 %v2624_v31  ;;  %2127 = vmatprep.subr.bf16.mxu1 %v2626_v32  ;;  %v686_v30 = vld [vmem:[%s3311_s4 + $0x1e8] sm:$0xff]  ;;  %v2515_v31 = vcombine.low %v661_v16, %v669_v17  ;;  %v2517_v32 = vcombine.low %v662_v18, %v670_v19  ;;  %v2628_v16 = vcombine.high %v773_v10, %v781_v11  ;;  %v789_v18 = vld [vmem:[%s3311_s4 + $0x520] sm:$0xff] }
  0xe6   : > { %v2534_v33 = vcombine.high %v678_v29, %v686_v30  ;;  %v797_v19 = vld [vmem:[%s3311_s4 + $0x560] sm:$0xff] }
  0xe8   : > { %2087 = vmatpush1.bf16.msra.mxu0 %v2623_v36  ;;  %2128 = vmatpush1.bf16.msra.mxu1 %v2625_v37  ;;  %v694_v36 = vld [vmem:[%s3311_s4 + $0x228] sm:$0xff] }
  0xe9   : > { %2088 = vmatprep.subr.bf16.mxu0 %v2640_v38  ;;  %2129 = vmatprep.subr.bf16.mxu1 %v2642_v39  ;;  %v702_v37 = vld [vmem:[%s3311_s4 + $0x268] sm:$0xff]  ;;  %v2531_v38 = vcombine.low %v677_v27, %v685_v28  ;;  %v2533_v39 = vcombine.low %v678_v29, %v686_v30  ;;  %v2644_v27 = vcombine.high %v789_v18, %v797_v19  ;;  %v805_v29 = vld [vmem:[%s3311_s4 + $0x5a0] sm:$0xff] }
  0xea   : > { %v2550_v41 = vcombine.high %v694_v36, %v702_v37  ;;  %v813_v30 = vld [vmem:[%s3311_s4 + $0x5e0] sm:$0xff] }
  0xec   : > { %2089 = vmatpush1.bf16.msra.mxu0 %v2639_v44  ;;  %2130 = vmatpush1.bf16.msra.mxu1 %v2641_v45  ;;  %v710_v44 = vld [vmem:[%s3311_s4 + $0x2a8] sm:$0xff] }
  0xed   : > { %2090 = vmatprep.subr.bf16.mxu0 %v2656_v46  ;;  %2131 = vmatprep.subr.bf16.mxu1 %v2658_v47  ;;  %v718_v45 = vld [vmem:[%s3311_s4 + $0x2e8] sm:$0xff]  ;;  %v2547_v46 = vcombine.low %v693_v34, %v701_v35  ;;  %v2549_v47 = vcombine.low %v694_v36, %v702_v37  ;;  %v2660_v34 = vcombine.high %v805_v29, %v813_v30  ;;  %v821_v36 = vld [vmem:[%s3311_s4 + $0x620] sm:$0xff] }
  0xee   : > { %v2566_v49 = vcombine.high %v710_v44, %v718_v45  ;;  %v829_v37 = vld [vmem:[%s3311_s4 + $0x660] sm:$0xff] }
  0xf0   : > { %2091 = vmatpush1.bf16.msra.mxu0 %v2655_v52  ;;  %2132 = vmatpush1.bf16.msra.mxu1 %v2657_v53  ;;  %v726_v52 = vld [vmem:[%s3311_s4 + $0x328] sm:$0xff] }
  0xf1   : > { %2092 = vmatprep.subr.bf16.mxu0 %v2672_v54  ;;  %2133 = vmatprep.subr.bf16.mxu1 %v2674_v55  ;;  %v734_v53 = vld [vmem:[%s3311_s4 + $0x368] sm:$0xff]  ;;  %v2563_v54 = vcombine.low %v709_v42, %v717_v43  ;;  %v2565_v55 = vcombine.low %v710_v44, %v718_v45  ;;  %v2676_v42 = vcombine.high %v821_v36, %v829_v37  ;;  %v837_v44 = vld [vmem:[%s3311_s4 + $0x6a0] sm:$0xff] }
  0xf2   : > { %v2582_v57 = vcombine.high %v726_v52, %v734_v53  ;;  %v2581_v63 = vcombine.low %v726_v52, %v734_v53  ;;  %v838_v45 = vld [vmem:[%s3311_s4 + $0x6a8] sm:$0xff]  ;;  %v631_v52 = vld [vmem:[%s3311_s4 + $0x30] sm:$0xff] }
  0xf3   : > { %v639_v53 = vld [vmem:[%s3311_s4 + $0x70] sm:$0xff] }
  0xf4   : > { %2093 = vmatpush1.bf16.msra.mxu0 %v2671_v58  ;;  %2134 = vmatpush1.bf16.msra.mxu1 %v2673_v59  ;;  %v741_v58 = vld [vmem:[%s3311_s4 + $0x3a0] sm:$0xff] }
  0xf5   : > { %2703 = vmatprep.subr.msk.bf16.mxu0 %vm1937_vm1, %v2688_v60  ;;  %2705 = vmatprep.subr.msk.bf16.mxu1 %vm1937_vm1, %v2690_v62  ;;  %v749_v59 = vld [vmem:[%s3311_s4 + $0x3e0] sm:$0xff]  ;;  %v742_v60 = vld [vmem:[%s3311_s4 + $0x3a8] sm:$0xff]  ;;  %v2579_v62 = vcombine.low %v725_v50, %v733_v51  ;;  %v2694_v50 = vcombine.high %v838_v45, %v838_v45  ;;  %v2693_v51 = vcombine.low %v838_v45, %v838_v45  ;;  %v743_v45 = vld [vmem:[%s3311_s4 + $0x3b0] sm:$0xff] }
  0xf6   : > { %v2596_v0 = vcombine.high %v741_v58, %v749_v59  ;;  %v2598_v1 = vcombine.high %v742_v60, %v750_v61 }
  0xf8   : > { %2095 = vmatpush1.bf16.msra.mxu0 %v1951_v4  ;;  %2136 = vmatpush1.bf16.msra.mxu1 %v1957_v6  ;;  %v758_v4 = vld [vmem:[%s3311_s4 + $0x428] sm:$0xff]  ;;  %v2595_v6 = vcombine.low %v741_v58, %v749_v59  ;;  %v1969_v58 = vsel %vm1937_vm1, %v2693_v51, 0 }
  0xf9   : > { %2150 = vmatprep.subr.bf16.mxu0 %v2484_v5  ;;  %2191 = vmatprep.subr.bf16.mxu1 %v2486_v7  ;;  %v766_v5 = vld [vmem:[%s3311_s4 + $0x468] sm:$0xff]  ;;  %v2597_v7 = vcombine.low %v742_v60, %v750_v61  ;;  %v647_v60 = vld [vmem:[%s3311_s4 + $0xb0] sm:$0xff] }
  0xfa   : > { %v2614_v9 = vcombine.high %v758_v4, %v766_v5  ;;  %v655_v61 = vld [vmem:[%s3311_s4 + $0xf0] sm:$0xff] }
  0xfb   : > { %2101 = vmatmul.mubr.bf16.vlgmr.msra.gmra.mrb[4].mxu0 %v3382_v22  ;;  %2142 = vmatmul.mubr.bf16.vlgmr.msra.gmra.mrb[4].mxu1 %v3382_v22 }
  0xfc   : > { %2151 = vmatpush1.bf16.msra.mxu0 %v2483_v12  ;;  %2192 = vmatpush1.bf16.msra.mxu1 %v2485_v13  ;;  %v774_v12 = vld [vmem:[%s3311_s4 + $0x4a8] sm:$0xff] }
  0xfd   : > { %2152 = vmatprep.subr.bf16.mxu0 %v2500_v14  ;;  %2193 = vmatprep.subr.bf16.mxu1 %v2502_v15  ;;  %v782_v13 = vld [vmem:[%s3311_s4 + $0x4e8] sm:$0xff]  ;;  %v2611_v14 = vcombine.low %v757_v2, %v765_v3  ;;  %v2613_v15 = vcombine.low %v758_v4, %v766_v5  ;;  %v2504_v2 = vcombine.high %v647_v60, %v655_v61  ;;  %v663_v4 = vld [vmem:[%s3311_s4 + $0x130] sm:$0xff] }
  0xfe   : > { %2708 = vmatprep.mubr.msk.bf16.mxu0 %vm1933_vm0, %v3305_v25  ;;  %2710 = vmatprep.mubr.msk.bf16.mxu1 %vm1933_vm0, %v3305_v25  ;;  %v2630_v17 = vcombine.high %v774_v12, %v782_v13  ;;  %v671_v5 = vld [vmem:[%s3311_s4 + $0x170] sm:$0xff] }
 0x100   : > { %2153 = vmatpush1.bf16.msra.mxu0 %v2499_v20  ;;  %2194 = vmatpush1.bf16.msra.mxu1 %v2501_v21  ;;  %v790_v20 = vld [vmem:[%s3311_s4 + $0x528] sm:$0xff] }
 0x101   : > { %2154 = vmatprep.subr.bf16.mxu0 %v2516_v23  ;;  %2195 = vmatprep.subr.bf16.mxu1 %v2518_v26  ;;  %v798_v21 = vld [vmem:[%s3311_s4 + $0x568] sm:$0xff]  ;;  %v2627_v23 = vcombine.low %v773_v10, %v781_v11  ;;  %v2629_v26 = vcombine.low %v774_v12, %v782_v13  ;;  %v2520_v10 = vcombine.high %v663_v4, %v671_v5  ;;  %v679_v12 = vld [vmem:[%s3311_s4 + $0x1b0] sm:$0xff] }
 0x102   : > { %v2646_v28 = vcombine.high %v790_v20, %v798_v21  ;;  %v687_v13 = vld [vmem:[%s3311_s4 + $0x1f0] sm:$0xff] }
 0x104   : > { %2155 = vmatpush1.bf16.msra.mxu0 %v2515_v31  ;;  %2196 = vmatpush1.bf16.msra.mxu1 %v2517_v32  ;;  %v806_v31 = vld [vmem:[%s3311_s4 + $0x5a8] sm:$0xff] }
 0x105   : > { %2156 = vmatprep.subr.bf16.mxu0 %v2532_v24  ;;  %2197 = vmatprep.subr.bf16.mxu1 %v2534_v33  ;;  %v814_v32 = vld [vmem:[%s3311_s4 + $0x5e8] sm:$0xff]  ;;  %v2643_v24 = vcombine.low %v789_v18, %v797_v19  ;;  %v2645_v33 = vcombine.low %v790_v20, %v798_v21  ;;  %v2536_v18 = vcombine.high %v679_v12, %v687_v13  ;;  %v695_v20 = vld [vmem:[%s3311_s4 + $0x230] sm:$0xff] }
 0x106   : > { %v2662_v35 = vcombine.high %v806_v31, %v814_v32  ;;  %v703_v21 = vld [vmem:[%s3311_s4 + $0x270] sm:$0xff] }
 0x108   : > { %2157 = vmatpush1.bf16.msra.mxu0 %v2531_v38  ;;  %2198 = vmatpush1.bf16.msra.mxu1 %v2533_v39  ;;  %v822_v38 = vld [vmem:[%s3311_s4 + $0x628] sm:$0xff] }
 0x109   : > { %2158 = vmatprep.subr.bf16.mxu0 %v2548_v40  ;;  %2199 = vmatprep.subr.bf16.mxu1 %v2550_v41  ;;  %v830_v39 = vld [vmem:[%s3311_s4 + $0x668] sm:$0xff]  ;;  %v2659_v40 = vcombine.low %v805_v29, %v813_v30  ;;  %v2661_v41 = vcombine.low %v806_v31, %v814_v32  ;;  %v711_v30 = vld [vmem:[%s3311_s4 + $0x2b0] sm:$0xff]  ;;  %v712_v32 = vld [vmem:[%s3311_s4 + $0x2b8] sm:$0xff] }
 0x10a   : > { %v2678_v43 = vcombine.high %v822_v38, %v830_v39  ;;  %v719_v31 = vld [vmem:[%s3311_s4 + $0x2f0] sm:$0xff] }
 0x10c   : > { %2159 = vmatpush1.bf16.msra.mxu0 %v2547_v46  ;;  %2200 = vmatpush1.bf16.msra.mxu1 %v2549_v47  ;;  %v2675_v46 = vcombine.low %v821_v36, %v829_v37  ;;  %v2677_v47 = vcombine.low %v822_v38, %v830_v39  ;;  %v727_v37 = vld [vmem:[%s3311_s4 + $0x330] sm:$0xff]  ;;  %v728_v39 = vld [vmem:[%s3311_s4 + $0x338] sm:$0xff] }
 0x10d   : > { %2160 = vmatprep.subr.bf16.mxu0 %v2564_v48  ;;  %2201 = vmatprep.subr.bf16.mxu1 %v2566_v49  ;;  %v2692_v48 = vcombine.high %v837_v44, %v837_v44  ;;  %v2691_v49 = vcombine.low %v837_v44, %v837_v44  ;;  %v735_v38 = vld [vmem:[%s3311_s4 + $0x370] sm:$0xff] }
 0x110   : > { %2161 = vmatpush1.bf16.msra.mxu0 %v2563_v54  ;;  %2202 = vmatpush1.bf16.msra.mxu1 %v2565_v55  ;;  %v632_v54 = vld [vmem:[%s3311_s4 + $0x38] sm:$0xff] }
 0x111   : > { %2162 = vmatprep.subr.bf16.mxu0 %v2580_v56  ;;  %2203 = vmatprep.subr.bf16.mxu1 %v2582_v57  ;;  %v640_v55 = vld [vmem:[%s3311_s4 + $0x78] sm:$0xff]  ;;  %v1963_v56 = vsel %vm1937_vm1, %v2691_v49, 0  ;;  %v2488_v57 = vcombine.high %v631_v52, %v639_v53  ;;  %v2583_v49 = vcombine.low %v727_v37, %v735_v38 }
 0x112   : > { %v2490_v59 = vcombine.high %v632_v54, %v640_v55 }
 0x114   : > { %2163 = vmatpush1.bf16.msra.mxu0 %v2579_v62  ;;  %2204 = vmatpush1.bf16.msra.mxu1 %v2581_v63  ;;  %v648_v62 = vld [vmem:[%s3311_s4 + $0xb8] sm:$0xff] }
 0x115   : > { %2164 = vmatprep.subr.bf16.mxu0 %v2596_v0  ;;  %2205 = vmatprep.subr.bf16.mxu1 %v2598_v1  ;;  %v656_v63 = vld [vmem:[%s3311_s4 + $0xf8] sm:$0xff]  ;;  %v2487_v0 = vcombine.low %v631_v52, %v639_v53  ;;  %v2489_v1 = vcombine.low %v632_v54, %v640_v55  ;;  %v759_v53 = vld [vmem:[%s3311_s4 + $0x430] sm:$0xff] }
 0x116   : > { %v2506_v3 = vcombine.high %v648_v62, %v656_v63  ;;  %v767_v54 = vld [vmem:[%s3311_s4 + $0x470] sm:$0xff]  ;;  %v760_v55 = vld [vmem:[%s3311_s4 + $0x438] sm:$0xff] }
 0x118   : > { %2165 = vmatpush1.bf16.msra.mxu0 %v2595_v6  ;;  %2206 = vmatpush1.bf16.msra.mxu1 %v2597_v7  ;;  %v664_v6 = vld [vmem:[%s3311_s4 + $0x138] sm:$0xff] }
 0x119   : > { %2166 = vmatprep.subr.bf16.mxu0 %v2612_v8  ;;  %2207 = vmatprep.subr.bf16.mxu1 %v2614_v9  ;;  %v672_v7 = vld [vmem:[%s3311_s4 + $0x178] sm:$0xff]  ;;  %v2503_v8 = vcombine.low %v647_v60, %v655_v61  ;;  %v2505_v9 = vcombine.low %v648_v62, %v656_v63  ;;  %v775_v61 = vld [vmem:[%s3311_s4 + $0x4b0] sm:$0xff] }
 0x11a   : > { %v2522_v11 = vcombine.high %v664_v6, %v672_v7  ;;  %v783_v62 = vld [vmem:[%s3311_s4 + $0x4f0] sm:$0xff]  ;;  %v776_v63 = vld [vmem:[%s3311_s4 + $0x4b8] sm:$0xff] }
 0x11c   : > { %2167 = vmatpush1.bf16.msra.mxu0 %v2611_v14  ;;  %2208 = vmatpush1.bf16.msra.mxu1 %v2613_v15  ;;  %v680_v14 = vld [vmem:[%s3311_s4 + $0x1b8] sm:$0xff] }
 0x11d   : > { %2168 = vmatprep.subr.bf16.mxu0 %v2628_v16  ;;  %2209 = vmatprep.subr.bf16.mxu1 %v2630_v17  ;;  %v688_v15 = vld [vmem:[%s3311_s4 + $0x1f8] sm:$0xff]  ;;  %v2519_v16 = vcombine.low %v663_v4, %v671_v5  ;;  %v2521_v17 = vcombine.low %v664_v6, %v672_v7  ;;  %v791_v5 = vld [vmem:[%s3311_s4 + $0x530] sm:$0xff] }
 0x11e   : > { %v2538_v19 = vcombine.high %v680_v14, %v688_v15  ;;  %v799_v6 = vld [vmem:[%s3311_s4 + $0x570] sm:$0xff]  ;;  %v792_v7 = vld [vmem:[%s3311_s4 + $0x538] sm:$0xff] }
 0x120   : > { %2169 = vmatpush1.bf16.msra.mxu0 %v2627_v23  ;;  %2210 = vmatpush1.bf16.msra.mxu1 %v2629_v26  ;;  %v696_v23 = vld [vmem:[%s3311_s4 + $0x238] sm:$0xff] }
 0x121   : > { %2170 = vmatprep.subr.bf16.mxu0 %v2644_v27  ;;  %2211 = vmatprep.subr.bf16.mxu1 %v2646_v28  ;;  %v704_v26 = vld [vmem:[%s3311_s4 + $0x278] sm:$0xff]  ;;  %v2535_v27 = vcombine.low %v679_v12, %v687_v13  ;;  %v2552_v28 = vcombine.high %v695_v20, %v703_v21  ;;  %v807_v13 = vld [vmem:[%s3311_s4 + $0x5b0] sm:$0xff] }
 0x122   : > { %v2554_v29 = vcombine.high %v696_v23, %v704_v26 }
 0x124   : > { %2171 = vmatpush1.bf16.msra.mxu0 %v2643_v24  ;;  %2212 = vmatpush1.bf16.msra.mxu1 %v2645_v33  ;;  %v720_v24 = vld [vmem:[%s3311_s4 + $0x2f8] sm:$0xff]  ;;  %v2551_v33 = vcombine.low %v695_v20, %v703_v21  ;;  %v823_v21 = vld [vmem:[%s3311_s4 + $0x630] sm:$0xff] }
 0x125   : > { %2172 = vmatprep.subr.bf16.mxu0 %v2660_v34  ;;  %2213 = vmatprep.subr.bf16.mxu1 %v2662_v35  ;;  %v2553_v34 = vcombine.low %v696_v23, %v704_v26  ;;  %v2568_v35 = vcombine.high %v711_v30, %v719_v31  ;;  %v2570_v36 = vcombine.high %v712_v32, %v720_v24  ;;  %v831_v23 = vld [vmem:[%s3311_s4 + $0x670] sm:$0xff]  ;;  %v824_v26 = vld [vmem:[%s3311_s4 + $0x638] sm:$0xff] }
 0x128   : > { %2173 = vmatpush1.bf16.msra.mxu0 %v2659_v40  ;;  %2214 = vmatpush1.bf16.msra.mxu1 %v2661_v41  ;;  %v736_v40 = vld [vmem:[%s3311_s4 + $0x378] sm:$0xff]  ;;  %v2567_v41 = vcombine.low %v711_v30, %v719_v31  ;;  %v839_v31 = vld [vmem:[%s3311_s4 + $0x6b0] sm:$0xff] }
 0x129   : > { %2174 = vmatprep.subr.bf16.mxu0 %v2676_v42  ;;  %2215 = vmatprep.subr.bf16.mxu1 %v2678_v43  ;;  %v2569_v42 = vcombine.low %v712_v32, %v720_v24  ;;  %v2584_v43 = vcombine.high %v727_v37, %v735_v38  ;;  %v2586_v44 = vcombine.high %v728_v39, %v736_v40  ;;  %v840_v32 = vld [vmem:[%s3311_s4 + $0x6b8] sm:$0xff] }
 0x12a   : > { %v2679_v24 = vcombine.low %v823_v21, %v831_v23  ;;  %v2697_v37 = vcombine.low %v840_v32, %v840_v32 }
 0x12c   : > { %2175 = vmatpush1.bf16.msra.mxu0 %v2675_v46  ;;  %2216 = vmatpush1.bf16.msra.mxu1 %v2677_v47  ;;  %v751_v46 = vld [vmem:[%s3311_s4 + $0x3f0] sm:$0xff]  ;;  %v744_v47 = vld [vmem:[%s3311_s4 + $0x3b8] sm:$0xff] }
 0x12d   : > { %2707 = vmatprep.subr.msk.bf16.mxu0 %vm1937_vm1, %v2692_v48  ;;  %2709 = vmatprep.subr.msk.bf16.mxu1 %vm1937_vm1, %v2694_v50  ;;  %v752_v48 = vld [vmem:[%s3311_s4 + $0x3f8] sm:$0xff]  ;;  %v2585_v50 = vcombine.low %v728_v39, %v736_v40  ;;  %v2600_v51 = vcombine.high %v743_v45, %v751_v46  ;;  %v1981_v39 = vsel %vm1937_vm1, %v2697_v37, 0  ;;  %v3574_v40 = vpop.permute.xlu0 %844 }
 0x12e   : > { %v2602_v52 = vcombine.high %v744_v47, %v752_v48 }
 0x130   : > { %2177 = vmatpush1.bf16.msra.mxu0 %v1963_v56  ;;  %2218 = vmatpush1.bf16.msra.mxu1 %v1969_v58  ;;  %v768_v56 = vld [vmem:[%s3311_s4 + $0x478] sm:$0xff]  ;;  %v2601_v58 = vcombine.low %v744_v47, %v752_v48 }
 0x131   : > { %2232 = vmatprep.subr.bf16.mxu0 %v2488_v57  ;;  %2273 = vmatprep.subr.bf16.mxu1 %v2490_v59  ;;  %v2599_v57 = vcombine.low %v743_v45, %v751_v46  ;;  %v2616_v59 = vcombine.high %v759_v53, %v767_v54  ;;  %v2618_v60 = vcombine.high %v760_v55, %v768_v56 }
 0x133   : > { %2183 = vmatmul.mubr.bf16.vlgmr.msra.gmra.mrb[8].mxu0 %v3382_v22  ;;  %2224 = vmatmul.mubr.bf16.vlgmr.msra.gmra.mrb[8].mxu1 %v3382_v22 }
 0x134   : > { %2233 = vmatpush1.bf16.msra.mxu0 %v2487_v0  ;;  %2274 = vmatpush1.bf16.msra.mxu1 %v2489_v1  ;;  %v784_v0 = vld [vmem:[%s3311_s4 + $0x4f8] sm:$0xff]  ;;  %v2615_v1 = vcombine.low %v759_v53, %v767_v54 }
 0x135   : > { %2234 = vmatprep.subr.bf16.mxu0 %v2504_v2  ;;  %2275 = vmatprep.subr.bf16.mxu1 %v2506_v3  ;;  %v2617_v2 = vcombine.low %v760_v55, %v768_v56  ;;  %v2632_v3 = vcombine.high %v775_v61, %v783_v62  ;;  %v2634_v4 = vcombine.high %v776_v63, %v784_v0 }
 0x136   : > { %2712 = vmatprep.mubr.msk.bf16.mxu0 %vm1933_vm0, %v3305_v25  ;;  %2714 = vmatprep.mubr.msk.bf16.mxu1 %vm1933_vm0, %v3305_v25  ;;  %v2537_v25 = vcombine.low %v680_v14, %v688_v15  ;;  %v815_v14 = vld [vmem:[%s3311_s4 + $0x5f0] sm:$0xff]  ;;  %v808_v15 = vld [vmem:[%s3311_s4 + $0x5b8] sm:$0xff] }
 0x138   : > { %2235 = vmatpush1.bf16.msra.mxu0 %v2503_v8  ;;  %2276 = vmatpush1.bf16.msra.mxu1 %v2505_v9  ;;  %v800_v8 = vld [vmem:[%s3311_s4 + $0x578] sm:$0xff]  ;;  %v2631_v9 = vcombine.low %v775_v61, %v783_v62 }
 0x139   : > { %2236 = vmatprep.subr.bf16.mxu0 %v2520_v10  ;;  %2277 = vmatprep.subr.bf16.mxu1 %v2522_v11  ;;  %v2633_v10 = vcombine.low %v776_v63, %v784_v0  ;;  %v2648_v11 = vcombine.high %v791_v5, %v799_v6  ;;  %v2650_v12 = vcombine.high %v792_v7, %v800_v8 }
 0x13c   : > { %2237 = vmatpush1.bf16.msra.mxu0 %v2519_v16  ;;  %2278 = vmatpush1.bf16.msra.mxu1 %v2521_v17  ;;  %v816_v16 = vld [vmem:[%s3311_s4 + $0x5f8] sm:$0xff]  ;;  %v2647_v17 = vcombine.low %v791_v5, %v799_v6 }
 0x13d   : > { %2238 = vmatprep.subr.bf16.mxu0 %v2536_v18  ;;  %2279 = vmatprep.subr.bf16.mxu1 %v2538_v19  ;;  %v2649_v18 = vcombine.low %v792_v7, %v800_v8  ;;  %v2664_v19 = vcombine.high %v807_v13, %v815_v14  ;;  %v2666_v20 = vcombine.high %v808_v15, %v816_v16 }
 0x140   : > { %2239 = vmatpush1.bf16.msra.mxu0 %v2535_v27  ;;  %2280 = vmatpush1.bf16.msra.mxu1 %v2537_v25  ;;  %v832_v27 = vld [vmem:[%s3311_s4 + $0x678] sm:$0xff]  ;;  %v2663_v25 = vcombine.low %v807_v13, %v815_v14 }
 0x141   : > { %2240 = vmatprep.subr.bf16.mxu0 %v2552_v28  ;;  %2281 = vmatprep.subr.bf16.mxu1 %v2554_v29  ;;  %v2665_v28 = vcombine.low %v808_v15, %v816_v16  ;;  %v2680_v29 = vcombine.high %v823_v21, %v831_v23  ;;  %v2682_v30 = vcombine.high %v824_v26, %v832_v27 }
 0x144   : > { %2241 = vmatpush1.bf16.msra.mxu0 %v2551_v33  ;;  %2282 = vmatpush1.bf16.msra.mxu1 %v2553_v34  ;;  %v2681_v33 = vcombine.low %v824_v26, %v832_v27  ;;  %v2696_v34 = vcombine.high %v839_v31, %v839_v31 }
 0x145   : > { %2242 = vmatprep.subr.bf16.mxu0 %v2568_v35  ;;  %2283 = vmatprep.subr.bf16.mxu1 %v2570_v36  ;;  %v2695_v35 = vcombine.low %v839_v31, %v839_v31  ;;  %v2698_v36 = vcombine.high %v840_v32, %v840_v32 }
 0x147   : > { %v1975_v38 = vsel %vm1937_vm1, %v2695_v35, 0 }
 0x148   : > { %2243 = vmatpush1.bf16.msra.mxu0 %v2567_v41  ;;  %2284 = vmatpush1.bf16.msra.mxu1 %v2569_v42 }
 0x149   : > { %2244 = vmatprep.subr.bf16.mxu0 %v2584_v43  ;;  %2285 = vmatprep.subr.bf16.mxu1 %v2586_v44 }
 0x14c   : > { %2245 = vmatpush1.bf16.msra.mxu0 %v2583_v49  ;;  %2286 = vmatpush1.bf16.msra.mxu1 %v2585_v50 }
 0x14d   : > { %2246 = vmatprep.subr.bf16.mxu0 %v2600_v51  ;;  %2287 = vmatprep.subr.bf16.mxu1 %v2602_v52 }
 0x150   : > { %2247 = vmatpush1.bf16.msra.mxu0 %v2599_v57  ;;  %2288 = vmatpush1.bf16.msra.mxu1 %v2601_v58 }
 0x151   : > { %2248 = vmatprep.subr.bf16.mxu0 %v2616_v59  ;;  %2289 = vmatprep.subr.bf16.mxu1 %v2618_v60 }
 0x154   : > { %2249 = vmatpush1.bf16.msra.mxu0 %v2615_v1  ;;  %2290 = vmatpush1.bf16.msra.mxu1 %v2617_v2 }
 0x155   : > { %2250 = vmatprep.subr.bf16.mxu0 %v2632_v3  ;;  %2291 = vmatprep.subr.bf16.mxu1 %v2634_v4 }
 0x158   : > { %2251 = vmatpush1.bf16.msra.mxu0 %v2631_v9  ;;  %2292 = vmatpush1.bf16.msra.mxu1 %v2633_v10 }
 0x159   : > { %2252 = vmatprep.subr.bf16.mxu0 %v2648_v11  ;;  %2293 = vmatprep.subr.bf16.mxu1 %v2650_v12 }
 0x15c   : > { %2253 = vmatpush1.bf16.msra.mxu0 %v2647_v17  ;;  %2294 = vmatpush1.bf16.msra.mxu1 %v2649_v18 }
 0x15d   : > { %2254 = vmatprep.subr.bf16.mxu0 %v2664_v19  ;;  %2295 = vmatprep.subr.bf16.mxu1 %v2666_v20 }
 0x160   : > { %2255 = vmatpush1.bf16.msra.mxu0 %v2663_v25  ;;  %2296 = vmatpush1.bf16.msra.mxu1 %v2665_v28 }
 0x161   : > { %2256 = vmatprep.subr.bf16.mxu0 %v2680_v29  ;;  %2297 = vmatprep.subr.bf16.mxu1 %v2682_v30 }
 0x164   : > { %2257 = vmatpush1.bf16.msra.mxu0 %v2679_v24  ;;  %2298 = vmatpush1.bf16.msra.mxu1 %v2681_v33 }
 0x165   : > { %2711 = vmatprep.subr.msk.bf16.mxu0 %vm1937_vm1, %v2696_v34  ;;  %2713 = vmatprep.subr.msk.bf16.mxu1 %vm1937_vm1, %v2698_v36 }
 0x168   : > { %2259 = vmatpush1.bf16.msra.mxu0 %v1975_v38  ;;  %2300 = vmatpush1.bf16.msra.mxu1 %v1981_v39 }
 0x16b   : > { %2265 = vmatmul.mubr.bf16.vlgmr.msra.gmra.mrb[12].mxu0 %v3382_v22  ;;  %2306 = vmatmul.mubr.bf16.vlgmr.msra.gmra.mrb[12].mxu1 %v3382_v22 }
 0x196   : > { %v2020_v41 = vpop.f32.mrb[0].mxu0  ;;  %v2061_v42 = vpop.f32.mrb[0].mxu1 }
 0x197   : > { %v2021_v43 = vadd.f32 %v2020_v41, %v3574_v40  ;;  %v2022_v44 = vpop.f32.mrb[1].mxu0  ;;  %v2062_v46 = vadd.f32 %v2061_v42, %v3574_v40  ;;  %v2063_v47 = vpop.f32.mrb[1].mxu1 }
 0x198   : > { %v2023_v45 = vadd.f32 %v2022_v44, %v3574_v40  ;;  %v2024_v48 = vpop.f32.mrb[2].mxu0  ;;  %v2064_v22 = vadd.f32 %v2063_v47, %v3574_v40  ;;  %v2065_v50 = vpop.f32.mrb[2].mxu1 }
 0x199   : > { %v2314_v49 = vmax.f32 %v2021_v43, 0.0  ;;  %v2025_v51 = vpop.f32.mrb[3].mxu0  ;;  %v2316_v53 = vmax.f32 %v2062_v46, 0.0  ;;  %v2066_v54 = vpop.f32.mrb[3].mxu1 }
 0x19a   : > { %v2315_v52 = vmax.f32 %v2023_v45, 0.0  ;;  %v2317_v55 = vmax.f32 %v2064_v22, 0.0 }
 0x19c   : > { %v2726_v56 = vpack.c.bf16 %v2315_v52, %v2314_v49  ;;  %v2727_v57 = vpack.c.bf16 %v2317_v55, %v2316_v53 }
 0x19e   : > { %2394 = vst [vmem:[%s3583_s11] sm:$0xff] %v2726_v56  ;;  %2395 = vst [vmem:[%s3583_s11 + $0x8] sm:$0xff] %v2727_v57 }
 0x1ce   : > { %v2102_v58 = vpop.f32.mrb[4].mxu0  ;;  %v2143_v60 = vpop.f32.mrb[4].mxu1 }
 0x1cf   : > { %v2103_v59 = vadd.f32 %v2102_v58, %v3574_v40  ;;  %v2104_v61 = vpop.f32.mrb[5].mxu0  ;;  %v2144_v62 = vadd.f32 %v2143_v60, %v3574_v40  ;;  %v2145_v0 = vpop.f32.mrb[5].mxu1 }
 0x1d0   : > { %v2105_v63 = vadd.f32 %v2104_v61, %v3574_v40  ;;  %v2106_v1 = vpop.f32.mrb[6].mxu0  ;;  %v2146_v3 = vadd.f32 %v2145_v0, %v3574_v40  ;;  %v2147_v4 = vpop.f32.mrb[6].mxu1 }
 0x1d1   : > { %v2318_v2 = vmax.f32 %v2103_v59, 0.0  ;;  %v2107_v5 = vpop.f32.mrb[7].mxu0  ;;  %v2320_v6 = vmax.f32 %v2144_v62, 0.0  ;;  %v2148_v8 = vpop.f32.mrb[7].mxu1 }
 0x1d2   : > { %v2319_v7 = vmax.f32 %v2105_v63, 0.0  ;;  %v2321_v9 = vmax.f32 %v2146_v3, 0.0 }
 0x1d4   : > { %v2728_v10 = vpack.c.bf16 %v2319_v7, %v2318_v2  ;;  %v2729_v11 = vpack.c.bf16 %v2321_v9, %v2320_v6 }
 0x1d6   : > { %2396 = vst [vmem:[%s3583_s11 + $0x10] sm:$0xff] %v2728_v10  ;;  %2397 = vst [vmem:[%s3583_s11 + $0x18] sm:$0xff] %v2729_v11 }
 0x206   : > { %v2184_v12 = vpop.f32.mrb[8].mxu0  ;;  %v2225_v14 = vpop.f32.mrb[8].mxu1 }
 0x207   : > { %v2185_v13 = vadd.f32 %v2184_v12, %v3574_v40  ;;  %v2186_v15 = vpop.f32.mrb[9].mxu0  ;;  %v2226_v16 = vadd.f32 %v2225_v14, %v3574_v40  ;;  %v2227_v18 = vpop.f32.mrb[9].mxu1 }
 0x208   : > { %v2187_v17 = vadd.f32 %v2186_v15, %v3574_v40  ;;  %v2188_v19 = vpop.f32.mrb[10].mxu0  ;;  %v2228_v21 = vadd.f32 %v2227_v18, %v3574_v40  ;;  %v2229_v23 = vpop.f32.mrb[10].mxu1 }
 0x209   : > { %v2322_v20 = vmax.f32 %v2185_v13, 0.0  ;;  %v2189_v26 = vpop.f32.mrb[11].mxu0  ;;  %v2324_v27 = vmax.f32 %v2226_v16, 0.0  ;;  %v2230_v28 = vpop.f32.mrb[11].mxu1 }
 0x20a   : > { %v2323_v25 = vmax.f32 %v2187_v17, 0.0  ;;  %v2325_v29 = vmax.f32 %v2228_v21, 0.0 }
 0x20c   : > { %v2730_v30 = vpack.c.bf16 %v2323_v25, %v2322_v20  ;;  %v2731_v31 = vpack.c.bf16 %v2325_v29, %v2324_v27 }
 0x20e   : > { %2398 = vst [vmem:[%s3583_s11 + $0x20] sm:$0xff] %v2730_v30  ;;  %2399 = vst [vmem:[%s3583_s11 + $0x28] sm:$0xff] %v2731_v31 }
 0x23e   : > { %v2266_v32 = vpop.f32.mrb[12].mxu0  ;;  %v2307_v33 = vpop.f32.mrb[12].mxu1 }
 0x23f   : > { %v2267_v24 = vadd.f32 %v2266_v32, %v3574_v40  ;;  %v2268_v34 = vpop.f32.mrb[13].mxu0  ;;  %v2308_v35 = vadd.f32 %v2307_v33, %v3574_v40  ;;  %v2309_v37 = vpop.f32.mrb[13].mxu1 }
 0x240   : > { %v2269_v36 = vadd.f32 %v2268_v34, %v3574_v40  ;;  %v2270_v38 = vpop.f32.mrb[14].mxu0  ;;  %v2310_v41 = vadd.f32 %v2309_v37, %v3574_v40  ;;  %v2311_v42 = vpop.f32.mrb[14].mxu1 }
 0x241   : > { %v2326_v39 = vmax.f32 %v2267_v24, 0.0  ;;  %v2271_v43 = vpop.f32.mrb[15].mxu0  ;;  %v2328_v44 = vmax.f32 %v2308_v35, 0.0  ;;  %v2312_v46 = vpop.f32.mrb[15].mxu1 }
 0x242   : > { %v2327_v45 = vmax.f32 %v2269_v36, 0.0  ;;  %v2329_v47 = vmax.f32 %v2310_v41, 0.0 }
 0x244   : > { %v2732_v48 = vpack.c.bf16 %v2327_v45, %v2326_v39  ;;  %v2733_v49 = vpack.c.bf16 %v2329_v47, %v2328_v44 }
 0x246   : > { %2400 = vst [vmem:[%s3583_s11 + $0x30] sm:$0xff] %v2732_v48  ;;  %2401 = vst [vmem:[%s3583_s11 + $0x38] sm:$0xff] %v2733_v49 }
 0x247 PF: > { %p10_p9 = scmp.ge.s32.totalorder %s2842_s16, 6   ;;  %s3619_s12 = smov %s2798_s13 }
 0x248   : > { %s3620_s13 = smov %s2851_s19  ;;  %s3621_s14 = smov %s2842_s16 }
 0x249   :  { %12 = sbr.rel (!%p10_p9) target bundleno = 2 (0x2), region = 90 }

// kernel: unet_confidnet_forward.20
= control target key start
LH: loop header
LB: loop body
LE: loop exit
PB: predicated region body
PF: predicated region fallthrough
CT: control target
= control target key end

     0   :  { %s1063_s14 = smov 0   ;;  %s1157_s0 = inlined_call_operand.vmem [shape: bf16[1,4], index: 0, kind: input, shape index: {}]   ;;  %s1158_s1 = inlined_call_operand.vmem [shape: bf16[4,8192], index: 1, kind: input, shape index: {}]   ;;  %s1159_s2 = inlined_call_operand.<no memory space> [shape: f32[1,1], index: 2, kind: input, shape index: {}]   ;;  %s1160_s3 = inlined_call_operand.vmem [shape: f32[1,8192], index: 3, kind: output, shape index: {}]  }
   0x1   :  { %v8_v0 = vstv %s1159_s2 }
   0x2   :  { %9 = vst [vmem:[#allocation2] sm:$0x1] %v8_v0 }
   0x3 LB: > { %s907_s15 = sadd.s32 4294967295, %s1035_s14   ;;  %p911_p0 = scmp.ge.s32.totalorder %s1035_s14, 1  ;;  %s1035_s14 = sphi %s1063_s14, %s15_s14  }
   0x4   : > { %p140_p1 = scmp.lt.s32.totalorder %s1035_s14, 5 }
   0x6   : > { %p141_p2 = pnand %p911_p0, %p140_p1 }
   0x7   : > { %s912_s16 = sshll.u32 (!%p141_p2), %s907_s15, 4  ;;  %v186_v1 = vlaneseq (!%p141_p2)  ;;  %v1037_v2 = vmov (!%p141_p2), 1983009808   ;;  %v1038_v5 = vmov (!%p141_p2), 0   ;;  %vm266_vm0 = vcmask (!%p141_p2), 1041408  }
   0x8   : > { %144 = sbr.rel (%p141_p2) target bundleno = 306 (0x132), region = 32  ;;  %p164_p3 = scmp.lt.s32.totalorder (!%p141_p2), %s912_s16, 63  ;;  %v196_v3 = vunpack.c.l.s4 (!%p141_p2), %v1037_v2  ;;  %347 = vmatprep.mubr.bf16.mxu0 (!%p141_p2), %v1038_v5  ;;  %388 = vmatprep.mubr.bf16.mxu1 (!%p141_p2), %v1038_v5  ;;  %v175_v26 = vld [vmem:[%s1157_s0] sm:$0x1] (!%p141_p2)  ;;  %vm262_vm1 = vcmask (!%p141_p2), 31744  }
   0x9   : > { %v1071_v4 = vshrl.u32 (!%p141_p2), %v186_v1, 7  ;;  %v180_v6 = vld [vmem:[#allocation2] sm:$0x1] (!%p141_p2)  ;;  %960 = vset.pattern.permute.xlu0 (!%p141_p2), %v1038_v5 }
   0xa   : > { %v197_v7 = vunpack.c.0.s8 (!%p141_p2), %v196_v3  ;;  %183 = vperm.xlu0 (!%p141_p2), %960, %v180_v6  }
   0xb   : > { %v188_v42 = vsub.s32 (!%p141_p2), 0, %v1071_v4 }
   0xc   : > { %v200_v8 = vsub.s32 (!%p141_p2), %v197_v7, %v1071_v4 }
   0xf   : > { %s1162_s16 = smov (!%p164_p3, %s912_s16), 63 }
  0x10   : > { %s913_s2 = sshll.u32 %s1162_s16, 1  ;;  %s172_s24 = scalar_lea.vmem %s1160_s3, %s1162_s16 }
  0x11   : > { %s167_s19 = scalar_lea.vmem %s1158_s1, %s913_s2 }
  0x12   : > { %v176_v9 = vld [vmem:[%s167_s19] sm:$0xff]  ;;  %v177_v10 = vld [vmem:[%s167_s19 + $0x8] sm:$0xff]  ;;  %v178_v11 = vld [vmem:[%s167_s19 + $0x10] sm:$0xff] }
  0x13   : > { %v201_v12 = vrot.slane %v176_v9, %v200_v8  ;;  %v194_v13 = vcombine.high %v176_v9, %v176_v9  ;;  %v218_v14 = vrot.slane %v177_v10, %v200_v8  ;;  %v211_v15 = vcombine.high %v177_v10, %v177_v10  ;;  %v179_v28 = vld [vmem:[%s167_s19 + $0x18] sm:$0xff] }
  0x14   : > { %v235_v16 = vrot.slane %v178_v11, %v200_v8  ;;  %v228_v17 = vcombine.high %v178_v11, %v178_v11  ;;  %v245_v33 = vcombine.high %v179_v28, %v179_v28  ;;  %v252_v34 = vrot.slane %v179_v28, %v200_v8 }
  0x15   : > { %v209_v18 = vcombine.high %v201_v12, %v201_v12  ;;  %v268_v19 = vsel %vm266_vm0, %v201_v12, 0  ;;  %v208_v20 = vrot.slane %v194_v13, %v200_v8  ;;  %v226_v21 = vcombine.high %v218_v14, %v218_v14 }
  0x16   : > { %v225_v22 = vrot.slane %v211_v15, %v200_v8  ;;  %v242_v25 = vrot.slane %v228_v17, %v200_v8  ;;  %v280_v29 = vsel %vm266_vm0, %v218_v14, 0  ;;  %v243_v30 = vcombine.high %v235_v16, %v235_v16 }
  0x17   : > { %915 = vmatprep.subr.msk.bf16.mxu0 %vm266_vm0, %v209_v18  ;;  %v210_v23 = vcombine.high %v208_v20, %v208_v20  ;;  %v274_v24 = vsel %vm266_vm0, %v208_v20, 0  ;;  %v259_v35 = vrot.slane %v245_v33, %v200_v8  ;;  %v292_v36 = vsel %vm266_vm0, %v235_v16, 0 }
  0x18   : > { %316 = vmatpush1.bf16.msra.mxu0 %v268_v19  ;;  %v227_v27 = vcombine.high %v225_v22, %v225_v22  ;;  %v286_v31 = vsel %vm266_vm0, %v225_v22, 0  ;;  %v244_v32 = vcombine.high %v242_v25, %v242_v25  ;;  %v260_v37 = vcombine.high %v252_v34, %v252_v34 }
  0x19   : > { %917 = vmatprep.subr.msk.bf16.mxu1 %vm266_vm0, %v210_v23  ;;  %919 = vmatprep.subr.msk.bf16.mxu0 %vm266_vm0, %v226_v21  ;;  %v298_v38 = vsel %vm266_vm0, %v242_v25, 0  ;;  %v261_v39 = vcombine.high %v259_v35, %v259_v35  ;;  %v304_v40 = vsel %vm266_vm0, %v252_v34, 0  ;;  %v310_v41 = vsel %vm266_vm0, %v259_v35, 0 }
  0x1a   : > { %357 = vmatpush1.bf16.msra.mxu1 %v274_v24 }
  0x1b   : > { %916 = vmatmul.mubr.msk.bf16.vlgmr.msra.gmra.mrb[0].mxu0 %vm262_vm1, %v175_v26  ;;  %921 = vmatprep.subr.msk.bf16.mxu1 %vm266_vm0, %v227_v27 }
  0x1c   : > { %398 = vmatpush1.bf16.msra.mxu0 %v280_v29  ;;  %429 = vmatprep.mubr.bf16.mxu0 %v1038_v5 }
  0x1d   : > { %918 = vmatmul.mubr.msk.bf16.vlgmr.msra.gmra.mrb[0].mxu1 %vm262_vm1, %v175_v26  ;;  %923 = vmatprep.subr.msk.bf16.mxu0 %vm266_vm0, %v243_v30 }
  0x1e   : > { %439 = vmatpush1.bf16.msra.mxu1 %v286_v31  ;;  %470 = vmatprep.mubr.bf16.mxu1 %v1038_v5 }
  0x1f   : > { %925 = vmatprep.subr.msk.bf16.mxu1 %vm266_vm0, %v244_v32  ;;  %v1039_v32 = vmov 1966171168  }
  0x20   : > { %v760_v33 = vunpack.c.l.s4 %v1039_v32 }
  0x23   : > { %920 = vmatmul.mubr.msk.bf16.vlgmr.msra.gmra.mrb[4].mxu0 %vm262_vm1, %v175_v26 }
  0x24   : > { %480 = vmatpush1.bf16.msra.mxu0 %v292_v36  ;;  %511 = vmatprep.mubr.bf16.mxu0 %v1038_v5 }
  0x25   : > { %922 = vmatmul.mubr.msk.bf16.vlgmr.msra.gmra.mrb[4].mxu1 %vm262_vm1, %v175_v26  ;;  %927 = vmatprep.subr.msk.bf16.mxu0 %vm266_vm0, %v260_v37 }
  0x26   : > { %521 = vmatpush1.bf16.msra.mxu1 %v298_v38  ;;  %552 = vmatprep.mubr.bf16.mxu1 %v1038_v5 }
  0x27   : > { %929 = vmatprep.subr.msk.bf16.mxu1 %vm266_vm0, %v261_v39 }
  0x2b   : > { %924 = vmatmul.mubr.msk.bf16.vlgmr.msra.gmra.mrb[8].mxu0 %vm262_vm1, %v175_v26 }
  0x2c   : > { %562 = vmatpush1.bf16.msra.mxu0 %v304_v40  ;;  %593 = vmatprep.mubr.bf16.mxu0 %v1038_v5 }
  0x2d   : > { %926 = vmatmul.mubr.msk.bf16.vlgmr.msra.gmra.mrb[8].mxu1 %vm262_vm1, %v175_v26 }
  0x2e   : > { %603 = vmatpush1.bf16.msra.mxu1 %v310_v41  ;;  %634 = vmatprep.mubr.bf16.mxu1 %v1038_v5 }
  0x33   : > { %928 = vmatmul.mubr.msk.bf16.vlgmr.msra.gmra.mrb[12].mxu0 %vm262_vm1, %v175_v26 }
  0x35   : > { %930 = vmatmul.mubr.msk.bf16.vlgmr.msra.gmra.mrb[12].mxu1 %vm262_vm1, %v175_v26 }
  0x89   : > { %v184_v43 = vpop.permute.xlu0 %183 }
  0x8a   : > { %v1117_v44 = vrot.slane %v184_v43, %v188_v42  ;;  %v761_v42 = vunpack.c.0.s8 %v760_v33 }
  0xee   : > { %v349_v45 = vpop.f32.mrb[0].mxu0 }
  0xef   : > { %v350_v46 = vadd.f32 %v349_v45, %v1117_v44  ;;  %v351_v47 = vpop.f32.mrb[1].mxu0 }
  0xf0   : > { %v352_v48 = vadd.f32 %v351_v47, %v1117_v44  ;;  %v353_v49 = vpop.f32.mrb[2].mxu0  ;;  %v390_v50 = vpop.f32.mrb[0].mxu1 }
  0xf1   : > { %v931_v51 = vmul.f32 -1.442695, %v350_v46  ;;  %v391_v52 = vadd.f32 %v390_v50, %v1117_v44  ;;  %v354_v53 = vpop.f32.mrb[3].mxu0  ;;  %v392_v54 = vpop.f32.mrb[1].mxu1 }
  0xf2   : > { %v932_v55 = vmul.f32 -1.442695, %v352_v48  ;;  %v393_v56 = vadd.f32 %v392_v54, %v1117_v44  ;;  %v394_v57 = vpop.f32.mrb[2].mxu1 }
  0xf3   : > { %965 = vpow2.f32 %v931_v51  ;;  %v933_v58 = vmul.f32 -1.442695, %v391_v52  ;;  %v395_v59 = vpop.f32.mrb[3].mxu1 }
  0xf4   : > { %967 = vpow2.f32 %v932_v55  ;;  %v934_v60 = vmul.f32 -1.442695, %v393_v56 }
  0xf5   : > { %969 = vpow2.f32 %v933_v58 }
  0xf6   : > { %971 = vpow2.f32 %v934_v60  ;;  %v431_v61 = vpop.f32.mrb[4].mxu0 }
  0xf7   : > { %v432_v62 = vadd.f32 %v431_v61, %v1117_v44  ;;  %v433_v63 = vpop.f32.mrb[5].mxu0  ;;  %v1135_v61 = vsub.s32 %v761_v42, %v1071_v4 }
  0xf8   : > { %v434_v0 = vadd.f32 %v433_v63, %v1117_v44  ;;  %v435_v1 = vpop.f32.mrb[6].mxu0  ;;  %v472_v2 = vpop.f32.mrb[4].mxu1 }
  0xf9   : > { %v935_v3 = vmul.f32 -1.442695, %v432_v62  ;;  %v473_v5 = vadd.f32 %v472_v2, %v1117_v44  ;;  %v436_v6 = vpop.f32.mrb[7].mxu0  ;;  %v474_v7 = vpop.f32.mrb[5].mxu1 }
  0xfa   : > { %v936_v8 = vmul.f32 -1.442695, %v434_v0  ;;  %v475_v9 = vadd.f32 %v474_v7, %v1117_v44  ;;  %v476_v10 = vpop.f32.mrb[6].mxu1 }
  0xfb   : > { %973 = vpow2.f32 %v935_v3  ;;  %v937_v11 = vmul.f32 -1.442695, %v473_v5  ;;  %v477_v12 = vpop.f32.mrb[7].mxu1 }
  0xfc   : > { %975 = vpow2.f32 %v936_v8  ;;  %v938_v13 = vmul.f32 -1.442695, %v475_v9 }
  0xfd   : > { %v966_v14 = vpop.eup %965  ;;  %977 = vpow2.f32 %v937_v11 }
  0xfe   : > { %v968_v15 = vpop.eup %967  ;;  %v691_v16 = vadd.f32 1.0, %v966_v14  ;;  %979 = vpow2.f32 %v938_v13  ;;  %v513_v17 = vpop.f32.mrb[8].mxu0 }
  0xff   : > { %v970_v18 = vpop.eup %969  ;;  %v692_v19 = vadd.f32 1.0, %v968_v15  ;;  %v514_v20 = vadd.f32 %v513_v17, %v1117_v44  ;;  %v515_v21 = vpop.f32.mrb[9].mxu0 }
 0x100   : > { %v972_v22 = vpop.eup %971  ;;  %981 = vrcp.f32 %v691_v16  ;;  %v693_v23 = vadd.f32 1.0, %v970_v18  ;;  %v516_v24 = vadd.f32 %v515_v21, %v1117_v44  ;;  %v517_v25 = vpop.f32.mrb[10].mxu0 }
 0x101   : > { %v554_v26 = vpop.f32.mrb[8].mxu1  ;;  %983 = vrcp.f32 %v692_v19  ;;  %v694_v27 = vadd.f32 1.0, %v972_v22  ;;  %v939_v28 = vmul.f32 -1.442695, %v514_v20  ;;  %v518_v30 = vpop.f32.mrb[11].mxu0 }
 0x102   : > { %v555_v29 = vadd.f32 %v554_v26, %v1117_v44  ;;  %v556_v31 = vpop.f32.mrb[9].mxu1  ;;  %985 = vrcp.f32 %v693_v23  ;;  %v940_v34 = vmul.f32 -1.442695, %v516_v24 }
 0x103   : > { %v557_v35 = vadd.f32 %v556_v31, %v1117_v44  ;;  %v558_v36 = vpop.f32.mrb[10].mxu1  ;;  %987 = vrcp.f32 %v694_v27 }
 0x104   : > { %v941_v37 = vmul.f32 -1.442695, %v555_v29  ;;  %v559_v38 = vpop.f32.mrb[11].mxu1  ;;  %989 = vpow2.f32 %v939_v28 }
 0x105   : > { %v942_v39 = vmul.f32 -1.442695, %v557_v35  ;;  %v974_v40 = vpop.eup %973  ;;  %991 = vpow2.f32 %v940_v34 }
 0x106   : > { %v976_v41 = vpop.eup %975  ;;  %v695_v43 = vadd.f32 1.0, %v974_v40  ;;  %993 = vpow2.f32 %v941_v37  ;;  %v595_v45 = vpop.f32.mrb[12].mxu0 }
 0x107   : > { %v978_v46 = vpop.eup %977  ;;  %v696_v47 = vadd.f32 1.0, %v976_v41  ;;  %995 = vpow2.f32 %v942_v39  ;;  %v596_v48 = vadd.f32 %v595_v45, %v1117_v44  ;;  %v597_v49 = vpop.f32.mrb[13].mxu0 }
 0x108   : > { %v980_v50 = vpop.eup %979  ;;  %997 = vrcp.f32 %v695_v43  ;;  %v697_v51 = vadd.f32 1.0, %v978_v46  ;;  %v598_v52 = vadd.f32 %v597_v49, %v1117_v44  ;;  %v599_v53 = vpop.f32.mrb[14].mxu0 }
 0x109   : > { %v636_v54 = vpop.f32.mrb[12].mxu1  ;;  %999 = vrcp.f32 %v696_v47  ;;  %v698_v55 = vadd.f32 1.0, %v980_v50  ;;  %v943_v56 = vmul.f32 -1.442695, %v596_v48  ;;  %v600_v58 = vpop.f32.mrb[15].mxu0 }
 0x10a   : > { %v637_v57 = vadd.f32 %v636_v54, %v1117_v44  ;;  %v638_v59 = vpop.f32.mrb[13].mxu1  ;;  %v982_v60 = vpop.eup %981  ;;  %1001 = vrcp.f32 %v697_v51  ;;  %v944_v62 = vmul.f32 -1.442695, %v598_v52 }
 0x10b   : > { %v639_v63 = vadd.f32 %v638_v59, %v1117_v44  ;;  %v640_v0 = vpop.f32.mrb[14].mxu1  ;;  %v984_v1 = vpop.eup %983  ;;  %1003 = vrcp.f32 %v698_v55 }
 0x10c   : > { %v945_v2 = vmul.f32 -1.442695, %v637_v57  ;;  %v641_v3 = vpop.f32.mrb[15].mxu1  ;;  %v986_v5 = vpop.eup %985  ;;  %v755_v6 = vcombine.low %v982_v60, %v984_v1  ;;  %1005 = vpow2.f32 %v943_v56 }
 0x10d   : > { %v946_v7 = vmul.f32 -1.442695, %v639_v63  ;;  %v988_v8 = vpop.eup %987  ;;  %1007 = vpow2.f32 %v944_v62 }
 0x10e   : > { %v990_v9 = vpop.eup %989  ;;  %v765_v10 = vrot.slane %v755_v6, %v1135_v61  ;;  %v756_v4 = vcombine.low %v986_v5, %v988_v8  ;;  %1009 = vpow2.f32 %v945_v2 }
 0x10f   : > { %v992_v11 = vpop.eup %991  ;;  %v699_v12 = vadd.f32 1.0, %v990_v9  ;;  %1011 = vpow2.f32 %v946_v7 }
 0x110   : > { %v994_v44 = vpop.eup %993  ;;  %v772_v13 = vrot.slane %v756_v4, %v1135_v61  ;;  %v700_v14 = vadd.f32 1.0, %v992_v11 }
 0x111   : > { %v996_v15 = vpop.eup %995  ;;  %1013 = vrcp.f32 %v699_v12  ;;  %v701_v16 = vadd.f32 1.0, %v994_v44 }
 0x112   : > { %v998_v17 = vpop.eup %997  ;;  %v787_v18 = vcombine.low %v765_v10, %v772_v13  ;;  %1015 = vrcp.f32 %v700_v14  ;;  %v702_v19 = vadd.f32 1.0, %v996_v15 }
 0x113   : > { %v1000_v20 = vpop.eup %999  ;;  %1017 = vrcp.f32 %v701_v16 }
 0x114   : > { %v1002_v21 = vpop.eup %1001  ;;  %v757_v22 = vcombine.low %v998_v17, %v1000_v20  ;;  %1019 = vrcp.f32 %v702_v19  ;;  %v795_v38 = vrot.slane %v787_v18, %v1135_v61 }
 0x115   : > { %v1004_v23 = vpop.eup %1003 }
 0x116   : > { %v1006_v24 = vpop.eup %1005  ;;  %v779_v25 = vrot.slane %v757_v22, %v1135_v61  ;;  %v758_v26 = vcombine.low %v1002_v21, %v1004_v23 }
 0x117   : > { %v1008_v27 = vpop.eup %1007  ;;  %v703_v28 = vadd.f32 1.0, %v1006_v24 }
 0x118   : > { %v1010_v29 = vpop.eup %1009  ;;  %v786_v30 = vrot.slane %v758_v26, %v1135_v61  ;;  %v704_v31 = vadd.f32 1.0, %v1008_v27 }
 0x119   : > { %v1012_v32 = vpop.eup %1011  ;;  %1021 = vrcp.f32 %v703_v28  ;;  %v705_v33 = vadd.f32 1.0, %v1010_v29 }
 0x11a   : > { %v788_v34 = vcombine.low %v779_v25, %v786_v30  ;;  %1023 = vrcp.f32 %v704_v31  ;;  %v706_v35 = vadd.f32 1.0, %v1012_v32 }
 0x11b   : > { %v1014_v36 = vpop.eup %1013  ;;  %1025 = vrcp.f32 %v705_v33 }
 0x11c   : > { %v1016_v37 = vpop.eup %1015  ;;  %v802_v39 = vrot.slane %v788_v34, %v1135_v61  ;;  %1027 = vrcp.f32 %v706_v35 }
 0x11d   : > { %v1018_v40 = vpop.eup %1017  ;;  %v804_v41 = vcombine.low %v1014_v36, %v1016_v37 }
 0x11e   : > { %v1020_v42 = vpop.eup %1019  ;;  %v803_v43 = vcombine.low %v795_v38, %v802_v39 }
 0x11f   : > { %v814_v45 = vrot.slane %v804_v41, %v1135_v61  ;;  %v805_v46 = vcombine.low %v1018_v40, %v1020_v42 }
 0x120   : > { %855 = vst [vmem:[%s172_s24] sm:$0xff] %v803_v43 }
 0x121   : > { %v821_v47 = vrot.slane %v805_v46, %v1135_v61 }
 0x123   : > { %v1022_v48 = vpop.eup %1021  ;;  %v836_v49 = vcombine.low %v814_v45, %v821_v47 }
 0x124   : > { %v1024_v50 = vpop.eup %1023 }
 0x125   : > { %v1026_v51 = vpop.eup %1025  ;;  %v806_v52 = vcombine.low %v1022_v48, %v1024_v50  ;;  %v844_v58 = vrot.slane %v836_v49, %v1135_v61 }
 0x126   : > { %v1028_v53 = vpop.eup %1027 }
 0x127   : > { %v828_v54 = vrot.slane %v806_v52, %v1135_v61  ;;  %v807_v55 = vcombine.low %v1026_v51, %v1028_v53 }
 0x129   : > { %v835_v56 = vrot.slane %v807_v55, %v1135_v61 }
 0x12b   : > { %v837_v57 = vcombine.low %v828_v54, %v835_v56 }
 0x12d   : > { %v851_v59 = vrot.slane %v837_v57, %v1135_v61 }
 0x12f   : > { %v852_v60 = vcombine.low %v844_v58, %v851_v59 }
 0x131   : > { %856 = vst [vmem:[%s172_s24 + $0x8] sm:$0xff] %v852_v60 }
 0x132 PF: > { %s15_s14 = sadd.s32 1, %s1035_s14  }
 0x133   : > { %p12_p4 = scmp.ge.s32.totalorder %s15_s14, 6  }
 0x135   :  { %14 = sbr.rel (!%p12_p4) target bundleno = 3 (0x3), region = 62 }

// kernel: unet_confidnet_forward.25
= control target key start
LH: loop header
LB: loop body
LE: loop exit
PB: predicated region body
PF: predicated region fallthrough
CT: control target
= control target key end

     0   :  { %s1869_s12 = smov 0   ;;  %s1871_s13 = smov 0   ;;  %s2346_s0 = inlined_call_operand.vmem [shape: bf16[4,108], index: 0, kind: input, shape index: {}]   ;;  %s2347_s1 = inlined_call_operand.vmem [shape: bf16[108,8192], index: 1, kind: input, shape index: {}]   ;;  %s2348_s2 = inlined_call_operand.vmem [shape: f32[4,1], index: 2, kind: input, shape index: {}]   ;;  %s2349_s3 = inlined_call_operand.vmem [shape: bf16[4,8192], index: 3, kind: output, shape index: {}]  }
   0x1   :  { %s1873_s14 = smov 0  }
   0x2 LB: > { %s1646_s15 = sadd.s32 4294967295, %s1845_s14   ;;  %s1886_s16 = sadd.s32 1, %s1845_s14   ;;  %s1845_s14 = sphi %s1873_s14, %s2352_s14   ;;  %s1841_s13 = sphi %s1871_s13, %s2351_s13   ;;  %s1837_s12 = sphi %s1869_s12, %s2350_s12  }
   0x3   : > { %s38_s17 = ssub.s32 %s1845_s14, %s1886_s16  ;;  %s41_s18 = sadd.s32 1, %s1841_s13 }
   0x4   : > { %p39_p0 = scmp.eq.s32.totalorder %s38_s17, 0  ;;  %p48_p1 = scmp.ne.s32.totalorder %s1841_s13, %s1837_s12 }
   0x5   : > { %p49_p2 = scmp.eq.s32.totalorder %s1845_s14, 0  ;;  %p1649_p4 = scmp.ge.s32.totalorder %s1845_s14, 4 }
   0x6   : > { %s1895_s19 = scalar_select %p39_p0, %s1841_s13, %s41_s18  }
   0x7   : > { %p50_p3 = por %p49_p2, %p48_p1  ;;  %127 = sbr.rel (%p1649_p4) target bundleno = 75 (0x4b), region = 24 }
   0xe   : > { %130 = sbr.rel (!%p50_p3) target bundleno = 75 (0x4b), region = 28  ;;  %s132_s20 = sand.u32 (%p50_p3), 1, %s1841_s13  }
   0xf   : > { %s1793_s21 = sshll.u32 (%p50_p3), %s1845_s14, 6  ;;  %s1794_s22 = smul.u32 (%p50_p3), 896, %s132_s20 }
  0x10   : > { %s1903_s25 = scalar_lea.vmem (%p50_p3), %s2347_s1, %s1793_s21 }
  0x11   : > { %v150_v0 = vld [vmem:[%s1903_s25] sm:$0xff] (%p50_p3)  ;;  %v152_v1 = vld [vmem:[%s1903_s25 + $0x8] sm:$0xff] (%p50_p3)  ;;  %v154_v2 = vld [vmem:[%s1903_s25 + $0x10] sm:$0xff] (%p50_p3)  ;;  %s1911_s26 = scalar_lea.vmem (%p50_p3), [#allocation2], %s1794_s22 }
  0x12   : > { %v156_v3 = vld [vmem:[%s1903_s25 + $0x18] sm:$0xff] (%p50_p3)  ;;  %v158_v4 = vld [vmem:[%s1903_s25 + $0x20] sm:$0xff] (%p50_p3)  ;;  %v160_v5 = vld [vmem:[%s1903_s25 + $0x28] sm:$0xff] (%p50_p3)  ;;  %151 = vst [vmem:[%s1911_s26] sm:$0xff] (%p50_p3), %v150_v0 }
  0x13   : > { %153 = vst [vmem:[%s1911_s26 + $0x8] sm:$0xff] (%p50_p3), %v152_v1  ;;  %155 = vst [vmem:[%s1911_s26 + $0x10] sm:$0xff] (%p50_p3), %v154_v2  ;;  %v162_v6 = vld [vmem:[%s1903_s25 + $0x30] sm:$0xff] (%p50_p3)  ;;  %v164_v7 = vld [vmem:[%s1903_s25 + $0x38] sm:$0xff] (%p50_p3) }
  0x14   : > { %157 = vst [vmem:[%s1911_s26 + $0x18] sm:$0xff] (%p50_p3), %v156_v3  ;;  %159 = vst [vmem:[%s1911_s26 + $0x20] sm:$0xff] (%p50_p3), %v158_v4  ;;  %v166_v8 = vld [vmem:[%s1903_s25 + $0x100] sm:$0xff] (%p50_p3)  ;;  %v168_v9 = vld [vmem:[%s1903_s25 + $0x108] sm:$0xff] (%p50_p3) }
  0x15   : > { %161 = vst [vmem:[%s1911_s26 + $0x28] sm:$0xff] %v160_v5  ;;  %163 = vst [vmem:[%s1911_s26 + $0x30] sm:$0xff] %v162_v6  ;;  %v170_v10 = vld [vmem:[%s1903_s25 + $0x110] sm:$0xff]  ;;  %v172_v11 = vld [vmem:[%s1903_s25 + $0x118] sm:$0xff] }
  0x16   : > { %165 = vst [vmem:[%s1911_s26 + $0x38] sm:$0xff] %v164_v7  ;;  %167 = vst [vmem:[%s1911_s26 + $0x40] sm:$0xff] %v166_v8  ;;  %v174_v12 = vld [vmem:[%s1903_s25 + $0x120] sm:$0xff]  ;;  %v176_v13 = vld [vmem:[%s1903_s25 + $0x128] sm:$0xff] }
  0x17   : > { %169 = vst [vmem:[%s1911_s26 + $0x48] sm:$0xff] %v168_v9  ;;  %171 = vst [vmem:[%s1911_s26 + $0x50] sm:$0xff] %v170_v10  ;;  %v178_v14 = vld [vmem:[%s1903_s25 + $0x130] sm:$0xff]  ;;  %v180_v15 = vld [vmem:[%s1903_s25 + $0x138] sm:$0xff] }
  0x18   : > { %173 = vst [vmem:[%s1911_s26 + $0x58] sm:$0xff] %v172_v11  ;;  %175 = vst [vmem:[%s1911_s26 + $0x60] sm:$0xff] %v174_v12  ;;  %v182_v16 = vld [vmem:[%s1903_s25 + $0x200] sm:$0xff]  ;;  %v184_v17 = vld [vmem:[%s1903_s25 + $0x208] sm:$0xff] }
  0x19   : > { %177 = vst [vmem:[%s1911_s26 + $0x68] sm:$0xff] %v176_v13  ;;  %179 = vst [vmem:[%s1911_s26 + $0x70] sm:$0xff] %v178_v14  ;;  %v186_v18 = vld [vmem:[%s1903_s25 + $0x210] sm:$0xff]  ;;  %v188_v19 = vld [vmem:[%s1903_s25 + $0x218] sm:$0xff] }
  0x1a   : > { %181 = vst [vmem:[%s1911_s26 + $0x78] sm:$0xff] %v180_v15  ;;  %183 = vst [vmem:[%s1911_s26 + $0x80] sm:$0xff] %v182_v16  ;;  %v190_v20 = vld [vmem:[%s1903_s25 + $0x220] sm:$0xff]  ;;  %v192_v21 = vld [vmem:[%s1903_s25 + $0x228] sm:$0xff] }
  0x1b   : > { %185 = vst [vmem:[%s1911_s26 + $0x88] sm:$0xff] %v184_v17  ;;  %187 = vst [vmem:[%s1911_s26 + $0x90] sm:$0xff] %v186_v18  ;;  %v194_v22 = vld [vmem:[%s1903_s25 + $0x230] sm:$0xff]  ;;  %v196_v23 = vld [vmem:[%s1903_s25 + $0x238] sm:$0xff] }
  0x1c   : > { %189 = vst [vmem:[%s1911_s26 + $0x98] sm:$0xff] %v188_v19  ;;  %191 = vst [vmem:[%s1911_s26 + $0xa0] sm:$0xff] %v190_v20  ;;  %v198_v24 = vld [vmem:[%s1903_s25 + $0x300] sm:$0xff]  ;;  %v200_v25 = vld [vmem:[%s1903_s25 + $0x308] sm:$0xff] }
  0x1d   : > { %193 = vst [vmem:[%s1911_s26 + $0xa8] sm:$0xff] %v192_v21  ;;  %195 = vst [vmem:[%s1911_s26 + $0xb0] sm:$0xff] %v194_v22  ;;  %v202_v26 = vld [vmem:[%s1903_s25 + $0x310] sm:$0xff]  ;;  %v204_v27 = vld [vmem:[%s1903_s25 + $0x318] sm:$0xff] }
  0x1e   : > { %197 = vst [vmem:[%s1911_s26 + $0xb8] sm:$0xff] %v196_v23  ;;  %199 = vst [vmem:[%s1911_s26 + $0xc0] sm:$0xff] %v198_v24  ;;  %v206_v28 = vld [vmem:[%s1903_s25 + $0x320] sm:$0xff]  ;;  %v208_v29 = vld [vmem:[%s1903_s25 + $0x328] sm:$0xff] }
  0x1f   : > { %201 = vst [vmem:[%s1911_s26 + $0xc8] sm:$0xff] %v200_v25  ;;  %203 = vst [vmem:[%s1911_s26 + $0xd0] sm:$0xff] %v202_v26  ;;  %v210_v30 = vld [vmem:[%s1903_s25 + $0x330] sm:$0xff]  ;;  %v212_v31 = vld [vmem:[%s1903_s25 + $0x338] sm:$0xff] }
  0x20   : > { %205 = vst [vmem:[%s1911_s26 + $0xd8] sm:$0xff] %v204_v27  ;;  %207 = vst [vmem:[%s1911_s26 + $0xe0] sm:$0xff] %v206_v28  ;;  %v214_v32 = vld [vmem:[%s1903_s25 + $0x400] sm:$0xff]  ;;  %v216_v33 = vld [vmem:[%s1903_s25 + $0x408] sm:$0xff] }
  0x21   : > { %209 = vst [vmem:[%s1911_s26 + $0xe8] sm:$0xff] %v208_v29  ;;  %211 = vst [vmem:[%s1911_s26 + $0xf0] sm:$0xff] %v210_v30  ;;  %v218_v34 = vld [vmem:[%s1903_s25 + $0x410] sm:$0xff]  ;;  %v220_v35 = vld [vmem:[%s1903_s25 + $0x418] sm:$0xff] }
  0x22   : > { %213 = vst [vmem:[%s1911_s26 + $0xf8] sm:$0xff] %v212_v31  ;;  %215 = vst [vmem:[%s1911_s26 + $0x100] sm:$0xff] %v214_v32  ;;  %v222_v36 = vld [vmem:[%s1903_s25 + $0x420] sm:$0xff]  ;;  %v224_v37 = vld [vmem:[%s1903_s25 + $0x428] sm:$0xff] }
  0x23   : > { %217 = vst [vmem:[%s1911_s26 + $0x108] sm:$0xff] %v216_v33  ;;  %219 = vst [vmem:[%s1911_s26 + $0x110] sm:$0xff] %v218_v34  ;;  %v226_v38 = vld [vmem:[%s1903_s25 + $0x430] sm:$0xff]  ;;  %v228_v39 = vld [vmem:[%s1903_s25 + $0x438] sm:$0xff] }
  0x24   : > { %221 = vst [vmem:[%s1911_s26 + $0x118] sm:$0xff] %v220_v35  ;;  %223 = vst [vmem:[%s1911_s26 + $0x120] sm:$0xff] %v222_v36  ;;  %v230_v40 = vld [vmem:[%s1903_s25 + $0x500] sm:$0xff]  ;;  %v232_v41 = vld [vmem:[%s1903_s25 + $0x508] sm:$0xff] }
  0x25   : > { %225 = vst [vmem:[%s1911_s26 + $0x128] sm:$0xff] %v224_v37  ;;  %227 = vst [vmem:[%s1911_s26 + $0x130] sm:$0xff] %v226_v38  ;;  %v234_v42 = vld [vmem:[%s1903_s25 + $0x510] sm:$0xff]  ;;  %v236_v43 = vld [vmem:[%s1903_s25 + $0x518] sm:$0xff] }
  0x26   : > { %229 = vst [vmem:[%s1911_s26 + $0x138] sm:$0xff] %v228_v39  ;;  %231 = vst [vmem:[%s1911_s26 + $0x140] sm:$0xff] %v230_v40  ;;  %v238_v44 = vld [vmem:[%s1903_s25 + $0x520] sm:$0xff]  ;;  %v240_v45 = vld [vmem:[%s1903_s25 + $0x528] sm:$0xff] }
  0x27   : > { %233 = vst [vmem:[%s1911_s26 + $0x148] sm:$0xff] %v232_v41  ;;  %235 = vst [vmem:[%s1911_s26 + $0x150] sm:$0xff] %v234_v42  ;;  %v242_v46 = vld [vmem:[%s1903_s25 + $0x530] sm:$0xff]  ;;  %v244_v47 = vld [vmem:[%s1903_s25 + $0x538] sm:$0xff] }
  0x28   : > { %237 = vst [vmem:[%s1911_s26 + $0x158] sm:$0xff] %v236_v43  ;;  %239 = vst [vmem:[%s1911_s26 + $0x160] sm:$0xff] %v238_v44  ;;  %v246_v48 = vld [vmem:[%s1903_s25 + $0x600] sm:$0xff]  ;;  %v248_v49 = vld [vmem:[%s1903_s25 + $0x608] sm:$0xff] }
  0x29   : > { %241 = vst [vmem:[%s1911_s26 + $0x168] sm:$0xff] %v240_v45  ;;  %243 = vst [vmem:[%s1911_s26 + $0x170] sm:$0xff] %v242_v46  ;;  %v250_v50 = vld [vmem:[%s1903_s25 + $0x610] sm:$0xff]  ;;  %v252_v51 = vld [vmem:[%s1903_s25 + $0x618] sm:$0xff] }
  0x2a   : > { %245 = vst [vmem:[%s1911_s26 + $0x178] sm:$0xff] %v244_v47  ;;  %247 = vst [vmem:[%s1911_s26 + $0x180] sm:$0xff] %v246_v48  ;;  %v254_v52 = vld [vmem:[%s1903_s25 + $0x620] sm:$0xff]  ;;  %v256_v53 = vld [vmem:[%s1903_s25 + $0x628] sm:$0xff] }
  0x2b   : > { %249 = vst [vmem:[%s1911_s26 + $0x188] sm:$0xff] %v248_v49  ;;  %251 = vst [vmem:[%s1911_s26 + $0x190] sm:$0xff] %v250_v50  ;;  %v258_v54 = vld [vmem:[%s1903_s25 + $0x630] sm:$0xff]  ;;  %v260_v55 = vld [vmem:[%s1903_s25 + $0x638] sm:$0xff] }
  0x2c   : > { %253 = vst [vmem:[%s1911_s26 + $0x198] sm:$0xff] %v252_v51  ;;  %255 = vst [vmem:[%s1911_s26 + $0x1a0] sm:$0xff] %v254_v52  ;;  %v262_v56 = vld [vmem:[%s1903_s25 + $0x700] sm:$0xff]  ;;  %v264_v57 = vld [vmem:[%s1903_s25 + $0x708] sm:$0xff] }
  0x2d   : > { %257 = vst [vmem:[%s1911_s26 + $0x1a8] sm:$0xff] %v256_v53  ;;  %259 = vst [vmem:[%s1911_s26 + $0x1b0] sm:$0xff] %v258_v54  ;;  %v266_v58 = vld [vmem:[%s1903_s25 + $0x710] sm:$0xff]  ;;  %v268_v59 = vld [vmem:[%s1903_s25 + $0x718] sm:$0xff] }
  0x2e   : > { %261 = vst [vmem:[%s1911_s26 + $0x1b8] sm:$0xff] %v260_v55  ;;  %263 = vst [vmem:[%s1911_s26 + $0x1c0] sm:$0xff] %v262_v56  ;;  %v270_v60 = vld [vmem:[%s1903_s25 + $0x720] sm:$0xff]  ;;  %v272_v61 = vld [vmem:[%s1903_s25 + $0x728] sm:$0xff] }
  0x2f   : > { %265 = vst [vmem:[%s1911_s26 + $0x1c8] sm:$0xff] %v264_v57  ;;  %267 = vst [vmem:[%s1911_s26 + $0x1d0] sm:$0xff] %v266_v58  ;;  %v274_v62 = vld [vmem:[%s1903_s25 + $0x730] sm:$0xff]  ;;  %v276_v63 = vld [vmem:[%s1903_s25 + $0x738] sm:$0xff] }
  0x30   : > { %269 = vst [vmem:[%s1911_s26 + $0x1d8] sm:$0xff] %v268_v59  ;;  %271 = vst [vmem:[%s1911_s26 + $0x1e0] sm:$0xff] %v270_v60  ;;  %v278_v0 = vld [vmem:[%s1903_s25 + $0x800] sm:$0xff]  ;;  %v280_v1 = vld [vmem:[%s1903_s25 + $0x808] sm:$0xff] }
  0x31   : > { %273 = vst [vmem:[%s1911_s26 + $0x1e8] sm:$0xff] %v272_v61  ;;  %275 = vst [vmem:[%s1911_s26 + $0x1f0] sm:$0xff] %v274_v62  ;;  %v282_v2 = vld [vmem:[%s1903_s25 + $0x810] sm:$0xff]  ;;  %v284_v3 = vld [vmem:[%s1903_s25 + $0x818] sm:$0xff] }
  0x32   : > { %277 = vst [vmem:[%s1911_s26 + $0x1f8] sm:$0xff] %v276_v63  ;;  %279 = vst [vmem:[%s1911_s26 + $0x200] sm:$0xff] %v278_v0  ;;  %v286_v4 = vld [vmem:[%s1903_s25 + $0x820] sm:$0xff]  ;;  %v288_v5 = vld [vmem:[%s1903_s25 + $0x828] sm:$0xff] }
  0x33   : > { %281 = vst [vmem:[%s1911_s26 + $0x208] sm:$0xff] %v280_v1  ;;  %283 = vst [vmem:[%s1911_s26 + $0x210] sm:$0xff] %v282_v2  ;;  %v290_v6 = vld [vmem:[%s1903_s25 + $0x830] sm:$0xff]  ;;  %v292_v7 = vld [vmem:[%s1903_s25 + $0x838] sm:$0xff] }
  0x34   : > { %285 = vst [vmem:[%s1911_s26 + $0x218] sm:$0xff] %v284_v3  ;;  %287 = vst [vmem:[%s1911_s26 + $0x220] sm:$0xff] %v286_v4  ;;  %v294_v8 = vld [vmem:[%s1903_s25 + $0x900] sm:$0xff]  ;;  %v296_v9 = vld [vmem:[%s1903_s25 + $0x908] sm:$0xff] }
  0x35   : > { %289 = vst [vmem:[%s1911_s26 + $0x228] sm:$0xff] %v288_v5  ;;  %291 = vst [vmem:[%s1911_s26 + $0x230] sm:$0xff] %v290_v6  ;;  %v298_v10 = vld [vmem:[%s1903_s25 + $0x910] sm:$0xff]  ;;  %v300_v11 = vld [vmem:[%s1903_s25 + $0x918] sm:$0xff] }
  0x36   : > { %293 = vst [vmem:[%s1911_s26 + $0x238] sm:$0xff] %v292_v7  ;;  %295 = vst [vmem:[%s1911_s26 + $0x240] sm:$0xff] %v294_v8  ;;  %v302_v12 = vld [vmem:[%s1903_s25 + $0x920] sm:$0xff]  ;;  %v304_v13 = vld [vmem:[%s1903_s25 + $0x928] sm:$0xff] }
  0x37   : > { %297 = vst [vmem:[%s1911_s26 + $0x248] sm:$0xff] %v296_v9  ;;  %299 = vst [vmem:[%s1911_s26 + $0x250] sm:$0xff] %v298_v10  ;;  %v306_v14 = vld [vmem:[%s1903_s25 + $0x930] sm:$0xff]  ;;  %v308_v15 = vld [vmem:[%s1903_s25 + $0x938] sm:$0xff] }
  0x38   : > { %301 = vst [vmem:[%s1911_s26 + $0x258] sm:$0xff] %v300_v11  ;;  %303 = vst [vmem:[%s1911_s26 + $0x260] sm:$0xff] %v302_v12  ;;  %v310_v16 = vld [vmem:[%s1903_s25 + $0xa00] sm:$0xff]  ;;  %v312_v17 = vld [vmem:[%s1903_s25 + $0xa08] sm:$0xff] }
  0x39   : > { %305 = vst [vmem:[%s1911_s26 + $0x268] sm:$0xff] %v304_v13  ;;  %307 = vst [vmem:[%s1911_s26 + $0x270] sm:$0xff] %v306_v14  ;;  %v314_v18 = vld [vmem:[%s1903_s25 + $0xa10] sm:$0xff]  ;;  %v316_v19 = vld [vmem:[%s1903_s25 + $0xa18] sm:$0xff] }
  0x3a   : > { %309 = vst [vmem:[%s1911_s26 + $0x278] sm:$0xff] %v308_v15  ;;  %311 = vst [vmem:[%s1911_s26 + $0x280] sm:$0xff] %v310_v16  ;;  %v318_v20 = vld [vmem:[%s1903_s25 + $0xa20] sm:$0xff]  ;;  %v320_v21 = vld [vmem:[%s1903_s25 + $0xa28] sm:$0xff] }
  0x3b   : > { %313 = vst [vmem:[%s1911_s26 + $0x288] sm:$0xff] %v312_v17  ;;  %315 = vst [vmem:[%s1911_s26 + $0x290] sm:$0xff] %v314_v18  ;;  %v322_v22 = vld [vmem:[%s1903_s25 + $0xa30] sm:$0xff]  ;;  %v324_v23 = vld [vmem:[%s1903_s25 + $0xa38] sm:$0xff] }
  0x3c   : > { %317 = vst [vmem:[%s1911_s26 + $0x298] sm:$0xff] %v316_v19  ;;  %319 = vst [vmem:[%s1911_s26 + $0x2a0] sm:$0xff] %v318_v20  ;;  %v326_v24 = vld [vmem:[%s1903_s25 + $0xb00] sm:$0xff]  ;;  %v328_v25 = vld [vmem:[%s1903_s25 + $0xb08] sm:$0xff] }
  0x3d   : > { %321 = vst [vmem:[%s1911_s26 + $0x2a8] sm:$0xff] %v320_v21  ;;  %323 = vst [vmem:[%s1911_s26 + $0x2b0] sm:$0xff] %v322_v22  ;;  %v330_v26 = vld [vmem:[%s1903_s25 + $0xb10] sm:$0xff]  ;;  %v332_v27 = vld [vmem:[%s1903_s25 + $0xb18] sm:$0xff] }
  0x3e   : > { %325 = vst [vmem:[%s1911_s26 + $0x2b8] sm:$0xff] %v324_v23  ;;  %327 = vst [vmem:[%s1911_s26 + $0x2c0] sm:$0xff] %v326_v24  ;;  %v334_v28 = vld [vmem:[%s1903_s25 + $0xb20] sm:$0xff]  ;;  %v336_v29 = vld [vmem:[%s1903_s25 + $0xb28] sm:$0xff] }
  0x3f   : > { %329 = vst [vmem:[%s1911_s26 + $0x2c8] sm:$0xff] %v328_v25  ;;  %331 = vst [vmem:[%s1911_s26 + $0x2d0] sm:$0xff] %v330_v26  ;;  %v338_v30 = vld [vmem:[%s1903_s25 + $0xb30] sm:$0xff]  ;;  %v340_v31 = vld [vmem:[%s1903_s25 + $0xb38] sm:$0xff] }
  0x40   : > { %333 = vst [vmem:[%s1911_s26 + $0x2d8] sm:$0xff] %v332_v27  ;;  %335 = vst [vmem:[%s1911_s26 + $0x2e0] sm:$0xff] %v334_v28  ;;  %v342_v32 = vld [vmem:[%s1903_s25 + $0xc00] sm:$0xff]  ;;  %v344_v33 = vld [vmem:[%s1903_s25 + $0xc08] sm:$0xff] }
  0x41   : > { %337 = vst [vmem:[%s1911_s26 + $0x2e8] sm:$0xff] %v336_v29  ;;  %339 = vst [vmem:[%s1911_s26 + $0x2f0] sm:$0xff] %v338_v30  ;;  %v346_v34 = vld [vmem:[%s1903_s25 + $0xc10] sm:$0xff]  ;;  %v348_v35 = vld [vmem:[%s1903_s25 + $0xc18] sm:$0xff] }
  0x42   : > { %341 = vst [vmem:[%s1911_s26 + $0x2f8] sm:$0xff] %v340_v31  ;;  %343 = vst [vmem:[%s1911_s26 + $0x300] sm:$0xff] %v342_v32  ;;  %v350_v36 = vld [vmem:[%s1903_s25 + $0xc20] sm:$0xff]  ;;  %v352_v37 = vld [vmem:[%s1903_s25 + $0xc28] sm:$0xff] }
  0x43   : > { %345 = vst [vmem:[%s1911_s26 + $0x308] sm:$0xff] %v344_v33  ;;  %347 = vst [vmem:[%s1911_s26 + $0x310] sm:$0xff] %v346_v34  ;;  %v354_v38 = vld [vmem:[%s1903_s25 + $0xc30] sm:$0xff]  ;;  %v356_v39 = vld [vmem:[%s1903_s25 + $0xc38] sm:$0xff] }
  0x44   : > { %349 = vst [vmem:[%s1911_s26 + $0x318] sm:$0xff] %v348_v35  ;;  %351 = vst [vmem:[%s1911_s26 + $0x320] sm:$0xff] %v350_v36  ;;  %v358_v40 = vld [vmem:[%s1903_s25 + $0xd00] sm:$0xff]  ;;  %v360_v41 = vld [vmem:[%s1903_s25 + $0xd08] sm:$0xff] }
  0x45   : > { %353 = vst [vmem:[%s1911_s26 + $0x328] sm:$0xff] %v352_v37  ;;  %355 = vst [vmem:[%s1911_s26 + $0x330] sm:$0xff] %v354_v38  ;;  %v362_v42 = vld [vmem:[%s1903_s25 + $0xd10] sm:$0xff]  ;;  %v364_v43 = vld [vmem:[%s1903_s25 + $0xd18] sm:$0xff] }
  0x46   : > { %357 = vst [vmem:[%s1911_s26 + $0x338] sm:$0xff] %v356_v39  ;;  %359 = vst [vmem:[%s1911_s26 + $0x340] sm:$0xff] %v358_v40  ;;  %v366_v44 = vld [vmem:[%s1903_s25 + $0xd20] sm:$0xff]  ;;  %v368_v45 = vld [vmem:[%s1903_s25 + $0xd28] sm:$0xff] }
  0x47   : > { %361 = vst [vmem:[%s1911_s26 + $0x348] sm:$0xff] %v360_v41  ;;  %363 = vst [vmem:[%s1911_s26 + $0x350] sm:$0xff] %v362_v42  ;;  %v370_v46 = vld [vmem:[%s1903_s25 + $0xd30] sm:$0xff]  ;;  %v372_v47 = vld [vmem:[%s1903_s25 + $0xd38] sm:$0xff] }
  0x48   : > { %365 = vst [vmem:[%s1911_s26 + $0x358] sm:$0xff] %v364_v43  ;;  %367 = vst [vmem:[%s1911_s26 + $0x360] sm:$0xff] %v366_v44 }
  0x49   : > { %369 = vst [vmem:[%s1911_s26 + $0x368] sm:$0xff] %v368_v45  ;;  %371 = vst [vmem:[%s1911_s26 + $0x370] sm:$0xff] %v370_v46 }
  0x4a   : > { %373 = vst [vmem:[%s1911_s26 + $0x378] sm:$0xff] %v372_v47 }
  0x4b PF: > { %p1652_p5 = scmp.ge.s32.totalorder %s1845_s14, 1  ;;  %p378_p6 = scmp.lt.s32.totalorder %s1845_s14, 5 }
  0x4d   : > { %p379_p7 = pnand %p1652_p5, %p378_p6 }
  0x4e   : > { %s385_s27 = sand.u32 (!%p379_p7), 1, %s1837_s12   ;;  %v1847_v48 = vmov (!%p379_p7), 0   ;;  %v529_v49 = vld [vmem:[%s2348_s2] sm:$0xf] (!%p379_p7)  ;;  %vm1083_vm0 = vcmask (!%p379_p7), 1045504   ;;  %vm1079_vm1 = vcmask (!%p379_p7), 883712  }
  0x4f   : > { %382 = sbr.rel (%p379_p7) target bundleno = 423 (0x1a7), region = 51  ;;  %1164 = vmatprep.mubr.bf16.mxu0 (!%p379_p7), %v1847_v48  ;;  %1205 = vmatprep.mubr.bf16.mxu1 (!%p379_p7), %v1847_v48  ;;  %s1653_s7 = sshll.u32 (!%p379_p7), %s1646_s15, 4 }
  0x50   : > { %s1795_s28 = smul.u32 (!%p379_p7), 896, %s385_s27  ;;  %1822 = vset.pattern.permute.xlu0 (!%p379_p7), %v1847_v48  ;;  %p410_p8 = scmp.lt.s32.totalorder (!%p379_p7), %s1653_s7, 63 }
  0x51   : > { %532 = vperm.xlu0 (!%p379_p7), %1822, %v529_v49  }
  0x52   : > { %s2140_s4 = scalar_lea.vmem (!%p379_p7), [#allocation2], %s1795_s28 }
  0x53   : > { %v417_v50 = vld [vmem:[%s2140_s4] sm:$0xff] (!%p379_p7)  ;;  %v418_v52 = vld [vmem:[%s2140_s4 + $0x8] sm:$0xff] (!%p379_p7)  ;;  %v419_v42 = vld [vmem:[%s2140_s4 + $0x10] sm:$0xff] (!%p379_p7) }
  0x54   : > { %v425_v51 = vld [vmem:[%s2140_s4 + $0x40] sm:$0xff] (!%p379_p7)  ;;  %v426_v54 = vld [vmem:[%s2140_s4 + $0x48] sm:$0xff] (!%p379_p7)  ;;  %v427_v43 = vld [vmem:[%s2140_s4 + $0x50] sm:$0xff] (!%p379_p7) }
  0x55   : > { %v1656_v53 = vcombine.high (!%p379_p7), %v417_v50, %v425_v51  ;;  %v1655_v55 = vcombine.low (!%p379_p7), %v417_v50, %v425_v51  ;;  %v433_v56 = vld [vmem:[%s2140_s4 + $0x80] sm:$0xff] (!%p379_p7)  ;;  %v1658_v58 = vcombine.high (!%p379_p7), %v418_v52, %v426_v54  ;;  %v1657_v59 = vcombine.low (!%p379_p7), %v418_v52, %v426_v54  ;;  %v434_v61 = vld [vmem:[%s2140_s4 + $0x88] sm:$0xff] (!%p379_p7)  ;;  %v420_v44 = vld [vmem:[%s2140_s4 + $0x18] sm:$0xff] (!%p379_p7) }
  0x56   : > { %v441_v57 = vld [vmem:[%s2140_s4 + $0xc0] sm:$0xff]  ;;  %v442_v62 = vld [vmem:[%s2140_s4 + $0xc8] sm:$0xff]  ;;  %v428_v45 = vld [vmem:[%s2140_s4 + $0x58] sm:$0xff]  ;;  %v1660_v47 = vcombine.high %v419_v42, %v427_v43  ;;  %s2354_s7 = smov (!%p410_p8, %s1653_s7), 63 }
  0x57   : > { %v1672_v60 = vcombine.high %v433_v56, %v441_v57  ;;  %v449_v63 = vld [vmem:[%s2140_s4 + $0x100] sm:$0xff]  ;;  %1132 = vmatprep.subr.bf16.mxu0 %v1656_v53  ;;  %v1674_v0 = vcombine.high %v434_v61, %v442_v62  ;;  %v450_v2 = vld [vmem:[%s2140_s4 + $0x108] sm:$0xff]  ;;  %1173 = vmatprep.subr.bf16.mxu1 %v1658_v58  ;;  %v1671_v4 = vcombine.low %v433_v56, %v441_v57  ;;  %v435_v51 = vld [vmem:[%s2140_s4 + $0x90] sm:$0xff]  ;;  %s1654_s8 = sshll.u32 %s2354_s7, 1 }
  0x58   : > { %v457_v1 = vld [vmem:[%s2140_s4 + $0x140] sm:$0xff]  ;;  %v458_v3 = vld [vmem:[%s2140_s4 + $0x148] sm:$0xff]  ;;  %1133 = vmatpush1.bf16.msra.mxu0 %v1655_v55  ;;  %1174 = vmatpush1.bf16.msra.mxu1 %v1657_v59  ;;  %v1673_v5 = vcombine.low %v434_v61, %v442_v62  ;;  %v1662_v50 = vcombine.high %v420_v44, %v428_v45  ;;  %v443_v52 = vld [vmem:[%s2140_s4 + $0xd0] sm:$0xff]  ;;  %v1659_v56 = vcombine.low %v419_v42, %v427_v43  ;;  %s2312_s11 = scalar_lea.vmem %s2349_s3, %s1654_s8 }
  0x59   : > { %1134 = vmatprep.subr.bf16.mxu0 %v1672_v60  ;;  %v1688_v6 = vcombine.high %v449_v63, %v457_v1  ;;  %1175 = vmatprep.subr.bf16.mxu1 %v1674_v0  ;;  %v1690_v7 = vcombine.high %v450_v2, %v458_v3  ;;  %v465_v8 = vld [vmem:[%s2140_s4 + $0x180] sm:$0xff]  ;;  %v466_v10 = vld [vmem:[%s2140_s4 + $0x188] sm:$0xff]  ;;  %v1687_v12 = vcombine.low %v449_v63, %v457_v1  ;;  %v436_v53 = vld [vmem:[%s2140_s4 + $0x98] sm:$0xff] }
  0x5a   : > { %v473_v9 = vld [vmem:[%s2140_s4 + $0x1c0] sm:$0xff]  ;;  %v474_v11 = vld [vmem:[%s2140_s4 + $0x1c8] sm:$0xff]  ;;  %v1689_v13 = vcombine.low %v450_v2, %v458_v3  ;;  %v444_v54 = vld [vmem:[%s2140_s4 + $0xd8] sm:$0xff]  ;;  %v1661_v57 = vcombine.low %v420_v44, %v428_v45  ;;  %v1676_v58 = vcombine.high %v435_v51, %v443_v52  ;;  %v1675_v0 = vcombine.low %v435_v51, %v443_v52 }
  0x5b   : > { %v1704_v14 = vcombine.high %v465_v8, %v473_v9  ;;  %v1706_v15 = vcombine.high %v466_v10, %v474_v11  ;;  %v481_v16 = vld [vmem:[%s2140_s4 + $0x200] sm:$0xff]  ;;  %v482_v18 = vld [vmem:[%s2140_s4 + $0x208] sm:$0xff]  ;;  %v1703_v20 = vcombine.low %v465_v8, %v473_v9  ;;  %v1705_v21 = vcombine.low %v466_v10, %v474_v11  ;;  %v451_v60 = vld [vmem:[%s2140_s4 + $0x110] sm:$0xff] }
  0x5c   : > { %1135 = vmatpush1.bf16.msra.mxu0 %v1671_v4  ;;  %1176 = vmatpush1.bf16.msra.mxu1 %v1673_v5  ;;  %v489_v17 = vld [vmem:[%s2140_s4 + $0x240] sm:$0xff]  ;;  %v490_v19 = vld [vmem:[%s2140_s4 + $0x248] sm:$0xff]  ;;  %v1678_v59 = vcombine.high %v436_v53, %v444_v54  ;;  %v459_v61 = vld [vmem:[%s2140_s4 + $0x150] sm:$0xff]  ;;  %v1677_v1 = vcombine.low %v436_v53, %v444_v54 }
  0x5d   : > { %1136 = vmatprep.subr.bf16.mxu0 %v1688_v6  ;;  %1177 = vmatprep.subr.bf16.mxu1 %v1690_v7  ;;  %v1720_v22 = vcombine.high %v481_v16, %v489_v17  ;;  %v1722_v23 = vcombine.high %v482_v18, %v490_v19  ;;  %v497_v24 = vld [vmem:[%s2140_s4 + $0x280] sm:$0xff]  ;;  %v498_v26 = vld [vmem:[%s2140_s4 + $0x288] sm:$0xff]  ;;  %v1719_v28 = vcombine.low %v481_v16, %v489_v17  ;;  %v452_v62 = vld [vmem:[%s2140_s4 + $0x118] sm:$0xff] }
  0x5e   : > { %v505_v25 = vld [vmem:[%s2140_s4 + $0x2c0] sm:$0xff]  ;;  %v506_v27 = vld [vmem:[%s2140_s4 + $0x2c8] sm:$0xff]  ;;  %v1721_v29 = vcombine.low %v482_v18, %v490_v19  ;;  %v460_v63 = vld [vmem:[%s2140_s4 + $0x158] sm:$0xff]  ;;  %v1692_v2 = vcombine.high %v451_v60, %v459_v61  ;;  %v1691_v8 = vcombine.low %v451_v60, %v459_v61 }
  0x5f   : > { %v1736_v30 = vcombine.high %v497_v24, %v505_v25  ;;  %v1738_v31 = vcombine.high %v498_v26, %v506_v27  ;;  %v513_v32 = vld [vmem:[%s2140_s4 + $0x300] sm:$0xff]  ;;  %v514_v34 = vld [vmem:[%s2140_s4 + $0x308] sm:$0xff]  ;;  %v1735_v36 = vcombine.low %v497_v24, %v505_v25  ;;  %v1737_v37 = vcombine.low %v498_v26, %v506_v27  ;;  %v467_v4 = vld [vmem:[%s2140_s4 + $0x190] sm:$0xff] }
  0x60   : > { %1137 = vmatpush1.bf16.msra.mxu0 %v1687_v12  ;;  %1178 = vmatpush1.bf16.msra.mxu1 %v1689_v13  ;;  %v521_v33 = vld [vmem:[%s2140_s4 + $0x340] sm:$0x33]  ;;  %v522_v35 = vld [vmem:[%s2140_s4 + $0x348] sm:$0x33]  ;;  %v1694_v3 = vcombine.high %v452_v62, %v460_v63  ;;  %v475_v5 = vld [vmem:[%s2140_s4 + $0x1d0] sm:$0xff]  ;;  %v1693_v9 = vcombine.low %v452_v62, %v460_v63 }
  0x61   : > { %1138 = vmatprep.subr.bf16.mxu0 %v1704_v14  ;;  %1179 = vmatprep.subr.bf16.mxu1 %v1706_v15  ;;  %v1752_v38 = vcombine.high %v513_v32, %v521_v33  ;;  %v1751_v39 = vcombine.low %v513_v32, %v521_v33  ;;  %v1754_v40 = vcombine.high %v514_v34, %v522_v35  ;;  %v2185_v55 = vld [vmem:[%s2346_s0] sm:$0x3]  ;;  %v468_v6 = vld [vmem:[%s2140_s4 + $0x198] sm:$0xff]  ;;  %v483_v12 = vld [vmem:[%s2140_s4 + $0x210] sm:$0xff] }
  0x62   : > { %v1753_v41 = vcombine.low %v514_v34, %v522_v35  ;;  %v476_v7 = vld [vmem:[%s2140_s4 + $0x1d8] sm:$0xff]  ;;  %v1708_v10 = vcombine.high %v467_v4, %v475_v5  ;;  %v491_v13 = vld [vmem:[%s2140_s4 + $0x250] sm:$0xff]  ;;  %v1707_v16 = vcombine.low %v467_v4, %v475_v5 }
  0x63   : > { %v1085_v46 = vsel %vm1083_vm0, %v1751_v39, 0  ;;  %v1710_v11 = vcombine.high %v468_v6, %v476_v7  ;;  %v484_v14 = vld [vmem:[%s2140_s4 + $0x218] sm:$0xff]  ;;  %v1709_v17 = vcombine.low %v468_v6, %v476_v7  ;;  %v1724_v18 = vcombine.high %v483_v12, %v491_v13  ;;  %v429_v39 = vld [vmem:[%s2140_s4 + $0x60] sm:$0xff] }
  0x64   : > { %1139 = vmatpush1.bf16.msra.mxu0 %v1703_v20  ;;  %1180 = vmatpush1.bf16.msra.mxu1 %v1705_v21  ;;  %v1091_v49 = vsel %vm1083_vm0, %v1753_v41, 0  ;;  %v492_v15 = vld [vmem:[%s2140_s4 + $0x258] sm:$0xff]  ;;  %v499_v20 = vld [vmem:[%s2140_s4 + $0x290] sm:$0xff]  ;;  %v1723_v24 = vcombine.low %v483_v12, %v491_v13  ;;  %v430_v41 = vld [vmem:[%s2140_s4 + $0x68] sm:$0xff] }
  0x65   : > { %1140 = vmatprep.subr.bf16.mxu0 %v1720_v22  ;;  %1181 = vmatprep.subr.bf16.mxu1 %v1722_v23  ;;  %v1726_v19 = vcombine.high %v484_v14, %v492_v15  ;;  %v507_v21 = vld [vmem:[%s2140_s4 + $0x2d0] sm:$0xff]  ;;  %v500_v22 = vld [vmem:[%s2140_s4 + $0x298] sm:$0xff]  ;;  %v1725_v25 = vcombine.low %v484_v14, %v492_v15 }
  0x66   : > { %v508_v23 = vld [vmem:[%s2140_s4 + $0x2d8] sm:$0xff]  ;;  %v1740_v26 = vcombine.high %v499_v20, %v507_v21  ;;  %v1739_v32 = vcombine.low %v499_v20, %v507_v21 }
  0x67   : > { %v1742_v27 = vcombine.high %v500_v22, %v508_v23  ;;  %v1741_v33 = vcombine.low %v500_v22, %v508_v23 }
  0x68   : > { %1141 = vmatpush1.bf16.msra.mxu0 %v1719_v28  ;;  %1182 = vmatpush1.bf16.msra.mxu1 %v1721_v29  ;;  %v515_v28 = vld [vmem:[%s2140_s4 + $0x310] sm:$0xff] }
  0x69   : > { %1142 = vmatprep.subr.bf16.mxu0 %v1736_v30  ;;  %1183 = vmatprep.subr.bf16.mxu1 %v1738_v31  ;;  %v523_v29 = vld [vmem:[%s2140_s4 + $0x350] sm:$0x33]  ;;  %v516_v30 = vld [vmem:[%s2140_s4 + $0x318] sm:$0xff] }
  0x6a   : > { %v524_v31 = vld [vmem:[%s2140_s4 + $0x358] sm:$0x33]  ;;  %v1756_v34 = vcombine.high %v515_v28, %v523_v29  ;;  %v1755_v35 = vcombine.low %v515_v28, %v523_v29 }
  0x6c   : > { %1143 = vmatpush1.bf16.msra.mxu0 %v1735_v36  ;;  %1184 = vmatpush1.bf16.msra.mxu1 %v1737_v37  ;;  %v1758_v36 = vcombine.high %v516_v30, %v524_v31  ;;  %v1757_v37 = vcombine.low %v516_v30, %v524_v31  ;;  %v1097_v42 = vsel %vm1083_vm0, %v1755_v35, 0  ;;  %v431_v35 = vld [vmem:[%s2140_s4 + $0x70] sm:$0xff] }
  0x6d   : > { %1767 = vmatprep.subr.msk.bf16.mxu0 %vm1083_vm0, %v1752_v38  ;;  %1769 = vmatprep.subr.msk.bf16.mxu1 %vm1083_vm0, %v1754_v40  ;;  %v421_v38 = vld [vmem:[%s2140_s4 + $0x20] sm:$0xff]  ;;  %v422_v40 = vld [vmem:[%s2140_s4 + $0x28] sm:$0xff] }
  0x6e   : > { %v1664_v43 = vcombine.high %v421_v38, %v429_v39  ;;  %v1103_v44 = vsel %vm1083_vm0, %v1757_v37, 0  ;;  %v1666_v45 = vcombine.high %v422_v40, %v430_v41  ;;  %v1663_v51 = vcombine.low %v421_v38, %v429_v39  ;;  %v432_v37 = vld [vmem:[%s2140_s4 + $0x78] sm:$0xff] }
  0x6f   : > { %v1665_v52 = vcombine.low %v422_v40, %v430_v41 }
  0x70   : > { %1145 = vmatpush1.bf16.msra.mxu0 %v1085_v46  ;;  %1186 = vmatpush1.bf16.msra.mxu1 %v1091_v49  ;;  %v437_v46 = vld [vmem:[%s2140_s4 + $0xa0] sm:$0xff]  ;;  %v438_v49 = vld [vmem:[%s2140_s4 + $0xa8] sm:$0xff] }
  0x71   : > { %1214 = vmatprep.subr.bf16.mxu0 %v1660_v47  ;;  %1255 = vmatprep.subr.bf16.mxu1 %v1662_v50  ;;  %v445_v47 = vld [vmem:[%s2140_s4 + $0xe0] sm:$0xff]  ;;  %v446_v50 = vld [vmem:[%s2140_s4 + $0xe8] sm:$0xff] }
  0x72   : > { %v1680_v53 = vcombine.high %v437_v46, %v445_v47  ;;  %v1682_v54 = vcombine.high %v438_v49, %v446_v50  ;;  %v1679_v60 = vcombine.low %v437_v46, %v445_v47  ;;  %v1681_v61 = vcombine.low %v438_v49, %v446_v50 }
  0x73   : > { %1768 = vmatmul.mubr.msk.bf16.vlgmr.msra.gmra.mrb[0].mxu0 %vm1079_vm1, %v2185_v55  ;;  %1770 = vmatmul.mubr.msk.bf16.vlgmr.msra.gmra.mrb[0].mxu1 %vm1079_vm1, %v2185_v55 }
  0x74   : > { %1215 = vmatpush1.bf16.msra.mxu0 %v1659_v56  ;;  %1256 = vmatpush1.bf16.msra.mxu1 %v1661_v57  ;;  %v453_v56 = vld [vmem:[%s2140_s4 + $0x120] sm:$0xff] }
  0x75   : > { %1216 = vmatprep.subr.bf16.mxu0 %v1676_v58  ;;  %1257 = vmatprep.subr.bf16.mxu1 %v1678_v59  ;;  %v461_v57 = vld [vmem:[%s2140_s4 + $0x160] sm:$0xff]  ;;  %v454_v58 = vld [vmem:[%s2140_s4 + $0x128] sm:$0xff] }
  0x76   : > { %1246 = vmatprep.mubr.bf16.mxu0 %v1847_v48  ;;  %1287 = vmatprep.mubr.bf16.mxu1 %v1847_v48  ;;  %v462_v59 = vld [vmem:[%s2140_s4 + $0x168] sm:$0xff]  ;;  %v1696_v62 = vcombine.high %v453_v56, %v461_v57  ;;  %v1695_v4 = vcombine.low %v453_v56, %v461_v57 }
  0x77   : > { %v1698_v63 = vcombine.high %v454_v58, %v462_v59  ;;  %v1697_v5 = vcombine.low %v454_v58, %v462_v59 }
  0x78   : > { %1217 = vmatpush1.bf16.msra.mxu0 %v1675_v0  ;;  %1258 = vmatpush1.bf16.msra.mxu1 %v1677_v1  ;;  %v469_v0 = vld [vmem:[%s2140_s4 + $0x1a0] sm:$0xff] }
  0x79   : > { %1218 = vmatprep.subr.bf16.mxu0 %v1692_v2  ;;  %1259 = vmatprep.subr.bf16.mxu1 %v1694_v3  ;;  %v477_v1 = vld [vmem:[%s2140_s4 + $0x1e0] sm:$0xff]  ;;  %v470_v2 = vld [vmem:[%s2140_s4 + $0x1a8] sm:$0xff] }
  0x7a   : > { %v478_v3 = vld [vmem:[%s2140_s4 + $0x1e8] sm:$0xff]  ;;  %v1712_v6 = vcombine.high %v469_v0, %v477_v1  ;;  %v1711_v12 = vcombine.low %v469_v0, %v477_v1 }
  0x7b   : > { %v1714_v7 = vcombine.high %v470_v2, %v478_v3  ;;  %v1713_v13 = vcombine.low %v470_v2, %v478_v3 }
  0x7c   : > { %1219 = vmatpush1.bf16.msra.mxu0 %v1691_v8  ;;  %1260 = vmatpush1.bf16.msra.mxu1 %v1693_v9  ;;  %v485_v8 = vld [vmem:[%s2140_s4 + $0x220] sm:$0xff] }
  0x7d   : > { %1220 = vmatprep.subr.bf16.mxu0 %v1708_v10  ;;  %1261 = vmatprep.subr.bf16.mxu1 %v1710_v11  ;;  %v493_v9 = vld [vmem:[%s2140_s4 + $0x260] sm:$0xff]  ;;  %v486_v10 = vld [vmem:[%s2140_s4 + $0x228] sm:$0xff] }
  0x7e   : > { %v494_v11 = vld [vmem:[%s2140_s4 + $0x268] sm:$0xff]  ;;  %v1728_v14 = vcombine.high %v485_v8, %v493_v9  ;;  %v1727_v20 = vcombine.low %v485_v8, %v493_v9 }
  0x7f   : > { %v1730_v15 = vcombine.high %v486_v10, %v494_v11  ;;  %v1729_v21 = vcombine.low %v486_v10, %v494_v11  ;;  %v503_v11 = vld [vmem:[%s2140_s4 + $0x2b0] sm:$0xff] }
  0x80   : > { %1221 = vmatpush1.bf16.msra.mxu0 %v1707_v16  ;;  %1262 = vmatpush1.bf16.msra.mxu1 %v1709_v17  ;;  %v501_v16 = vld [vmem:[%s2140_s4 + $0x2a0] sm:$0xff] }
  0x81   : > { %1222 = vmatprep.subr.bf16.mxu0 %v1724_v18  ;;  %1263 = vmatprep.subr.bf16.mxu1 %v1726_v19  ;;  %v509_v17 = vld [vmem:[%s2140_s4 + $0x2e0] sm:$0xff]  ;;  %v502_v18 = vld [vmem:[%s2140_s4 + $0x2a8] sm:$0xff] }
  0x82   : > { %v510_v19 = vld [vmem:[%s2140_s4 + $0x2e8] sm:$0xff]  ;;  %v1744_v22 = vcombine.high %v501_v16, %v509_v17  ;;  %v1743_v28 = vcombine.low %v501_v16, %v509_v17 }
  0x83   : > { %v1746_v23 = vcombine.high %v502_v18, %v510_v19  ;;  %v1745_v29 = vcombine.low %v502_v18, %v510_v19  ;;  %v519_v19 = vld [vmem:[%s2140_s4 + $0x330] sm:$0xff] }
  0x84   : > { %1223 = vmatpush1.bf16.msra.mxu0 %v1723_v24  ;;  %1264 = vmatpush1.bf16.msra.mxu1 %v1725_v25  ;;  %v517_v24 = vld [vmem:[%s2140_s4 + $0x320] sm:$0xff] }
  0x85   : > { %1224 = vmatprep.subr.bf16.mxu0 %v1740_v26  ;;  %1265 = vmatprep.subr.bf16.mxu1 %v1742_v27  ;;  %v525_v25 = vld [vmem:[%s2140_s4 + $0x360] sm:$0x33]  ;;  %v518_v26 = vld [vmem:[%s2140_s4 + $0x328] sm:$0xff] }
  0x86   : > { %v526_v27 = vld [vmem:[%s2140_s4 + $0x368] sm:$0x33]  ;;  %v1760_v30 = vcombine.high %v517_v24, %v525_v25  ;;  %v1759_v31 = vcombine.low %v517_v24, %v525_v25 }
  0x88   : > { %1225 = vmatpush1.bf16.msra.mxu0 %v1739_v32  ;;  %1266 = vmatpush1.bf16.msra.mxu1 %v1741_v33  ;;  %v1762_v32 = vcombine.high %v518_v26, %v526_v27  ;;  %v1761_v33 = vcombine.low %v518_v26, %v526_v27  ;;  %v1109_v38 = vsel %vm1083_vm0, %v1759_v31, 0  ;;  %v1848_v31 = vmov 1983009808  }
  0x89   : > { %1771 = vmatprep.subr.msk.bf16.mxu0 %vm1083_vm0, %v1756_v34  ;;  %1773 = vmatprep.subr.msk.bf16.mxu1 %vm1083_vm0, %v1758_v36  ;;  %v423_v34 = vld [vmem:[%s2140_s4 + $0x30] sm:$0xff]  ;;  %v424_v36 = vld [vmem:[%s2140_s4 + $0x38] sm:$0xff] }
  0x8a   : > { %v1668_v39 = vcombine.high %v423_v34, %v431_v35  ;;  %v1115_v40 = vsel %vm1083_vm0, %v1761_v33, 0  ;;  %v1670_v41 = vcombine.high %v424_v36, %v432_v37  ;;  %v1667_v46 = vcombine.low %v423_v34, %v431_v35 }
  0x8b   : > { %v1669_v47 = vcombine.low %v424_v36, %v432_v37  ;;  %v1513_v33 = vlaneseq }
  0x8c   : > { %1227 = vmatpush1.bf16.msra.mxu0 %v1097_v42  ;;  %1268 = vmatpush1.bf16.msra.mxu1 %v1103_v44  ;;  %v439_v42 = vld [vmem:[%s2140_s4 + $0xb0] sm:$0xff]  ;;  %v440_v44 = vld [vmem:[%s2140_s4 + $0xb8] sm:$0xff] }
  0x8d   : > { %1296 = vmatprep.subr.bf16.mxu0 %v1664_v43  ;;  %1337 = vmatprep.subr.bf16.mxu1 %v1666_v45  ;;  %v447_v43 = vld [vmem:[%s2140_s4 + $0xf0] sm:$0xff]  ;;  %v448_v45 = vld [vmem:[%s2140_s4 + $0xf8] sm:$0xff]  ;;  %v1514_v37 = vshrl.u32 %v1513_v33, 7 }
  0x8e   : > { %v1684_v49 = vcombine.high %v439_v42, %v447_v43  ;;  %v1686_v50 = vcombine.high %v440_v44, %v448_v45  ;;  %v1683_v56 = vcombine.low %v439_v42, %v447_v43  ;;  %v1685_v57 = vcombine.low %v440_v44, %v448_v45 }
  0x8f   : > { %1772 = vmatmul.mubr.msk.bf16.vlgmr.msra.gmra.mrb[4].mxu0 %vm1079_vm1, %v2185_v55  ;;  %1774 = vmatmul.mubr.msk.bf16.vlgmr.msra.gmra.mrb[4].mxu1 %vm1079_vm1, %v2185_v55 }
  0x90   : > { %1297 = vmatpush1.bf16.msra.mxu0 %v1663_v51  ;;  %1338 = vmatpush1.bf16.msra.mxu1 %v1665_v52  ;;  %v455_v51 = vld [vmem:[%s2140_s4 + $0x130] sm:$0xff] }
  0x91   : > { %1298 = vmatprep.subr.bf16.mxu0 %v1680_v53  ;;  %1339 = vmatprep.subr.bf16.mxu1 %v1682_v54  ;;  %v463_v52 = vld [vmem:[%s2140_s4 + $0x170] sm:$0xff]  ;;  %v456_v53 = vld [vmem:[%s2140_s4 + $0x138] sm:$0xff] }
  0x92   : > { %1328 = vmatprep.mubr.bf16.mxu0 %v1847_v48  ;;  %1369 = vmatprep.mubr.bf16.mxu1 %v1847_v48  ;;  %v464_v54 = vld [vmem:[%s2140_s4 + $0x178] sm:$0xff]  ;;  %v1700_v58 = vcombine.high %v455_v51, %v463_v52  ;;  %v1699_v0 = vcombine.low %v455_v51, %v463_v52 }
  0x93   : > { %v1702_v59 = vcombine.high %v456_v53, %v464_v54  ;;  %v1701_v1 = vcombine.low %v456_v53, %v464_v54 }
  0x94   : > { %1299 = vmatpush1.bf16.msra.mxu0 %v1679_v60  ;;  %1340 = vmatpush1.bf16.msra.mxu1 %v1681_v61  ;;  %v471_v60 = vld [vmem:[%s2140_s4 + $0x1b0] sm:$0xff] }
  0x95   : > { %1300 = vmatprep.subr.bf16.mxu0 %v1696_v62  ;;  %1341 = vmatprep.subr.bf16.mxu1 %v1698_v63  ;;  %v479_v61 = vld [vmem:[%s2140_s4 + $0x1f0] sm:$0xff]  ;;  %v472_v62 = vld [vmem:[%s2140_s4 + $0x1b8] sm:$0xff] }
  0x96   : > { %v480_v63 = vld [vmem:[%s2140_s4 + $0x1f8] sm:$0xff]  ;;  %v1716_v2 = vcombine.high %v471_v60, %v479_v61  ;;  %v1715_v8 = vcombine.low %v471_v60, %v479_v61 }
  0x97   : > { %v1718_v3 = vcombine.high %v472_v62, %v480_v63 }
  0x98   : > { %1301 = vmatpush1.bf16.msra.mxu0 %v1695_v4  ;;  %1342 = vmatpush1.bf16.msra.mxu1 %v1697_v5  ;;  %v487_v4 = vld [vmem:[%s2140_s4 + $0x230] sm:$0xff] }
  0x99   : > { %1302 = vmatprep.subr.bf16.mxu0 %v1712_v6  ;;  %1343 = vmatprep.subr.bf16.mxu1 %v1714_v7  ;;  %v495_v5 = vld [vmem:[%s2140_s4 + $0x270] sm:$0xff]  ;;  %v488_v6 = vld [vmem:[%s2140_s4 + $0x238] sm:$0xff] }
  0x9a   : > { %v496_v7 = vld [vmem:[%s2140_s4 + $0x278] sm:$0xff]  ;;  %v1732_v9 = vcombine.high %v487_v4, %v495_v5 }
  0x9b   : > { %v1734_v10 = vcombine.high %v488_v6, %v496_v7  ;;  %v1733_v16 = vcombine.low %v488_v6, %v496_v7 }
  0x9c   : > { %1303 = vmatpush1.bf16.msra.mxu0 %v1711_v12  ;;  %1344 = vmatpush1.bf16.msra.mxu1 %v1713_v13  ;;  %v511_v12 = vld [vmem:[%s2140_s4 + $0x2f0] sm:$0xff]  ;;  %v504_v13 = vld [vmem:[%s2140_s4 + $0x2b8] sm:$0xff] }
  0x9d   : > { %1304 = vmatprep.subr.bf16.mxu0 %v1728_v14  ;;  %1345 = vmatprep.subr.bf16.mxu1 %v1730_v15  ;;  %v512_v14 = vld [vmem:[%s2140_s4 + $0x2f8] sm:$0xff]  ;;  %v1731_v15 = vcombine.low %v487_v4, %v495_v5  ;;  %v1748_v17 = vcombine.high %v503_v11, %v511_v12 }
  0x9e   : > { %v1750_v18 = vcombine.high %v504_v13, %v512_v14  ;;  %v1749_v24 = vcombine.low %v504_v13, %v512_v14 }
  0xa0   : > { %1305 = vmatpush1.bf16.msra.mxu0 %v1727_v20  ;;  %1346 = vmatpush1.bf16.msra.mxu1 %v1729_v21  ;;  %v527_v20 = vld [vmem:[%s2140_s4 + $0x370] sm:$0x33]  ;;  %v520_v21 = vld [vmem:[%s2140_s4 + $0x338] sm:$0xff] }
  0xa1   : > { %1306 = vmatprep.subr.bf16.mxu0 %v1744_v22  ;;  %1347 = vmatprep.subr.bf16.mxu1 %v1746_v23  ;;  %v528_v22 = vld [vmem:[%s2140_s4 + $0x378] sm:$0x33]  ;;  %v1747_v23 = vcombine.low %v503_v11, %v511_v12  ;;  %v1764_v25 = vcombine.high %v519_v19, %v527_v20  ;;  %v1763_v26 = vcombine.low %v519_v19, %v527_v20 }
  0xa2   : > { %v1766_v27 = vcombine.high %v520_v21, %v528_v22 }
  0xa4   : > { %1307 = vmatpush1.bf16.msra.mxu0 %v1743_v28  ;;  %1348 = vmatpush1.bf16.msra.mxu1 %v1745_v29  ;;  %v1765_v28 = vcombine.low %v520_v21, %v528_v22  ;;  %v1121_v29 = vsel %vm1083_vm0, %v1763_v26, 0 }
  0xa5   : > { %1775 = vmatprep.subr.msk.bf16.mxu0 %vm1083_vm0, %v1760_v30  ;;  %1777 = vmatprep.subr.msk.bf16.mxu1 %vm1083_vm0, %v1762_v32  ;;  %v1511_v32 = vunpack.c.l.s4 %v1848_v31 }
  0xa6   : > { %v1127_v30 = vsel %vm1083_vm0, %v1765_v28, 0 }
  0xa7   : > { %v1512_v36 = vunpack.c.0.s8 %v1511_v32 }
  0xa8   : > { %1309 = vmatpush1.bf16.msra.mxu0 %v1109_v38  ;;  %1350 = vmatpush1.bf16.msra.mxu1 %v1115_v40 }
  0xa9   : > { %1378 = vmatprep.subr.bf16.mxu0 %v1668_v39  ;;  %1419 = vmatprep.subr.bf16.mxu1 %v1670_v41 }
  0xab   : > { %1776 = vmatmul.mubr.msk.bf16.vlgmr.msra.gmra.mrb[8].mxu0 %vm1079_vm1, %v2185_v55  ;;  %1778 = vmatmul.mubr.msk.bf16.vlgmr.msra.gmra.mrb[8].mxu1 %vm1079_vm1, %v2185_v55 }
  0xac   : > { %1379 = vmatpush1.bf16.msra.mxu0 %v1667_v46  ;;  %1420 = vmatpush1.bf16.msra.mxu1 %v1669_v47 }
  0xad   : > { %1380 = vmatprep.subr.bf16.mxu0 %v1684_v49  ;;  %1421 = vmatprep.subr.bf16.mxu1 %v1686_v50  ;;  %v2305_v50 = vsub.s32 %v1512_v36, %v1514_v37 }
  0xae   : > { %1410 = vmatprep.mubr.bf16.mxu0 %v1847_v48  ;;  %1451 = vmatprep.mubr.bf16.mxu1 %v1847_v48  ;;  %v1717_v48 = vcombine.low %v472_v62, %v480_v63 }
  0xb0   : > { %1381 = vmatpush1.bf16.msra.mxu0 %v1683_v56  ;;  %1422 = vmatpush1.bf16.msra.mxu1 %v1685_v57 }
  0xb1   : > { %1382 = vmatprep.subr.bf16.mxu0 %v1700_v58  ;;  %1423 = vmatprep.subr.bf16.mxu1 %v1702_v59 }
  0xb4   : > { %1383 = vmatpush1.bf16.msra.mxu0 %v1699_v0  ;;  %1424 = vmatpush1.bf16.msra.mxu1 %v1701_v1 }
  0xb5   : > { %1384 = vmatprep.subr.bf16.mxu0 %v1716_v2  ;;  %1425 = vmatprep.subr.bf16.mxu1 %v1718_v3 }
  0xb8   : > { %1385 = vmatpush1.bf16.msra.mxu0 %v1715_v8  ;;  %1426 = vmatpush1.bf16.msra.mxu1 %v1717_v48 }
  0xb9   : > { %1386 = vmatprep.subr.bf16.mxu0 %v1732_v9  ;;  %1427 = vmatprep.subr.bf16.mxu1 %v1734_v10 }
  0xbc   : > { %1387 = vmatpush1.bf16.msra.mxu0 %v1731_v15  ;;  %1428 = vmatpush1.bf16.msra.mxu1 %v1733_v16 }
  0xbd   : > { %1388 = vmatprep.subr.bf16.mxu0 %v1748_v17  ;;  %1429 = vmatprep.subr.bf16.mxu1 %v1750_v18 }
  0xc0   : > { %1389 = vmatpush1.bf16.msra.mxu0 %v1747_v23  ;;  %1430 = vmatpush1.bf16.msra.mxu1 %v1749_v24 }
  0xc1   : > { %1779 = vmatprep.subr.msk.bf16.mxu0 %vm1083_vm0, %v1764_v25  ;;  %1781 = vmatprep.subr.msk.bf16.mxu1 %vm1083_vm0, %v1766_v27 }
  0xc4   : > { %1391 = vmatpush1.bf16.msra.mxu0 %v1121_v29  ;;  %1432 = vmatpush1.bf16.msra.mxu1 %v1127_v30 }
  0xc7   : > { %1780 = vmatmul.mubr.msk.bf16.vlgmr.msra.gmra.mrb[12].mxu0 %vm1079_vm1, %v2185_v55  ;;  %1782 = vmatmul.mubr.msk.bf16.vlgmr.msra.gmra.mrb[12].mxu1 %vm1079_vm1, %v2185_v55 }
  0xd0   : > { %v2299_v34 = vpop.permute.xlu0 %532 }
 0x146   : > { %v1166_v35 = vpop.f32.mrb[0].mxu0  ;;  %v1207_v38 = vpop.f32.mrb[0].mxu1 }
 0x147   : > { %v1167_v39 = vadd.f32 %v1166_v35, %v2299_v34  ;;  %v1168_v40 = vpop.f32.mrb[1].mxu0  ;;  %v1208_v42 = vadd.f32 %v1207_v38, %v2299_v34  ;;  %v1209_v55 = vpop.f32.mrb[1].mxu1 }
 0x148   : > { %v1169_v41 = vadd.f32 %v1168_v40, %v2299_v34  ;;  %v1170_v43 = vpop.f32.mrb[2].mxu0  ;;  %v1210_v45 = vadd.f32 %v1209_v55, %v2299_v34  ;;  %v1211_v46 = vpop.f32.mrb[2].mxu1 }
 0x149   : > { %v1460_v44 = vmax.f32 %v1167_v39, 0.0  ;;  %v1171_v47 = vpop.f32.mrb[3].mxu0  ;;  %v1462_v51 = vmax.f32 %v1208_v42, 0.0  ;;  %v1212_v52 = vpop.f32.mrb[3].mxu1 }
 0x14a   : > { %v1461_v49 = vmax.f32 %v1169_v41, 0.0  ;;  %v1463_v53 = vmax.f32 %v1210_v45, 0.0 }
 0x14c   : > { %v1783_v54 = vpack.c.bf16 %v1461_v49, %v1460_v44  ;;  %v1784_v56 = vpack.c.bf16 %v1463_v53, %v1462_v51 }
 0x14e   : > { %v1516_v57 = vrot.slane %v1783_v54, %v2305_v50  ;;  %v1523_v58 = vrot.slane %v1784_v56, %v2305_v50 }
 0x150   : > { %v1524_v59 = vcombine.low %v1516_v57, %v1523_v58 }
 0x152   : > { %1580 = vst [vmem:[%s2312_s11] sm:$0xff] %v1524_v59 }
 0x162   : > { %v1248_v60 = vpop.f32.mrb[4].mxu0  ;;  %v1289_v62 = vpop.f32.mrb[4].mxu1 }
 0x163   : > { %v1249_v61 = vadd.f32 %v1248_v60, %v2299_v34  ;;  %v1250_v63 = vpop.f32.mrb[5].mxu0  ;;  %v1290_v0 = vadd.f32 %v1289_v62, %v2299_v34  ;;  %v1291_v2 = vpop.f32.mrb[5].mxu1 }
 0x164   : > { %v1251_v1 = vadd.f32 %v1250_v63, %v2299_v34  ;;  %v1252_v3 = vpop.f32.mrb[6].mxu0  ;;  %v1292_v5 = vadd.f32 %v1291_v2, %v2299_v34  ;;  %v1293_v6 = vpop.f32.mrb[6].mxu1 }
 0x165   : > { %v1464_v4 = vmax.f32 %v1249_v61, 0.0  ;;  %v1253_v7 = vpop.f32.mrb[7].mxu0  ;;  %v1466_v8 = vmax.f32 %v1290_v0, 0.0  ;;  %v1294_v9 = vpop.f32.mrb[7].mxu1 }
 0x166   : > { %v1465_v48 = vmax.f32 %v1251_v1, 0.0  ;;  %v1467_v10 = vmax.f32 %v1292_v5, 0.0 }
 0x168   : > { %v1785_v11 = vpack.c.bf16 %v1465_v48, %v1464_v4  ;;  %v1786_v12 = vpack.c.bf16 %v1467_v10, %v1466_v8 }
 0x16a   : > { %v1533_v13 = vrot.slane %v1785_v11, %v2305_v50  ;;  %v1540_v14 = vrot.slane %v1786_v12, %v2305_v50 }
 0x16c   : > { %v1541_v15 = vcombine.low %v1533_v13, %v1540_v14 }
 0x16e   : > { %1581 = vst [vmem:[%s2312_s11 + $0x8] sm:$0xff] %v1541_v15 }
 0x17e   : > { %v1330_v16 = vpop.f32.mrb[8].mxu0  ;;  %v1371_v18 = vpop.f32.mrb[8].mxu1 }
 0x17f   : > { %v1331_v17 = vadd.f32 %v1330_v16, %v2299_v34  ;;  %v1332_v19 = vpop.f32.mrb[9].mxu0  ;;  %v1372_v20 = vadd.f32 %v1371_v18, %v2299_v34  ;;  %v1373_v22 = vpop.f32.mrb[9].mxu1 }
 0x180   : > { %v1333_v21 = vadd.f32 %v1332_v19, %v2299_v34  ;;  %v1334_v23 = vpop.f32.mrb[10].mxu0  ;;  %v1374_v25 = vadd.f32 %v1373_v22, %v2299_v34  ;;  %v1375_v26 = vpop.f32.mrb[10].mxu1 }
 0x181   : > { %v1468_v24 = vmax.f32 %v1331_v17, 0.0  ;;  %v1335_v27 = vpop.f32.mrb[11].mxu0  ;;  %v1470_v28 = vmax.f32 %v1372_v20, 0.0  ;;  %v1376_v30 = vpop.f32.mrb[11].mxu1 }
 0x182   : > { %v1469_v29 = vmax.f32 %v1333_v21, 0.0  ;;  %v1471_v31 = vmax.f32 %v1374_v25, 0.0 }
 0x184   : > { %v1787_v32 = vpack.c.bf16 %v1469_v29, %v1468_v24  ;;  %v1788_v33 = vpack.c.bf16 %v1471_v31, %v1470_v28 }
 0x186   : > { %v1550_v35 = vrot.slane %v1787_v32, %v2305_v50  ;;  %v1557_v36 = vrot.slane %v1788_v33, %v2305_v50 }
 0x188   : > { %v1558_v37 = vcombine.low %v1550_v35, %v1557_v36 }
 0x18a   : > { %1582 = vst [vmem:[%s2312_s11 + $0x10] sm:$0xff] %v1558_v37 }
 0x19a   : > { %v1412_v38 = vpop.f32.mrb[12].mxu0  ;;  %v1453_v40 = vpop.f32.mrb[12].mxu1 }
 0x19b   : > { %v1413_v39 = vadd.f32 %v1412_v38, %v2299_v34  ;;  %v1414_v41 = vpop.f32.mrb[13].mxu0  ;;  %v1454_v42 = vadd.f32 %v1453_v40, %v2299_v34  ;;  %v1455_v43 = vpop.f32.mrb[13].mxu1 }
 0x19c   : > { %v1415_v55 = vadd.f32 %v1414_v41, %v2299_v34  ;;  %v1416_v44 = vpop.f32.mrb[14].mxu0  ;;  %v1456_v46 = vadd.f32 %v1455_v43, %v2299_v34  ;;  %v1457_v47 = vpop.f32.mrb[14].mxu1 }
 0x19d   : > { %v1472_v45 = vmax.f32 %v1413_v39, 0.0  ;;  %v1417_v49 = vpop.f32.mrb[15].mxu0  ;;  %v1474_v51 = vmax.f32 %v1454_v42, 0.0  ;;  %v1458_v53 = vpop.f32.mrb[15].mxu1 }
 0x19e   : > { %v1473_v52 = vmax.f32 %v1415_v55, 0.0  ;;  %v1475_v54 = vmax.f32 %v1456_v46, 0.0 }
 0x1a0   : > { %v1789_v56 = vpack.c.bf16 %v1473_v52, %v1472_v45  ;;  %v1790_v57 = vpack.c.bf16 %v1475_v54, %v1474_v51 }
 0x1a2   : > { %v1567_v58 = vrot.slane %v1789_v56, %v2305_v50  ;;  %v1574_v59 = vrot.slane %v1790_v57, %v2305_v50 }
 0x1a4   : > { %v1575_v60 = vcombine.low %v1567_v58, %v1574_v59 }
 0x1a6   : > { %1583 = vst [vmem:[%s2312_s11 + $0x18] sm:$0xff] %v1575_v60 }
 0x1a7 PF: > { %p10_p9 = scmp.ge.s32.totalorder %s1886_s16, 6   ;;  %s2350_s12 = smov %s1841_s13 }
 0x1a8   : > { %s2351_s13 = smov %s1895_s19  ;;  %s2352_s14 = smov %s1886_s16 }
 0x1a9   :  { %12 = sbr.rel (!%p10_p9) target bundleno = 2 (0x2), region = 90 }

</bundles_post_ra>
